<compile_context>
chip_gen: v7x
topology: tpu7x:2x2x1
jax: 0.10.0
libtpu: 0.0.40
codegen_flags: <defaults>
</compile_context>

<pallas_src>
import functools

import jax
import jax.numpy as jnp
from jax.experimental import pallas as pl
from jax.experimental.pallas import tpu as pltpu


# ----------------------------- tiling helpers ------------------------------

def _row_tile(m, target=512):
    """Largest row tile <= target that divides m and is a multiple of 8
    (or the full extent m when m is small / nothing divides)."""
    if m <= target:
        return m
    t = (target // 8) * 8
    while t >= 8:
        if m % t == 0:
            return t
        t -= 8
    return m


def _h_tile(h, w, target_rows=512):
    """Largest divisor th of h such that th * w <= target_rows (>= 1)."""
    best = 1
    for t in range(1, h + 1):
        if h % t == 0 and t * w <= target_rows:
            best = t
    return best


# ----------------------------- Pallas kernels ------------------------------

def _upconv_prelu_kernel(x0, x1, x2, x3, w0, w1, w2, w3, b_ref, a_ref, o_ref):
    """ConvTranspose2d(k=2, s=2) over 4 channel-concatenated inputs + PReLU.

    Channel concat fused as 4 accumulated matmuls.  Output columns are
    ordered (ky, kx, co); the 2x2 sub-pixel scatter happens in the wrapper.
    """
    acc = jnp.zeros(o_ref.shape, jnp.float32)
    for x_ref, w_ref in ((x0, w0), (x1, w1), (x2, w2), (x3, w3)):
        acc = acc + jnp.dot(x_ref[...].astype(jnp.bfloat16), w_ref[...],
                            preferred_element_type=jnp.float32)
    y = acc + b_ref[...]
    o_ref[...] = jnp.where(y > 0, y, a_ref[...] * y).astype(o_ref.dtype)


def _conv3x3_stats_kernel(xp_ref, w_ref, b_ref, y_ref, st_ref, *, th, w2, dil):
    """Dilated 3x3 conv (+bias) on a row band of one image + partial BN stats.

    xp_ref : (1, Hp, Wp, Ci)  whole zero-padded image of batch n; its block
             index depends only on n, so it stays resident in VMEM across
             the h grid axis (Pallas skips the repeated DMA).
    w_ref  : (3, 3, Ci, Co)   bf16 weights, resident.
    y_ref  : (1, th, W2, Co)  pre-BN conv output tile (f32).
    st_ref : (1, 1, 2, Co)    per-tile [sum, sum-of-squares] over rows.
    """
    # TODO(synk): for very large images switch to halo'd row blocks via manual
    # double-buffered DMA so the whole padded image need not fit in VMEM (v7x
    # has only 64 MiB).
    ci = xp_ref.shape[-1]
    co = w_ref.shape[-1]
    h0 = pl.multiple_of(pl.program_id(1) * th, th)

    acc = jnp.zeros((th * w2, co), jnp.float32)
    for ky in range(3):
        xrow = xp_ref[0, pl.ds(h0 + ky * dil, th), :, :]          # (th, Wp, Ci)
        for kx in range(3):
            xs = xrow[:, kx * dil:kx * dil + w2, :]               # (th, W2, Ci)
            xs = xs.reshape(th * w2, ci).astype(jnp.bfloat16)
            acc = acc + jnp.dot(xs, w_ref[ky, kx],
                                preferred_element_type=jnp.float32)
    y = acc + b_ref[...]                                          # (th*W2, Co)
    y_ref[...] = y.reshape(1, th, w2, co).astype(y_ref.dtype)
    # one-pass moments: sum and sum-of-squares (var = E[x^2] - E[x]^2 later)
    s = jnp.sum(y, axis=0, keepdims=True)
    ss = jnp.sum(y * y, axis=0, keepdims=True)
    st_ref[...] = jnp.concatenate([s, ss], axis=0).reshape(1, 1, 2, co)


def _bn_prelu_kernel(y_ref, sc_ref, sh_ref, a_ref, o_ref):
    """Apply folded BatchNorm (y*scale + shift) + per-channel PReLU."""
    z = y_ref[...].astype(jnp.float32) * sc_ref[...] + sh_ref[...]
    o_ref[...] = jnp.where(z > 0, z, a_ref[...] * z).astype(o_ref.dtype)


# ------------------------------- wrappers -----------------------------------

def _upconv_prelu(xs_nchw, w_iohw, bias, alpha, *, target_rows=512):
    """ConvTranspose2d(4*Cin, Cin, k=2, s=2) + PReLU over 4 NCHW inputs."""
    N, Cin, H, W = xs_nchw[0].shape
    C4 = 4 * Cin
    cols = 4 * Cin                         # (ky, kx, co) output columns
    M0 = N * H * W
    # layout glue: NCHW -> rows = (n,h,w), cols = channels
    flats = [jnp.transpose(a, (0, 2, 3, 1)).reshape(M0, Cin) for a in xs_nchw]
    # weight (C4, Cin, 2, 2) -> (C4, ky, kx, Cin) -> (C4, 4*Cin); split per input.
    wfull = jnp.transpose(w_iohw, (0, 2, 3, 1)).reshape(C4, cols)
    wchunks = [wfull[k * Cin:(k + 1) * Cin].astype(jnp.bfloat16) for k in range(4)]
    b2 = jnp.tile(bias, 4).reshape(1, cols).astype(jnp.float32)
    a2 = jnp.tile(alpha, 4).reshape(1, cols).astype(jnp.float32)

    tm = _row_tile(M0, target_rows)
    y = pl.pallas_call(
        _upconv_prelu_kernel,
        out_shape=jax.ShapeDtypeStruct((M0, cols), jnp.float32),
        grid=(M0 // tm,),
        in_specs=[pl.BlockSpec((tm, Cin), lambda i: (i, 0))] * 4
                + [pl.BlockSpec((Cin, cols), lambda i: (0, 0))] * 4
                + [pl.BlockSpec((1, cols), lambda i: (0, 0))] * 2,
        out_specs=pl.BlockSpec((tm, cols), lambda i: (i, 0)),
        compiler_params=pltpu.CompilerParams(
            dimension_semantics=("parallel",)),
    )(*flats, *wchunks, b2, a2)

    # TODO(synk): fold this 2x2 sub-pixel scatter into the output BlockSpec
    # (needs an in-kernel (W,ky)->row relayout); kept as XLA glue for now.
    y = y.reshape(N, H, W, 2, 2, Cin)
    y = jnp.transpose(y, (0, 1, 3, 2, 4, 5)).reshape(N, 2 * H, 2 * W, Cin)
    return y


def _conv3x3_phase_a(x_nhwc, w_oihw, bias, dilation, *, target_rows=512):
    """Conv2d(k=3, padding=dilation, dilation=dilation) + bias, plus per-tile
    BatchNorm partial statistics.  Returns (pre-BN output, partial stats)."""
    N, H2, W2, Ci = x_nhwc.shape
    Co = w_oihw.shape[0]
    d = dilation
    xp = jnp.pad(x_nhwc, ((0, 0), (d, d), (d, d), (0, 0)))
    Hp, Wp = H2 + 2 * d, W2 + 2 * d
    th = _h_tile(H2, W2, target_rows)
    hb = H2 // th
    wt = jnp.transpose(w_oihw, (2, 3, 1, 0)).astype(jnp.bfloat16)   # (3,3,Ci,Co)
    b2 = bias.reshape(1, Co).astype(jnp.float32)

    kern = functools.partial(_conv3x3_stats_kernel, th=th, w2=W2, dil=d)
    y, stats = pl.pallas_call(
        kern,
        out_shape=(jax.ShapeDtypeStruct((N, H2, W2, Co), jnp.float32),
                   jax.ShapeDtypeStruct((N, hb, 2, Co), jnp.float32)),
        grid=(N, hb),
        in_specs=[pl.BlockSpec((1, Hp, Wp, Ci), lambda n, h: (n, 0, 0, 0)),
                  pl.BlockSpec((3, 3, Ci, Co), lambda n, h: (0, 0, 0, 0)),
                  pl.BlockSpec((1, Co), lambda n, h: (0, 0))],
        out_specs=(pl.BlockSpec((1, th, W2, Co), lambda n, h: (n, h, 0, 0)),
                   pl.BlockSpec((1, 1, 2, Co), lambda n, h: (n, h, 0, 0))),
        compiler_params=pltpu.CompilerParams(
            dimension_semantics=("parallel", "parallel")),
    )(xp, wt, b2)
    return y, stats


def _bn_prelu_apply(y_nhwc, stats, gamma, beta, alpha, *, target_rows=512):
    """Finalize BatchNorm (train-mode batch stats) and apply BN + PReLU."""
    N, H2, W2, Co = y_nhwc.shape
    cnt = N * H2 * W2
    tot = jnp.sum(stats, axis=(0, 1))                      # (2, Co) tiny XLA op
    mean = tot[0] / cnt
    var = jnp.maximum(tot[1] / cnt - mean * mean, 0.0)     # biased variance
    inv = jax.lax.rsqrt(var + 1e-5)
    scale = (gamma * inv).reshape(1, Co).astype(jnp.float32)
    shift = (beta - mean * gamma * inv).reshape(1, Co).astype(jnp.float32)
    a2 = alpha.reshape(1, Co).astype(jnp.float32)

    M = cnt
    tm = _row_tile(M, target_rows)
    yf = y_nhwc.reshape(M, Co)                             # free reshape
    out = pl.pallas_call(
        _bn_prelu_kernel,
        out_shape=jax.ShapeDtypeStruct((M, Co), jnp.float32),
        grid=(M // tm,),
        in_specs=[pl.BlockSpec((tm, Co), lambda i: (i, 0)),
                  pl.BlockSpec((1, Co), lambda i: (0, 0)),
                  pl.BlockSpec((1, Co), lambda i: (0, 0)),
                  pl.BlockSpec((1, Co), lambda i: (0, 0))],
        out_specs=pl.BlockSpec((tm, Co), lambda i: (i, 0)),
        compiler_params=pltpu.CompilerParams(
            dimension_semantics=("parallel",)),
    )(yf, scale, shift, a2)
    return out.reshape(N, H2, W2, Co)


# ------------------------------ module glue ---------------------------------

def init_params(key, in_channels, out_channels):
    """Deterministic synthetic parameters matching the PyTorch __init__ shapes."""
    ks = jax.random.split(key, 6)
    c4 = 4 * in_channels
    p = {}
    # nn.ConvTranspose2d(4*in, in, kernel_size=2, stride=2)
    p["up_w"] = jax.random.normal(ks[0], (c4, in_channels, 2, 2), jnp.float32) * 0.1
    p["up_b"] = jax.random.normal(ks[1], (in_channels,), jnp.float32) * 0.1
    p["up_alpha"] = jnp.full((in_channels,), 0.25, jnp.float32)   # nn.PReLU default
    # DoubleConv conv1 / bn1 / prelu1
    p["c1_w"] = jax.random.normal(ks[2], (out_channels, in_channels, 3, 3), jnp.float32) * 0.1
    p["c1_b"] = jax.random.normal(ks[3], (out_channels,), jnp.float32) * 0.1
    p["bn1_g"] = jnp.ones((out_channels,), jnp.float32)
    p["bn1_b"] = jnp.zeros((out_channels,), jnp.float32)
    p["prelu1"] = jnp.full((out_channels,), 0.25, jnp.float32)
    # DoubleConv conv2 / bn2 / prelu2
    p["c2_w"] = jax.random.normal(ks[4], (out_channels, out_channels, 3, 3), jnp.float32) * 0.1
    p["c2_b"] = jax.random.normal(ks[5], (out_channels,), jnp.float32) * 0.1
    p["bn2_g"] = jnp.ones((out_channels,), jnp.float32)
    p["bn2_b"] = jnp.zeros((out_channels,), jnp.float32)
    p["prelu2"] = jnp.full((out_channels,), 0.25, jnp.float32)
    return p


def upconv_forward(params, x, xskip, yskip, xyskip, *, dilation):
    """UpConv.forward.  Inputs/outputs are NCHW like the PyTorch module."""
    if x.shape != xskip.shape:
        # F.pad(input=x, pad=(0, 1, 0, 1)): pad last (W) and second-to-last (H).
        x = jnp.pad(x, ((0, 0), (0, 0), (0, 1), (0, 1)))

    # ConvTranspose2d(4*Cin, Cin, k=2, s=2) + PReLU (concat fused in-kernel)
    y = _upconv_prelu((x, xskip, yskip, xyskip),
                      params["up_w"], params["up_b"], params["up_alpha"])

    # DoubleConv: (Conv3x3 dil + BN + PReLU) x 2, each as conv+stats / bn-apply
    y1, st1 = _conv3x3_phase_a(y, params["c1_w"], params["c1_b"], dilation)
    z1 = _bn_prelu_apply(y1, st1, params["bn1_g"], params["bn1_b"], params["prelu1"])
    y2, st2 = _conv3x3_phase_a(z1, params["c2_w"], params["c2_b"], dilation)
    z2 = _bn_prelu_apply(y2, st2, params["bn2_g"], params["bn2_b"], params["prelu2"])

    # TODO(synk): fold this NHWC->NCHW transpose into the last kernel's
    # output BlockSpec (needs an in-kernel transpose of the row tile).
    return jnp.transpose(z2, (0, 3, 1, 2))


# --------------------------------- driver -----------------------------------

if __name__ == "__main__":
    in_channels, out_channels, dilation = 4, 4, 2
    N, H, W = 2, 16, 16

    key = jax.random.PRNGKey(0)
    k0, k1, k2, k3, kp = jax.random.split(key, 5)
    x      = jax.random.normal(k0, (N, in_channels, H, W), jnp.float32)
    xskip  = jax.random.normal(k1, (N, in_channels, H, W), jnp.float32)
    yskip  = jax.random.normal(k2, (N, in_channels, H, W), jnp.float32)
    xyskip = jax.random.normal(k3, (N, in_channels, H, W), jnp.float32)
    params = init_params(kp, in_channels, out_channels)

    fwd = jax.jit(functools.partial(upconv_forward, dilation=dilation))
    out = fwd(params, x, xskip, yskip, xyskip)
    jax.block_until_ready(out)

    assert out.shape == (N, out_channels, 2 * H, 2 * W), out.shape
    assert out.dtype == jnp.float32
    print("KERNEL_OK")
</pallas_src>

<mosaic_0001>
module attributes {stable_mosaic.version = 11 : i64} {
  func.func @_upconv_prelu_kernel(%arg0: i32, %arg1: memref<512x4xf32, #tpu.memory_space<vmem>>, %arg2: memref<512x4xf32, #tpu.memory_space<vmem>>, %arg3: memref<512x4xf32, #tpu.memory_space<vmem>>, %arg4: memref<512x4xf32, #tpu.memory_space<vmem>>, %arg5: memref<4x16xbf16, #tpu.memory_space<vmem>>, %arg6: memref<4x16xbf16, #tpu.memory_space<vmem>>, %arg7: memref<4x16xbf16, #tpu.memory_space<vmem>>, %arg8: memref<4x16xbf16, #tpu.memory_space<vmem>>, %arg9: memref<1x16xf32, #tpu.memory_space<vmem>>, %arg10: memref<1x16xf32, #tpu.memory_space<vmem>>, %arg11: memref<512x16xf32, #tpu.memory_space<vmem>>) attributes {dimension_semantics = [#tpu.dimension_semantics<parallel>], iteration_bounds = array<i64: 1>, scalar_prefetch = 0 : i64, scratch_operands = 0 : i64, tpu.core_type = #tpu.core_type<tc>, window_params = [{transform_indices = @transform_0, window_bounds = array<i64: 512, 4>}, {transform_indices = @transform_1, window_bounds = array<i64: 512, 4>}, {transform_indices = @transform_2, window_bounds = array<i64: 512, 4>}, {transform_indices = @transform_3, window_bounds = array<i64: 512, 4>}, {pipeline_mode = #tpu.pipeline_mode<synchronous>, transform_indices = @transform_4, window_bounds = array<i64: 4, 16>}, {pipeline_mode = #tpu.pipeline_mode<synchronous>, transform_indices = @transform_5, window_bounds = array<i64: 4, 16>}, {pipeline_mode = #tpu.pipeline_mode<synchronous>, transform_indices = @transform_6, window_bounds = array<i64: 4, 16>}, {pipeline_mode = #tpu.pipeline_mode<synchronous>, transform_indices = @transform_7, window_bounds = array<i64: 4, 16>}, {pipeline_mode = #tpu.pipeline_mode<synchronous>, transform_indices = @transform_8, window_bounds = array<i64: 1, 16>}, {pipeline_mode = #tpu.pipeline_mode<synchronous>, transform_indices = @transform_9, window_bounds = array<i64: 1, 16>}, {transform_indices = @transform_10, window_bounds = array<i64: 512, 16>}]} {
    %cst = arith.constant 0.000000e+00 : f32
    %0 = vector.broadcast %cst : f32 to vector<512x16xf32>
    %c0 = arith.constant 0 : index
    %c0_0 = arith.constant 0 : index
    %1 = vector.load %arg1[%c0, %c0_0] : memref<512x4xf32, #tpu.memory_space<vmem>>, vector<512x4xf32>
    %2 = arith.truncf %1 : vector<512x4xf32> to vector<512x4xbf16>
    %c0_1 = arith.constant 0 : index
    %c0_2 = arith.constant 0 : index
    %3 = vector.load %arg5[%c0_1, %c0_2] : memref<4x16xbf16, #tpu.memory_space<vmem>>, vector<4x16xbf16>
    %cst_3 = arith.constant dense<0.000000e+00> : vector<512x16xf32>
    %4 = tpu.matmul %2, %3, %cst_3 {dimension_numbers = #tpu.dot_dimension_numbers<[1], [0], [0], [1], [0, 0, 1, 1], [], []>} : vector<512x4xbf16>, vector<4x16xbf16>, vector<512x16xf32> -> vector<512x16xf32>
    %5 = arith.addf %0, %4 : vector<512x16xf32>
    %c0_4 = arith.constant 0 : index
    %c0_5 = arith.constant 0 : index
    %6 = vector.load %arg2[%c0_4, %c0_5] : memref<512x4xf32, #tpu.memory_space<vmem>>, vector<512x4xf32>
    %7 = arith.truncf %6 : vector<512x4xf32> to vector<512x4xbf16>
    %c0_6 = arith.constant 0 : index
    %c0_7 = arith.constant 0 : index
    %8 = vector.load %arg6[%c0_6, %c0_7] : memref<4x16xbf16, #tpu.memory_space<vmem>>, vector<4x16xbf16>
    %cst_8 = arith.constant dense<0.000000e+00> : vector<512x16xf32>
    %9 = tpu.matmul %7, %8, %cst_8 {dimension_numbers = #tpu.dot_dimension_numbers<[1], [0], [0], [1], [0, 0, 1, 1], [], []>} : vector<512x4xbf16>, vector<4x16xbf16>, vector<512x16xf32> -> vector<512x16xf32>
    %10 = arith.addf %5, %9 : vector<512x16xf32>
    %c0_9 = arith.constant 0 : index
    %c0_10 = arith.constant 0 : index
    %11 = vector.load %arg3[%c0_9, %c0_10] : memref<512x4xf32, #tpu.memory_space<vmem>>, vector<512x4xf32>
    %12 = arith.truncf %11 : vector<512x4xf32> to vector<512x4xbf16>
    %c0_11 = arith.constant 0 : index
    %c0_12 = arith.constant 0 : index
    %13 = vector.load %arg7[%c0_11, %c0_12] : memref<4x16xbf16, #tpu.memory_space<vmem>>, vector<4x16xbf16>
    %cst_13 = arith.constant dense<0.000000e+00> : vector<512x16xf32>
    %14 = tpu.matmul %12, %13, %cst_13 {dimension_numbers = #tpu.dot_dimension_numbers<[1], [0], [0], [1], [0, 0, 1, 1], [], []>} : vector<512x4xbf16>, vector<4x16xbf16>, vector<512x16xf32> -> vector<512x16xf32>
    %15 = arith.addf %10, %14 : vector<512x16xf32>
    %c0_14 = arith.constant 0 : index
    %c0_15 = arith.constant 0 : index
    %16 = vector.load %arg4[%c0_14, %c0_15] : memref<512x4xf32, #tpu.memory_space<vmem>>, vector<512x4xf32>
    %17 = arith.truncf %16 : vector<512x4xf32> to vector<512x4xbf16>
    %c0_16 = arith.constant 0 : index
    %c0_17 = arith.constant 0 : index
    %18 = vector.load %arg8[%c0_16, %c0_17] : memref<4x16xbf16, #tpu.memory_space<vmem>>, vector<4x16xbf16>
    %cst_18 = arith.constant dense<0.000000e+00> : vector<512x16xf32>
    %19 = tpu.matmul %17, %18, %cst_18 {dimension_numbers = #tpu.dot_dimension_numbers<[1], [0], [0], [1], [0, 0, 1, 1], [], []>} : vector<512x4xbf16>, vector<4x16xbf16>, vector<512x16xf32> -> vector<512x16xf32>
    %20 = arith.addf %15, %19 : vector<512x16xf32>
    %c0_19 = arith.constant 0 : index
    %c0_20 = arith.constant 0 : index
    %21 = vector.load %arg9[%c0_19, %c0_20] : memref<1x16xf32, #tpu.memory_space<vmem>>, vector<1x16xf32>
    %22 = vector.broadcast %21 : vector<1x16xf32> to vector<512x16xf32>
    %23 = arith.addf %20, %22 : vector<512x16xf32>
    %cst_21 = arith.constant 0.000000e+00 : f32
    %24 = vector.broadcast %cst_21 : f32 to vector<512x16xf32>
    %25 = arith.cmpf ogt, %23, %24 : vector<512x16xf32>
    %c0_22 = arith.constant 0 : index
    %c0_23 = arith.constant 0 : index
    %26 = vector.load %arg10[%c0_22, %c0_23] : memref<1x16xf32, #tpu.memory_space<vmem>>, vector<1x16xf32>
    %27 = vector.broadcast %26 : vector<1x16xf32> to vector<512x16xf32>
    %28 = arith.mulf %27, %23 : vector<512x16xf32>
    %29 = arith.select %25, %23, %28 : vector<512x16xi1>, vector<512x16xf32>
    %c0_24 = arith.constant 0 : index
    %c0_25 = arith.constant 0 : index
    %30 = vector.load %arg11[%c0_24, %c0_25] : memref<512x16xf32, #tpu.memory_space<vmem>>, vector<512x16xf32>
    tpu.vector_store %arg11[%c0_24, %c0_25], %29 {strides = array<i32>} : memref<512x16xf32, #tpu.memory_space<vmem>>, vector<512x16xf32>,
    return
  }
  func.func @transform_0(%arg0: i32) -> (i32, i32) {
    %c0_i32 = arith.constant 0 : i32
    %c0_i32_0 = arith.constant 0 : i32
    return %arg0, %c0_i32 : i32, i32
  }
  func.func @transform_1(%arg0: i32) -> (i32, i32) {
    %c0_i32 = arith.constant 0 : i32
    %c0_i32_0 = arith.constant 0 : i32
    return %arg0, %c0_i32 : i32, i32
  }
  func.func @transform_2(%arg0: i32) -> (i32, i32) {
    %c0_i32 = arith.constant 0 : i32
    %c0_i32_0 = arith.constant 0 : i32
    return %arg0, %c0_i32 : i32, i32
  }
  func.func @transform_3(%arg0: i32) -> (i32, i32) {
    %c0_i32 = arith.constant 0 : i32
    %c0_i32_0 = arith.constant 0 : i32
    return %arg0, %c0_i32 : i32, i32
  }
  func.func @transform_4(%arg0: i32) -> (i32, i32) {
    %c0_i32 = arith.constant 0 : i32
    %c0_i32_0 = arith.constant 0 : i32
    %c0_i32_1 = arith.constant 0 : i32
    return %c0_i32, %c0_i32_0 : i32, i32
  }
  func.func @transform_5(%arg0: i32) -> (i32, i32) {
    %c0_i32 = arith.constant 0 : i32
    %c0_i32_0 = arith.constant 0 : i32
    %c0_i32_1 = arith.constant 0 : i32
    return %c0_i32, %c0_i32_0 : i32, i32
  }
  func.func @transform_6(%arg0: i32) -> (i32, i32) {
    %c0_i32 = arith.constant 0 : i32
    %c0_i32_0 = arith.constant 0 : i32
    %c0_i32_1 = arith.constant 0 : i32
    return %c0_i32, %c0_i32_0 : i32, i32
  }
  func.func @transform_7(%arg0: i32) -> (i32, i32) {
    %c0_i32 = arith.constant 0 : i32
    %c0_i32_0 = arith.constant 0 : i32
    %c0_i32_1 = arith.constant 0 : i32
    return %c0_i32, %c0_i32_0 : i32, i32
  }
  func.func @transform_8(%arg0: i32) -> (i32, i32) {
    %c0_i32 = arith.constant 0 : i32
    %c0_i32_0 = arith.constant 0 : i32
    %c0_i32_1 = arith.constant 0 : i32
    return %c0_i32, %c0_i32_0 : i32, i32
  }
  func.func @transform_9(%arg0: i32) -> (i32, i32) {
    %c0_i32 = arith.constant 0 : i32
    %c0_i32_0 = arith.constant 0 : i32
    %c0_i32_1 = arith.constant 0 : i32
    return %c0_i32, %c0_i32_0 : i32, i32
  }
  func.func @transform_10(%arg0: i32) -> (i32, i32) {
    %c0_i32 = arith.constant 0 : i32
    %c0_i32_0 = arith.constant 0 : i32
    return %arg0, %c0_i32 : i32, i32
  }
}

module attributes {stable_mosaic.version = 11 : i64} {
  func.func @_conv3x3_stats_kernel(%arg0: i32, %arg1: i32, %arg2: memref<1x36x36x4xf32, #tpu.memory_space<vmem>>, %arg3: memref<3x3x4x4xbf16, #tpu.memory_space<vmem>>, %arg4: memref<1x4xf32, #tpu.memory_space<vmem>>, %arg5: memref<1x16x32x4xf32, #tpu.memory_space<vmem>>, %arg6: memref<1x1x2x4xf32, #tpu.memory_space<vmem>>) attributes {dimension_semantics = [#tpu.dimension_semantics<parallel>, #tpu.dimension_semantics<parallel>], iteration_bounds = array<i64: 2, 2>, scalar_prefetch = 0 : i64, scratch_operands = 0 : i64, tpu.core_type = #tpu.core_type<tc>, window_params = [{transform_indices = @transform_0, window_bounds = array<i64: 1, 36, 36, 4>}, {pipeline_mode = #tpu.pipeline_mode<synchronous>, transform_indices = @transform_1, window_bounds = array<i64: 3, 3, 4, 4>}, {pipeline_mode = #tpu.pipeline_mode<synchronous>, transform_indices = @transform_2, window_bounds = array<i64: 1, 4>}, {transform_indices = @transform_3, window_bounds = array<i64: 1, 16, 32, 4>}, {transform_indices = @transform_4, window_bounds = array<i64: 1, 1, 2, 4>}]} {
    %c16_i32 = arith.constant 16 : i32
    %0 = arith.muli %arg1, %c16_i32 : i32
    %1 = tpu.assume_multiple %0, 16 : i32
    %cst = arith.constant 0.000000e+00 : f32
    %2 = vector.broadcast %cst : f32 to vector<512x4xf32>
    %c0_i32 = arith.constant 0 : i32
    %3 = arith.addi %1, %c0_i32 : i32
    %c0 = arith.constant 0 : index
    %4 = arith.index_cast %3 : i32 to index
    %c0_0 = arith.constant 0 : index
    %c0_1 = arith.constant 0 : index
    %5 = vector.load %arg2[%c0, %4, %c0_0, %c0_1] : memref<1x36x36x4xf32, #tpu.memory_space<vmem>>, vector<1x16x36x4xf32>
    %6 = vector.shape_cast %5 : vector<1x16x36x4xf32> to vector<16x36x4xf32>
    %7 = vector.extract_strided_slice %6 {offsets = [0, 0, 0], sizes = [16, 32, 4], strides = [1, 1, 1]} : vector<16x36x4xf32> to vector<16x32x4xf32>
    %8 = vector.shape_cast %7 : vector<16x32x4xf32> to vector<512x4xf32>
    %9 = arith.truncf %8 : vector<512x4xf32> to vector<512x4xbf16>
    %c0_2 = arith.constant 0 : index
    %c0_3 = arith.constant 0 : index
    %c0_4 = arith.constant 0 : index
    %c0_5 = arith.constant 0 : index
    %10 = vector.load %arg3[%c0_2, %c0_3, %c0_4, %c0_5] : memref<3x3x4x4xbf16, #tpu.memory_space<vmem>>, vector<1x1x4x4xbf16>
    %11 = vector.shape_cast %10 : vector<1x1x4x4xbf16> to vector<4x4xbf16>
    %cst_6 = arith.constant dense<0.000000e+00> : vector<512x4xf32>
    %12 = tpu.matmul %9, %11, %cst_6 {dimension_numbers = #tpu.dot_dimension_numbers<[1], [0], [0], [1], [0, 0, 1, 1], [], []>} : vector<512x4xbf16>, vector<4x4xbf16>, vector<512x4xf32> -> vector<512x4xf32>
    %13 = arith.addf %2, %12 : vector<512x4xf32>
    %14 = vector.extract_strided_slice %6 {offsets = [0, 2, 0], sizes = [16, 32, 4], strides = [1, 1, 1]} : vector<16x36x4xf32> to vector<16x32x4xf32>
    %15 = vector.shape_cast %14 : vector<16x32x4xf32> to vector<512x4xf32>
    %16 = arith.truncf %15 : vector<512x4xf32> to vector<512x4xbf16>
    %c0_7 = arith.constant 0 : index
    %c1 = arith.constant 1 : index
    %c0_8 = arith.constant 0 : index
    %c0_9 = arith.constant 0 : index
    %17 = vector.load %arg3[%c0_7, %c1, %c0_8, %c0_9] : memref<3x3x4x4xbf16, #tpu.memory_space<vmem>>, vector<1x1x4x4xbf16>
    %18 = vector.shape_cast %17 : vector<1x1x4x4xbf16> to vector<4x4xbf16>
    %cst_10 = arith.constant dense<0.000000e+00> : vector<512x4xf32>
    %19 = tpu.matmul %16, %18, %cst_10 {dimension_numbers = #tpu.dot_dimension_numbers<[1], [0], [0], [1], [0, 0, 1, 1], [], []>} : vector<512x4xbf16>, vector<4x4xbf16>, vector<512x4xf32> -> vector<512x4xf32>
    %20 = arith.addf %13, %19 : vector<512x4xf32>
    %21 = vector.extract_strided_slice %6 {offsets = [0, 4, 0], sizes = [16, 32, 4], strides = [1, 1, 1]} : vector<16x36x4xf32> to vector<16x32x4xf32>
    %22 = vector.shape_cast %21 : vector<16x32x4xf32> to vector<512x4xf32>
    %23 = arith.truncf %22 : vector<512x4xf32> to vector<512x4xbf16>
    %c0_11 = arith.constant 0 : index
    %c2 = arith.constant 2 : index
    %c0_12 = arith.constant 0 : index
    %c0_13 = arith.constant 0 : index
    %24 = vector.load %arg3[%c0_11, %c2, %c0_12, %c0_13] : memref<3x3x4x4xbf16, #tpu.memory_space<vmem>>, vector<1x1x4x4xbf16>
    %25 = vector.shape_cast %24 : vector<1x1x4x4xbf16> to vector<4x4xbf16>
    %cst_14 = arith.constant dense<0.000000e+00> : vector<512x4xf32>
    %26 = tpu.matmul %23, %25, %cst_14 {dimension_numbers = #tpu.dot_dimension_numbers<[1], [0], [0], [1], [0, 0, 1, 1], [], []>} : vector<512x4xbf16>, vector<4x4xbf16>, vector<512x4xf32> -> vector<512x4xf32>
    %27 = arith.addf %20, %26 : vector<512x4xf32>
    %c2_i32 = arith.constant 2 : i32
    %28 = arith.addi %1, %c2_i32 : i32
    %c0_15 = arith.constant 0 : index
    %29 = arith.index_cast %28 : i32 to index
    %c0_16 = arith.constant 0 : index
    %c0_17 = arith.constant 0 : index
    %30 = vector.load %arg2[%c0_15, %29, %c0_16, %c0_17] : memref<1x36x36x4xf32, #tpu.memory_space<vmem>>, vector<1x16x36x4xf32>
    %31 = vector.shape_cast %30 : vector<1x16x36x4xf32> to vector<16x36x4xf32>
    %32 = vector.extract_strided_slice %31 {offsets = [0, 0, 0], sizes = [16, 32, 4], strides = [1, 1, 1]} : vector<16x36x4xf32> to vector<16x32x4xf32>
    %33 = vector.shape_cast %32 : vector<16x32x4xf32> to vector<512x4xf32>
    %34 = arith.truncf %33 : vector<512x4xf32> to vector<512x4xbf16>
    %c1_18 = arith.constant 1 : index
    %c0_19 = arith.constant 0 : index
    %c0_20 = arith.constant 0 : index
    %c0_21 = arith.constant 0 : index
    %35 = vector.load %arg3[%c1_18, %c0_19, %c0_20, %c0_21] : memref<3x3x4x4xbf16, #tpu.memory_space<vmem>>, vector<1x1x4x4xbf16>
    %36 = vector.shape_cast %35 : vector<1x1x4x4xbf16> to vector<4x4xbf16>
    %cst_22 = arith.constant dense<0.000000e+00> : vector<512x4xf32>
    %37 = tpu.matmul %34, %36, %cst_22 {dimension_numbers = #tpu.dot_dimension_numbers<[1], [0], [0], [1], [0, 0, 1, 1], [], []>} : vector<512x4xbf16>, vector<4x4xbf16>, vector<512x4xf32> -> vector<512x4xf32>
    %38 = arith.addf %27, %37 : vector<512x4xf32>
    %39 = vector.extract_strided_slice %31 {offsets = [0, 2, 0], sizes = [16, 32, 4], strides = [1, 1, 1]} : vector<16x36x4xf32> to vector<16x32x4xf32>
    %40 = vector.shape_cast %39 : vector<16x32x4xf32> to vector<512x4xf32>
    %41 = arith.truncf %40 : vector<512x4xf32> to vector<512x4xbf16>
    %c1_23 = arith.constant 1 : index
    %c1_24 = arith.constant 1 : index
    %c0_25 = arith.constant 0 : index
    %c0_26 = arith.constant 0 : index
    %42 = vector.load %arg3[%c1_23, %c1_24, %c0_25, %c0_26] : memref<3x3x4x4xbf16, #tpu.memory_space<vmem>>, vector<1x1x4x4xbf16>
    %43 = vector.shape_cast %42 : vector<1x1x4x4xbf16> to vector<4x4xbf16>
    %cst_27 = arith.constant dense<0.000000e+00> : vector<512x4xf32>
    %44 = tpu.matmul %41, %43, %cst_27 {dimension_numbers = #tpu.dot_dimension_numbers<[1], [0], [0], [1], [0, 0, 1, 1], [], []>} : vector<512x4xbf16>, vector<4x4xbf16>, vector<512x4xf32> -> vector<512x4xf32>
    %45 = arith.addf %38, %44 : vector<512x4xf32>
    %46 = vector.extract_strided_slice %31 {offsets = [0, 4, 0], sizes = [16, 32, 4], strides = [1, 1, 1]} : vector<16x36x4xf32> to vector<16x32x4xf32>
    %47 = vector.shape_cast %46 : vector<16x32x4xf32> to vector<512x4xf32>
    %48 = arith.truncf %47 : vector<512x4xf32> to vector<512x4xbf16>
    %c1_28 = arith.constant 1 : index
    %c2_29 = arith.constant 2 : index
    %c0_30 = arith.constant 0 : index
    %c0_31 = arith.constant 0 : index
    %49 = vector.load %arg3[%c1_28, %c2_29, %c0_30, %c0_31] : memref<3x3x4x4xbf16, #tpu.memory_space<vmem>>, vector<1x1x4x4xbf16>
    %50 = vector.shape_cast %49 : vector<1x1x4x4xbf16> to vector<4x4xbf16>
    %cst_32 = arith.constant dense<0.000000e+00> : vector<512x4xf32>
    %51 = tpu.matmul %48, %50, %cst_32 {dimension_numbers = #tpu.dot_dimension_numbers<[1], [0], [0], [1], [0, 0, 1, 1], [], []>} : vector<512x4xbf16>, vector<4x4xbf16>, vector<512x4xf32> -> vector<512x4xf32>
    %52 = arith.addf %45, %51 : vector<512x4xf32>
    %c4_i32 = arith.constant 4 : i32
    %53 = arith.addi %1, %c4_i32 : i32
    %c0_33 = arith.constant 0 : index
    %54 = arith.index_cast %53 : i32 to index
    %c0_34 = arith.constant 0 : index
    %c0_35 = arith.constant 0 : index
    %55 = vector.load %arg2[%c0_33, %54, %c0_34, %c0_35] : memref<1x36x36x4xf32, #tpu.memory_space<vmem>>, vector<1x16x36x4xf32>
    %56 = vector.shape_cast %55 : vector<1x16x36x4xf32> to vector<16x36x4xf32>
    %57 = vector.extract_strided_slice %56 {offsets = [0, 0, 0], sizes = [16, 32, 4], strides = [1, 1, 1]} : vector<16x36x4xf32> to vector<16x32x4xf32>
    %58 = vector.shape_cast %57 : vector<16x32x4xf32> to vector<512x4xf32>
    %59 = arith.truncf %58 : vector<512x4xf32> to vector<512x4xbf16>
    %c2_36 = arith.constant 2 : index
    %c0_37 = arith.constant 0 : index
    %c0_38 = arith.constant 0 : index
    %c0_39 = arith.constant 0 : index
    %60 = vector.load %arg3[%c2_36, %c0_37, %c0_38, %c0_39] : memref<3x3x4x4xbf16, #tpu.memory_space<vmem>>, vector<1x1x4x4xbf16>
    %61 = vector.shape_cast %60 : vector<1x1x4x4xbf16> to vector<4x4xbf16>
    %cst_40 = arith.constant dense<0.000000e+00> : vector<512x4xf32>
    %62 = tpu.matmul %59, %61, %cst_40 {dimension_numbers = #tpu.dot_dimension_numbers<[1], [0], [0], [1], [0, 0, 1, 1], [], []>} : vector<512x4xbf16>, vector<4x4xbf16>, vector<512x4xf32> -> vector<512x4xf32>
    %63 = arith.addf %52, %62 : vector<512x4xf32>
    %64 = vector.extract_strided_slice %56 {offsets = [0, 2, 0], sizes = [16, 32, 4], strides = [1, 1, 1]} : vector<16x36x4xf32> to vector<16x32x4xf32>
    %65 = vector.shape_cast %64 : vector<16x32x4xf32> to vector<512x4xf32>
    %66 = arith.truncf %65 : vector<512x4xf32> to vector<512x4xbf16>
    %c2_41 = arith.constant 2 : index
    %c1_42 = arith.constant 1 : index
    %c0_43 = arith.constant 0 : index
    %c0_44 = arith.constant 0 : index
    %67 = vector.load %arg3[%c2_41, %c1_42, %c0_43, %c0_44] : memref<3x3x4x4xbf16, #tpu.memory_space<vmem>>, vector<1x1x4x4xbf16>
    %68 = vector.shape_cast %67 : vector<1x1x4x4xbf16> to vector<4x4xbf16>
    %cst_45 = arith.constant dense<0.000000e+00> : vector<512x4xf32>
    %69 = tpu.matmul %66, %68, %cst_45 {dimension_numbers = #tpu.dot_dimension_numbers<[1], [0], [0], [1], [0, 0, 1, 1], [], []>} : vector<512x4xbf16>, vector<4x4xbf16>, vector<512x4xf32> -> vector<512x4xf32>
    %70 = arith.addf %63, %69 : vector<512x4xf32>
    %71 = vector.extract_strided_slice %56 {offsets = [0, 4, 0], sizes = [16, 32, 4], strides = [1, 1, 1]} : vector<16x36x4xf32> to vector<16x32x4xf32>
    %72 = vector.shape_cast %71 : vector<16x32x4xf32> to vector<512x4xf32>
    %73 = arith.truncf %72 : vector<512x4xf32> to vector<512x4xbf16>
    %c2_46 = arith.constant 2 : index
    %c2_47 = arith.constant 2 : index
    %c0_48 = arith.constant 0 : index
    %c0_49 = arith.constant 0 : index
    %74 = vector.load %arg3[%c2_46, %c2_47, %c0_48, %c0_49] : memref<3x3x4x4xbf16, #tpu.memory_space<vmem>>, vector<1x1x4x4xbf16>
    %75 = vector.shape_cast %74 : vector<1x1x4x4xbf16> to vector<4x4xbf16>
    %cst_50 = arith.constant dense<0.000000e+00> : vector<512x4xf32>
    %76 = tpu.matmul %73, %75, %cst_50 {dimension_numbers = #tpu.dot_dimension_numbers<[1], [0], [0], [1], [0, 0, 1, 1], [], []>} : vector<512x4xbf16>, vector<4x4xbf16>, vector<512x4xf32> -> vector<512x4xf32>
    %77 = arith.addf %70, %76 : vector<512x4xf32>
    %c0_51 = arith.constant 0 : index
    %c0_52 = arith.constant 0 : index
    %78 = vector.load %arg4[%c0_51, %c0_52] : memref<1x4xf32, #tpu.memory_space<vmem>>, vector<1x4xf32>
    %79 = vector.broadcast %78 : vector<1x4xf32> to vector<512x4xf32>
    %80 = arith.addf %77, %79 : vector<512x4xf32>
    %81 = vector.shape_cast %80 : vector<512x4xf32> to vector<1x16x32x4xf32>
    %c0_53 = arith.constant 0 : index
    %c0_54 = arith.constant 0 : index
    %c0_55 = arith.constant 0 : index
    %c0_56 = arith.constant 0 : index
    %82 = vector.load %arg5[%c0_53, %c0_54, %c0_55, %c0_56] : memref<1x16x32x4xf32, #tpu.memory_space<vmem>>, vector<1x16x32x4xf32>
    tpu.vector_store %arg5[%c0_53, %c0_54, %c0_55, %c0_56], %81 {strides = array<i32>} : memref<1x16x32x4xf32, #tpu.memory_space<vmem>>, vector<1x16x32x4xf32>,
    %cst_57 = arith.constant dense<0.000000e+00> : vector<4xf32>
    %83 = vector.multi_reduction <add>, %80, %cst_57 [0] : vector<512x4xf32> to vector<4xf32>
    %84 = vector.shape_cast %83 : vector<4xf32> to vector<1x4xf32>
    %85 = arith.mulf %80, %80 : vector<512x4xf32>
    %cst_58 = arith.constant dense<0.000000e+00> : vector<4xf32>
    %86 = vector.multi_reduction <add>, %85, %cst_58 [0] : vector<512x4xf32> to vector<4xf32>
    %87 = vector.shape_cast %86 : vector<4xf32> to vector<1x4xf32>
    %88 = tpu.concatenate %84, %87 in 0 : vector<1x4xf32>, vector<1x4xf32> -> vector<2x4xf32>
    %89 = vector.shape_cast %88 : vector<2x4xf32> to vector<1x1x2x4xf32>
    %c0_59 = arith.constant 0 : index
    %c0_60 = arith.constant 0 : index
    %c0_61 = arith.constant 0 : index
    %c0_62 = arith.constant 0 : index
    %90 = vector.load %arg6[%c0_59, %c0_60, %c0_61, %c0_62] : memref<1x1x2x4xf32, #tpu.memory_space<vmem>>, vector<1x1x2x4xf32>
    tpu.vector_store %arg6[%c0_59, %c0_60, %c0_61, %c0_62], %89 {strides = array<i32>} : memref<1x1x2x4xf32, #tpu.memory_space<vmem>>, vector<1x1x2x4xf32>,
    return
  }
  func.func @transform_0(%arg0: i32, %arg1: i32) -> (i32, i32, i32, i32) {
    %c0_i32 = arith.constant 0 : i32
    %c0_i32_0 = arith.constant 0 : i32
    %c0_i32_1 = arith.constant 0 : i32
    %c0_i32_2 = arith.constant 0 : i32
    return %arg0, %c0_i32, %c0_i32_0, %c0_i32_1 : i32, i32, i32, i32
  }
  func.func @transform_1(%arg0: i32, %arg1: i32) -> (i32, i32, i32, i32) {
    %c0_i32 = arith.constant 0 : i32
    %c0_i32_0 = arith.constant 0 : i32
    %c0_i32_1 = arith.constant 0 : i32
    %c0_i32_2 = arith.constant 0 : i32
    %c0_i32_3 = arith.constant 0 : i32
    return %c0_i32, %c0_i32_0, %c0_i32_1, %c0_i32_2 : i32, i32, i32, i32
  }
  func.func @transform_2(%arg0: i32, %arg1: i32) -> (i32, i32) {
    %c0_i32 = arith.constant 0 : i32
    %c0_i32_0 = arith.constant 0 : i32
    %c0_i32_1 = arith.constant 0 : i32
    return %c0_i32, %c0_i32_0 : i32, i32
  }
  func.func @transform_3(%arg0: i32, %arg1: i32) -> (i32, i32, i32, i32) {
    %c0_i32 = arith.constant 0 : i32
    %c0_i32_0 = arith.constant 0 : i32
    %c0_i32_1 = arith.constant 0 : i32
    return %arg0, %arg1, %c0_i32, %c0_i32_0 : i32, i32, i32, i32
  }
  func.func @transform_4(%arg0: i32, %arg1: i32) -> (i32, i32, i32, i32) {
    %c0_i32 = arith.constant 0 : i32
    %c0_i32_0 = arith.constant 0 : i32
    %c0_i32_1 = arith.constant 0 : i32
    return %arg0, %arg1, %c0_i32, %c0_i32_0 : i32, i32, i32, i32
  }
}

module attributes {stable_mosaic.version = 11 : i64} {
  func.func @_bn_prelu_kernel(%arg0: i32, %arg1: memref<512x4xf32, #tpu.memory_space<vmem>>, %arg2: memref<1x4xf32, #tpu.memory_space<vmem>>, %arg3: memref<1x4xf32, #tpu.memory_space<vmem>>, %arg4: memref<1x4xf32, #tpu.memory_space<vmem>>, %arg5: memref<512x4xf32, #tpu.memory_space<vmem>>) attributes {dimension_semantics = [#tpu.dimension_semantics<parallel>], iteration_bounds = array<i64: 4>, scalar_prefetch = 0 : i64, scratch_operands = 0 : i64, tpu.core_type = #tpu.core_type<tc>, window_params = [{transform_indices = @transform_0, window_bounds = array<i64: 512, 4>}, {pipeline_mode = #tpu.pipeline_mode<synchronous>, transform_indices = @transform_1, window_bounds = array<i64: 1, 4>}, {pipeline_mode = #tpu.pipeline_mode<synchronous>, transform_indices = @transform_2, window_bounds = array<i64: 1, 4>}, {pipeline_mode = #tpu.pipeline_mode<synchronous>, transform_indices = @transform_3, window_bounds = array<i64: 1, 4>}, {transform_indices = @transform_4, window_bounds = array<i64: 512, 4>}]} {
    %c0 = arith.constant 0 : index
    %c0_0 = arith.constant 0 : index
    %0 = vector.load %arg1[%c0, %c0_0] : memref<512x4xf32, #tpu.memory_space<vmem>>, vector<512x4xf32>
    %c0_1 = arith.constant 0 : index
    %c0_2 = arith.constant 0 : index
    %1 = vector.load %arg2[%c0_1, %c0_2] : memref<1x4xf32, #tpu.memory_space<vmem>>, vector<1x4xf32>
    %2 = vector.broadcast %1 : vector<1x4xf32> to vector<512x4xf32>
    %3 = arith.mulf %0, %2 : vector<512x4xf32>
    %c0_3 = arith.constant 0 : index
    %c0_4 = arith.constant 0 : index
    %4 = vector.load %arg3[%c0_3, %c0_4] : memref<1x4xf32, #tpu.memory_space<vmem>>, vector<1x4xf32>
    %5 = vector.broadcast %4 : vector<1x4xf32> to vector<512x4xf32>
    %6 = arith.addf %3, %5 : vector<512x4xf32>
    %cst = arith.constant 0.000000e+00 : f32
    %7 = vector.broadcast %cst : f32 to vector<512x4xf32>
    %8 = arith.cmpf ogt, %6, %7 : vector<512x4xf32>
    %c0_5 = arith.constant 0 : index
    %c0_6 = arith.constant 0 : index
    %9 = vector.load %arg4[%c0_5, %c0_6] : memref<1x4xf32, #tpu.memory_space<vmem>>, vector<1x4xf32>
    %10 = vector.broadcast %9 : vector<1x4xf32> to vector<512x4xf32>
    %11 = arith.mulf %10, %6 : vector<512x4xf32>
    %12 = arith.select %8, %6, %11 : vector<512x4xi1>, vector<512x4xf32>
    %c0_7 = arith.constant 0 : index
    %c0_8 = arith.constant 0 : index
    %13 = vector.load %arg5[%c0_7, %c0_8] : memref<512x4xf32, #tpu.memory_space<vmem>>, vector<512x4xf32>
    tpu.vector_store %arg5[%c0_7, %c0_8], %12 {strides = array<i32>} : memref<512x4xf32, #tpu.memory_space<vmem>>, vector<512x4xf32>,
    return
  }
  func.func @transform_0(%arg0: i32) -> (i32, i32) {
    %c0_i32 = arith.constant 0 : i32
    %c0_i32_0 = arith.constant 0 : i32
    return %arg0, %c0_i32 : i32, i32
  }
  func.func @transform_1(%arg0: i32) -> (i32, i32) {
    %c0_i32 = arith.constant 0 : i32
    %c0_i32_0 = arith.constant 0 : i32
    %c0_i32_1 = arith.constant 0 : i32
    return %c0_i32, %c0_i32_0 : i32, i32
  }
  func.func @transform_2(%arg0: i32) -> (i32, i32) {
    %c0_i32 = arith.constant 0 : i32
    %c0_i32_0 = arith.constant 0 : i32
    %c0_i32_1 = arith.constant 0 : i32
    return %c0_i32, %c0_i32_0 : i32, i32
  }
  func.func @transform_3(%arg0: i32) -> (i32, i32) {
    %c0_i32 = arith.constant 0 : i32
    %c0_i32_0 = arith.constant 0 : i32
    %c0_i32_1 = arith.constant 0 : i32
    return %c0_i32, %c0_i32_0 : i32, i32
  }
  func.func @transform_4(%arg0: i32) -> (i32, i32) {
    %c0_i32 = arith.constant 0 : i32
    %c0_i32_0 = arith.constant 0 : i32
    return %arg0, %c0_i32 : i32, i32
  }
}

</mosaic_0001>

<bundles_post_ra>
// kernel: tile.13
= control target key start
LH: loop header
LB: loop body
LE: loop exit
PB: predicated region body
PF: predicated region fallthrough
CT: control target
= control target key end

     0   :  { %2 = vsyncpa [#allocation1], 0  ;;  %s44_s6 = smov [#allocation0]   ;;  %s70_s0 = inlined_call_operand.hbm [shape: f32[4], index: 0, kind: input, shape index: {}]   ;;  %s71_s1 = inlined_call_operand.vmem [shape: f32[4,4], index: 1, kind: output, shape index: {}]  }
   0x1   :  { %s9_s7 = sshll.u32 %s44_s6, 4  ;;  %s20_s10 = scalar_lea.hbm %s70_s0, 16  ;;  %s10_s7 = int_to_ptr.vmem [resolvable:$true] %s9_s7 }
   0x2   :  { %p21_p0 = scmp.ne.s32.totalorder %s70_s0, %s20_s10  ;;  %p24_p1 = scmp.lt.u32.totalorder %s20_s10, %s70_s0 }
   0x4   :  { %p26_p2 = pnand %p24_p1, %p21_p0 }
   0x6   :  { %29 = shalt.err (!%p26_p2)
}
   0x7   :  { %s30_s15 = scalar_lea.vmem %s10_s7, 16  ;;  %s34_s16 = scalar_lea.vmem %s10_s7, 32 }
   0x8   :  { %p31_p3 = scmp.ne.s32.totalorder %s10_s7, %s30_s15  ;;  %p35_p4 = scmp.lt.s32.totalorder %s10_s7, %s10_s7 }
   0x9   :  { %p36_p5 = scmp.lt.s32.totalorder %s34_s16, %s30_s15 }
   0xb   :  { %p37_p6 = por %p36_p5, %p35_p4 }
   0xd   :  { %p38_p7 = pnand %p37_p6, %p31_p3 }
   0xf   :  { %41 = shalt.err (!%p38_p7)
}
  0x10   :  { %12 = dma.hbm_to_vmem [thread:$0]  %s70_s0, 16, %s10_s7, [#allocation1]  }
  0x11   :  { %42 = dma.done.wait [#allocation1], 16  }
  0x12   :  { %43 = vsyncadd [#allocation1], 4294967280  ;;  %v16_v0 = vld [vmem:[#allocation0] ss:$0 sm:$0xff] }
  0x13   :  { %17 = vst [vmem:[%s71_s1] sm:$0xf] %v16_v0 }
  0x14   :  { %18 = vsyncpa [#allocation1], 1 }

// kernel: tile.14
= control target key start
LH: loop header
LB: loop body
LE: loop exit
PB: predicated region body
PF: predicated region fallthrough
CT: control target
= control target key end

     0   :  { %vm7_vm0 = vcmask 31744   ;;  %s37_s8 = smov 4   ;;  %s38_s9 = smov 8   ;;  %vm13_vm1 = vcmask 130144   ;;  %vm19_vm2 = vcmask 97344   ;;  %vm25_vm3 = vcmask 64544   ;;  %s55_s0 = inlined_call_operand.vmem [shape: f32[4,4], index: 0, kind: input, shape index: {}]   ;;  %s56_s1 = inlined_call_operand.vmem [shape: f32[1,16], index: 1, kind: output, shape index: {}]  }
   0x1   :  { %v4_v0 = vld [vmem:[%s55_s0] sm:$0xf]  ;;  %s36_s0 = smov 12  }
   0x2   :  { %5 = vst [vmem:[#allocation1] sm:$0xf] %v4_v0 }
   0x9   :  { %v10_v1 = vld [vmem:[#allocation1 + $0x3] sm:$0x1]   ;;  %v22_v2 = vld [vmem:[#allocation1 + $0x1] sm:$0x1]   ;;  %v6_v3 = vld [vmem:[#allocation1] sm:$0x1]  }
   0xa   :  { %11 = vrot.lane.b32.xlu0 %v10_v1, %s36_s0  ;;  %23 = vrot.lane.b32.xlu1 %v22_v2, %s37_s8  ;;  %v16_v4 = vld [vmem:[#allocation1 + $0x2] sm:$0x1]   ;;  %8 = vst.msk [vmem:[#allocation0] sm:$0x1] %vm7_vm0, %v6_v3  }
   0xe   :  { %17 = vrot.lane.b32.xlu0 %v16_v4, %s38_s9 }
  0x7c   :  { %v12_v5 = vpop.permute.xlu0 %11   ;;  %v24_v6 = vpop.permute.xlu1 %23  }
  0x7d   :  { %14 = vst.msk [vmem:[#allocation0] sm:$0x1] %vm13_vm1, %v12_v5  }
  0x80   :  { %v18_v7 = vpop.permute.xlu0 %17  }
  0x81   :  { %20 = vst.msk [vmem:[#allocation0] sm:$0x1] %vm19_vm2, %v18_v7  }
  0x82   :  { %26 = vst.msk [vmem:[#allocation0] sm:$0x1] %vm25_vm3, %v24_v6  }
  0x89   :  { %v30_v8 = vld [vmem:[#allocation0] sm:$0x1] }
  0x8a   :  { %32 = vst [vmem:[%s56_s1] sm:$0x1] %v30_v8 }

// kernel: upconv_forward.5
= control target key start
LH: loop header
LB: loop body
LE: loop exit
PB: predicated region body
PF: predicated region fallthrough
CT: control target
= control target key end

     0   :  { %vm327_vm0 = vcmask 1041408   ;;  %vm230_vm1 = vcmask 31744   ;;  %vm2376_vm3 = vcmask 130048   ;;  %s4532_s5 = inlined_call_operand.vmem [shape: bf16[4,16], index: 5, kind: input, shape index: {}]   ;;  %s4533_s6 = inlined_call_operand.vmem [shape: bf16[4,16], index: 6, kind: input, shape index: {}]   ;;  %s4534_s1 = inlined_call_operand.vmem [shape: f32[512,4], index: 1, kind: input, shape index: {}]   ;;  %s4535_s2 = inlined_call_operand.vmem [shape: f32[512,4], index: 2, kind: input, shape index: {}]   ;;  %s4536_s4 = inlined_call_operand.vmem [shape: bf16[4,16], index: 4, kind: input, shape index: {}]   ;;  %s4537_s7 = inlined_call_operand.vmem [shape: bf16[4,16], index: 7, kind: input, shape index: {}]   ;;  %s4538_s0 = inlined_call_operand.vmem [shape: f32[512,4], index: 0, kind: input, shape index: {}]   ;;  %s4539_s3 = inlined_call_operand.vmem [shape: f32[512,4], index: 3, kind: input, shape index: {}]   ;;  %s4540_s8 = inlined_call_operand.vmem [shape: f32[1,16], index: 8, kind: input, shape index: {}]   ;;  %s4541_s9 = inlined_call_operand.vmem [shape: f32[1,16], index: 9, kind: input, shape index: {}]   ;;  %s4542_s10 = inlined_call_operand.vmem [shape: f32[512,16], index: 10, kind: output, shape index: {}]  }
   0x1   :  { %v229_v0 = vld [vmem:[%s4532_s5] sm:$0x3]  ;;  %v134_v5 = vld [vmem:[%s4534_s1 + $0x8] sm:$0xff]  ;;  %v135_v10 = vld [vmem:[%s4534_s1 + $0x10] sm:$0xff] }
   0x2   :  { %v1104_v1 = vld [vmem:[%s4533_s6] sm:$0x3]  ;;  %3163 = vmatprep.subr.msk.bf16.mxu1 %vm327_vm0, %v229_v0  ;;  %v329_v3 = vsel %vm327_vm0, %v229_v0, 0  ;;  %v1009_v7 = vld [vmem:[%s4535_s2 + $0x8] sm:$0xff]  ;;  %v136_v11 = vld [vmem:[%s4534_s1 + $0x18] sm:$0xff] }
   0x3   :  { %v133_v2 = vld [vmem:[%s4534_s1] sm:$0xff]  ;;  %3165 = vmatprep.subr.msk.bf16.mxu0 %vm327_vm0, %v1104_v1  ;;  %v1202_v4 = vsel %vm327_vm0, %v1104_v1, 0  ;;  %2708 = vmatpush3.bf16.msra.mxu1 %v329_v3  ;;  %v198_v13 = vpack.c.bf16 %v136_v11, %v135_v10  ;;  %v1010_v14 = vld [vmem:[%s4535_s2 + $0x10] sm:$0xff]  ;;  %v1011_v15 = vld [vmem:[%s4535_s2 + $0x18] sm:$0xff] }
   0x4   :  { %v1008_v6 = vld [vmem:[%s4535_s2] sm:$0xff]  ;;  %2840 = vmatpush3.bf16.msra.mxu0 %v1202_v4  ;;  %v197_v8 = vpack.c.bf16 %v134_v5, %v133_v2  ;;  %v1073_v18 = vpack.c.bf16 %v1011_v15, %v1010_v14  ;;  %v138_v21 = vld [vmem:[%s4534_s1 + $0x28] sm:$0xff]  ;;  %v139_v26 = vld [vmem:[%s4534_s1 + $0x30] sm:$0xff] }
   0x5   :  { %v1072_v9 = vpack.c.bf16 %v1009_v7, %v1008_v6  ;;  %v132_v12 = vld [vmem:[%s4536_s4] sm:$0x3]  ;;  %v1013_v24 = vld [vmem:[%s4535_s2 + $0x28] sm:$0xff]  ;;  %v140_v27 = vld [vmem:[%s4534_s1 + $0x38] sm:$0xff] }
   0x6   :  { %3164 = vmatprep.subr.msk.bf16.mxu1 %vm327_vm0, %v132_v12  ;;  %v1653_v16 = vld [vmem:[%s4537_s7] sm:$0x3]  ;;  %v717_v17 = vsel %vm327_vm0, %v132_v12, 0  ;;  %2709 = vmatprep.mubr.msk.bf16.mxu1 %vm230_vm1, %v197_v8  ;;  %v1014_v28 = vld [vmem:[%s4535_s2 + $0x30] sm:$0xff]  ;;  %v1015_v29 = vld [vmem:[%s4535_s2 + $0x38] sm:$0xff]  ;;  %v200_v34 = vpack.c.bf16 %v140_v27, %v139_v26 }
   0x7   :  { %2841 = vmatprep.mubr.msk.bf16.mxu0 %vm230_vm1, %v1072_v9  ;;  %v1751_v19 = vsel %vm327_vm0, %v1653_v16, 0  ;;  %v137_v20 = vld [vmem:[%s4534_s1 + $0x20] sm:$0xff]  ;;  %2710 = vmatmul.mubr.msk.bf16.vlgmr.msra.gmra.mrb[0].mxu1 %vm230_vm1, %v198_v13  ;;  %v142_v31 = vld [vmem:[%s4534_s1 + $0x48] sm:$0xff]  ;;  %v1075_v35 = vpack.c.bf16 %v1015_v29, %v1014_v28  ;;  %v143_v38 = vld [vmem:[%s4534_s1 + $0x50] sm:$0xff] }
   0x8   :  { %v1012_v22 = vld [vmem:[%s4535_s2 + $0x20] sm:$0xff]  ;;  %3166 = vmatprep.subr.msk.bf16.mxu0 %vm327_vm0, %v1653_v16  ;;  %v199_v23 = vpack.c.bf16 %v138_v21, %v137_v20  ;;  %2842 = vmatmul.mubr.msk.bf16.vlgmr.msra.gmra.mrb[0].mxu0 %vm230_vm1, %v1073_v18  ;;  %v1017_v33 = vld [vmem:[%s4535_s2 + $0x48] sm:$0xff]  ;;  %v144_v39 = vld [vmem:[%s4534_s1 + $0x58] sm:$0xff] }
   0x9   :  { %2774 = vmatpush3.bf16.msra.mxu1 %v717_v17  ;;  %v1074_v25 = vpack.c.bf16 %v1013_v24, %v1012_v22  ;;  %2906 = vmatpush3.bf16.msra.mxu0 %v1751_v19  ;;  %v141_v30 = vld [vmem:[%s4534_s1 + $0x40] sm:$0xff]  ;;  %v1018_v40 = vld [vmem:[%s4535_s2 + $0x50] sm:$0xff]  ;;  %v1019_v41 = vld [vmem:[%s4535_s2 + $0x58] sm:$0xff]  ;;  %v202_v46 = vpack.c.bf16 %v144_v39, %v143_v38 }
   0xa   :  { %2713 = vmatprep.mubr.msk.bf16.mxu1 %vm230_vm1, %v199_v23  ;;  %v1016_v32 = vld [vmem:[%s4535_s2 + $0x40] sm:$0xff]  ;;  %v201_v36 = vpack.c.bf16 %v142_v31, %v141_v30  ;;  %v146_v43 = vld [vmem:[%s4534_s1 + $0x68] sm:$0xff]  ;;  %v1077_v47 = vpack.c.bf16 %v1019_v41, %v1018_v40  ;;  %v147_v50 = vld [vmem:[%s4534_s1 + $0x70] sm:$0xff] }
   0xb   :  { %2845 = vmatprep.mubr.msk.bf16.mxu0 %vm230_vm1, %v1074_v25  ;;  %v1076_v37 = vpack.c.bf16 %v1017_v33, %v1016_v32  ;;  %v145_v42 = vld [vmem:[%s4534_s1 + $0x60] sm:$0xff]  ;;  %v1021_v45 = vld [vmem:[%s4535_s2 + $0x68] sm:$0xff]  ;;  %v148_v51 = vld [vmem:[%s4534_s1 + $0x78] sm:$0xff] }
   0xc   :  { %v1020_v44 = vld [vmem:[%s4535_s2 + $0x60] sm:$0xff]  ;;  %v203_v48 = vpack.c.bf16 %v146_v43, %v145_v42  ;;  %v1022_v52 = vld [vmem:[%s4535_s2 + $0x70] sm:$0xff]  ;;  %v1023_v53 = vld [vmem:[%s4535_s2 + $0x78] sm:$0xff]  ;;  %v204_v58 = vpack.c.bf16 %v148_v51, %v147_v50 }
   0xd   :  { %v1078_v49 = vpack.c.bf16 %v1021_v45, %v1020_v44  ;;  %v149_v54 = vld [vmem:[%s4534_s1 + $0x80] sm:$0xff]  ;;  %v150_v55 = vld [vmem:[%s4534_s1 + $0x88] sm:$0xff]  ;;  %v1079_v59 = vpack.c.bf16 %v1023_v53, %v1022_v52  ;;  %v151_v62 = vld [vmem:[%s4534_s1 + $0x90] sm:$0xff] }
   0xe   :  { %v1024_v56 = vld [vmem:[%s4535_s2 + $0x80] sm:$0xff]  ;;  %v1025_v57 = vld [vmem:[%s4535_s2 + $0x88] sm:$0xff]  ;;  %v205_v60 = vpack.c.bf16 %v150_v55, %v149_v54  ;;  %v152_v63 = vld [vmem:[%s4534_s1 + $0x98] sm:$0xff] }
   0xf   :  { %2714 = vmatmul.mubr.msk.bf16.gmra.mrb[4].mxu1 %vm230_vm1, %v200_v34  ;;  %v1080_v61 = vpack.c.bf16 %v1025_v57, %v1024_v56  ;;  %v1026_v0 = vld [vmem:[%s4535_s2 + $0x90] sm:$0xff]  ;;  %v1027_v1 = vld [vmem:[%s4535_s2 + $0x98] sm:$0xff]  ;;  %v153_v2 = vld [vmem:[%s4534_s1 + $0xa0] sm:$0xff]  ;;  %v206_v6 = vpack.c.bf16 %v152_v63, %v151_v62 }
  0x10   :  { %2846 = vmatmul.mubr.msk.bf16.gmra.mrb[4].mxu0 %vm230_vm1, %v1075_v35  ;;  %2717 = vmatprep.mubr.msk.bf16.mxu1 %vm230_vm1, %v201_v36  ;;  %v154_v3 = vld [vmem:[%s4534_s1 + $0xa8] sm:$0xff]  ;;  %v1028_v4 = vld [vmem:[%s4535_s2 + $0xa0] sm:$0xff]  ;;  %v1081_v7 = vpack.c.bf16 %v1027_v1, %v1026_v0  ;;  %v155_v10 = vld [vmem:[%s4534_s1 + $0xb0] sm:$0xff] }
  0x11   :  { %2849 = vmatprep.mubr.msk.bf16.mxu0 %vm230_vm1, %v1076_v37  ;;  %v1029_v5 = vld [vmem:[%s4535_s2 + $0xa8] sm:$0xff]  ;;  %v207_v8 = vpack.c.bf16 %v154_v3, %v153_v2  ;;  %v156_v11 = vld [vmem:[%s4534_s1 + $0xb8] sm:$0xff]  ;;  %v1030_v12 = vld [vmem:[%s4535_s2 + $0xb0] sm:$0xff] }
  0x12   :  { %v1082_v9 = vpack.c.bf16 %v1029_v5, %v1028_v4  ;;  %v1031_v13 = vld [vmem:[%s4535_s2 + $0xb8] sm:$0xff]  ;;  %v157_v14 = vld [vmem:[%s4534_s1 + $0xc0] sm:$0xff]  ;;  %v158_v15 = vld [vmem:[%s4534_s1 + $0xc8] sm:$0xff]  ;;  %v208_v18 = vpack.c.bf16 %v156_v11, %v155_v10 }
  0x13   :  { %v1032_v16 = vld [vmem:[%s4535_s2 + $0xc0] sm:$0xff]  ;;  %v1033_v17 = vld [vmem:[%s4535_s2 + $0xc8] sm:$0xff]  ;;  %v1083_v19 = vpack.c.bf16 %v1031_v13, %v1030_v12  ;;  %v209_v20 = vpack.c.bf16 %v158_v15, %v157_v14  ;;  %v159_v22 = vld [vmem:[%s4534_s1 + $0xd0] sm:$0xff] }
  0x14   :  { %v1084_v21 = vpack.c.bf16 %v1033_v17, %v1032_v16  ;;  %v160_v23 = vld [vmem:[%s4534_s1 + $0xd8] sm:$0xff]  ;;  %v1034_v24 = vld [vmem:[%s4535_s2 + $0xd0] sm:$0xff]  ;;  %v161_v26 = vld [vmem:[%s4534_s1 + $0xe0] sm:$0xff] }
  0x15   :  { %v1035_v25 = vld [vmem:[%s4535_s2 + $0xd8] sm:$0xff]  ;;  %v162_v27 = vld [vmem:[%s4534_s1 + $0xe8] sm:$0xff]  ;;  %v1036_v28 = vld [vmem:[%s4535_s2 + $0xe0] sm:$0xff]  ;;  %v210_v30 = vpack.c.bf16 %v160_v23, %v159_v22 }
  0x16   :  { %v1037_v29 = vld [vmem:[%s4535_s2 + $0xe8] sm:$0xff]  ;;  %v1085_v31 = vpack.c.bf16 %v1035_v25, %v1034_v24  ;;  %v211_v32 = vpack.c.bf16 %v162_v27, %v161_v26  ;;  %v163_v34 = vld [vmem:[%s4534_s1 + $0xf0] sm:$0xff]  ;;  %v164_v35 = vld [vmem:[%s4534_s1 + $0xf8] sm:$0xff] }
  0x17   :  { %2718 = vmatmul.mubr.msk.bf16.gmra.mrb[8].mxu1 %vm230_vm1, %v202_v46  ;;  %v1086_v33 = vpack.c.bf16 %v1037_v29, %v1036_v28  ;;  %v1038_v36 = vld [vmem:[%s4535_s2 + $0xf0] sm:$0xff]  ;;  %v1039_v37 = vld [vmem:[%s4535_s2 + $0xf8] sm:$0xff]  ;;  %v165_v38 = vld [vmem:[%s4534_s1 + $0x100] sm:$0xff]  ;;  %v212_v42 = vpack.c.bf16 %v164_v35, %v163_v34 }
  0x18   :  { %2850 = vmatmul.mubr.msk.bf16.gmra.mrb[8].mxu0 %vm230_vm1, %v1077_v47  ;;  %2721 = vmatprep.mubr.msk.bf16.mxu1 %vm230_vm1, %v203_v48  ;;  %v166_v39 = vld [vmem:[%s4534_s1 + $0x108] sm:$0xff]  ;;  %v1040_v40 = vld [vmem:[%s4535_s2 + $0x100] sm:$0xff]  ;;  %v1087_v43 = vpack.c.bf16 %v1039_v37, %v1038_v36  ;;  %v167_v46 = vld [vmem:[%s4534_s1 + $0x110] sm:$0xff] }
  0x19   :  { %2853 = vmatprep.mubr.msk.bf16.mxu0 %vm230_vm1, %v1078_v49  ;;  %v1041_v41 = vld [vmem:[%s4535_s2 + $0x108] sm:$0xff]  ;;  %v213_v44 = vpack.c.bf16 %v166_v39, %v165_v38  ;;  %v168_v47 = vld [vmem:[%s4534_s1 + $0x118] sm:$0xff]  ;;  %v1042_v48 = vld [vmem:[%s4535_s2 + $0x110] sm:$0xff] }
  0x1a   :  { %v1088_v45 = vpack.c.bf16 %v1041_v41, %v1040_v40  ;;  %v1043_v49 = vld [vmem:[%s4535_s2 + $0x118] sm:$0xff]  ;;  %v169_v50 = vld [vmem:[%s4534_s1 + $0x120] sm:$0xff]  ;;  %v170_v51 = vld [vmem:[%s4534_s1 + $0x128] sm:$0xff]  ;;  %v214_v54 = vpack.c.bf16 %v168_v47, %v167_v46 }
  0x1b   :  { %v1044_v52 = vld [vmem:[%s4535_s2 + $0x120] sm:$0xff]  ;;  %v1045_v53 = vld [vmem:[%s4535_s2 + $0x128] sm:$0xff]  ;;  %v1089_v55 = vpack.c.bf16 %v1043_v49, %v1042_v48  ;;  %v215_v56 = vpack.c.bf16 %v170_v51, %v169_v50 }
  0x1c   :  { %v1090_v57 = vpack.c.bf16 %v1045_v53, %v1044_v52  ;;  %v173_v62 = vld [vmem:[%s4534_s1 + $0x140] sm:$0xff]  ;;  %v174_v63 = vld [vmem:[%s4534_s1 + $0x148] sm:$0xff] }
  0x1d   :  { %v1048_v0 = vld [vmem:[%s4535_s2 + $0x140] sm:$0xff]  ;;  %v1049_v1 = vld [vmem:[%s4535_s2 + $0x148] sm:$0xff]  ;;  %v217_v4 = vpack.c.bf16 %v174_v63, %v173_v62 }
  0x1e   :  { %v1092_v5 = vpack.c.bf16 %v1049_v1, %v1048_v0  ;;  %v177_v10 = vld [vmem:[%s4534_s1 + $0x160] sm:$0xff]  ;;  %v178_v11 = vld [vmem:[%s4534_s1 + $0x168] sm:$0xff] }
  0x1f   :  { %2722 = vmatmul.mubr.msk.bf16.gmra.mrb[12].mxu1 %vm230_vm1, %v204_v58  ;;  %v171_v58 = vld [vmem:[%s4534_s1 + $0x130] sm:$0xff]  ;;  %v1052_v12 = vld [vmem:[%s4535_s2 + $0x160] sm:$0xff]  ;;  %v1053_v13 = vld [vmem:[%s4535_s2 + $0x168] sm:$0xff]  ;;  %v219_v16 = vpack.c.bf16 %v178_v11, %v177_v10 }
  0x20   :  { %2854 = vmatmul.mubr.msk.bf16.gmra.mrb[12].mxu0 %vm230_vm1, %v1079_v59  ;;  %2725 = vmatprep.mubr.msk.bf16.mxu1 %vm230_vm1, %v205_v60  ;;  %v172_v59 = vld [vmem:[%s4534_s1 + $0x138] sm:$0xff]  ;;  %v1046_v60 = vld [vmem:[%s4535_s2 + $0x130] sm:$0xff]  ;;  %v1094_v17 = vpack.c.bf16 %v1053_v13, %v1052_v12  ;;  %v181_v22 = vld [vmem:[%s4534_s1 + $0x180] sm:$0xff] }
  0x21   :  { %2857 = vmatprep.mubr.msk.bf16.mxu0 %vm230_vm1, %v1080_v61  ;;  %v1047_v61 = vld [vmem:[%s4535_s2 + $0x138] sm:$0xff]  ;;  %v216_v2 = vpack.c.bf16 %v172_v59, %v171_v58  ;;  %v182_v23 = vld [vmem:[%s4534_s1 + $0x188] sm:$0xff]  ;;  %v1056_v24 = vld [vmem:[%s4535_s2 + $0x180] sm:$0xff] }
  0x22   :  { %v1091_v3 = vpack.c.bf16 %v1047_v61, %v1046_v60  ;;  %v1057_v25 = vld [vmem:[%s4535_s2 + $0x188] sm:$0xff]  ;;  %v221_v28 = vpack.c.bf16 %v182_v23, %v181_v22  ;;  %v185_v34 = vld [vmem:[%s4534_s1 + $0x1a0] sm:$0xff] }
  0x23   :  { %v1096_v29 = vpack.c.bf16 %v1057_v25, %v1056_v24  ;;  %v186_v35 = vld [vmem:[%s4534_s1 + $0x1a8] sm:$0xff]  ;;  %v1060_v36 = vld [vmem:[%s4535_s2 + $0x1a0] sm:$0xff] }
  0x24   :  { %v1061_v37 = vld [vmem:[%s4535_s2 + $0x1a8] sm:$0xff]  ;;  %v223_v40 = vpack.c.bf16 %v186_v35, %v185_v34  ;;  %v189_v46 = vld [vmem:[%s4534_s1 + $0x1c0] sm:$0xff] }
  0x25   :  { %v1098_v41 = vpack.c.bf16 %v1061_v37, %v1060_v36  ;;  %v190_v47 = vld [vmem:[%s4534_s1 + $0x1c8] sm:$0xff]  ;;  %v1064_v48 = vld [vmem:[%s4535_s2 + $0x1c0] sm:$0xff] }
  0x26   :  { %v1065_v49 = vld [vmem:[%s4535_s2 + $0x1c8] sm:$0xff]  ;;  %v225_v52 = vpack.c.bf16 %v190_v47, %v189_v46  ;;  %v193_v58 = vld [vmem:[%s4534_s1 + $0x1e0] sm:$0xff] }
  0x27   :  { %2726 = vmatmul.mubr.msk.bf16.gmra.mrb[16].mxu1 %vm230_vm1, %v206_v6  ;;  %v175_v6 = vld [vmem:[%s4534_s1 + $0x150] sm:$0xff]  ;;  %v1100_v53 = vpack.c.bf16 %v1065_v49, %v1064_v48  ;;  %v194_v59 = vld [vmem:[%s4534_s1 + $0x1e8] sm:$0xff]  ;;  %v1068_v60 = vld [vmem:[%s4535_s2 + $0x1e0] sm:$0xff] }
  0x28   :  { %2858 = vmatmul.mubr.msk.bf16.gmra.mrb[16].mxu0 %vm230_vm1, %v1081_v7  ;;  %2729 = vmatprep.mubr.msk.bf16.mxu1 %vm230_vm1, %v207_v8  ;;  %v176_v7 = vld [vmem:[%s4534_s1 + $0x158] sm:$0xff]  ;;  %v1050_v8 = vld [vmem:[%s4535_s2 + $0x150] sm:$0xff]  ;;  %v1069_v61 = vld [vmem:[%s4535_s2 + $0x1e8] sm:$0xff]  ;;  %v227_v0 = vpack.c.bf16 %v194_v59, %v193_v58 }
  0x29   :  { %2861 = vmatprep.mubr.msk.bf16.mxu0 %vm230_vm1, %v1082_v9  ;;  %v1051_v9 = vld [vmem:[%s4535_s2 + $0x158] sm:$0xff]  ;;  %v218_v14 = vpack.c.bf16 %v176_v7, %v175_v6  ;;  %v1102_v1 = vpack.c.bf16 %v1069_v61, %v1068_v60  ;;  %v36_v6 = vld [vmem:[%s4538_s0] sm:$0xff]  ;;  %v37_v7 = vld [vmem:[%s4538_s0 + $0x8] sm:$0xff] }
  0x2a   :  { %v1093_v15 = vpack.c.bf16 %v1051_v9, %v1050_v8  ;;  %v1557_v8 = vld [vmem:[%s4539_s3] sm:$0xff]  ;;  %v1558_v9 = vld [vmem:[%s4539_s3 + $0x8] sm:$0xff]  ;;  %v100_v12 = vpack.c.bf16 %v37_v7, %v36_v6 }
  0x2b   :  { %v1621_v13 = vpack.c.bf16 %v1558_v9, %v1557_v8 }
  0x2f   :  { %2730 = vmatmul.mubr.msk.bf16.gmra.mrb[20].mxu1 %vm230_vm1, %v208_v18  ;;  %v179_v18 = vld [vmem:[%s4534_s1 + $0x170] sm:$0xff] }
  0x30   :  { %2862 = vmatmul.mubr.msk.bf16.gmra.mrb[20].mxu0 %vm230_vm1, %v1083_v19  ;;  %2733 = vmatprep.mubr.msk.bf16.mxu1 %vm230_vm1, %v209_v20  ;;  %v180_v19 = vld [vmem:[%s4534_s1 + $0x178] sm:$0xff]  ;;  %v1054_v20 = vld [vmem:[%s4535_s2 + $0x170] sm:$0xff] }
  0x31   :  { %2865 = vmatprep.mubr.msk.bf16.mxu0 %vm230_vm1, %v1084_v21  ;;  %v1055_v21 = vld [vmem:[%s4535_s2 + $0x178] sm:$0xff]  ;;  %v220_v26 = vpack.c.bf16 %v180_v19, %v179_v18  ;;  %v40_v18 = vld [vmem:[%s4538_s0 + $0x20] sm:$0xff]  ;;  %v41_v19 = vld [vmem:[%s4538_s0 + $0x28] sm:$0xff] }
  0x32   :  { %v1095_v27 = vpack.c.bf16 %v1055_v21, %v1054_v20  ;;  %v1561_v20 = vld [vmem:[%s4539_s3 + $0x20] sm:$0xff]  ;;  %v1562_v21 = vld [vmem:[%s4539_s3 + $0x28] sm:$0xff]  ;;  %v102_v24 = vpack.c.bf16 %v41_v19, %v40_v18 }
  0x33   :  { %v1623_v25 = vpack.c.bf16 %v1562_v21, %v1561_v20 }
  0x37   :  { %2734 = vmatmul.mubr.msk.bf16.gmra.mrb[24].mxu1 %vm230_vm1, %v210_v30  ;;  %v183_v30 = vld [vmem:[%s4534_s1 + $0x190] sm:$0xff] }
  0x38   :  { %2866 = vmatmul.mubr.msk.bf16.gmra.mrb[24].mxu0 %vm230_vm1, %v1085_v31  ;;  %2737 = vmatprep.mubr.msk.bf16.mxu1 %vm230_vm1, %v211_v32  ;;  %v184_v31 = vld [vmem:[%s4534_s1 + $0x198] sm:$0xff]  ;;  %v1058_v32 = vld [vmem:[%s4535_s2 + $0x190] sm:$0xff] }
  0x39   :  { %2869 = vmatprep.mubr.msk.bf16.mxu0 %vm230_vm1, %v1086_v33  ;;  %v1059_v33 = vld [vmem:[%s4535_s2 + $0x198] sm:$0xff]  ;;  %v222_v38 = vpack.c.bf16 %v184_v31, %v183_v30  ;;  %v44_v30 = vld [vmem:[%s4538_s0 + $0x40] sm:$0xff]  ;;  %v45_v31 = vld [vmem:[%s4538_s0 + $0x48] sm:$0xff] }
  0x3a   :  { %v1097_v39 = vpack.c.bf16 %v1059_v33, %v1058_v32  ;;  %v1565_v32 = vld [vmem:[%s4539_s3 + $0x40] sm:$0xff]  ;;  %v1566_v33 = vld [vmem:[%s4539_s3 + $0x48] sm:$0xff]  ;;  %v104_v36 = vpack.c.bf16 %v45_v31, %v44_v30 }
  0x3b   :  { %v1625_v37 = vpack.c.bf16 %v1566_v33, %v1565_v32 }
  0x3f   :  { %2738 = vmatmul.mubr.msk.bf16.gmra.mrb[28].mxu1 %vm230_vm1, %v212_v42  ;;  %v187_v42 = vld [vmem:[%s4534_s1 + $0x1b0] sm:$0xff] }
  0x40   :  { %2870 = vmatmul.mubr.msk.bf16.gmra.mrb[28].mxu0 %vm230_vm1, %v1087_v43  ;;  %2741 = vmatprep.mubr.msk.bf16.mxu1 %vm230_vm1, %v213_v44  ;;  %v188_v43 = vld [vmem:[%s4534_s1 + $0x1b8] sm:$0xff]  ;;  %v1062_v44 = vld [vmem:[%s4535_s2 + $0x1b0] sm:$0xff] }
  0x41   :  { %2873 = vmatprep.mubr.msk.bf16.mxu0 %vm230_vm1, %v1088_v45  ;;  %v1063_v45 = vld [vmem:[%s4535_s2 + $0x1b8] sm:$0xff]  ;;  %v224_v50 = vpack.c.bf16 %v188_v43, %v187_v42  ;;  %v48_v42 = vld [vmem:[%s4538_s0 + $0x60] sm:$0xff]  ;;  %v49_v43 = vld [vmem:[%s4538_s0 + $0x68] sm:$0xff] }
  0x42   :  { %v1099_v51 = vpack.c.bf16 %v1063_v45, %v1062_v44  ;;  %v1569_v44 = vld [vmem:[%s4539_s3 + $0x60] sm:$0xff]  ;;  %v1570_v45 = vld [vmem:[%s4539_s3 + $0x68] sm:$0xff]  ;;  %v106_v48 = vpack.c.bf16 %v49_v43, %v48_v42 }
  0x43   :  { %v1627_v49 = vpack.c.bf16 %v1570_v45, %v1569_v44 }
  0x47   :  { %2742 = vmatmul.mubr.msk.bf16.gmra.mrb[32].mxu1 %vm230_vm1, %v214_v54  ;;  %v191_v54 = vld [vmem:[%s4534_s1 + $0x1d0] sm:$0xff] }
  0x48   :  { %2874 = vmatmul.mubr.msk.bf16.gmra.mrb[32].mxu0 %vm230_vm1, %v1089_v55  ;;  %2745 = vmatprep.mubr.msk.bf16.mxu1 %vm230_vm1, %v215_v56  ;;  %v192_v55 = vld [vmem:[%s4534_s1 + $0x1d8] sm:$0xff]  ;;  %v1066_v56 = vld [vmem:[%s4535_s2 + $0x1d0] sm:$0xff] }
  0x49   :  { %2877 = vmatprep.mubr.msk.bf16.mxu0 %vm230_vm1, %v1090_v57  ;;  %v1067_v57 = vld [vmem:[%s4535_s2 + $0x1d8] sm:$0xff]  ;;  %v226_v62 = vpack.c.bf16 %v192_v55, %v191_v54  ;;  %v52_v54 = vld [vmem:[%s4538_s0 + $0x80] sm:$0xff]  ;;  %v53_v55 = vld [vmem:[%s4538_s0 + $0x88] sm:$0xff] }
  0x4a   :  { %v1101_v63 = vpack.c.bf16 %v1067_v57, %v1066_v56  ;;  %v1573_v56 = vld [vmem:[%s4539_s3 + $0x80] sm:$0xff]  ;;  %v1574_v57 = vld [vmem:[%s4539_s3 + $0x88] sm:$0xff]  ;;  %v108_v60 = vpack.c.bf16 %v53_v55, %v52_v54 }
  0x4b   :  { %v1629_v61 = vpack.c.bf16 %v1574_v57, %v1573_v56 }
  0x4f   :  { %2746 = vmatmul.mubr.msk.bf16.gmra.mrb[36].mxu1 %vm230_vm1, %v216_v2  ;;  %v195_v2 = vld [vmem:[%s4534_s1 + $0x1f0] sm:$0xff] }
  0x50   :  { %2878 = vmatmul.mubr.msk.bf16.gmra.mrb[36].mxu0 %vm230_vm1, %v1091_v3  ;;  %2749 = vmatprep.mubr.msk.bf16.mxu1 %vm230_vm1, %v217_v4  ;;  %v196_v3 = vld [vmem:[%s4534_s1 + $0x1f8] sm:$0xff]  ;;  %v1070_v4 = vld [vmem:[%s4535_s2 + $0x1f0] sm:$0xff] }
  0x51   :  { %2881 = vmatprep.mubr.msk.bf16.mxu0 %vm230_vm1, %v1092_v5  ;;  %v1071_v5 = vld [vmem:[%s4535_s2 + $0x1f8] sm:$0xff]  ;;  %v228_v10 = vpack.c.bf16 %v196_v3, %v195_v2  ;;  %v56_v2 = vld [vmem:[%s4538_s0 + $0xa0] sm:$0xff]  ;;  %v57_v3 = vld [vmem:[%s4538_s0 + $0xa8] sm:$0xff] }
  0x52   :  { %v1103_v11 = vpack.c.bf16 %v1071_v5, %v1070_v4  ;;  %v1577_v4 = vld [vmem:[%s4539_s3 + $0xa0] sm:$0xff]  ;;  %v1578_v5 = vld [vmem:[%s4539_s3 + $0xa8] sm:$0xff]  ;;  %v110_v8 = vpack.c.bf16 %v57_v3, %v56_v2 }
  0x53   :  { %v1631_v9 = vpack.c.bf16 %v1578_v5, %v1577_v4 }
  0x57   :  { %2750 = vmatmul.mubr.msk.bf16.gmra.mrb[40].mxu1 %vm230_vm1, %v218_v14  ;;  %v38_v14 = vld [vmem:[%s4538_s0 + $0x10] sm:$0xff] }
  0x58   :  { %2882 = vmatmul.mubr.msk.bf16.gmra.mrb[40].mxu0 %vm230_vm1, %v1093_v15  ;;  %2753 = vmatprep.mubr.msk.bf16.mxu1 %vm230_vm1, %v219_v16  ;;  %v39_v15 = vld [vmem:[%s4538_s0 + $0x18] sm:$0xff]  ;;  %v1559_v16 = vld [vmem:[%s4539_s3 + $0x10] sm:$0xff] }
  0x59   :  { %2885 = vmatprep.mubr.msk.bf16.mxu0 %vm230_vm1, %v1094_v17  ;;  %v1560_v17 = vld [vmem:[%s4539_s3 + $0x18] sm:$0xff]  ;;  %v101_v22 = vpack.c.bf16 %v39_v15, %v38_v14  ;;  %v60_v14 = vld [vmem:[%s4538_s0 + $0xc0] sm:$0xff]  ;;  %v61_v15 = vld [vmem:[%s4538_s0 + $0xc8] sm:$0xff] }
  0x5a   :  { %v1622_v23 = vpack.c.bf16 %v1560_v17, %v1559_v16  ;;  %v1581_v16 = vld [vmem:[%s4539_s3 + $0xc0] sm:$0xff]  ;;  %v1582_v17 = vld [vmem:[%s4539_s3 + $0xc8] sm:$0xff]  ;;  %v112_v20 = vpack.c.bf16 %v61_v15, %v60_v14 }
  0x5b   :  { %v1633_v21 = vpack.c.bf16 %v1582_v17, %v1581_v16 }
  0x5f   :  { %2754 = vmatmul.mubr.msk.bf16.gmra.mrb[44].mxu1 %vm230_vm1, %v220_v26  ;;  %v42_v26 = vld [vmem:[%s4538_s0 + $0x30] sm:$0xff] }
  0x60   :  { %2886 = vmatmul.mubr.msk.bf16.gmra.mrb[44].mxu0 %vm230_vm1, %v1095_v27  ;;  %2757 = vmatprep.mubr.msk.bf16.mxu1 %vm230_vm1, %v221_v28  ;;  %v43_v27 = vld [vmem:[%s4538_s0 + $0x38] sm:$0xff]  ;;  %v1563_v28 = vld [vmem:[%s4539_s3 + $0x30] sm:$0xff] }
  0x61   :  { %2889 = vmatprep.mubr.msk.bf16.mxu0 %vm230_vm1, %v1096_v29  ;;  %v1564_v29 = vld [vmem:[%s4539_s3 + $0x38] sm:$0xff]  ;;  %v103_v34 = vpack.c.bf16 %v43_v27, %v42_v26  ;;  %v64_v26 = vld [vmem:[%s4538_s0 + $0xe0] sm:$0xff]  ;;  %v65_v27 = vld [vmem:[%s4538_s0 + $0xe8] sm:$0xff] }
  0x62   :  { %v1624_v35 = vpack.c.bf16 %v1564_v29, %v1563_v28  ;;  %v1585_v28 = vld [vmem:[%s4539_s3 + $0xe0] sm:$0xff]  ;;  %v1586_v29 = vld [vmem:[%s4539_s3 + $0xe8] sm:$0xff]  ;;  %v114_v32 = vpack.c.bf16 %v65_v27, %v64_v26 }
  0x63   :  { %v1635_v33 = vpack.c.bf16 %v1586_v29, %v1585_v28 }
  0x67   :  { %2758 = vmatmul.mubr.msk.bf16.gmra.mrb[48].mxu1 %vm230_vm1, %v222_v38  ;;  %v46_v38 = vld [vmem:[%s4538_s0 + $0x50] sm:$0xff] }
  0x68   :  { %2890 = vmatmul.mubr.msk.bf16.gmra.mrb[48].mxu0 %vm230_vm1, %v1097_v39  ;;  %2761 = vmatprep.mubr.msk.bf16.mxu1 %vm230_vm1, %v223_v40  ;;  %v47_v39 = vld [vmem:[%s4538_s0 + $0x58] sm:$0xff]  ;;  %v1567_v40 = vld [vmem:[%s4539_s3 + $0x50] sm:$0xff] }
  0x69   :  { %2893 = vmatprep.mubr.msk.bf16.mxu0 %vm230_vm1, %v1098_v41  ;;  %v1568_v41 = vld [vmem:[%s4539_s3 + $0x58] sm:$0xff]  ;;  %v105_v46 = vpack.c.bf16 %v47_v39, %v46_v38  ;;  %v68_v38 = vld [vmem:[%s4538_s0 + $0x100] sm:$0xff]  ;;  %v69_v39 = vld [vmem:[%s4538_s0 + $0x108] sm:$0xff] }
  0x6a   :  { %v1626_v47 = vpack.c.bf16 %v1568_v41, %v1567_v40  ;;  %v1589_v40 = vld [vmem:[%s4539_s3 + $0x100] sm:$0xff]  ;;  %v1590_v41 = vld [vmem:[%s4539_s3 + $0x108] sm:$0xff]  ;;  %v116_v44 = vpack.c.bf16 %v69_v39, %v68_v38 }
  0x6b   :  { %v1637_v45 = vpack.c.bf16 %v1590_v41, %v1589_v40 }
  0x6f   :  { %2762 = vmatmul.mubr.msk.bf16.gmra.mrb[52].mxu1 %vm230_vm1, %v224_v50  ;;  %v50_v50 = vld [vmem:[%s4538_s0 + $0x70] sm:$0xff] }
  0x70   :  { %2894 = vmatmul.mubr.msk.bf16.gmra.mrb[52].mxu0 %vm230_vm1, %v1099_v51  ;;  %2765 = vmatprep.mubr.msk.bf16.mxu1 %vm230_vm1, %v225_v52  ;;  %v51_v51 = vld [vmem:[%s4538_s0 + $0x78] sm:$0xff]  ;;  %v1571_v52 = vld [vmem:[%s4539_s3 + $0x70] sm:$0xff] }
  0x71   :  { %2897 = vmatprep.mubr.msk.bf16.mxu0 %vm230_vm1, %v1100_v53  ;;  %v1572_v53 = vld [vmem:[%s4539_s3 + $0x78] sm:$0xff]  ;;  %v107_v58 = vpack.c.bf16 %v51_v51, %v50_v50  ;;  %v72_v50 = vld [vmem:[%s4538_s0 + $0x120] sm:$0xff]  ;;  %v73_v51 = vld [vmem:[%s4538_s0 + $0x128] sm:$0xff] }
  0x72   :  { %v1628_v59 = vpack.c.bf16 %v1572_v53, %v1571_v52  ;;  %v1593_v52 = vld [vmem:[%s4539_s3 + $0x120] sm:$0xff]  ;;  %v1594_v53 = vld [vmem:[%s4539_s3 + $0x128] sm:$0xff]  ;;  %v118_v56 = vpack.c.bf16 %v73_v51, %v72_v50 }
  0x73   :  { %v1639_v57 = vpack.c.bf16 %v1594_v53, %v1593_v52 }
  0x77   :  { %2766 = vmatmul.mubr.msk.bf16.gmra.mrb[56].mxu1 %vm230_vm1, %v226_v62  ;;  %v54_v62 = vld [vmem:[%s4538_s0 + $0x90] sm:$0xff] }
  0x78   :  { %2898 = vmatmul.mubr.msk.bf16.gmra.mrb[56].mxu0 %vm230_vm1, %v1101_v63  ;;  %2769 = vmatprep.mubr.msk.bf16.mxu1 %vm230_vm1, %v227_v0  ;;  %v55_v63 = vld [vmem:[%s4538_s0 + $0x98] sm:$0xff]  ;;  %v1575_v0 = vld [vmem:[%s4539_s3 + $0x90] sm:$0xff] }
  0x79   :  { %2901 = vmatprep.mubr.msk.bf16.mxu0 %vm230_vm1, %v1102_v1  ;;  %v1576_v1 = vld [vmem:[%s4539_s3 + $0x98] sm:$0xff]  ;;  %v109_v6 = vpack.c.bf16 %v55_v63, %v54_v62  ;;  %v76_v62 = vld [vmem:[%s4538_s0 + $0x140] sm:$0xff]  ;;  %v77_v63 = vld [vmem:[%s4538_s0 + $0x148] sm:$0xff] }
  0x7a   :  { %v1630_v7 = vpack.c.bf16 %v1576_v1, %v1575_v0  ;;  %v1597_v0 = vld [vmem:[%s4539_s3 + $0x140] sm:$0xff]  ;;  %v1598_v1 = vld [vmem:[%s4539_s3 + $0x148] sm:$0xff]  ;;  %v120_v4 = vpack.c.bf16 %v77_v63, %v76_v62 }
  0x7b   :  { %v1641_v5 = vpack.c.bf16 %v1598_v1, %v1597_v0 }
  0x7f   :  { %2770 = vmatmul.mubr.msk.bf16.gmra.mrb[60].mxu1 %vm230_vm1, %v228_v10  ;;  %v58_v10 = vld [vmem:[%s4538_s0 + $0xb0] sm:$0xff] }
  0x80   :  { %2902 = vmatmul.mubr.msk.bf16.gmra.mrb[60].mxu0 %vm230_vm1, %v1103_v11  ;;  %2775 = vmatprep.mubr.msk.bf16.mxu1 %vm230_vm1, %v100_v12  ;;  %v59_v11 = vld [vmem:[%s4538_s0 + $0xb8] sm:$0xff]  ;;  %v1579_v12 = vld [vmem:[%s4539_s3 + $0xb0] sm:$0xff] }
  0x81   :  { %2907 = vmatprep.mubr.msk.bf16.mxu0 %vm230_vm1, %v1621_v13  ;;  %v1580_v13 = vld [vmem:[%s4539_s3 + $0xb8] sm:$0xff]  ;;  %v111_v18 = vpack.c.bf16 %v59_v11, %v58_v10  ;;  %v80_v10 = vld [vmem:[%s4538_s0 + $0x160] sm:$0xff]  ;;  %v81_v11 = vld [vmem:[%s4538_s0 + $0x168] sm:$0xff] }
  0x82   :  { %v1632_v19 = vpack.c.bf16 %v1580_v13, %v1579_v12  ;;  %v1601_v12 = vld [vmem:[%s4539_s3 + $0x160] sm:$0xff]  ;;  %v1602_v13 = vld [vmem:[%s4539_s3 + $0x168] sm:$0xff]  ;;  %v122_v16 = vpack.c.bf16 %v81_v11, %v80_v10 }
  0x83   :  { %v1643_v17 = vpack.c.bf16 %v1602_v13, %v1601_v12  ;;  %v4141_v10 = vld [vmem:[%s4540_s8] ss:$0 sm:$0xff] }
  0x87   :  { %2776 = vmatmul.mubr.msk.bf16.vlgmr.msra.gmra.mrb[0].mxu1 %vm230_vm1, %v101_v22  ;;  %v62_v22 = vld [vmem:[%s4538_s0 + $0xd0] sm:$0xff] }
  0x88   :  { %2908 = vmatmul.mubr.msk.bf16.vlgmr.msra.gmra.mrb[0].mxu0 %vm230_vm1, %v1622_v23  ;;  %2779 = vmatprep.mubr.msk.bf16.mxu1 %vm230_vm1, %v102_v24  ;;  %v63_v23 = vld [vmem:[%s4538_s0 + $0xd8] sm:$0xff]  ;;  %v1583_v24 = vld [vmem:[%s4539_s3 + $0xd0] sm:$0xff] }
  0x89   :  { %2911 = vmatprep.mubr.msk.bf16.mxu0 %vm230_vm1, %v1623_v25  ;;  %v1584_v25 = vld [vmem:[%s4539_s3 + $0xd8] sm:$0xff]  ;;  %v113_v30 = vpack.c.bf16 %v63_v23, %v62_v22  ;;  %v84_v22 = vld [vmem:[%s4538_s0 + $0x180] sm:$0xff]  ;;  %v85_v23 = vld [vmem:[%s4538_s0 + $0x188] sm:$0xff] }
  0x8a   :  { %v1634_v31 = vpack.c.bf16 %v1584_v25, %v1583_v24  ;;  %v1605_v24 = vld [vmem:[%s4539_s3 + $0x180] sm:$0xff]  ;;  %v1606_v25 = vld [vmem:[%s4539_s3 + $0x188] sm:$0xff]  ;;  %v124_v28 = vpack.c.bf16 %v85_v23, %v84_v22 }
  0x8b   :  { %v1645_v29 = vpack.c.bf16 %v1606_v25, %v1605_v24 }
  0x8f   :  { %2780 = vmatmul.mubr.msk.bf16.gmra.mrb[4].mxu1 %vm230_vm1, %v103_v34  ;;  %v66_v34 = vld [vmem:[%s4538_s0 + $0xf0] sm:$0xff] }
  0x90   :  { %2912 = vmatmul.mubr.msk.bf16.gmra.mrb[4].mxu0 %vm230_vm1, %v1624_v35  ;;  %2783 = vmatprep.mubr.msk.bf16.mxu1 %vm230_vm1, %v104_v36  ;;  %v67_v35 = vld [vmem:[%s4538_s0 + $0xf8] sm:$0xff]  ;;  %v1587_v36 = vld [vmem:[%s4539_s3 + $0xf0] sm:$0xff] }
  0x91   :  { %2915 = vmatprep.mubr.msk.bf16.mxu0 %vm230_vm1, %v1625_v37  ;;  %v1588_v37 = vld [vmem:[%s4539_s3 + $0xf8] sm:$0xff]  ;;  %v115_v42 = vpack.c.bf16 %v67_v35, %v66_v34  ;;  %v88_v34 = vld [vmem:[%s4538_s0 + $0x1a0] sm:$0xff]  ;;  %v89_v35 = vld [vmem:[%s4538_s0 + $0x1a8] sm:$0xff] }
  0x92   :  { %v1636_v43 = vpack.c.bf16 %v1588_v37, %v1587_v36  ;;  %v1609_v36 = vld [vmem:[%s4539_s3 + $0x1a0] sm:$0xff]  ;;  %v1610_v37 = vld [vmem:[%s4539_s3 + $0x1a8] sm:$0xff]  ;;  %v126_v40 = vpack.c.bf16 %v89_v35, %v88_v34 }
  0x93   :  { %v1647_v41 = vpack.c.bf16 %v1610_v37, %v1609_v36 }
  0x97   :  { %2784 = vmatmul.mubr.msk.bf16.gmra.mrb[8].mxu1 %vm230_vm1, %v105_v46  ;;  %v70_v46 = vld [vmem:[%s4538_s0 + $0x110] sm:$0xff] }
  0x98   :  { %2916 = vmatmul.mubr.msk.bf16.gmra.mrb[8].mxu0 %vm230_vm1, %v1626_v47  ;;  %2787 = vmatprep.mubr.msk.bf16.mxu1 %vm230_vm1, %v106_v48  ;;  %v71_v47 = vld [vmem:[%s4538_s0 + $0x118] sm:$0xff]  ;;  %v1591_v48 = vld [vmem:[%s4539_s3 + $0x110] sm:$0xff] }
  0x99   :  { %2919 = vmatprep.mubr.msk.bf16.mxu0 %vm230_vm1, %v1627_v49  ;;  %v1592_v49 = vld [vmem:[%s4539_s3 + $0x118] sm:$0xff]  ;;  %v117_v54 = vpack.c.bf16 %v71_v47, %v70_v46  ;;  %v92_v46 = vld [vmem:[%s4538_s0 + $0x1c0] sm:$0xff]  ;;  %v93_v47 = vld [vmem:[%s4538_s0 + $0x1c8] sm:$0xff] }
  0x9a   :  { %v1638_v55 = vpack.c.bf16 %v1592_v49, %v1591_v48  ;;  %v1613_v48 = vld [vmem:[%s4539_s3 + $0x1c0] sm:$0xff]  ;;  %v1614_v49 = vld [vmem:[%s4539_s3 + $0x1c8] sm:$0xff]  ;;  %v128_v52 = vpack.c.bf16 %v93_v47, %v92_v46 }
  0x9b   :  { %v1649_v53 = vpack.c.bf16 %v1614_v49, %v1613_v48 }
  0x9f   :  { %2788 = vmatmul.mubr.msk.bf16.gmra.mrb[12].mxu1 %vm230_vm1, %v107_v58  ;;  %v74_v58 = vld [vmem:[%s4538_s0 + $0x130] sm:$0xff] }
  0xa0   :  { %2920 = vmatmul.mubr.msk.bf16.gmra.mrb[12].mxu0 %vm230_vm1, %v1628_v59  ;;  %2791 = vmatprep.mubr.msk.bf16.mxu1 %vm230_vm1, %v108_v60  ;;  %v75_v59 = vld [vmem:[%s4538_s0 + $0x138] sm:$0xff]  ;;  %v1595_v60 = vld [vmem:[%s4539_s3 + $0x130] sm:$0xff] }
  0xa1   :  { %2923 = vmatprep.mubr.msk.bf16.mxu0 %vm230_vm1, %v1629_v61  ;;  %v1596_v61 = vld [vmem:[%s4539_s3 + $0x138] sm:$0xff]  ;;  %v119_v2 = vpack.c.bf16 %v75_v59, %v74_v58  ;;  %v96_v58 = vld [vmem:[%s4538_s0 + $0x1e0] sm:$0xff]  ;;  %v97_v59 = vld [vmem:[%s4538_s0 + $0x1e8] sm:$0xff] }
  0xa2   :  { %v1640_v3 = vpack.c.bf16 %v1596_v61, %v1595_v60  ;;  %v1617_v60 = vld [vmem:[%s4539_s3 + $0x1e0] sm:$0xff]  ;;  %v1618_v61 = vld [vmem:[%s4539_s3 + $0x1e8] sm:$0xff]  ;;  %v130_v0 = vpack.c.bf16 %v97_v59, %v96_v58 }
  0xa3   :  { %v1651_v1 = vpack.c.bf16 %v1618_v61, %v1617_v60 }
  0xa7   :  { %2792 = vmatmul.mubr.msk.bf16.gmra.mrb[16].mxu1 %vm230_vm1, %v109_v6  ;;  %v78_v6 = vld [vmem:[%s4538_s0 + $0x150] sm:$0xff] }
  0xa8   :  { %2924 = vmatmul.mubr.msk.bf16.gmra.mrb[16].mxu0 %vm230_vm1, %v1630_v7  ;;  %2795 = vmatprep.mubr.msk.bf16.mxu1 %vm230_vm1, %v110_v8  ;;  %v79_v7 = vld [vmem:[%s4538_s0 + $0x158] sm:$0xff]  ;;  %v1599_v8 = vld [vmem:[%s4539_s3 + $0x150] sm:$0xff] }
  0xa9   :  { %2927 = vmatprep.mubr.msk.bf16.mxu0 %vm230_vm1, %v1631_v9  ;;  %v1600_v9 = vld [vmem:[%s4539_s3 + $0x158] sm:$0xff]  ;;  %v121_v14 = vpack.c.bf16 %v79_v7, %v78_v6 }
  0xaa   :  { %v1642_v15 = vpack.c.bf16 %v1600_v9, %v1599_v8 }
  0xaf   :  { %2796 = vmatmul.mubr.msk.bf16.gmra.mrb[20].mxu1 %vm230_vm1, %v111_v18  ;;  %v82_v18 = vld [vmem:[%s4538_s0 + $0x170] sm:$0xff] }
  0xb0   :  { %2928 = vmatmul.mubr.msk.bf16.gmra.mrb[20].mxu0 %vm230_vm1, %v1632_v19  ;;  %2799 = vmatprep.mubr.msk.bf16.mxu1 %vm230_vm1, %v112_v20  ;;  %v83_v19 = vld [vmem:[%s4538_s0 + $0x178] sm:$0xff]  ;;  %v1603_v20 = vld [vmem:[%s4539_s3 + $0x170] sm:$0xff] }
  0xb1   :  { %2931 = vmatprep.mubr.msk.bf16.mxu0 %vm230_vm1, %v1633_v21  ;;  %v1604_v21 = vld [vmem:[%s4539_s3 + $0x178] sm:$0xff]  ;;  %v123_v26 = vpack.c.bf16 %v83_v19, %v82_v18 }
  0xb2   :  { %v1644_v27 = vpack.c.bf16 %v1604_v21, %v1603_v20 }
  0xb7   :  { %2800 = vmatmul.mubr.msk.bf16.gmra.mrb[24].mxu1 %vm230_vm1, %v113_v30  ;;  %v86_v30 = vld [vmem:[%s4538_s0 + $0x190] sm:$0xff] }
  0xb8   :  { %2932 = vmatmul.mubr.msk.bf16.gmra.mrb[24].mxu0 %vm230_vm1, %v1634_v31  ;;  %2803 = vmatprep.mubr.msk.bf16.mxu1 %vm230_vm1, %v114_v32  ;;  %v87_v31 = vld [vmem:[%s4538_s0 + $0x198] sm:$0xff]  ;;  %v1607_v32 = vld [vmem:[%s4539_s3 + $0x190] sm:$0xff] }
  0xb9   :  { %2935 = vmatprep.mubr.msk.bf16.mxu0 %vm230_vm1, %v1635_v33  ;;  %v1608_v33 = vld [vmem:[%s4539_s3 + $0x198] sm:$0xff]  ;;  %v125_v38 = vpack.c.bf16 %v87_v31, %v86_v30 }
  0xba   :  { %v1646_v39 = vpack.c.bf16 %v1608_v33, %v1607_v32 }
  0xbf   :  { %2804 = vmatmul.mubr.msk.bf16.gmra.mrb[28].mxu1 %vm230_vm1, %v115_v42  ;;  %v90_v42 = vld [vmem:[%s4538_s0 + $0x1b0] sm:$0xff] }
  0xc0   :  { %2936 = vmatmul.mubr.msk.bf16.gmra.mrb[28].mxu0 %vm230_vm1, %v1636_v43  ;;  %2807 = vmatprep.mubr.msk.bf16.mxu1 %vm230_vm1, %v116_v44  ;;  %v91_v43 = vld [vmem:[%s4538_s0 + $0x1b8] sm:$0xff]  ;;  %v1611_v44 = vld [vmem:[%s4539_s3 + $0x1b0] sm:$0xff] }
  0xc1   :  { %2939 = vmatprep.mubr.msk.bf16.mxu0 %vm230_vm1, %v1637_v45  ;;  %v1612_v45 = vld [vmem:[%s4539_s3 + $0x1b8] sm:$0xff]  ;;  %v127_v50 = vpack.c.bf16 %v91_v43, %v90_v42 }
  0xc2   :  { %v1648_v51 = vpack.c.bf16 %v1612_v45, %v1611_v44 }
  0xc7   :  { %2808 = vmatmul.mubr.msk.bf16.gmra.mrb[32].mxu1 %vm230_vm1, %v117_v54  ;;  %v94_v54 = vld [vmem:[%s4538_s0 + $0x1d0] sm:$0xff] }
  0xc8   :  { %2940 = vmatmul.mubr.msk.bf16.gmra.mrb[32].mxu0 %vm230_vm1, %v1638_v55  ;;  %2811 = vmatprep.mubr.msk.bf16.mxu1 %vm230_vm1, %v118_v56  ;;  %v95_v55 = vld [vmem:[%s4538_s0 + $0x1d8] sm:$0xff]  ;;  %v1615_v56 = vld [vmem:[%s4539_s3 + $0x1d0] sm:$0xff] }
  0xc9   :  { %2943 = vmatprep.mubr.msk.bf16.mxu0 %vm230_vm1, %v1639_v57  ;;  %v1616_v57 = vld [vmem:[%s4539_s3 + $0x1d8] sm:$0xff]  ;;  %v129_v62 = vpack.c.bf16 %v95_v55, %v94_v54 }
  0xca   :  { %v1650_v63 = vpack.c.bf16 %v1616_v57, %v1615_v56 }
  0xcf   :  { %2812 = vmatmul.mubr.msk.bf16.gmra.mrb[36].mxu1 %vm230_vm1, %v119_v2  ;;  %v98_v2 = vld [vmem:[%s4538_s0 + $0x1f0] sm:$0xff] }
  0xd0   :  { %2944 = vmatmul.mubr.msk.bf16.gmra.mrb[36].mxu0 %vm230_vm1, %v1640_v3  ;;  %2815 = vmatprep.mubr.msk.bf16.mxu1 %vm230_vm1, %v120_v4  ;;  %v99_v3 = vld [vmem:[%s4538_s0 + $0x1f8] sm:$0xff]  ;;  %v1619_v4 = vld [vmem:[%s4539_s3 + $0x1f0] sm:$0xff] }
  0xd1   :  { %2947 = vmatprep.mubr.msk.bf16.mxu0 %vm230_vm1, %v1641_v5  ;;  %v1620_v5 = vld [vmem:[%s4539_s3 + $0x1f8] sm:$0xff]  ;;  %v131_v6 = vpack.c.bf16 %v99_v3, %v98_v2 }
  0xd2   :  { %v1652_v7 = vpack.c.bf16 %v1620_v5, %v1619_v4 }
  0xd7   :  { %2816 = vmatmul.mubr.msk.bf16.gmra.mrb[40].mxu1 %vm230_vm1, %v121_v14 }
  0xd8   :  { %2948 = vmatmul.mubr.msk.bf16.gmra.mrb[40].mxu0 %vm230_vm1, %v1642_v15  ;;  %2819 = vmatprep.mubr.msk.bf16.mxu1 %vm230_vm1, %v122_v16  ;;  %v4146_v15 = vld [vmem:[%s4541_s9] ss:$0 sm:$0xff] }
  0xd9   :  { %2951 = vmatprep.mubr.msk.bf16.mxu0 %vm230_vm1, %v1643_v17 }
  0xdf   :  { %2820 = vmatmul.mubr.msk.bf16.gmra.mrb[44].mxu1 %vm230_vm1, %v123_v26 }
  0xe0   :  { %2952 = vmatmul.mubr.msk.bf16.gmra.mrb[44].mxu0 %vm230_vm1, %v1644_v27  ;;  %2823 = vmatprep.mubr.msk.bf16.mxu1 %vm230_vm1, %v124_v28 }
  0xe1   :  { %2955 = vmatprep.mubr.msk.bf16.mxu0 %vm230_vm1, %v1645_v29 }
  0xe7   :  { %2824 = vmatmul.mubr.msk.bf16.gmra.mrb[48].mxu1 %vm230_vm1, %v125_v38 }
  0xe8   :  { %2956 = vmatmul.mubr.msk.bf16.gmra.mrb[48].mxu0 %vm230_vm1, %v1646_v39  ;;  %2827 = vmatprep.mubr.msk.bf16.mxu1 %vm230_vm1, %v126_v40 }
  0xe9   :  { %2959 = vmatprep.mubr.msk.bf16.mxu0 %vm230_vm1, %v1647_v41 }
  0xef   :  { %2828 = vmatmul.mubr.msk.bf16.gmra.mrb[52].mxu1 %vm230_vm1, %v127_v50 }
  0xf0   :  { %2960 = vmatmul.mubr.msk.bf16.gmra.mrb[52].mxu0 %vm230_vm1, %v1648_v51  ;;  %2831 = vmatprep.mubr.msk.bf16.mxu1 %vm230_vm1, %v128_v52 }
  0xf1   :  { %2963 = vmatprep.mubr.msk.bf16.mxu0 %vm230_vm1, %v1649_v53 }
  0xf7   :  { %2832 = vmatmul.mubr.msk.bf16.gmra.mrb[56].mxu1 %vm230_vm1, %v129_v62 }
  0xf8   :  { %2964 = vmatmul.mubr.msk.bf16.gmra.mrb[56].mxu0 %vm230_vm1, %v1650_v63  ;;  %2835 = vmatprep.mubr.msk.bf16.mxu1 %vm230_vm1, %v130_v0 }
  0xf9   :  { %2967 = vmatprep.mubr.msk.bf16.mxu0 %vm230_vm1, %v1651_v1 }
  0xff   :  { %2836 = vmatmul.mubr.msk.bf16.gmra.mrb[60].mxu1 %vm230_vm1, %v131_v6 }
 0x100   :  { %2968 = vmatmul.mubr.msk.bf16.gmra.mrb[60].mxu0 %vm230_vm1, %v1652_v7 }
 0x15a   :  { %v2777_v8 = vpop.f32.mrb[0].mxu1 }
 0x15b   :  { %v2909_v9 = vpop.f32.mrb[0].mxu0  ;;  %v753_v11 = vpop.f32.mrb[1].mxu1 }
 0x15c   :  { %v2971_v12 = vadd.f32 %v2909_v9, %v2777_v8  ;;  %v1787_v13 = vpop.f32.mrb[1].mxu0  ;;  %v2778_v14 = vpop.f32.mrb[2].mxu1 }
 0x15d   :  { %v2972_v16 = vadd.f32 %v1787_v13, %v753_v11  ;;  %v2910_v17 = vpop.f32.mrb[2].mxu0  ;;  %v756_v18 = vpop.f32.mrb[3].mxu1 }
 0x15e   :  { %v2115_v19 = vadd.f32 %v2971_v12, %v4141_v10  ;;  %v2973_v20 = vadd.f32 %v2910_v17, %v2778_v14  ;;  %v1790_v21 = vpop.f32.mrb[3].mxu0 }
 0x15f   :  { %v2113_v22 = vadd.f32 %v2972_v16, %v4141_v10  ;;  %v2974_v23 = vadd.f32 %v1790_v21, %v756_v18 }
 0x160   :  { %vm2179_vm2 = vcmp.gt.f32.partialorder %v2115_v19, 0.0  ;;  %v2250_v24 = vmul.f32 %v4146_v15, %v2115_v19  ;;  %v2116_v25 = vadd.f32 %v2973_v20, %v4141_v10 }
 0x161   :  { %vm2177_vm4 = vcmp.gt.f32.partialorder %v2113_v22, 0.0  ;;  %v2248_v26 = vmul.f32 %v4146_v15, %v2113_v22  ;;  %v2114_v27 = vadd.f32 %v2974_v23, %v4141_v10 }
 0x162   :  { %v2314_v28 = vsel %vm2179_vm2, %v2115_v19, %v2250_v24  ;;  %vm2180_vm5 = vcmp.gt.f32.partialorder %v2116_v25, 0.0  ;;  %v2251_v29 = vmul.f32 %v4146_v15, %v2116_v25  ;;  %v2781_v30 = vpop.f32.mrb[4].mxu1 }
 0x163   :  { %2379 = vst.msk [vmem:[%s4542_s10 + $0x10] sm:$0xff] %vm2376_vm3, %v2314_v28  ;;  %v2312_v31 = vsel %vm2177_vm4, %v2113_v22, %v2248_v26  ;;  %vm2178_vm6 = vcmp.gt.f32.partialorder %v2114_v27, 0.0  ;;  %v2249_v32 = vmul.f32 %v4146_v15, %v2114_v27  ;;  %v2913_v33 = vpop.f32.mrb[4].mxu0  ;;  %v769_v34 = vpop.f32.mrb[5].mxu1 }
 0x164   :  { %2377 = vst.msk [vmem:[%s4542_s10] sm:$0xff] %vm2376_vm3, %v2312_v31  ;;  %v2315_v35 = vsel %vm2180_vm5, %v2116_v25, %v2251_v29  ;;  %v2975_v36 = vadd.f32 %v2913_v33, %v2781_v30  ;;  %v1803_v37 = vpop.f32.mrb[5].mxu0  ;;  %v2782_v38 = vpop.f32.mrb[6].mxu1 }
 0x165   :  { %2380 = vst.msk [vmem:[%s4542_s10 + $0x18] sm:$0xff] %vm2376_vm3, %v2315_v35  ;;  %v2313_v39 = vsel %vm2178_vm6, %v2114_v27, %v2249_v32  ;;  %v2976_v40 = vadd.f32 %v1803_v37, %v769_v34  ;;  %v2914_v41 = vpop.f32.mrb[6].mxu0  ;;  %v772_v42 = vpop.f32.mrb[7].mxu1 }
 0x166   :  { %2378 = vst.msk [vmem:[%s4542_s10 + $0x8] sm:$0xff] %vm2376_vm3, %v2313_v39  ;;  %v2119_v43 = vadd.f32 %v2975_v36, %v4141_v10  ;;  %v2977_v44 = vadd.f32 %v2914_v41, %v2782_v38  ;;  %v1806_v45 = vpop.f32.mrb[7].mxu0 }
 0x167   :  { %v2117_v46 = vadd.f32 %v2976_v40, %v4141_v10  ;;  %v2978_v47 = vadd.f32 %v1806_v45, %v772_v42 }
 0x168   :  { %vm2183_vm7 = vcmp.gt.f32.partialorder %v2119_v43, 0.0  ;;  %v2254_v48 = vmul.f32 %v4146_v15, %v2119_v43  ;;  %v2120_v49 = vadd.f32 %v2977_v44, %v4141_v10 }
 0x169   :  { %vm2181_vm8 = vcmp.gt.f32.partialorder %v2117_v46, 0.0  ;;  %v2252_v50 = vmul.f32 %v4146_v15, %v2117_v46  ;;  %v2118_v51 = vadd.f32 %v2978_v47, %v4141_v10 }
 0x16a   :  { %v2318_v52 = vsel %vm2183_vm7, %v2119_v43, %v2254_v48  ;;  %vm2184_vm9 = vcmp.gt.f32.partialorder %v2120_v49, 0.0  ;;  %v2255_v53 = vmul.f32 %v4146_v15, %v2120_v49  ;;  %v2785_v54 = vpop.f32.mrb[8].mxu1 }
 0x16b   :  { %2383 = vst.msk [vmem:[%s4542_s10 + $0x30] sm:$0xff] %vm2376_vm3, %v2318_v52  ;;  %v2316_v55 = vsel %vm2181_vm8, %v2117_v46, %v2252_v50  ;;  %vm2182_vm10 = vcmp.gt.f32.partialorder %v2118_v51, 0.0  ;;  %v2253_v56 = vmul.f32 %v4146_v15, %v2118_v51  ;;  %v2917_v57 = vpop.f32.mrb[8].mxu0  ;;  %v785_v58 = vpop.f32.mrb[9].mxu1 }
 0x16c   :  { %2381 = vst.msk [vmem:[%s4542_s10 + $0x20] sm:$0xff] %vm2376_vm3, %v2316_v55  ;;  %v2319_v59 = vsel %vm2184_vm9, %v2120_v49, %v2255_v53  ;;  %v2979_v60 = vadd.f32 %v2917_v57, %v2785_v54  ;;  %v1819_v61 = vpop.f32.mrb[9].mxu0  ;;  %v2786_v62 = vpop.f32.mrb[10].mxu1 }
 0x16d   :  { %2384 = vst.msk [vmem:[%s4542_s10 + $0x38] sm:$0xff] %vm2376_vm3, %v2319_v59  ;;  %v2317_v63 = vsel %vm2182_vm10, %v2118_v51, %v2253_v56  ;;  %v2980_v0 = vadd.f32 %v1819_v61, %v785_v58  ;;  %v2918_v1 = vpop.f32.mrb[10].mxu0  ;;  %v788_v2 = vpop.f32.mrb[11].mxu1 }
 0x16e   :  { %2382 = vst.msk [vmem:[%s4542_s10 + $0x28] sm:$0xff] %vm2376_vm3, %v2317_v63  ;;  %v2123_v3 = vadd.f32 %v2979_v60, %v4141_v10  ;;  %v2981_v4 = vadd.f32 %v2918_v1, %v2786_v62  ;;  %v1822_v5 = vpop.f32.mrb[11].mxu0 }
 0x16f   :  { %v2121_v6 = vadd.f32 %v2980_v0, %v4141_v10  ;;  %v2982_v7 = vadd.f32 %v1822_v5, %v788_v2 }
 0x170   :  { %vm2187_vm11 = vcmp.gt.f32.partialorder %v2123_v3, 0.0  ;;  %v2258_v8 = vmul.f32 %v4146_v15, %v2123_v3  ;;  %v2124_v9 = vadd.f32 %v2981_v4, %v4141_v10 }
 0x171   :  { %vm2185_vm12 = vcmp.gt.f32.partialorder %v2121_v6, 0.0  ;;  %v2256_v11 = vmul.f32 %v4146_v15, %v2121_v6  ;;  %v2122_v12 = vadd.f32 %v2982_v7, %v4141_v10 }
 0x172   :  { %v2322_v13 = vsel %vm2187_vm11, %v2123_v3, %v2258_v8  ;;  %vm2188_vm13 = vcmp.gt.f32.partialorder %v2124_v9, 0.0  ;;  %v2259_v14 = vmul.f32 %v4146_v15, %v2124_v9  ;;  %v2789_v16 = vpop.f32.mrb[12].mxu1 }
 0x173   :  { %2387 = vst.msk [vmem:[%s4542_s10 + $0x50] sm:$0xff] %vm2376_vm3, %v2322_v13  ;;  %v2320_v17 = vsel %vm2185_vm12, %v2121_v6, %v2256_v11  ;;  %vm2186_vm14 = vcmp.gt.f32.partialorder %v2122_v12, 0.0  ;;  %v2257_v18 = vmul.f32 %v4146_v15, %v2122_v12  ;;  %v2921_v19 = vpop.f32.mrb[12].mxu0  ;;  %v801_v20 = vpop.f32.mrb[13].mxu1 }
 0x174   :  { %2385 = vst.msk [vmem:[%s4542_s10 + $0x40] sm:$0xff] %vm2376_vm3, %v2320_v17  ;;  %v2323_v21 = vsel %vm2188_vm13, %v2124_v9, %v2259_v14  ;;  %v2983_v22 = vadd.f32 %v2921_v19, %v2789_v16  ;;  %v1835_v23 = vpop.f32.mrb[13].mxu0  ;;  %v2790_v24 = vpop.f32.mrb[14].mxu1 }
 0x175   :  { %2388 = vst.msk [vmem:[%s4542_s10 + $0x58] sm:$0xff] %vm2376_vm3, %v2323_v21  ;;  %v2321_v25 = vsel %vm2186_vm14, %v2122_v12, %v2257_v18  ;;  %v2984_v26 = vadd.f32 %v1835_v23, %v801_v20  ;;  %v2922_v27 = vpop.f32.mrb[14].mxu0  ;;  %v804_v28 = vpop.f32.mrb[15].mxu1 }
 0x176   :  { %2386 = vst.msk [vmem:[%s4542_s10 + $0x48] sm:$0xff] %vm2376_vm3, %v2321_v25  ;;  %v2127_v29 = vadd.f32 %v2983_v22, %v4141_v10  ;;  %v2985_v30 = vadd.f32 %v2922_v27, %v2790_v24  ;;  %v1838_v31 = vpop.f32.mrb[15].mxu0 }
 0x177   :  { %v2125_v32 = vadd.f32 %v2984_v26, %v4141_v10  ;;  %v2986_v33 = vadd.f32 %v1838_v31, %v804_v28 }
 0x178   :  { %vm2191_vm15 = vcmp.gt.f32.partialorder %v2127_v29, 0.0  ;;  %v2262_v34 = vmul.f32 %v4146_v15, %v2127_v29  ;;  %v2128_v35 = vadd.f32 %v2985_v30, %v4141_v10 }
 0x179   :  { %vm2189_vm0 = vcmp.gt.f32.partialorder %v2125_v32, 0.0  ;;  %v2260_v36 = vmul.f32 %v4146_v15, %v2125_v32  ;;  %v2126_v37 = vadd.f32 %v2986_v33, %v4141_v10 }
 0x17a   :  { %v2326_v38 = vsel %vm2191_vm15, %v2127_v29, %v2262_v34  ;;  %vm2192_vm1 = vcmp.gt.f32.partialorder %v2128_v35, 0.0  ;;  %v2263_v39 = vmul.f32 %v4146_v15, %v2128_v35  ;;  %v2793_v40 = vpop.f32.mrb[16].mxu1 }
 0x17b   :  { %2391 = vst.msk [vmem:[%s4542_s10 + $0x70] sm:$0xff] %vm2376_vm3, %v2326_v38  ;;  %v2324_v41 = vsel %vm2189_vm0, %v2125_v32, %v2260_v36  ;;  %vm2190_vm2 = vcmp.gt.f32.partialorder %v2126_v37, 0.0  ;;  %v2261_v42 = vmul.f32 %v4146_v15, %v2126_v37  ;;  %v2925_v43 = vpop.f32.mrb[16].mxu0  ;;  %v817_v44 = vpop.f32.mrb[17].mxu1 }
 0x17c   :  { %2389 = vst.msk [vmem:[%s4542_s10 + $0x60] sm:$0xff] %vm2376_vm3, %v2324_v41  ;;  %v2327_v45 = vsel %vm2192_vm1, %v2128_v35, %v2263_v39  ;;  %v2987_v46 = vadd.f32 %v2925_v43, %v2793_v40  ;;  %v1851_v47 = vpop.f32.mrb[17].mxu0  ;;  %v2794_v48 = vpop.f32.mrb[18].mxu1 }
 0x17d   :  { %2392 = vst.msk [vmem:[%s4542_s10 + $0x78] sm:$0xff] %vm2376_vm3, %v2327_v45  ;;  %v2325_v49 = vsel %vm2190_vm2, %v2126_v37, %v2261_v42  ;;  %v2988_v50 = vadd.f32 %v1851_v47, %v817_v44  ;;  %v2926_v51 = vpop.f32.mrb[18].mxu0  ;;  %v820_v52 = vpop.f32.mrb[19].mxu1 }
 0x17e   :  { %2390 = vst.msk [vmem:[%s4542_s10 + $0x68] sm:$0xff] %vm2376_vm3, %v2325_v49  ;;  %v2131_v53 = vadd.f32 %v2987_v46, %v4141_v10  ;;  %v2989_v54 = vadd.f32 %v2926_v51, %v2794_v48  ;;  %v1854_v55 = vpop.f32.mrb[19].mxu0 }
 0x17f   :  { %v2129_v56 = vadd.f32 %v2988_v50, %v4141_v10  ;;  %v2990_v57 = vadd.f32 %v1854_v55, %v820_v52 }
 0x180   :  { %vm2195_vm4 = vcmp.gt.f32.partialorder %v2131_v53, 0.0  ;;  %v2266_v58 = vmul.f32 %v4146_v15, %v2131_v53  ;;  %v2132_v59 = vadd.f32 %v2989_v54, %v4141_v10 }
 0x181   :  { %vm2193_vm5 = vcmp.gt.f32.partialorder %v2129_v56, 0.0  ;;  %v2264_v60 = vmul.f32 %v4146_v15, %v2129_v56  ;;  %v2130_v61 = vadd.f32 %v2990_v57, %v4141_v10 }
 0x182   :  { %v2330_v62 = vsel %vm2195_vm4, %v2131_v53, %v2266_v58  ;;  %vm2196_vm6 = vcmp.gt.f32.partialorder %v2132_v59, 0.0  ;;  %v2267_v63 = vmul.f32 %v4146_v15, %v2132_v59  ;;  %v2797_v0 = vpop.f32.mrb[20].mxu1 }
 0x183   :  { %2395 = vst.msk [vmem:[%s4542_s10 + $0x90] sm:$0xff] %vm2376_vm3, %v2330_v62  ;;  %v2328_v1 = vsel %vm2193_vm5, %v2129_v56, %v2264_v60  ;;  %vm2194_vm7 = vcmp.gt.f32.partialorder %v2130_v61, 0.0  ;;  %v2265_v2 = vmul.f32 %v4146_v15, %v2130_v61  ;;  %v2929_v3 = vpop.f32.mrb[20].mxu0  ;;  %v833_v4 = vpop.f32.mrb[21].mxu1 }
 0x184   :  { %2393 = vst.msk [vmem:[%s4542_s10 + $0x80] sm:$0xff] %vm2376_vm3, %v2328_v1  ;;  %v2331_v5 = vsel %vm2196_vm6, %v2132_v59, %v2267_v63  ;;  %v2991_v6 = vadd.f32 %v2929_v3, %v2797_v0  ;;  %v1867_v7 = vpop.f32.mrb[21].mxu0  ;;  %v2798_v8 = vpop.f32.mrb[22].mxu1 }
 0x185   :  { %2396 = vst.msk [vmem:[%s4542_s10 + $0x98] sm:$0xff] %vm2376_vm3, %v2331_v5  ;;  %v2329_v9 = vsel %vm2194_vm7, %v2130_v61, %v2265_v2  ;;  %v2992_v11 = vadd.f32 %v1867_v7, %v833_v4  ;;  %v2930_v12 = vpop.f32.mrb[22].mxu0  ;;  %v836_v13 = vpop.f32.mrb[23].mxu1 }
 0x186   :  { %2394 = vst.msk [vmem:[%s4542_s10 + $0x88] sm:$0xff] %vm2376_vm3, %v2329_v9  ;;  %v2135_v14 = vadd.f32 %v2991_v6, %v4141_v10  ;;  %v2993_v16 = vadd.f32 %v2930_v12, %v2798_v8  ;;  %v1870_v17 = vpop.f32.mrb[23].mxu0 }
 0x187   :  { %v2133_v18 = vadd.f32 %v2992_v11, %v4141_v10  ;;  %v2994_v19 = vadd.f32 %v1870_v17, %v836_v13 }
 0x188   :  { %vm2199_vm8 = vcmp.gt.f32.partialorder %v2135_v14, 0.0  ;;  %v2270_v20 = vmul.f32 %v4146_v15, %v2135_v14  ;;  %v2136_v21 = vadd.f32 %v2993_v16, %v4141_v10 }
 0x189   :  { %vm2197_vm9 = vcmp.gt.f32.partialorder %v2133_v18, 0.0  ;;  %v2268_v22 = vmul.f32 %v4146_v15, %v2133_v18  ;;  %v2134_v23 = vadd.f32 %v2994_v19, %v4141_v10 }
 0x18a   :  { %v2334_v24 = vsel %vm2199_vm8, %v2135_v14, %v2270_v20  ;;  %vm2200_vm10 = vcmp.gt.f32.partialorder %v2136_v21, 0.0  ;;  %v2271_v25 = vmul.f32 %v4146_v15, %v2136_v21  ;;  %v2801_v26 = vpop.f32.mrb[24].mxu1 }
 0x18b   :  { %2399 = vst.msk [vmem:[%s4542_s10 + $0xb0] sm:$0xff] %vm2376_vm3, %v2334_v24  ;;  %v2332_v27 = vsel %vm2197_vm9, %v2133_v18, %v2268_v22  ;;  %vm2198_vm11 = vcmp.gt.f32.partialorder %v2134_v23, 0.0  ;;  %v2269_v28 = vmul.f32 %v4146_v15, %v2134_v23  ;;  %v2933_v29 = vpop.f32.mrb[24].mxu0  ;;  %v849_v30 = vpop.f32.mrb[25].mxu1 }
 0x18c   :  { %2397 = vst.msk [vmem:[%s4542_s10 + $0xa0] sm:$0xff] %vm2376_vm3, %v2332_v27  ;;  %v2335_v31 = vsel %vm2200_vm10, %v2136_v21, %v2271_v25  ;;  %v2995_v32 = vadd.f32 %v2933_v29, %v2801_v26  ;;  %v1883_v33 = vpop.f32.mrb[25].mxu0  ;;  %v2802_v34 = vpop.f32.mrb[26].mxu1 }
 0x18d   :  { %2400 = vst.msk [vmem:[%s4542_s10 + $0xb8] sm:$0xff] %vm2376_vm3, %v2335_v31  ;;  %v2333_v35 = vsel %vm2198_vm11, %v2134_v23, %v2269_v28  ;;  %v2996_v36 = vadd.f32 %v1883_v33, %v849_v30  ;;  %v2934_v37 = vpop.f32.mrb[26].mxu0  ;;  %v852_v38 = vpop.f32.mrb[27].mxu1 }
 0x18e   :  { %2398 = vst.msk [vmem:[%s4542_s10 + $0xa8] sm:$0xff] %vm2376_vm3, %v2333_v35  ;;  %v2139_v39 = vadd.f32 %v2995_v32, %v4141_v10  ;;  %v2997_v40 = vadd.f32 %v2934_v37, %v2802_v34  ;;  %v1886_v41 = vpop.f32.mrb[27].mxu0 }
 0x18f   :  { %v2137_v42 = vadd.f32 %v2996_v36, %v4141_v10  ;;  %v2998_v43 = vadd.f32 %v1886_v41, %v852_v38 }
 0x190   :  { %vm2203_vm12 = vcmp.gt.f32.partialorder %v2139_v39, 0.0  ;;  %v2274_v44 = vmul.f32 %v4146_v15, %v2139_v39  ;;  %v2140_v45 = vadd.f32 %v2997_v40, %v4141_v10 }
 0x191   :  { %vm2201_vm13 = vcmp.gt.f32.partialorder %v2137_v42, 0.0  ;;  %v2272_v46 = vmul.f32 %v4146_v15, %v2137_v42  ;;  %v2138_v47 = vadd.f32 %v2998_v43, %v4141_v10 }
 0x192   :  { %v2338_v48 = vsel %vm2203_vm12, %v2139_v39, %v2274_v44  ;;  %vm2204_vm14 = vcmp.gt.f32.partialorder %v2140_v45, 0.0  ;;  %v2275_v49 = vmul.f32 %v4146_v15, %v2140_v45  ;;  %v2805_v50 = vpop.f32.mrb[28].mxu1 }
 0x193   :  { %2403 = vst.msk [vmem:[%s4542_s10 + $0xd0] sm:$0xff] %vm2376_vm3, %v2338_v48  ;;  %v2336_v51 = vsel %vm2201_vm13, %v2137_v42, %v2272_v46  ;;  %vm2202_vm15 = vcmp.gt.f32.partialorder %v2138_v47, 0.0  ;;  %v2273_v52 = vmul.f32 %v4146_v15, %v2138_v47  ;;  %v2937_v53 = vpop.f32.mrb[28].mxu0  ;;  %v865_v54 = vpop.f32.mrb[29].mxu1 }
 0x194   :  { %2401 = vst.msk [vmem:[%s4542_s10 + $0xc0] sm:$0xff] %vm2376_vm3, %v2336_v51  ;;  %v2339_v55 = vsel %vm2204_vm14, %v2140_v45, %v2275_v49  ;;  %v2999_v56 = vadd.f32 %v2937_v53, %v2805_v50  ;;  %v1899_v57 = vpop.f32.mrb[29].mxu0  ;;  %v2806_v58 = vpop.f32.mrb[30].mxu1 }
 0x195   :  { %2404 = vst.msk [vmem:[%s4542_s10 + $0xd8] sm:$0xff] %vm2376_vm3, %v2339_v55  ;;  %v2337_v59 = vsel %vm2202_vm15, %v2138_v47, %v2273_v52  ;;  %v3000_v60 = vadd.f32 %v1899_v57, %v865_v54  ;;  %v2938_v61 = vpop.f32.mrb[30].mxu0  ;;  %v868_v62 = vpop.f32.mrb[31].mxu1 }
 0x196   :  { %2402 = vst.msk [vmem:[%s4542_s10 + $0xc8] sm:$0xff] %vm2376_vm3, %v2337_v59  ;;  %v2143_v63 = vadd.f32 %v2999_v56, %v4141_v10  ;;  %v3001_v0 = vadd.f32 %v2938_v61, %v2806_v58  ;;  %v1902_v1 = vpop.f32.mrb[31].mxu0 }
 0x197   :  { %v2141_v2 = vadd.f32 %v3000_v60, %v4141_v10  ;;  %v3002_v3 = vadd.f32 %v1902_v1, %v868_v62 }
 0x198   :  { %vm2207_vm0 = vcmp.gt.f32.partialorder %v2143_v63, 0.0  ;;  %v2278_v4 = vmul.f32 %v4146_v15, %v2143_v63  ;;  %v2144_v5 = vadd.f32 %v3001_v0, %v4141_v10 }
 0x199   :  { %vm2205_vm1 = vcmp.gt.f32.partialorder %v2141_v2, 0.0  ;;  %v2276_v6 = vmul.f32 %v4146_v15, %v2141_v2  ;;  %v2142_v7 = vadd.f32 %v3002_v3, %v4141_v10 }
 0x19a   :  { %v2342_v8 = vsel %vm2207_vm0, %v2143_v63, %v2278_v4  ;;  %vm2208_vm2 = vcmp.gt.f32.partialorder %v2144_v5, 0.0  ;;  %v2279_v9 = vmul.f32 %v4146_v15, %v2144_v5  ;;  %v2809_v11 = vpop.f32.mrb[32].mxu1 }
 0x19b   :  { %2407 = vst.msk [vmem:[%s4542_s10 + $0xf0] sm:$0xff] %vm2376_vm3, %v2342_v8  ;;  %v2340_v12 = vsel %vm2205_vm1, %v2141_v2, %v2276_v6  ;;  %vm2206_vm4 = vcmp.gt.f32.partialorder %v2142_v7, 0.0  ;;  %v2277_v13 = vmul.f32 %v4146_v15, %v2142_v7  ;;  %v2941_v14 = vpop.f32.mrb[32].mxu0  ;;  %v881_v16 = vpop.f32.mrb[33].mxu1 }
 0x19c   :  { %2405 = vst.msk [vmem:[%s4542_s10 + $0xe0] sm:$0xff] %vm2376_vm3, %v2340_v12  ;;  %v2343_v17 = vsel %vm2208_vm2, %v2144_v5, %v2279_v9  ;;  %v3003_v18 = vadd.f32 %v2941_v14, %v2809_v11  ;;  %v1915_v19 = vpop.f32.mrb[33].mxu0  ;;  %v2810_v20 = vpop.f32.mrb[34].mxu1 }
 0x19d   :  { %2408 = vst.msk [vmem:[%s4542_s10 + $0xf8] sm:$0xff] %vm2376_vm3, %v2343_v17  ;;  %v2341_v21 = vsel %vm2206_vm4, %v2142_v7, %v2277_v13  ;;  %v3004_v22 = vadd.f32 %v1915_v19, %v881_v16  ;;  %v2942_v23 = vpop.f32.mrb[34].mxu0  ;;  %v884_v24 = vpop.f32.mrb[35].mxu1 }
 0x19e   :  { %2406 = vst.msk [vmem:[%s4542_s10 + $0xe8] sm:$0xff] %vm2376_vm3, %v2341_v21  ;;  %v2147_v25 = vadd.f32 %v3003_v18, %v4141_v10  ;;  %v3005_v26 = vadd.f32 %v2942_v23, %v2810_v20  ;;  %v1918_v27 = vpop.f32.mrb[35].mxu0 }
 0x19f   :  { %v2145_v28 = vadd.f32 %v3004_v22, %v4141_v10  ;;  %v3006_v29 = vadd.f32 %v1918_v27, %v884_v24 }
 0x1a0   :  { %vm2211_vm5 = vcmp.gt.f32.partialorder %v2147_v25, 0.0  ;;  %v2282_v30 = vmul.f32 %v4146_v15, %v2147_v25  ;;  %v2148_v31 = vadd.f32 %v3005_v26, %v4141_v10 }
 0x1a1   :  { %vm2209_vm6 = vcmp.gt.f32.partialorder %v2145_v28, 0.0  ;;  %v2280_v32 = vmul.f32 %v4146_v15, %v2145_v28  ;;  %v2146_v33 = vadd.f32 %v3006_v29, %v4141_v10 }
 0x1a2   :  { %v2346_v34 = vsel %vm2211_vm5, %v2147_v25, %v2282_v30  ;;  %vm2212_vm7 = vcmp.gt.f32.partialorder %v2148_v31, 0.0  ;;  %v2283_v35 = vmul.f32 %v4146_v15, %v2148_v31  ;;  %v2813_v36 = vpop.f32.mrb[36].mxu1 }
 0x1a3   :  { %2411 = vst.msk [vmem:[%s4542_s10 + $0x110] sm:$0xff] %vm2376_vm3, %v2346_v34  ;;  %v2344_v37 = vsel %vm2209_vm6, %v2145_v28, %v2280_v32  ;;  %vm2210_vm8 = vcmp.gt.f32.partialorder %v2146_v33, 0.0  ;;  %v2281_v38 = vmul.f32 %v4146_v15, %v2146_v33  ;;  %v2945_v39 = vpop.f32.mrb[36].mxu0  ;;  %v897_v40 = vpop.f32.mrb[37].mxu1 }
 0x1a4   :  { %2409 = vst.msk [vmem:[%s4542_s10 + $0x100] sm:$0xff] %vm2376_vm3, %v2344_v37  ;;  %v2347_v41 = vsel %vm2212_vm7, %v2148_v31, %v2283_v35  ;;  %v3007_v42 = vadd.f32 %v2945_v39, %v2813_v36  ;;  %v1931_v43 = vpop.f32.mrb[37].mxu0  ;;  %v2814_v44 = vpop.f32.mrb[38].mxu1 }
 0x1a5   :  { %2412 = vst.msk [vmem:[%s4542_s10 + $0x118] sm:$0xff] %vm2376_vm3, %v2347_v41  ;;  %v2345_v45 = vsel %vm2210_vm8, %v2146_v33, %v2281_v38  ;;  %v3008_v46 = vadd.f32 %v1931_v43, %v897_v40  ;;  %v2946_v47 = vpop.f32.mrb[38].mxu0  ;;  %v900_v48 = vpop.f32.mrb[39].mxu1 }
 0x1a6   :  { %2410 = vst.msk [vmem:[%s4542_s10 + $0x108] sm:$0xff] %vm2376_vm3, %v2345_v45  ;;  %v2151_v49 = vadd.f32 %v3007_v42, %v4141_v10  ;;  %v3009_v50 = vadd.f32 %v2946_v47, %v2814_v44  ;;  %v1934_v51 = vpop.f32.mrb[39].mxu0 }
 0x1a7   :  { %v2149_v52 = vadd.f32 %v3008_v46, %v4141_v10  ;;  %v3010_v53 = vadd.f32 %v1934_v51, %v900_v48 }
 0x1a8   :  { %vm2215_vm9 = vcmp.gt.f32.partialorder %v2151_v49, 0.0  ;;  %v2286_v54 = vmul.f32 %v4146_v15, %v2151_v49  ;;  %v2152_v55 = vadd.f32 %v3009_v50, %v4141_v10 }
 0x1a9   :  { %vm2213_vm10 = vcmp.gt.f32.partialorder %v2149_v52, 0.0  ;;  %v2284_v56 = vmul.f32 %v4146_v15, %v2149_v52  ;;  %v2150_v57 = vadd.f32 %v3010_v53, %v4141_v10 }
 0x1aa   :  { %v2350_v58 = vsel %vm2215_vm9, %v2151_v49, %v2286_v54  ;;  %vm2216_vm11 = vcmp.gt.f32.partialorder %v2152_v55, 0.0  ;;  %v2287_v59 = vmul.f32 %v4146_v15, %v2152_v55  ;;  %v2817_v60 = vpop.f32.mrb[40].mxu1 }
 0x1ab   :  { %2415 = vst.msk [vmem:[%s4542_s10 + $0x130] sm:$0xff] %vm2376_vm3, %v2350_v58  ;;  %v2348_v61 = vsel %vm2213_vm10, %v2149_v52, %v2284_v56  ;;  %vm2214_vm12 = vcmp.gt.f32.partialorder %v2150_v57, 0.0  ;;  %v2285_v62 = vmul.f32 %v4146_v15, %v2150_v57  ;;  %v2949_v63 = vpop.f32.mrb[40].mxu0  ;;  %v913_v0 = vpop.f32.mrb[41].mxu1 }
 0x1ac   :  { %2413 = vst.msk [vmem:[%s4542_s10 + $0x120] sm:$0xff] %vm2376_vm3, %v2348_v61  ;;  %v2351_v1 = vsel %vm2216_vm11, %v2152_v55, %v2287_v59  ;;  %v3011_v2 = vadd.f32 %v2949_v63, %v2817_v60  ;;  %v1947_v3 = vpop.f32.mrb[41].mxu0  ;;  %v2818_v4 = vpop.f32.mrb[42].mxu1 }
 0x1ad   :  { %2416 = vst.msk [vmem:[%s4542_s10 + $0x138] sm:$0xff] %vm2376_vm3, %v2351_v1  ;;  %v2349_v5 = vsel %vm2214_vm12, %v2150_v57, %v2285_v62  ;;  %v3012_v6 = vadd.f32 %v1947_v3, %v913_v0  ;;  %v2950_v7 = vpop.f32.mrb[42].mxu0  ;;  %v916_v8 = vpop.f32.mrb[43].mxu1 }
 0x1ae   :  { %2414 = vst.msk [vmem:[%s4542_s10 + $0x128] sm:$0xff] %vm2376_vm3, %v2349_v5  ;;  %v2155_v9 = vadd.f32 %v3011_v2, %v4141_v10  ;;  %v3013_v11 = vadd.f32 %v2950_v7, %v2818_v4  ;;  %v1950_v12 = vpop.f32.mrb[43].mxu0 }
 0x1af   :  { %v2153_v13 = vadd.f32 %v3012_v6, %v4141_v10  ;;  %v3014_v14 = vadd.f32 %v1950_v12, %v916_v8 }
 0x1b0   :  { %vm2219_vm13 = vcmp.gt.f32.partialorder %v2155_v9, 0.0  ;;  %v2290_v16 = vmul.f32 %v4146_v15, %v2155_v9  ;;  %v2156_v17 = vadd.f32 %v3013_v11, %v4141_v10 }
 0x1b1   :  { %vm2217_vm14 = vcmp.gt.f32.partialorder %v2153_v13, 0.0  ;;  %v2288_v18 = vmul.f32 %v4146_v15, %v2153_v13  ;;  %v2154_v19 = vadd.f32 %v3014_v14, %v4141_v10 }
 0x1b2   :  { %v2354_v20 = vsel %vm2219_vm13, %v2155_v9, %v2290_v16  ;;  %vm2220_vm15 = vcmp.gt.f32.partialorder %v2156_v17, 0.0  ;;  %v2291_v21 = vmul.f32 %v4146_v15, %v2156_v17  ;;  %v2821_v22 = vpop.f32.mrb[44].mxu1 }
 0x1b3   :  { %2419 = vst.msk [vmem:[%s4542_s10 + $0x150] sm:$0xff] %vm2376_vm3, %v2354_v20  ;;  %v2352_v23 = vsel %vm2217_vm14, %v2153_v13, %v2288_v18  ;;  %vm2218_vm0 = vcmp.gt.f32.partialorder %v2154_v19, 0.0  ;;  %v2289_v24 = vmul.f32 %v4146_v15, %v2154_v19  ;;  %v2953_v25 = vpop.f32.mrb[44].mxu0  ;;  %v929_v26 = vpop.f32.mrb[45].mxu1 }
 0x1b4   :  { %2417 = vst.msk [vmem:[%s4542_s10 + $0x140] sm:$0xff] %vm2376_vm3, %v2352_v23  ;;  %v2355_v27 = vsel %vm2220_vm15, %v2156_v17, %v2291_v21  ;;  %v3015_v28 = vadd.f32 %v2953_v25, %v2821_v22  ;;  %v1963_v29 = vpop.f32.mrb[45].mxu0  ;;  %v2822_v30 = vpop.f32.mrb[46].mxu1 }
 0x1b5   :  { %2420 = vst.msk [vmem:[%s4542_s10 + $0x158] sm:$0xff] %vm2376_vm3, %v2355_v27  ;;  %v2353_v31 = vsel %vm2218_vm0, %v2154_v19, %v2289_v24  ;;  %v3016_v32 = vadd.f32 %v1963_v29, %v929_v26  ;;  %v2954_v33 = vpop.f32.mrb[46].mxu0  ;;  %v932_v34 = vpop.f32.mrb[47].mxu1 }
 0x1b6   :  { %2418 = vst.msk [vmem:[%s4542_s10 + $0x148] sm:$0xff] %vm2376_vm3, %v2353_v31  ;;  %v2159_v35 = vadd.f32 %v3015_v28, %v4141_v10  ;;  %v3017_v36 = vadd.f32 %v2954_v33, %v2822_v30  ;;  %v1966_v37 = vpop.f32.mrb[47].mxu0 }
 0x1b7   :  { %v2157_v38 = vadd.f32 %v3016_v32, %v4141_v10  ;;  %v3018_v39 = vadd.f32 %v1966_v37, %v932_v34 }
 0x1b8   :  { %vm2223_vm1 = vcmp.gt.f32.partialorder %v2159_v35, 0.0  ;;  %v2294_v40 = vmul.f32 %v4146_v15, %v2159_v35  ;;  %v2160_v41 = vadd.f32 %v3017_v36, %v4141_v10 }
 0x1b9   :  { %vm2221_vm2 = vcmp.gt.f32.partialorder %v2157_v38, 0.0  ;;  %v2292_v42 = vmul.f32 %v4146_v15, %v2157_v38  ;;  %v2158_v43 = vadd.f32 %v3018_v39, %v4141_v10 }
 0x1ba   :  { %v2358_v44 = vsel %vm2223_vm1, %v2159_v35, %v2294_v40  ;;  %vm2224_vm4 = vcmp.gt.f32.partialorder %v2160_v41, 0.0  ;;  %v2295_v45 = vmul.f32 %v4146_v15, %v2160_v41  ;;  %v2825_v46 = vpop.f32.mrb[48].mxu1 }
 0x1bb   :  { %2423 = vst.msk [vmem:[%s4542_s10 + $0x170] sm:$0xff] %vm2376_vm3, %v2358_v44  ;;  %v2356_v47 = vsel %vm2221_vm2, %v2157_v38, %v2292_v42  ;;  %vm2222_vm5 = vcmp.gt.f32.partialorder %v2158_v43, 0.0  ;;  %v2293_v48 = vmul.f32 %v4146_v15, %v2158_v43  ;;  %v2957_v49 = vpop.f32.mrb[48].mxu0  ;;  %v945_v50 = vpop.f32.mrb[49].mxu1 }
 0x1bc   :  { %2421 = vst.msk [vmem:[%s4542_s10 + $0x160] sm:$0xff] %vm2376_vm3, %v2356_v47  ;;  %v2359_v51 = vsel %vm2224_vm4, %v2160_v41, %v2295_v45  ;;  %v3019_v52 = vadd.f32 %v2957_v49, %v2825_v46  ;;  %v1979_v53 = vpop.f32.mrb[49].mxu0  ;;  %v2826_v54 = vpop.f32.mrb[50].mxu1 }
 0x1bd   :  { %2424 = vst.msk [vmem:[%s4542_s10 + $0x178] sm:$0xff] %vm2376_vm3, %v2359_v51  ;;  %v2357_v55 = vsel %vm2222_vm5, %v2158_v43, %v2293_v48  ;;  %v3020_v56 = vadd.f32 %v1979_v53, %v945_v50  ;;  %v2958_v57 = vpop.f32.mrb[50].mxu0  ;;  %v948_v58 = vpop.f32.mrb[51].mxu1 }
 0x1be   :  { %2422 = vst.msk [vmem:[%s4542_s10 + $0x168] sm:$0xff] %vm2376_vm3, %v2357_v55  ;;  %v2163_v59 = vadd.f32 %v3019_v52, %v4141_v10  ;;  %v3021_v60 = vadd.f32 %v2958_v57, %v2826_v54  ;;  %v1982_v61 = vpop.f32.mrb[51].mxu0 }
 0x1bf   :  { %v2161_v62 = vadd.f32 %v3020_v56, %v4141_v10  ;;  %v3022_v63 = vadd.f32 %v1982_v61, %v948_v58 }
 0x1c0   :  { %vm2227_vm6 = vcmp.gt.f32.partialorder %v2163_v59, 0.0  ;;  %v2298_v0 = vmul.f32 %v4146_v15, %v2163_v59  ;;  %v2164_v1 = vadd.f32 %v3021_v60, %v4141_v10 }
 0x1c1   :  { %vm2225_vm7 = vcmp.gt.f32.partialorder %v2161_v62, 0.0  ;;  %v2296_v2 = vmul.f32 %v4146_v15, %v2161_v62  ;;  %v2162_v3 = vadd.f32 %v3022_v63, %v4141_v10 }
 0x1c2   :  { %v2362_v4 = vsel %vm2227_vm6, %v2163_v59, %v2298_v0  ;;  %vm2228_vm8 = vcmp.gt.f32.partialorder %v2164_v1, 0.0  ;;  %v2299_v5 = vmul.f32 %v4146_v15, %v2164_v1  ;;  %v2829_v6 = vpop.f32.mrb[52].mxu1 }
 0x1c3   :  { %2427 = vst.msk [vmem:[%s4542_s10 + $0x190] sm:$0xff] %vm2376_vm3, %v2362_v4  ;;  %v2360_v7 = vsel %vm2225_vm7, %v2161_v62, %v2296_v2  ;;  %vm2226_vm9 = vcmp.gt.f32.partialorder %v2162_v3, 0.0  ;;  %v2297_v8 = vmul.f32 %v4146_v15, %v2162_v3  ;;  %v2961_v9 = vpop.f32.mrb[52].mxu0  ;;  %v961_v11 = vpop.f32.mrb[53].mxu1 }
 0x1c4   :  { %2425 = vst.msk [vmem:[%s4542_s10 + $0x180] sm:$0xff] %vm2376_vm3, %v2360_v7  ;;  %v2363_v12 = vsel %vm2228_vm8, %v2164_v1, %v2299_v5  ;;  %v3023_v13 = vadd.f32 %v2961_v9, %v2829_v6  ;;  %v1995_v14 = vpop.f32.mrb[53].mxu0  ;;  %v2830_v16 = vpop.f32.mrb[54].mxu1 }
 0x1c5   :  { %2428 = vst.msk [vmem:[%s4542_s10 + $0x198] sm:$0xff] %vm2376_vm3, %v2363_v12  ;;  %v2361_v17 = vsel %vm2226_vm9, %v2162_v3, %v2297_v8  ;;  %v3024_v18 = vadd.f32 %v1995_v14, %v961_v11  ;;  %v2962_v19 = vpop.f32.mrb[54].mxu0  ;;  %v964_v20 = vpop.f32.mrb[55].mxu1 }
 0x1c6   :  { %2426 = vst.msk [vmem:[%s4542_s10 + $0x188] sm:$0xff] %vm2376_vm3, %v2361_v17  ;;  %v2167_v21 = vadd.f32 %v3023_v13, %v4141_v10  ;;  %v3025_v22 = vadd.f32 %v2962_v19, %v2830_v16  ;;  %v1998_v23 = vpop.f32.mrb[55].mxu0 }
 0x1c7   :  { %v2165_v24 = vadd.f32 %v3024_v18, %v4141_v10  ;;  %v3026_v25 = vadd.f32 %v1998_v23, %v964_v20 }
 0x1c8   :  { %vm2231_vm10 = vcmp.gt.f32.partialorder %v2167_v21, 0.0  ;;  %v2302_v26 = vmul.f32 %v4146_v15, %v2167_v21  ;;  %v2168_v27 = vadd.f32 %v3025_v22, %v4141_v10 }
 0x1c9   :  { %vm2229_vm11 = vcmp.gt.f32.partialorder %v2165_v24, 0.0  ;;  %v2300_v28 = vmul.f32 %v4146_v15, %v2165_v24  ;;  %v2166_v29 = vadd.f32 %v3026_v25, %v4141_v10 }
 0x1ca   :  { %v2366_v30 = vsel %vm2231_vm10, %v2167_v21, %v2302_v26  ;;  %vm2232_vm12 = vcmp.gt.f32.partialorder %v2168_v27, 0.0  ;;  %v2303_v31 = vmul.f32 %v4146_v15, %v2168_v27  ;;  %v2833_v32 = vpop.f32.mrb[56].mxu1 }
 0x1cb   :  { %2431 = vst.msk [vmem:[%s4542_s10 + $0x1b0] sm:$0xff] %vm2376_vm3, %v2366_v30  ;;  %v2364_v33 = vsel %vm2229_vm11, %v2165_v24, %v2300_v28  ;;  %vm2230_vm13 = vcmp.gt.f32.partialorder %v2166_v29, 0.0  ;;  %v2301_v34 = vmul.f32 %v4146_v15, %v2166_v29  ;;  %v2965_v35 = vpop.f32.mrb[56].mxu0  ;;  %v977_v36 = vpop.f32.mrb[57].mxu1 }
 0x1cc   :  { %2429 = vst.msk [vmem:[%s4542_s10 + $0x1a0] sm:$0xff] %vm2376_vm3, %v2364_v33  ;;  %v2367_v37 = vsel %vm2232_vm12, %v2168_v27, %v2303_v31  ;;  %v3027_v38 = vadd.f32 %v2965_v35, %v2833_v32  ;;  %v2011_v39 = vpop.f32.mrb[57].mxu0  ;;  %v2834_v40 = vpop.f32.mrb[58].mxu1 }
 0x1cd   :  { %2432 = vst.msk [vmem:[%s4542_s10 + $0x1b8] sm:$0xff] %vm2376_vm3, %v2367_v37  ;;  %v2365_v41 = vsel %vm2230_vm13, %v2166_v29, %v2301_v34  ;;  %v3028_v42 = vadd.f32 %v2011_v39, %v977_v36  ;;  %v2966_v43 = vpop.f32.mrb[58].mxu0  ;;  %v980_v44 = vpop.f32.mrb[59].mxu1 }
 0x1ce   :  { %2430 = vst.msk [vmem:[%s4542_s10 + $0x1a8] sm:$0xff] %vm2376_vm3, %v2365_v41  ;;  %v2171_v45 = vadd.f32 %v3027_v38, %v4141_v10  ;;  %v3029_v46 = vadd.f32 %v2966_v43, %v2834_v40  ;;  %v2014_v47 = vpop.f32.mrb[59].mxu0 }
 0x1cf   :  { %v2169_v48 = vadd.f32 %v3028_v42, %v4141_v10  ;;  %v3030_v49 = vadd.f32 %v2014_v47, %v980_v44 }
 0x1d0   :  { %vm2235_vm14 = vcmp.gt.f32.partialorder %v2171_v45, 0.0  ;;  %v2306_v50 = vmul.f32 %v4146_v15, %v2171_v45  ;;  %v2172_v51 = vadd.f32 %v3029_v46, %v4141_v10 }
 0x1d1   :  { %vm2233_vm15 = vcmp.gt.f32.partialorder %v2169_v48, 0.0  ;;  %v2304_v52 = vmul.f32 %v4146_v15, %v2169_v48  ;;  %v2170_v53 = vadd.f32 %v3030_v49, %v4141_v10 }
 0x1d2   :  { %v2370_v54 = vsel %vm2235_vm14, %v2171_v45, %v2306_v50  ;;  %vm2236_vm0 = vcmp.gt.f32.partialorder %v2172_v51, 0.0  ;;  %v2307_v55 = vmul.f32 %v4146_v15, %v2172_v51  ;;  %v2837_v56 = vpop.f32.mrb[60].mxu1 }
 0x1d3   :  { %2435 = vst.msk [vmem:[%s4542_s10 + $0x1d0] sm:$0xff] %vm2376_vm3, %v2370_v54  ;;  %v2368_v57 = vsel %vm2233_vm15, %v2169_v48, %v2304_v52  ;;  %vm2234_vm1 = vcmp.gt.f32.partialorder %v2170_v53, 0.0  ;;  %v2305_v58 = vmul.f32 %v4146_v15, %v2170_v53  ;;  %v2969_v59 = vpop.f32.mrb[60].mxu0  ;;  %v993_v60 = vpop.f32.mrb[61].mxu1 }
 0x1d4   :  { %2433 = vst.msk [vmem:[%s4542_s10 + $0x1c0] sm:$0xff] %vm2376_vm3, %v2368_v57  ;;  %v2371_v61 = vsel %vm2236_vm0, %v2172_v51, %v2307_v55  ;;  %v3031_v62 = vadd.f32 %v2969_v59, %v2837_v56  ;;  %v2027_v63 = vpop.f32.mrb[61].mxu0  ;;  %v2838_v0 = vpop.f32.mrb[62].mxu1 }
 0x1d5   :  { %2436 = vst.msk [vmem:[%s4542_s10 + $0x1d8] sm:$0xff] %vm2376_vm3, %v2371_v61  ;;  %v2369_v1 = vsel %vm2234_vm1, %v2170_v53, %v2305_v58  ;;  %v3032_v2 = vadd.f32 %v2027_v63, %v993_v60  ;;  %v2970_v3 = vpop.f32.mrb[62].mxu0  ;;  %v996_v4 = vpop.f32.mrb[63].mxu1 }
 0x1d6   :  { %2434 = vst.msk [vmem:[%s4542_s10 + $0x1c8] sm:$0xff] %vm2376_vm3, %v2369_v1  ;;  %v2175_v5 = vadd.f32 %v3031_v62, %v4141_v10  ;;  %v3033_v6 = vadd.f32 %v2970_v3, %v2838_v0  ;;  %v2030_v7 = vpop.f32.mrb[63].mxu0 }
 0x1d7   :  { %v2173_v8 = vadd.f32 %v3032_v2, %v4141_v10  ;;  %v3034_v9 = vadd.f32 %v2030_v7, %v996_v4 }
 0x1d8   :  { %vm2239_vm2 = vcmp.gt.f32.partialorder %v2175_v5, 0.0  ;;  %v2310_v11 = vmul.f32 %v4146_v15, %v2175_v5  ;;  %v2176_v12 = vadd.f32 %v3033_v6, %v4141_v10 }
 0x1d9   :  { %vm2237_vm4 = vcmp.gt.f32.partialorder %v2173_v8, 0.0  ;;  %v2308_v13 = vmul.f32 %v4146_v15, %v2173_v8  ;;  %v2174_v14 = vadd.f32 %v3034_v9, %v4141_v10 }
 0x1da   :  { %v2374_v16 = vsel %vm2239_vm2, %v2175_v5, %v2310_v11  ;;  %vm2240_vm5 = vcmp.gt.f32.partialorder %v2176_v12, 0.0  ;;  %v2311_v17 = vmul.f32 %v4146_v15, %v2176_v12 }
 0x1db   :  { %2439 = vst.msk [vmem:[%s4542_s10 + $0x1f0] sm:$0xff] %vm2376_vm3, %v2374_v16  ;;  %v2372_v18 = vsel %vm2237_vm4, %v2173_v8, %v2308_v13  ;;  %vm2238_vm6 = vcmp.gt.f32.partialorder %v2174_v14, 0.0  ;;  %v2309_v19 = vmul.f32 %v4146_v15, %v2174_v14 }
 0x1dc   :  { %2437 = vst.msk [vmem:[%s4542_s10 + $0x1e0] sm:$0xff] %vm2376_vm3, %v2372_v18  ;;  %v2375_v20 = vsel %vm2240_vm5, %v2176_v12, %v2311_v17 }
 0x1dd   :  { %2440 = vst.msk [vmem:[%s4542_s10 + $0x1f8] sm:$0xff] %vm2376_vm3, %v2375_v20  ;;  %v2373_v10 = vsel %vm2238_vm6, %v2174_v14, %v2309_v19 }
 0x1de   :  { %2438 = vst.msk [vmem:[%s4542_s10 + $0x1e8] sm:$0xff] %vm2376_vm3, %v2373_v10 }

// kernel: upconv_forward.7
= control target key start
LH: loop header
LB: loop body
LE: loop exit
PB: predicated region body
PF: predicated region fallthrough
CT: control target
= control target key end

     0   :  { %s782_s15 = smov 0   ;;  %s1205_s0 = inlined_call_operand.vmem [shape: f32[2048,4], index: 0, kind: input, shape index: {}]   ;;  %s1206_s1 = inlined_call_operand.vmem [shape: f32[1,4], index: 1, kind: input, shape index: {}]   ;;  %s1207_s2 = inlined_call_operand.vmem [shape: f32[1,4], index: 2, kind: input, shape index: {}]   ;;  %s1208_s3 = inlined_call_operand.vmem [shape: f32[1,4], index: 3, kind: input, shape index: {}]   ;;  %s1209_s4 = inlined_call_operand.vmem [shape: f32[2048,4], index: 4, kind: output, shape index: {}]  }
   0x1 LB: > { %s727_s16 = sadd.s32 4294967295, %s755_s15   ;;  %p731_p0 = scmp.ge.s32.totalorder %s755_s15, 1  ;;  %s755_s15 = sphi %s782_s15, %s14_s15  }
   0x2   : > { %p163_p1 = scmp.lt.s32.totalorder %s755_s15, 5 }
   0x4   : > { %p164_p2 = pnand %p731_p0, %p163_p1 }
   0x5   : > { %s732_s17 = sshll.u32 (!%p164_p2), %s727_s16, 6  ;;  %v796_v0 = vld [vmem:[%s1206_s1] ss:$0 sm:$0xff] (!%p164_p2)  ;;  %vm606_vm0 = vcmask (!%p164_p2), 31744  }
   0x6   : > { %167 = sbr.rel (%p164_p2) target bundleno = 102 (0x66), region = 36  ;;  %p190_p3 = scmp.lt.s32.totalorder (!%p164_p2), %s732_s17, 255  ;;  %v806_v1 = vld [vmem:[%s1207_s2] ss:$0 sm:$0xff] (!%p164_p2) }
   0x7   : > { %v820_v11 = vld [vmem:[%s1208_s3] ss:$0 sm:$0xff] (!%p164_p2) }
   0xd   : > { %s1211_s17 = smov (!%p190_p3, %s732_s17), 255 }
   0xe   : > { %s733_s18 = sshll.u32 %s1211_s17, 3 }
   0xf   : > { %s801_s23 = scalar_lea.vmem %s1205_s0, %s733_s18  ;;  %s838_s30 = scalar_lea.vmem %s1209_s4, %s733_s18 }
  0x10   : > { %v201_v2 = vld [vmem:[%s801_s23] sm:$0xff]  ;;  %v202_v3 = vld [vmem:[%s801_s23 + $0x8] sm:$0xff]  ;;  %v203_v4 = vld [vmem:[%s801_s23 + $0x10] sm:$0xff] }
  0x11   : > { %v272_v5 = vmul.f32 %v796_v0, %v201_v2  ;;  %v273_v6 = vmul.f32 %v796_v0, %v202_v3  ;;  %v274_v7 = vmul.f32 %v796_v0, %v203_v4  ;;  %v204_v8 = vld [vmem:[%s801_s23 + $0x18] sm:$0xff]  ;;  %v205_v9 = vld [vmem:[%s801_s23 + $0x20] sm:$0xff]  ;;  %v206_v10 = vld [vmem:[%s801_s23 + $0x28] sm:$0xff] }
  0x12   : > { %v275_v12 = vmul.f32 %v796_v0, %v204_v8  ;;  %v276_v13 = vmul.f32 %v796_v0, %v205_v9  ;;  %v277_v14 = vmul.f32 %v796_v0, %v206_v10  ;;  %v207_v15 = vld [vmem:[%s801_s23 + $0x30] sm:$0xff]  ;;  %v208_v16 = vld [vmem:[%s801_s23 + $0x38] sm:$0xff]  ;;  %v209_v29 = vld [vmem:[%s801_s23 + $0x40] sm:$0xff] }
  0x13   : > { %v343_v17 = vadd.f32 %v806_v1, %v272_v5  ;;  %v344_v18 = vadd.f32 %v806_v1, %v273_v6  ;;  %v345_v19 = vadd.f32 %v806_v1, %v274_v7  ;;  %v278_v20 = vmul.f32 %v796_v0, %v207_v15  ;;  %v210_v33 = vld [vmem:[%s801_s23 + $0x48] sm:$0xff]  ;;  %v211_v34 = vld [vmem:[%s801_s23 + $0x50] sm:$0xff]  ;;  %v212_v35 = vld [vmem:[%s801_s23 + $0x58] sm:$0xff] }
  0x14   : > { %v346_v21 = vadd.f32 %v806_v1, %v275_v12  ;;  %v347_v22 = vadd.f32 %v806_v1, %v276_v13  ;;  %v348_v23 = vadd.f32 %v806_v1, %v277_v14  ;;  %v279_v24 = vmul.f32 %v796_v0, %v208_v16  ;;  %v213_v47 = vld [vmem:[%s801_s23 + $0x60] sm:$0xff]  ;;  %v214_v48 = vld [vmem:[%s801_s23 + $0x68] sm:$0xff]  ;;  %v215_v61 = vld [vmem:[%s801_s23 + $0x70] sm:$0xff] }
  0x15   : > { %vm407_vm1 = vcmp.gt.f32.partialorder %v343_v17, 0.0  ;;  %v478_v25 = vmul.f32 %v820_v11, %v343_v17  ;;  %vm408_vm2 = vcmp.gt.f32.partialorder %v344_v18, 0.0  ;;  %v479_v26 = vmul.f32 %v820_v11, %v344_v18  ;;  %v216_v62 = vld [vmem:[%s801_s23 + $0x78] sm:$0xff]  ;;  %v217_v7 = vld [vmem:[%s801_s23 + $0x80] sm:$0xff]  ;;  %v218_v8 = vld [vmem:[%s801_s23 + $0x88] sm:$0xff] }
  0x16   : > { %vm409_vm3 = vcmp.gt.f32.partialorder %v345_v19, 0.0  ;;  %v480_v27 = vmul.f32 %v820_v11, %v345_v19  ;;  %vm410_vm4 = vcmp.gt.f32.partialorder %v346_v21, 0.0  ;;  %v481_v28 = vmul.f32 %v820_v11, %v346_v21  ;;  %v219_v14 = vld [vmem:[%s801_s23 + $0x90] sm:$0xff]  ;;  %v220_v15 = vld [vmem:[%s801_s23 + $0x98] sm:$0xff] }
  0x17   : > { %v542_v30 = vsel %vm407_vm1, %v343_v17, %v478_v25  ;;  %v543_v31 = vsel %vm408_vm2, %v344_v18, %v479_v26  ;;  %vm411_vm5 = vcmp.gt.f32.partialorder %v347_v22, 0.0  ;;  %v482_v32 = vmul.f32 %v820_v11, %v347_v22  ;;  %v221_v26 = vld [vmem:[%s801_s23 + $0xa0] sm:$0xff] }
  0x18   : > { %607 = vst.msk [vmem:[%s838_s30] sm:$0xff] %vm606_vm0, %v542_v30  ;;  %608 = vst.msk [vmem:[%s838_s30 + $0x8] sm:$0xff] %vm606_vm0, %v543_v31  ;;  %v544_v36 = vsel %vm409_vm3, %v345_v19, %v480_v27  ;;  %v545_v37 = vsel %vm410_vm4, %v346_v21, %v481_v28  ;;  %vm412_vm6 = vcmp.gt.f32.partialorder %v348_v23, 0.0  ;;  %v483_v38 = vmul.f32 %v820_v11, %v348_v23  ;;  %v222_v27 = vld [vmem:[%s801_s23 + $0xa8] sm:$0xff] }
  0x19   : > { %609 = vst.msk [vmem:[%s838_s30 + $0x10] sm:$0xff] %vm606_vm0, %v544_v36  ;;  %610 = vst.msk [vmem:[%s838_s30 + $0x18] sm:$0xff] %vm606_vm0, %v545_v37  ;;  %v546_v39 = vsel %vm411_vm5, %v347_v22, %v482_v32  ;;  %v349_v40 = vadd.f32 %v806_v1, %v278_v20  ;;  %v350_v41 = vadd.f32 %v806_v1, %v279_v24 }
  0x1a   : > { %v280_v42 = vmul.f32 %v796_v0, %v209_v29  ;;  %611 = vst.msk [vmem:[%s838_s30 + $0x20] sm:$0xff] %vm606_vm0, %v546_v39  ;;  %v547_v43 = vsel %vm412_vm6, %v348_v23, %v483_v38  ;;  %v281_v44 = vmul.f32 %v796_v0, %v210_v33  ;;  %v282_v45 = vmul.f32 %v796_v0, %v211_v34 }
  0x1b   : > { %v283_v46 = vmul.f32 %v796_v0, %v212_v35  ;;  %612 = vst.msk [vmem:[%s838_s30 + $0x28] sm:$0xff] %vm606_vm0, %v547_v43  ;;  %vm413_vm7 = vcmp.gt.f32.partialorder %v349_v40, 0.0  ;;  %v484_v49 = vmul.f32 %v820_v11, %v349_v40  ;;  %vm414_vm8 = vcmp.gt.f32.partialorder %v350_v41, 0.0 }
  0x1c   : > { %v485_v50 = vmul.f32 %v820_v11, %v350_v41  ;;  %v351_v51 = vadd.f32 %v806_v1, %v280_v42  ;;  %v352_v52 = vadd.f32 %v806_v1, %v281_v44  ;;  %v353_v53 = vadd.f32 %v806_v1, %v282_v45 }
  0x1d   : > { %v354_v54 = vadd.f32 %v806_v1, %v283_v46  ;;  %v548_v55 = vsel %vm413_vm7, %v349_v40, %v484_v49  ;;  %v284_v57 = vmul.f32 %v796_v0, %v213_v47  ;;  %v285_v58 = vmul.f32 %v796_v0, %v214_v48  ;;  %v223_v40 = vld [vmem:[%s801_s23 + $0xb0] sm:$0xff]  ;;  %v225_v48 = vld [vmem:[%s801_s23 + $0xc0] sm:$0xff]  ;;  %v226_v49 = vld [vmem:[%s801_s23 + $0xc8] sm:$0xff] }
  0x1e   : > { %v549_v56 = vsel %vm414_vm8, %v350_v41, %v485_v50  ;;  %613 = vst.msk [vmem:[%s838_s30 + $0x30] sm:$0xff] %vm606_vm0, %v548_v55  ;;  %vm415_vm9 = vcmp.gt.f32.partialorder %v351_v51, 0.0  ;;  %v486_v59 = vmul.f32 %v820_v11, %v351_v51  ;;  %vm416_vm10 = vcmp.gt.f32.partialorder %v352_v52, 0.0  ;;  %v224_v41 = vld [vmem:[%s801_s23 + $0xb8] sm:$0xff] }
  0x1f   : > { %614 = vst.msk [vmem:[%s838_s30 + $0x38] sm:$0xff] %vm606_vm0, %v549_v56  ;;  %v487_v60 = vmul.f32 %v820_v11, %v352_v52  ;;  %vm417_vm11 = vcmp.gt.f32.partialorder %v353_v53, 0.0  ;;  %v488_v63 = vmul.f32 %v820_v11, %v353_v53  ;;  %vm418_vm12 = vcmp.gt.f32.partialorder %v354_v54, 0.0  ;;  %v228_v55 = vld [vmem:[%s801_s23 + $0xd8] sm:$0xff] }
  0x20   : > { %v489_v2 = vmul.f32 %v820_v11, %v354_v54  ;;  %v550_v3 = vsel %vm415_vm9, %v351_v51, %v486_v59  ;;  %v355_v5 = vadd.f32 %v806_v1, %v284_v57  ;;  %v356_v6 = vadd.f32 %v806_v1, %v285_v58 }
  0x21   : > { %v551_v4 = vsel %vm416_vm10, %v352_v52, %v487_v60  ;;  %615 = vst.msk [vmem:[%s838_s30 + $0x40] sm:$0xff] %vm606_vm0, %v550_v3  ;;  %v552_v9 = vsel %vm417_vm11, %v353_v53, %v488_v63  ;;  %v286_v12 = vmul.f32 %v796_v0, %v215_v61  ;;  %v287_v13 = vmul.f32 %v796_v0, %v216_v62 }
  0x22   : > { %616 = vst.msk [vmem:[%s838_s30 + $0x48] sm:$0xff] %vm606_vm0, %v551_v4  ;;  %v553_v10 = vsel %vm418_vm12, %v354_v54, %v489_v2  ;;  %617 = vst.msk [vmem:[%s838_s30 + $0x50] sm:$0xff] %vm606_vm0, %v552_v9  ;;  %vm419_vm13 = vcmp.gt.f32.partialorder %v355_v5, 0.0  ;;  %v490_v16 = vmul.f32 %v820_v11, %v355_v5  ;;  %vm420_vm14 = vcmp.gt.f32.partialorder %v356_v6, 0.0  ;;  %v227_v54 = vld [vmem:[%s801_s23 + $0xd0] sm:$0xff]  ;;  %v229_v4 = vld [vmem:[%s801_s23 + $0xe0] sm:$0xff] }
  0x23   : > { %618 = vst.msk [vmem:[%s838_s30 + $0x58] sm:$0xff] %vm606_vm0, %v553_v10  ;;  %v491_v17 = vmul.f32 %v820_v11, %v356_v6  ;;  %v357_v18 = vadd.f32 %v806_v1, %v286_v12  ;;  %v358_v19 = vadd.f32 %v806_v1, %v287_v13  ;;  %v288_v20 = vmul.f32 %v796_v0, %v217_v7 }
  0x24   : > { %v289_v21 = vmul.f32 %v796_v0, %v218_v8  ;;  %v554_v22 = vsel %vm419_vm13, %v355_v5, %v490_v16  ;;  %v290_v24 = vmul.f32 %v796_v0, %v219_v14  ;;  %v291_v25 = vmul.f32 %v796_v0, %v220_v15  ;;  %v230_v5 = vld [vmem:[%s801_s23 + $0xe8] sm:$0xff] }
  0x25   : > { %v555_v23 = vsel %vm420_vm14, %v356_v6, %v491_v17  ;;  %619 = vst.msk [vmem:[%s838_s30 + $0x60] sm:$0xff] %vm606_vm0, %v554_v22  ;;  %vm421_vm15 = vcmp.gt.f32.partialorder %v357_v18, 0.0  ;;  %v492_v28 = vmul.f32 %v820_v11, %v357_v18  ;;  %vm422_vm1 = vcmp.gt.f32.partialorder %v358_v19, 0.0 }
  0x26   : > { %620 = vst.msk [vmem:[%s838_s30 + $0x68] sm:$0xff] %vm606_vm0, %v555_v23  ;;  %v493_v29 = vmul.f32 %v820_v11, %v358_v19  ;;  %v359_v30 = vadd.f32 %v806_v1, %v288_v20  ;;  %v360_v31 = vadd.f32 %v806_v1, %v289_v21  ;;  %v361_v32 = vadd.f32 %v806_v1, %v290_v24  ;;  %v232_v20 = vld [vmem:[%s801_s23 + $0xf8] sm:$0xff] }
  0x27   : > { %v362_v33 = vadd.f32 %v806_v1, %v291_v25  ;;  %v556_v34 = vsel %vm421_vm15, %v357_v18, %v492_v28  ;;  %v292_v36 = vmul.f32 %v796_v0, %v221_v26  ;;  %v293_v37 = vmul.f32 %v796_v0, %v222_v27  ;;  %v233_v27 = vld [vmem:[%s801_s23 + $0x100] sm:$0xff]  ;;  %v234_v28 = vld [vmem:[%s801_s23 + $0x108] sm:$0xff] }
  0x28   : > { %v557_v35 = vsel %vm422_vm1, %v358_v19, %v493_v29  ;;  %621 = vst.msk [vmem:[%s838_s30 + $0x70] sm:$0xff] %vm606_vm0, %v556_v34  ;;  %vm423_vm2 = vcmp.gt.f32.partialorder %v359_v30, 0.0  ;;  %v494_v38 = vmul.f32 %v820_v11, %v359_v30  ;;  %vm424_vm3 = vcmp.gt.f32.partialorder %v360_v31, 0.0  ;;  %v231_v19 = vld [vmem:[%s801_s23 + $0xf0] sm:$0xff]  ;;  %v236_v34 = vld [vmem:[%s801_s23 + $0x118] sm:$0xff] }
  0x29   : > { %622 = vst.msk [vmem:[%s838_s30 + $0x78] sm:$0xff] %vm606_vm0, %v557_v35  ;;  %v495_v39 = vmul.f32 %v820_v11, %v360_v31  ;;  %vm425_vm4 = vcmp.gt.f32.partialorder %v361_v32, 0.0  ;;  %v496_v42 = vmul.f32 %v820_v11, %v361_v32  ;;  %vm426_vm5 = vcmp.gt.f32.partialorder %v362_v33, 0.0 }
  0x2a   : > { %v497_v43 = vmul.f32 %v820_v11, %v362_v33  ;;  %v558_v44 = vsel %vm423_vm2, %v359_v30, %v494_v38  ;;  %v363_v46 = vadd.f32 %v806_v1, %v292_v36  ;;  %v364_v47 = vadd.f32 %v806_v1, %v293_v37 }
  0x2b   : > { %v559_v45 = vsel %vm424_vm3, %v360_v31, %v495_v39  ;;  %623 = vst.msk [vmem:[%s838_s30 + $0x80] sm:$0xff] %vm606_vm0, %v558_v44  ;;  %v560_v50 = vsel %vm425_vm4, %v361_v32, %v496_v42  ;;  %v294_v52 = vmul.f32 %v796_v0, %v223_v40  ;;  %v295_v53 = vmul.f32 %v796_v0, %v224_v41 }
  0x2c   : > { %624 = vst.msk [vmem:[%s838_s30 + $0x88] sm:$0xff] %vm606_vm0, %v559_v45  ;;  %v561_v51 = vsel %vm426_vm5, %v362_v33, %v497_v43  ;;  %625 = vst.msk [vmem:[%s838_s30 + $0x90] sm:$0xff] %vm606_vm0, %v560_v50  ;;  %vm427_vm6 = vcmp.gt.f32.partialorder %v363_v46, 0.0  ;;  %v498_v56 = vmul.f32 %v820_v11, %v363_v46  ;;  %vm428_vm7 = vcmp.gt.f32.partialorder %v364_v47, 0.0  ;;  %v235_v33 = vld [vmem:[%s801_s23 + $0x110] sm:$0xff]  ;;  %v237_v45 = vld [vmem:[%s801_s23 + $0x120] sm:$0xff] }
  0x2d   : > { %626 = vst.msk [vmem:[%s838_s30 + $0x98] sm:$0xff] %vm606_vm0, %v561_v51  ;;  %v499_v57 = vmul.f32 %v820_v11, %v364_v47  ;;  %v365_v58 = vadd.f32 %v806_v1, %v294_v52  ;;  %v366_v59 = vadd.f32 %v806_v1, %v295_v53  ;;  %v296_v60 = vmul.f32 %v796_v0, %v225_v48 }
  0x2e   : > { %v297_v61 = vmul.f32 %v796_v0, %v226_v49  ;;  %v562_v62 = vsel %vm427_vm6, %v363_v46, %v498_v56  ;;  %v298_v2 = vmul.f32 %v796_v0, %v227_v54  ;;  %v299_v3 = vmul.f32 %v796_v0, %v228_v55  ;;  %v238_v46 = vld [vmem:[%s801_s23 + $0x128] sm:$0xff] }
  0x2f   : > { %v563_v63 = vsel %vm428_vm7, %v364_v47, %v499_v57  ;;  %627 = vst.msk [vmem:[%s838_s30 + $0xa0] sm:$0xff] %vm606_vm0, %v562_v62  ;;  %vm429_vm8 = vcmp.gt.f32.partialorder %v365_v58, 0.0  ;;  %v500_v6 = vmul.f32 %v820_v11, %v365_v58  ;;  %vm430_vm9 = vcmp.gt.f32.partialorder %v366_v59, 0.0 }
  0x30   : > { %628 = vst.msk [vmem:[%s838_s30 + $0xa8] sm:$0xff] %vm606_vm0, %v563_v63  ;;  %v501_v7 = vmul.f32 %v820_v11, %v366_v59  ;;  %v367_v8 = vadd.f32 %v806_v1, %v296_v60  ;;  %v368_v9 = vadd.f32 %v806_v1, %v297_v61  ;;  %v369_v10 = vadd.f32 %v806_v1, %v298_v2  ;;  %v240_v60 = vld [vmem:[%s801_s23 + $0x138] sm:$0xff] }
  0x31   : > { %v370_v12 = vadd.f32 %v806_v1, %v299_v3  ;;  %v564_v13 = vsel %vm429_vm8, %v365_v58, %v500_v6  ;;  %v300_v15 = vmul.f32 %v796_v0, %v229_v4  ;;  %v301_v16 = vmul.f32 %v796_v0, %v230_v5  ;;  %v241_v5 = vld [vmem:[%s801_s23 + $0x140] sm:$0xff]  ;;  %v242_v6 = vld [vmem:[%s801_s23 + $0x148] sm:$0xff] }
  0x32   : > { %v565_v14 = vsel %vm430_vm9, %v366_v59, %v501_v7  ;;  %629 = vst.msk [vmem:[%s838_s30 + $0xb0] sm:$0xff] %vm606_vm0, %v564_v13  ;;  %vm431_vm10 = vcmp.gt.f32.partialorder %v367_v8, 0.0  ;;  %v502_v17 = vmul.f32 %v820_v11, %v367_v8  ;;  %vm432_vm11 = vcmp.gt.f32.partialorder %v368_v9, 0.0  ;;  %v239_v59 = vld [vmem:[%s801_s23 + $0x130] sm:$0xff]  ;;  %v244_v13 = vld [vmem:[%s801_s23 + $0x158] sm:$0xff] }
  0x33   : > { %630 = vst.msk [vmem:[%s838_s30 + $0xb8] sm:$0xff] %vm606_vm0, %v565_v14  ;;  %v503_v18 = vmul.f32 %v820_v11, %v368_v9  ;;  %vm433_vm12 = vcmp.gt.f32.partialorder %v369_v10, 0.0  ;;  %v504_v21 = vmul.f32 %v820_v11, %v369_v10  ;;  %vm434_vm13 = vcmp.gt.f32.partialorder %v370_v12, 0.0 }
  0x34   : > { %v505_v22 = vmul.f32 %v820_v11, %v370_v12  ;;  %v566_v23 = vsel %vm431_vm10, %v367_v8, %v502_v17  ;;  %v371_v25 = vadd.f32 %v806_v1, %v300_v15  ;;  %v372_v26 = vadd.f32 %v806_v1, %v301_v16 }
  0x35   : > { %v567_v24 = vsel %vm432_vm11, %v368_v9, %v503_v18  ;;  %631 = vst.msk [vmem:[%s838_s30 + $0xc0] sm:$0xff] %vm606_vm0, %v566_v23  ;;  %v568_v29 = vsel %vm433_vm12, %v369_v10, %v504_v21  ;;  %v302_v31 = vmul.f32 %v796_v0, %v231_v19  ;;  %v303_v32 = vmul.f32 %v796_v0, %v232_v20 }
  0x36   : > { %632 = vst.msk [vmem:[%s838_s30 + $0xc8] sm:$0xff] %vm606_vm0, %v567_v24  ;;  %v569_v30 = vsel %vm434_vm13, %v370_v12, %v505_v22  ;;  %633 = vst.msk [vmem:[%s838_s30 + $0xd0] sm:$0xff] %vm606_vm0, %v568_v29  ;;  %vm435_vm14 = vcmp.gt.f32.partialorder %v371_v25, 0.0  ;;  %v506_v35 = vmul.f32 %v820_v11, %v371_v25  ;;  %vm436_vm15 = vcmp.gt.f32.partialorder %v372_v26, 0.0  ;;  %v243_v12 = vld [vmem:[%s801_s23 + $0x150] sm:$0xff]  ;;  %v245_v24 = vld [vmem:[%s801_s23 + $0x160] sm:$0xff] }
  0x37   : > { %634 = vst.msk [vmem:[%s838_s30 + $0xd8] sm:$0xff] %vm606_vm0, %v569_v30  ;;  %v507_v36 = vmul.f32 %v820_v11, %v372_v26  ;;  %v373_v37 = vadd.f32 %v806_v1, %v302_v31  ;;  %v374_v38 = vadd.f32 %v806_v1, %v303_v32  ;;  %v304_v39 = vmul.f32 %v796_v0, %v233_v27 }
  0x38   : > { %v305_v40 = vmul.f32 %v796_v0, %v234_v28  ;;  %v570_v41 = vsel %vm435_vm14, %v371_v25, %v506_v35  ;;  %v306_v43 = vmul.f32 %v796_v0, %v235_v33  ;;  %v307_v44 = vmul.f32 %v796_v0, %v236_v34  ;;  %v246_v25 = vld [vmem:[%s801_s23 + $0x168] sm:$0xff] }
  0x39   : > { %v571_v42 = vsel %vm436_vm15, %v372_v26, %v507_v36  ;;  %635 = vst.msk [vmem:[%s838_s30 + $0xe0] sm:$0xff] %vm606_vm0, %v570_v41  ;;  %vm437_vm1 = vcmp.gt.f32.partialorder %v373_v37, 0.0  ;;  %v508_v47 = vmul.f32 %v820_v11, %v373_v37  ;;  %vm438_vm2 = vcmp.gt.f32.partialorder %v374_v38, 0.0 }
  0x3a   : > { %636 = vst.msk [vmem:[%s838_s30 + $0xe8] sm:$0xff] %vm606_vm0, %v571_v42  ;;  %v509_v48 = vmul.f32 %v820_v11, %v374_v38  ;;  %v375_v49 = vadd.f32 %v806_v1, %v304_v39  ;;  %v376_v50 = vadd.f32 %v806_v1, %v305_v40  ;;  %v377_v51 = vadd.f32 %v806_v1, %v306_v43  ;;  %v248_v39 = vld [vmem:[%s801_s23 + $0x178] sm:$0xff] }
  0x3b   : > { %v378_v52 = vadd.f32 %v806_v1, %v307_v44  ;;  %v572_v53 = vsel %vm437_vm1, %v373_v37, %v508_v47  ;;  %v308_v55 = vmul.f32 %v796_v0, %v237_v45  ;;  %v309_v56 = vmul.f32 %v796_v0, %v238_v46  ;;  %v249_v46 = vld [vmem:[%s801_s23 + $0x180] sm:$0xff]  ;;  %v250_v47 = vld [vmem:[%s801_s23 + $0x188] sm:$0xff] }
  0x3c   : > { %v573_v54 = vsel %vm438_vm2, %v374_v38, %v509_v48  ;;  %637 = vst.msk [vmem:[%s838_s30 + $0xf0] sm:$0xff] %vm606_vm0, %v572_v53  ;;  %vm439_vm3 = vcmp.gt.f32.partialorder %v375_v49, 0.0  ;;  %v510_v57 = vmul.f32 %v820_v11, %v375_v49  ;;  %vm440_vm4 = vcmp.gt.f32.partialorder %v376_v50, 0.0  ;;  %v247_v38 = vld [vmem:[%s801_s23 + $0x170] sm:$0xff]  ;;  %v252_v53 = vld [vmem:[%s801_s23 + $0x198] sm:$0xff] }
  0x3d   : > { %638 = vst.msk [vmem:[%s838_s30 + $0xf8] sm:$0xff] %vm606_vm0, %v573_v54  ;;  %v511_v58 = vmul.f32 %v820_v11, %v376_v50  ;;  %vm441_vm5 = vcmp.gt.f32.partialorder %v377_v51, 0.0  ;;  %v512_v61 = vmul.f32 %v820_v11, %v377_v51  ;;  %vm442_vm6 = vcmp.gt.f32.partialorder %v378_v52, 0.0 }
  0x3e   : > { %v513_v62 = vmul.f32 %v820_v11, %v378_v52  ;;  %v574_v63 = vsel %vm439_vm3, %v375_v49, %v510_v57  ;;  %v379_v3 = vadd.f32 %v806_v1, %v308_v55  ;;  %v380_v4 = vadd.f32 %v806_v1, %v309_v56 }
  0x3f   : > { %v575_v2 = vsel %vm440_vm4, %v376_v50, %v511_v58  ;;  %639 = vst.msk [vmem:[%s838_s30 + $0x100] sm:$0xff] %vm606_vm0, %v574_v63  ;;  %v576_v7 = vsel %vm441_vm5, %v377_v51, %v512_v61  ;;  %v310_v9 = vmul.f32 %v796_v0, %v239_v59  ;;  %v311_v10 = vmul.f32 %v796_v0, %v240_v60 }
  0x40   : > { %640 = vst.msk [vmem:[%s838_s30 + $0x108] sm:$0xff] %vm606_vm0, %v575_v2  ;;  %v577_v8 = vsel %vm442_vm6, %v378_v52, %v513_v62  ;;  %641 = vst.msk [vmem:[%s838_s30 + $0x110] sm:$0xff] %vm606_vm0, %v576_v7  ;;  %vm443_vm7 = vcmp.gt.f32.partialorder %v379_v3, 0.0  ;;  %v514_v14 = vmul.f32 %v820_v11, %v379_v3  ;;  %vm444_vm8 = vcmp.gt.f32.partialorder %v380_v4, 0.0  ;;  %v251_v52 = vld [vmem:[%s801_s23 + $0x190] sm:$0xff]  ;;  %v253_v2 = vld [vmem:[%s801_s23 + $0x1a0] sm:$0xff] }
  0x41   : > { %642 = vst.msk [vmem:[%s838_s30 + $0x118] sm:$0xff] %vm606_vm0, %v577_v8  ;;  %v515_v15 = vmul.f32 %v820_v11, %v380_v4  ;;  %v381_v16 = vadd.f32 %v806_v1, %v310_v9  ;;  %v382_v17 = vadd.f32 %v806_v1, %v311_v10  ;;  %v312_v18 = vmul.f32 %v796_v0, %v241_v5 }
  0x42   : > { %v313_v19 = vmul.f32 %v796_v0, %v242_v6  ;;  %v578_v20 = vsel %vm443_vm7, %v379_v3, %v514_v14  ;;  %v314_v22 = vmul.f32 %v796_v0, %v243_v12  ;;  %v315_v23 = vmul.f32 %v796_v0, %v244_v13  ;;  %v254_v3 = vld [vmem:[%s801_s23 + $0x1a8] sm:$0xff] }
  0x43   : > { %v579_v21 = vsel %vm444_vm8, %v380_v4, %v515_v15  ;;  %643 = vst.msk [vmem:[%s838_s30 + $0x120] sm:$0xff] %vm606_vm0, %v578_v20  ;;  %vm445_vm9 = vcmp.gt.f32.partialorder %v381_v16, 0.0  ;;  %v516_v26 = vmul.f32 %v820_v11, %v381_v16  ;;  %vm446_vm10 = vcmp.gt.f32.partialorder %v382_v17, 0.0 }
  0x44   : > { %644 = vst.msk [vmem:[%s838_s30 + $0x128] sm:$0xff] %vm606_vm0, %v579_v21  ;;  %v517_v27 = vmul.f32 %v820_v11, %v382_v17  ;;  %v383_v28 = vadd.f32 %v806_v1, %v312_v18  ;;  %v384_v29 = vadd.f32 %v806_v1, %v313_v19  ;;  %v385_v30 = vadd.f32 %v806_v1, %v314_v22  ;;  %v256_v18 = vld [vmem:[%s801_s23 + $0x1b8] sm:$0xff] }
  0x45   : > { %v386_v31 = vadd.f32 %v806_v1, %v315_v23  ;;  %v580_v32 = vsel %vm445_vm9, %v381_v16, %v516_v26  ;;  %v316_v34 = vmul.f32 %v796_v0, %v245_v24  ;;  %v317_v35 = vmul.f32 %v796_v0, %v246_v25  ;;  %v257_v25 = vld [vmem:[%s801_s23 + $0x1c0] sm:$0xff]  ;;  %v258_v26 = vld [vmem:[%s801_s23 + $0x1c8] sm:$0xff] }
  0x46   : > { %v581_v33 = vsel %vm446_vm10, %v382_v17, %v517_v27  ;;  %645 = vst.msk [vmem:[%s838_s30 + $0x130] sm:$0xff] %vm606_vm0, %v580_v32  ;;  %vm447_vm11 = vcmp.gt.f32.partialorder %v383_v28, 0.0  ;;  %v518_v36 = vmul.f32 %v820_v11, %v383_v28  ;;  %vm448_vm12 = vcmp.gt.f32.partialorder %v384_v29, 0.0  ;;  %v255_v17 = vld [vmem:[%s801_s23 + $0x1b0] sm:$0xff]  ;;  %v260_v32 = vld [vmem:[%s801_s23 + $0x1d8] sm:$0xff] }
  0x47   : > { %646 = vst.msk [vmem:[%s838_s30 + $0x138] sm:$0xff] %vm606_vm0, %v581_v33  ;;  %v519_v37 = vmul.f32 %v820_v11, %v384_v29  ;;  %vm449_vm13 = vcmp.gt.f32.partialorder %v385_v30, 0.0  ;;  %v520_v40 = vmul.f32 %v820_v11, %v385_v30  ;;  %vm450_vm14 = vcmp.gt.f32.partialorder %v386_v31, 0.0 }
  0x48   : > { %v521_v41 = vmul.f32 %v820_v11, %v386_v31  ;;  %v582_v42 = vsel %vm447_vm11, %v383_v28, %v518_v36  ;;  %v387_v44 = vadd.f32 %v806_v1, %v316_v34  ;;  %v388_v45 = vadd.f32 %v806_v1, %v317_v35 }
  0x49   : > { %v583_v43 = vsel %vm448_vm12, %v384_v29, %v519_v37  ;;  %647 = vst.msk [vmem:[%s838_s30 + $0x140] sm:$0xff] %vm606_vm0, %v582_v42  ;;  %v584_v48 = vsel %vm449_vm13, %v385_v30, %v520_v40  ;;  %v318_v50 = vmul.f32 %v796_v0, %v247_v38  ;;  %v319_v51 = vmul.f32 %v796_v0, %v248_v39 }
  0x4a   : > { %648 = vst.msk [vmem:[%s838_s30 + $0x148] sm:$0xff] %vm606_vm0, %v583_v43  ;;  %v585_v49 = vsel %vm450_vm14, %v386_v31, %v521_v41  ;;  %649 = vst.msk [vmem:[%s838_s30 + $0x150] sm:$0xff] %vm606_vm0, %v584_v48  ;;  %vm451_vm15 = vcmp.gt.f32.partialorder %v387_v44, 0.0  ;;  %v522_v54 = vmul.f32 %v820_v11, %v387_v44  ;;  %vm452_vm1 = vcmp.gt.f32.partialorder %v388_v45, 0.0  ;;  %v259_v31 = vld [vmem:[%s801_s23 + $0x1d0] sm:$0xff]  ;;  %v261_v43 = vld [vmem:[%s801_s23 + $0x1e0] sm:$0xff] }
  0x4b   : > { %650 = vst.msk [vmem:[%s838_s30 + $0x158] sm:$0xff] %vm606_vm0, %v585_v49  ;;  %v523_v55 = vmul.f32 %v820_v11, %v388_v45  ;;  %v389_v56 = vadd.f32 %v806_v1, %v318_v50  ;;  %v390_v57 = vadd.f32 %v806_v1, %v319_v51  ;;  %v320_v58 = vmul.f32 %v796_v0, %v249_v46 }
  0x4c   : > { %v321_v59 = vmul.f32 %v796_v0, %v250_v47  ;;  %v586_v60 = vsel %vm451_vm15, %v387_v44, %v522_v54  ;;  %v322_v62 = vmul.f32 %v796_v0, %v251_v52  ;;  %v323_v63 = vmul.f32 %v796_v0, %v252_v53  ;;  %v262_v44 = vld [vmem:[%s801_s23 + $0x1e8] sm:$0xff] }
  0x4d   : > { %v587_v61 = vsel %vm452_vm1, %v388_v45, %v523_v55  ;;  %651 = vst.msk [vmem:[%s838_s30 + $0x160] sm:$0xff] %vm606_vm0, %v586_v60  ;;  %vm453_vm2 = vcmp.gt.f32.partialorder %v389_v56, 0.0  ;;  %v524_v4 = vmul.f32 %v820_v11, %v389_v56  ;;  %vm454_vm3 = vcmp.gt.f32.partialorder %v390_v57, 0.0 }
  0x4e   : > { %652 = vst.msk [vmem:[%s838_s30 + $0x168] sm:$0xff] %vm606_vm0, %v587_v61  ;;  %v525_v5 = vmul.f32 %v820_v11, %v390_v57  ;;  %v391_v6 = vadd.f32 %v806_v1, %v320_v58  ;;  %v392_v7 = vadd.f32 %v806_v1, %v321_v59  ;;  %v393_v8 = vadd.f32 %v806_v1, %v322_v62  ;;  %v264_v58 = vld [vmem:[%s801_s23 + $0x1f8] sm:$0xff] }
  0x4f   : > { %v394_v9 = vadd.f32 %v806_v1, %v323_v63  ;;  %v588_v10 = vsel %vm453_vm2, %v389_v56, %v524_v4  ;;  %v324_v13 = vmul.f32 %v796_v0, %v253_v2  ;;  %v325_v14 = vmul.f32 %v796_v0, %v254_v3 }
  0x50   : > { %v589_v12 = vsel %vm454_vm3, %v390_v57, %v525_v5  ;;  %653 = vst.msk [vmem:[%s838_s30 + $0x170] sm:$0xff] %vm606_vm0, %v588_v10  ;;  %vm455_vm4 = vcmp.gt.f32.partialorder %v391_v6, 0.0  ;;  %v526_v15 = vmul.f32 %v820_v11, %v391_v6  ;;  %vm456_vm5 = vcmp.gt.f32.partialorder %v392_v7, 0.0  ;;  %v263_v57 = vld [vmem:[%s801_s23 + $0x1f0] sm:$0xff] }
  0x51   : > { %654 = vst.msk [vmem:[%s838_s30 + $0x178] sm:$0xff] %vm606_vm0, %v589_v12  ;;  %v527_v16 = vmul.f32 %v820_v11, %v392_v7  ;;  %vm457_vm6 = vcmp.gt.f32.partialorder %v393_v8, 0.0  ;;  %v528_v19 = vmul.f32 %v820_v11, %v393_v8  ;;  %vm458_vm7 = vcmp.gt.f32.partialorder %v394_v9, 0.0 }
  0x52   : > { %v529_v20 = vmul.f32 %v820_v11, %v394_v9  ;;  %v590_v21 = vsel %vm455_vm4, %v391_v6, %v526_v15  ;;  %v395_v23 = vadd.f32 %v806_v1, %v324_v13  ;;  %v396_v24 = vadd.f32 %v806_v1, %v325_v14 }
  0x53   : > { %v591_v22 = vsel %vm456_vm5, %v392_v7, %v527_v16  ;;  %655 = vst.msk [vmem:[%s838_s30 + $0x180] sm:$0xff] %vm606_vm0, %v590_v21  ;;  %v592_v27 = vsel %vm457_vm6, %v393_v8, %v528_v19  ;;  %v326_v29 = vmul.f32 %v796_v0, %v255_v17  ;;  %v327_v30 = vmul.f32 %v796_v0, %v256_v18 }
  0x54   : > { %656 = vst.msk [vmem:[%s838_s30 + $0x188] sm:$0xff] %vm606_vm0, %v591_v22  ;;  %v593_v28 = vsel %vm458_vm7, %v394_v9, %v529_v20  ;;  %657 = vst.msk [vmem:[%s838_s30 + $0x190] sm:$0xff] %vm606_vm0, %v592_v27  ;;  %vm459_vm8 = vcmp.gt.f32.partialorder %v395_v23, 0.0  ;;  %v530_v33 = vmul.f32 %v820_v11, %v395_v23  ;;  %vm460_vm9 = vcmp.gt.f32.partialorder %v396_v24, 0.0 }
  0x55   : > { %658 = vst.msk [vmem:[%s838_s30 + $0x198] sm:$0xff] %vm606_vm0, %v593_v28  ;;  %v531_v34 = vmul.f32 %v820_v11, %v396_v24  ;;  %v397_v35 = vadd.f32 %v806_v1, %v326_v29  ;;  %v398_v36 = vadd.f32 %v806_v1, %v327_v30  ;;  %v328_v37 = vmul.f32 %v796_v0, %v257_v25 }
  0x56   : > { %v329_v38 = vmul.f32 %v796_v0, %v258_v26  ;;  %v594_v39 = vsel %vm459_vm8, %v395_v23, %v530_v33  ;;  %v330_v41 = vmul.f32 %v796_v0, %v259_v31  ;;  %v331_v42 = vmul.f32 %v796_v0, %v260_v32 }
  0x57   : > { %v595_v40 = vsel %vm460_vm9, %v396_v24, %v531_v34  ;;  %659 = vst.msk [vmem:[%s838_s30 + $0x1a0] sm:$0xff] %vm606_vm0, %v594_v39  ;;  %vm461_vm10 = vcmp.gt.f32.partialorder %v397_v35, 0.0  ;;  %v532_v45 = vmul.f32 %v820_v11, %v397_v35  ;;  %vm462_vm11 = vcmp.gt.f32.partialorder %v398_v36, 0.0 }
  0x58   : > { %660 = vst.msk [vmem:[%s838_s30 + $0x1a8] sm:$0xff] %vm606_vm0, %v595_v40  ;;  %v533_v46 = vmul.f32 %v820_v11, %v398_v36  ;;  %v399_v47 = vadd.f32 %v806_v1, %v328_v37  ;;  %v400_v48 = vadd.f32 %v806_v1, %v329_v38  ;;  %v401_v49 = vadd.f32 %v806_v1, %v330_v41 }
  0x59   : > { %v402_v50 = vadd.f32 %v806_v1, %v331_v42  ;;  %v596_v51 = vsel %vm461_vm10, %v397_v35, %v532_v45  ;;  %v332_v53 = vmul.f32 %v796_v0, %v261_v43  ;;  %v333_v54 = vmul.f32 %v796_v0, %v262_v44 }
  0x5a   : > { %v597_v52 = vsel %vm462_vm11, %v398_v36, %v533_v46  ;;  %661 = vst.msk [vmem:[%s838_s30 + $0x1b0] sm:$0xff] %vm606_vm0, %v596_v51  ;;  %vm463_vm12 = vcmp.gt.f32.partialorder %v399_v47, 0.0  ;;  %v534_v55 = vmul.f32 %v820_v11, %v399_v47  ;;  %vm464_vm13 = vcmp.gt.f32.partialorder %v400_v48, 0.0 }
  0x5b   : > { %662 = vst.msk [vmem:[%s838_s30 + $0x1b8] sm:$0xff] %vm606_vm0, %v597_v52  ;;  %v535_v56 = vmul.f32 %v820_v11, %v400_v48  ;;  %vm465_vm14 = vcmp.gt.f32.partialorder %v401_v49, 0.0  ;;  %v536_v59 = vmul.f32 %v820_v11, %v401_v49  ;;  %vm466_vm15 = vcmp.gt.f32.partialorder %v402_v50, 0.0 }
  0x5c   : > { %v537_v60 = vmul.f32 %v820_v11, %v402_v50  ;;  %v598_v61 = vsel %vm463_vm12, %v399_v47, %v534_v55  ;;  %v403_v63 = vadd.f32 %v806_v1, %v332_v53  ;;  %v404_v2 = vadd.f32 %v806_v1, %v333_v54 }
  0x5d   : > { %v599_v62 = vsel %vm464_vm13, %v400_v48, %v535_v56  ;;  %663 = vst.msk [vmem:[%s838_s30 + $0x1c0] sm:$0xff] %vm606_vm0, %v598_v61  ;;  %v600_v3 = vsel %vm465_vm14, %v401_v49, %v536_v59  ;;  %v334_v5 = vmul.f32 %v796_v0, %v263_v57  ;;  %v335_v6 = vmul.f32 %v796_v0, %v264_v58 }
  0x5e   : > { %664 = vst.msk [vmem:[%s838_s30 + $0x1c8] sm:$0xff] %vm606_vm0, %v599_v62  ;;  %v601_v4 = vsel %vm466_vm15, %v402_v50, %v537_v60  ;;  %665 = vst.msk [vmem:[%s838_s30 + $0x1d0] sm:$0xff] %vm606_vm0, %v600_v3  ;;  %vm467_vm1 = vcmp.gt.f32.partialorder %v403_v63, 0.0  ;;  %v538_v7 = vmul.f32 %v820_v11, %v403_v63  ;;  %vm468_vm2 = vcmp.gt.f32.partialorder %v404_v2, 0.0 }
  0x5f   : > { %666 = vst.msk [vmem:[%s838_s30 + $0x1d8] sm:$0xff] %vm606_vm0, %v601_v4  ;;  %v539_v8 = vmul.f32 %v820_v11, %v404_v2  ;;  %v405_v9 = vadd.f32 %v806_v1, %v334_v5  ;;  %v406_v10 = vadd.f32 %v806_v1, %v335_v6 }
  0x60   : > { %v602_v12 = vsel %vm467_vm1, %v403_v63, %v538_v7 }
  0x61   : > { %v603_v13 = vsel %vm468_vm2, %v404_v2, %v539_v8  ;;  %667 = vst.msk [vmem:[%s838_s30 + $0x1e0] sm:$0xff] %vm606_vm0, %v602_v12  ;;  %vm469_vm3 = vcmp.gt.f32.partialorder %v405_v9, 0.0  ;;  %v540_v0 = vmul.f32 %v820_v11, %v405_v9  ;;  %vm470_vm4 = vcmp.gt.f32.partialorder %v406_v10, 0.0 }
  0x62   : > { %668 = vst.msk [vmem:[%s838_s30 + $0x1e8] sm:$0xff] %vm606_vm0, %v603_v13  ;;  %v541_v14 = vmul.f32 %v820_v11, %v406_v10 }
  0x63   : > { %v604_v15 = vsel %vm469_vm3, %v405_v9, %v540_v0 }
  0x64   : > { %v605_v16 = vsel %vm470_vm4, %v406_v10, %v541_v14  ;;  %669 = vst.msk [vmem:[%s838_s30 + $0x1f0] sm:$0xff] %vm606_vm0, %v604_v15 }
  0x65   : > { %670 = vst.msk [vmem:[%s838_s30 + $0x1f8] sm:$0xff] %vm606_vm0, %v605_v16 }
  0x66 PF: > { %s14_s15 = sadd.s32 1, %s755_s15  }
  0x67   : > { %p11_p4 = scmp.ge.s32.totalorder %s14_s15, 6  }
  0x69   :  { %13 = sbr.rel (!%p11_p4) target bundleno = 1 (0x1), region = 66 }

// kernel: upconv_forward.6
= control target key start
LH: loop header
LB: loop body
LE: loop exit
PB: predicated region body
PF: predicated region fallthrough
CT: control target
= control target key end

     0   :  { %s8941_s15 = smov 0   ;;  %s8943_s16 = smov 0   ;;  %s11792_s0 = inlined_call_operand.vmem [shape: f32[2,36,36,4], index: 0, kind: input, shape index: {}]   ;;  %s11793_s1 = inlined_call_operand.vmem [shape: bf16[3,3,4,4], index: 1, kind: input, shape index: {}]   ;;  %s11794_s2 = inlined_call_operand.vmem [shape: f32[1,4], index: 2, kind: input, shape index: {}]   ;;  %s11795_s3 = inlined_call_operand.vmem [shape: f32[2,32,32,4], index: 3, kind: output, shape index: {0}]   ;;  %s11796_s4 = inlined_call_operand.vmem [shape: f32[2,2,2,4], index: 4, kind: output, shape index: {1}]  }
   0x1   :  { %s8945_s17 = smov 0   ;;  %s8947_s18 = smov 0  }
   0x2   :  { %s8949_s19 = smov 0  }
   0x3 LB: > { %s24_s20 = sadd.s32 1, %s8906_s17  ;;  %s27_s21 = sadd.s32 1, %s8910_s18  ;;  %s8914_s19 = sphi %s8949_s19, %s15_s19   ;;  %s8910_s18 = sphi %s8947_s18, %s12303_s18   ;;  %s8906_s17 = sphi %s8945_s17, %s12302_s17   ;;  %s8902_s16 = sphi %s8943_s16, %s12301_s16   ;;  %s8898_s15 = sphi %s8941_s15, %s12300_s15  }
   0x4   : > { %p25_p0 = scmp.ge.s32.totalorder %s24_s20, 2  ;;  %p6851_p1 = scmp.ge.s32.totalorder %s8914_s19, 1 }
   0x5   : > { %p181_p2 = scmp.lt.s32.totalorder %s8914_s19, 5 }
   0x6   : > { %s12305_s20 = smov (%p25_p0, %s24_s20), 0  ;;  %s12307_s21 = smov (!%p25_p0, %s27_s21), %s8910_s18 }
   0x7   : > { %p182_p3 = pnand %p6851_p1, %p181_p2  ;;  %p29_p4 = scmp.ge.s32.totalorder %s12307_s21, 2 }
   0x9   : > { %s12309_s21 = smov (%p29_p4, %s12307_s21), 0  ;;  %185 = sbr.rel (%p182_p3) target bundleno = 845 (0x34d), region = 32 }
  0x10   : > { %v6861_v0 = vld [vmem:[%s11793_s1 + $0x2] sm:$0x3]  ;;  %vm781_vm0 = vcmask 1041408   ;;  %v7074_v1 = vld [vmem:[%s11793_s1 + $0x8] sm:$0x3]  ;;  %p220_p5 = scmp.lt.s32.totalorder %s8902_s16, 1 }
  0x11   : > { %8729 = vmatprep.subr.msk.bf16.mxu1 %vm781_vm0, %v6861_v0  ;;  %8733 = vmatprep.subr.msk.bf16.mxu0 %vm781_vm0, %v7074_v1  ;;  %v783_v2 = vsel %vm781_vm0, %v6861_v0, 0  ;;  %v8983_v3 = vsel %vm781_vm0, %v7074_v1, 0  ;;  %v360_v4 = vld [vmem:[%s11793_s1] sm:$0x3]  ;;  %v7107_v5 = vld [vmem:[%s11793_s1 + $0xa] sm:$0x3] }
  0x12   : > { %11963 = vst [vmem:[#allocation2_spill] sm:$0xff] %v8983_v3  ;;  %7622 = vmatpush3.bf16.msra.mxu1 %v783_v2  ;;  %7886 = vmatpush3.bf16.msra.mxu0 %v8983_v3  ;;  %s12311_s16 = smov (!%p220_p5, %s8902_s16), 1  ;;  %s6860_s30 = smul.u32 640, %s8898_s15  ;;  %vm441_vm1 = vcmask 1045504   ;;  %vm684_vm2 = vcmask 31744   ;;  %vm1462_vm3 = vcmask 1043456  }
  0x13   : > { %8730 = vmatprep.subr.msk.bf16.mxu1 %vm781_vm0, %v360_v4  ;;  %8735 = vmatprep.subr.msk.bf16.mxu0 %vm781_vm0, %v7107_v5  ;;  %s8739_s5 = smul.u32 1440, %s12311_s16  ;;  %v1171_v36 = vsel %vm781_vm0, %v360_v4, 0  ;;  %v3839_v44 = vsel %vm781_vm0, %v7107_v5, 0  ;;  %s6853_s29 = sshll.u32 %s8898_s15, 4  ;;  %vm6696_vm4 = vcmask 1040384   ;;  %vm6698_vm5 = vcmask 25600  }
  0x14   : > { %p228_p6 = scmp.lt.s32.totalorder %s6853_s29, 31  ;;  %p238_p7 = scmp.lt.s32.totalorder %s8898_s15, 1 }
  0x15   : > { %s224_s8 = scalar_lea.vmem %s11792_s0, %s8739_s5  ;;  %s6855_s5 = sshll.u32 %s12311_s16, 7 }
  0x16   : > { %s9001_s9 = scalar_lea.vmem %s224_s8, %s6860_s30  ;;  %s12313_s29 = smov (!%p228_p6, %s6853_s29), 31 }
  0x17   : > { %v9004_v6 = vld [vmem:[%s9001_s9] sm:$0xff]  ;;  %v9007_v7 = vld [vmem:[%s9001_s9 + $0x8] sm:$0xff]  ;;  %v9010_v8 = vld [vmem:[%s9001_s9 + $0x10] sm:$0xff]  ;;  %s6854_s30 = sshll.u32 %s12313_s29, 2  ;;  %s12315_s15 = smov (!%p238_p7, %s8898_s15), 1 }
  0x18   : > { %11964 = vst [vmem:[#allocation3_spill] sm:$0xff] %v9007_v7  ;;  %11965 = vst [vmem:[#allocation4_spill] sm:$0xff] %v9010_v8  ;;  %v9013_v9 = vld [vmem:[%s9001_s9 + $0x18] sm:$0xff]  ;;  %v442_v10 = vrot.slane %v9004_v6, 2  ;;  %v443_v11 = vrot.slane %v9007_v7, 2  ;;  %v445_v12 = vrot.slane %v9010_v8, 2  ;;  %s232_s6 = sadd.s32 %s6855_s5, %s6854_s30 }
  0x19   : > { %11966 = vst [vmem:[#allocation5_spill] sm:$0xff] %v9013_v9  ;;  %v9019_v13 = vld [vmem:[%s9001_s9 + $0x50] sm:$0xff]  ;;  %v11797_v15 = vrot.slane %v9010_v8, 4  ;;  %v11798_v16 = vrot.slane %v9013_v9, 4  ;;  %v9026_v17 = vld [vmem:[%s9001_s9 + $0x58] sm:$0xff]  ;;  %v9029_v18 = vld [vmem:[%s9001_s9 + $0x60] sm:$0xff] }
  0x1a   : > { %11967 = vst [vmem:[#allocation6_spill] sm:$0xff] %v9029_v18  ;;  %v444_v19 = vsel %vm441_vm1, %v442_v10, %v443_v11  ;;  %v446_v20 = vsel %vm441_vm1, %v443_v11, %v445_v12  ;;  %v2806_v21 = vrot.slane %v9019_v13, 2  ;;  %v9035_v22 = vld [vmem:[%s9001_s9 + $0x20] sm:$0xf]  ;;  %v9045_v25 = vld [vmem:[%s9001_s9 + $0x68] sm:$0xff]  ;;  %v2807_v26 = vrot.slane %v9026_v17, 2 }
  0x1b   : > { %11968 = vst [vmem:[#allocation7_spill] sm:$0xff] %v9035_v22  ;;  %v650_v23 = vpack.c.bf16 %v446_v20, %v444_v19  ;;  %v9042_v24 = vsel %vm1462_vm3, %v11797_v15, %v11798_v16  ;;  %v2809_v27 = vrot.slane %v9029_v18, 2  ;;  %v9050_v28 = vld [vmem:[%s9001_s9 + $0x70] sm:$0xf]  ;;  %v447_v31 = vrot.slane %v9013_v9, 2  ;;  %v9058_v33 = vld [vmem:[%s9001_s9 + $0x28] sm:$0xff] }
  0x1c   : > { %11969 = vst [vmem:[#allocation8_spill] sm:$0xff] %v9042_v24  ;;  %v2808_v29 = vsel %vm441_vm1, %v2806_v21, %v2807_v26  ;;  %v449_v32 = vrot.slane %v9035_v22, 2  ;;  %11970 = vst [vmem:[#allocation9_spill] sm:$0xff] %v9058_v33  ;;  %v9061_v34 = vld [vmem:[%s9001_s9 + $0x30] sm:$0xff]  ;;  %v9067_v37 = vrot.slane %v9045_v25, 2  ;;  %v9070_v38 = vld [vmem:[%s9001_s9 + $0x38] sm:$0xff] }
  0x1d   : > { %7623 = vmatprep.mubr.msk.bf16.mxu1 %vm684_vm2, %v650_v23  ;;  %v2810_v30 = vsel %vm441_vm1, %v2807_v26, %v2809_v27  ;;  %11971 = vst [vmem:[#allocation10_spill] sm:$0xff] %v9061_v34  ;;  %11972 = vst [vmem:[#allocation11_spill] sm:$0xff] %v9070_v38  ;;  %v9073_v39 = vld [vmem:[%s9001_s9 + $0x78] sm:$0xff]  ;;  %v9076_v40 = vld [vmem:[%s9001_s9 + $0x80] sm:$0xff]  ;;  %v448_v41 = vsel %vm441_vm1, %v445_v12, %v447_v31  ;;  %v2813_v43 = vrot.slane %v9050_v28, 2  ;;  %v451_v49 = vrot.slane %v9058_v33, 2 }
  0x1e   : > { %v9063_v35 = vpack.c.bf16 %v2810_v30, %v2808_v29  ;;  %v450_v42 = vsel %vm441_vm1, %v447_v31, %v449_v32  ;;  %v9083_v45 = vld [vmem:[%s9001_s9 + $0x88] sm:$0xff]  ;;  %v9086_v46 = vld [vmem:[%s9001_s9 + $0x40] sm:$0xff]  ;;  %v9092_v48 = vsel %vm441_vm1, %v2809_v27, %v9067_v37  ;;  %v452_v50 = vrot.slane %v9061_v34, 2  ;;  %v9098_v52 = vld [vmem:[%s9001_s9 + $0x90] sm:$0xff]  ;;  %s6856_s7 = sshll.u32 %s232_s6, 3  ;;  %s6857_s22 = sshll.u32 %s12311_s16, 1 }
  0x1f   : > { %11973 = vst [vmem:[#allocation12_spill] sm:$0xff] %v9083_v45  ;;  %11974 = vst [vmem:[#allocation13_spill] sm:$0xff] %v9086_v46  ;;  %v651_v47 = vpack.c.bf16 %v450_v42, %v448_v41  ;;  %v257_v51 = vld [vmem:[%s9001_s9 + $0x48] sm:$0xf]  ;;  %v2814_v53 = vsel %vm441_vm1, %v9067_v37, %v2813_v43  ;;  %v454_v54 = vrot.slane %v9070_v38, 2  ;;  %v2815_v55 = vrot.slane %v9073_v39, 2  ;;  %s11427_s12 = scalar_lea.vmem %s11795_s3, %s6856_s7  ;;  %s241_s23 = sadd.s32 %s6857_s22, %s12315_s15 }
  0x20   : > { %7887 = vmatprep.mubr.msk.bf16.mxu0 %vm684_vm2, %v9063_v35  ;;  %v2816_v56 = vrot.slane %v9076_v40, 2  ;;  %v9106_v57 = vld [vmem:[%s9001_s9 + $0x98] sm:$0xf]  ;;  %v3015_v58 = vpack.c.bf16 %v2814_v53, %v9092_v48  ;;  %v453_v59 = vsel %vm441_vm1, %v451_v49, %v452_v50  ;;  %v2818_v60 = vrot.slane %v9083_v45, 2  ;;  %v9114_v62 = vld [vmem:[%s9001_s9 + $0xa0] sm:$0xff]  ;;  %v9122_v4 = vld [vmem:[%s9001_s9 + $0xa8] sm:$0xff] }
  0x21   : > { %7624 = vmatmul.mubr.msk.bf16.vlgmr.msra.gmra.mrb[0].mxu1 %vm684_vm2, %v651_v47  ;;  %v456_v61 = vrot.slane %v9086_v46, 2  ;;  %v455_v63 = vsel %vm441_vm1, %v452_v50, %v454_v54  ;;  %v458_v1 = vrot.slane %v257_v51, 2  ;;  %v9119_v2 = vrot.slane %v9098_v52, 2  ;;  %v9125_v5 = vld [vmem:[%s9001_s9 + $0xb0] sm:$0xff]  ;;  %v9130_v10 = vld [vmem:[%s11793_s1 + $0xc] sm:$0x3] }
  0x22   : > { %7688 = vmatpush3.bf16.msra.mxu1 %v1171_v36  ;;  %v2817_v0 = vsel %vm441_vm1, %v2815_v55, %v2816_v56  ;;  %11975 = vst [vmem:[#allocation14_spill] sm:$0xff] %v9125_v5  ;;  %7888 = vmatmul.mubr.msk.bf16.vlgmr.msra.gmra.mrb[0].mxu0 %vm684_vm2, %v3015_v58  ;;  %v652_v11 = vpack.c.bf16 %v455_v63, %v453_v59  ;;  %v2822_v20 = vrot.slane %v9106_v57, 2  ;;  %v262_v21 = vld [vmem:[%s9001_s9 + $0x70] sm:$0xf]  ;;  %v2824_v29 = vrot.slane %v9114_v62, 2  ;;  %v9149_v41 = vld [vmem:[%s9001_s9 + $0xb8] sm:$0xff] }
  0x23   : > { %v2819_v12 = vsel %vm441_vm1, %v2816_v56, %v2818_v60  ;;  %v457_v19 = vsel %vm441_vm1, %v454_v54, %v456_v61  ;;  %7952 = vmatpush3.bf16.msra.mxu0 %v3839_v44  ;;  %v459_v26 = vsel %vm441_vm1, %v456_v61, %v458_v1  ;;  %v9140_v27 = vsel %vm441_vm1, %v2818_v60, %v9119_v2  ;;  %v9152_v42 = vld [vmem:[%s9001_s9 + $0xc0] sm:$0xf]  ;;  %v9158_v44 = vld [vmem:[%s9001_s9 + $0xc8] sm:$0xff]  ;;  %v9161_v47 = vld [vmem:[%s9001_s9 + $0xd0] sm:$0xff]  ;;  %s6858_s24 = sshll.u32 %s241_s23, 1 }
  0x24   : > { %v3016_v23 = vpack.c.bf16 %v2819_v12, %v2817_v0  ;;  %7627 = vmatprep.mubr.msk.bf16.mxu1 %vm684_vm2, %v652_v11  ;;  %v653_v30 = vpack.c.bf16 %v459_v26, %v457_v19  ;;  %v2823_v31 = vsel %vm441_vm1, %v9119_v2, %v2822_v20  ;;  %v2825_v32 = vrot.slane %v9122_v4, 2  ;;  %8736 = vmatprep.subr.msk.bf16.mxu0 %vm781_vm0, %v9130_v10  ;;  %v9164_v49 = vld [vmem:[%s9001_s9 + $0xd8] sm:$0xff]  ;;  %v9193_v20 = vld [vmem:[%s9001_s9 + $0xe8] sm:$0xf]  ;;  %v9266_v16 = vld [vmem:[%s9001_s9 + $0x130] sm:$0xff]  ;;  %s243_s27 = scalar_lea.vmem %s11796_s4, %s6858_s24 }
  0x25   : > { %v2827_v36 = vrot.slane %v9125_v5, 2  ;;  %v467_v43 = vrot.slane %v262_v21, 2  ;;  %11976 = vst [vmem:[#allocation15_spill] sm:$0xff] %v9158_v44  ;;  %11977 = vst [vmem:[#allocation16_spill] sm:$0xff] %v9161_v47  ;;  %v3017_v50 = vpack.c.bf16 %v2823_v31, %v9140_v27  ;;  %v2829_v55 = vrot.slane %v9149_v41, 2  ;;  %v9196_v21 = vld [vmem:[%s9001_s9 + $0xf0] sm:$0xff] }
  0x26   : > { %7891 = vmatprep.mubr.msk.bf16.mxu0 %vm684_vm2, %v3016_v23  ;;  %11978 = vst [vmem:[#allocation17_spill] sm:$0xff] %v9164_v49  ;;  %v2826_v51 = vsel %vm441_vm1, %v2824_v29, %v2825_v32  ;;  %v2831_v56 = vrot.slane %v9152_v42, 2  ;;  %v2833_v58 = vrot.slane %v9158_v44, 2  ;;  %v2834_v59 = vrot.slane %v9161_v47, 2  ;;  %v267_v63 = vld [vmem:[%s9001_s9 + $0x98] sm:$0xf] }
  0x27   : > { %v2828_v53 = vsel %vm441_vm1, %v2825_v32, %v2827_v36  ;;  %v2836_v60 = vrot.slane %v9164_v49, 2  ;;  %v468_v61 = vsel %vm441_vm1, %v9067_v37, %v467_v43  ;;  %v9183_v0 = vsel %vm441_vm1, %v2827_v36, %v2829_v55  ;;  %11979 = vst [vmem:[#allocation18_spill] sm:$0xff] %v9196_v21  ;;  %v9199_v26 = vld [vmem:[%s9001_s9 + $0xf8] sm:$0xff]  ;;  %v9202_v29 = vld [vmem:[%s9001_s9 + $0x100] sm:$0xff] }
  0x28   : > { %v3018_v54 = vpack.c.bf16 %v2828_v53, %v2826_v51  ;;  %v2832_v1 = vsel %vm441_vm1, %v2829_v55, %v2831_v56  ;;  %v655_v11 = vpack.c.bf16 %v468_v61, %v9092_v48  ;;  %v2835_v12 = vsel %vm441_vm1, %v2833_v58, %v2834_v59  ;;  %11980 = vst [vmem:[#allocation19_spill] sm:$0xff] %v9199_v26  ;;  %v272_v53 = vld [vmem:[%s9001_s9 + $0xc0] sm:$0xf]  ;;  %v9310_v34 = vld [vmem:[%s9001_s9 + $0x178] sm:$0xff] }
  0x29   : > { %7628 = vmatmul.mubr.msk.bf16.gmra.mrb[4].mxu1 %vm684_vm2, %v653_v30  ;;  %v2837_v19 = vsel %vm441_vm1, %v2834_v59, %v2836_v60  ;;  %v476_v37 = vrot.slane %v267_v63, 2  ;;  %11981 = vst [vmem:[#allocation20_spill] sm:$0xff] %v9202_v29  ;;  %v3019_v30 = vpack.c.bf16 %v2832_v1, %v9183_v0  ;;  %v2840_v32 = vrot.slane %v9193_v20, 2  ;;  %v9228_v1 = vld [vmem:[%s9001_s9 + $0x110] sm:$0xf]  ;;  %11990 = vst [vmem:[#allocation29_spill] sm:$0xff] %v9310_v34 }
  0x2a   : > { %7631 = vmatprep.mubr.msk.bf16.mxu1 %vm684_vm2, %v9063_v35  ;;  %7892 = vmatmul.mubr.msk.bf16.gmra.mrb[4].mxu0 %vm684_vm2, %v3017_v50  ;;  %v9190_v35 = vld [vmem:[%s9001_s9 + $0xe0] sm:$0xff]  ;;  %v3020_v31 = vpack.c.bf16 %v2837_v19, %v2835_v12  ;;  %v2842_v36 = vrot.slane %v9196_v21, 2  ;;  %v2843_v43 = vrot.slane %v9199_v26, 2  ;;  %v2845_v50 = vrot.slane %v9202_v29, 2 }
  0x2b   : > { %7895 = vmatprep.mubr.msk.bf16.mxu0 %vm684_vm2, %v3018_v54  ;;  %v2838_v48 = vrot.slane %v9190_v35, 2  ;;  %v477_v51 = vsel %vm441_vm1, %v9119_v2, %v476_v37  ;;  %v9231_v2 = vld [vmem:[%s9001_s9 + $0x118] sm:$0xff]  ;;  %v9234_v12 = vld [vmem:[%s9001_s9 + $0x120] sm:$0xff] }
  0x2c   : > { %v657_v59 = vpack.c.bf16 %v477_v51, %v9140_v27  ;;  %v2844_v61 = vsel %vm441_vm1, %v2842_v36, %v2843_v43  ;;  %v2846_v63 = vsel %vm441_vm1, %v2843_v43, %v2845_v50  ;;  %11982 = vst [vmem:[#allocation21_spill] sm:$0xff] %v9231_v2  ;;  %11983 = vst [vmem:[#allocation22_spill] sm:$0xff] %v9234_v12  ;;  %v9242_v27 = vld [vmem:[%s11793_s1 + $0x4] sm:$0x3]  ;;  %v2851_v36 = vrot.slane %v9231_v2, 2 }
  0x2d   : > { %v9218_v56 = vsel %vm441_vm1, %v2836_v60, %v2838_v48  ;;  %v2841_v58 = vsel %vm441_vm1, %v2838_v48, %v2840_v32  ;;  %v9237_v60 = vld [vmem:[%s9001_s9 + $0x128] sm:$0xff]  ;;  %11985 = vst [vmem:[#allocation24_spill] sm:$0xff] %v9242_v27  ;;  %8731 = vmatprep.subr.msk.bf16.mxu1 %vm781_vm0, %v9242_v27  ;;  %v3022_v37 = vpack.c.bf16 %v2846_v63, %v2844_v61  ;;  %v2849_v32 = vrot.slane %v9228_v1, 2  ;;  %v9298_v27 = vld [vmem:[%s9001_s9 + $0x158] sm:$0xff]  ;;  %v9329_v22 = vld [vmem:[%s9001_s9 + $0x180] sm:$0xff] }
  0x2e   : > { %11984 = vst [vmem:[#allocation23_spill] sm:$0xff] %v9237_v60  ;;  %v3021_v19 = vpack.c.bf16 %v2841_v58, %v9218_v56  ;;  %v2852_v43 = vrot.slane %v9234_v12, 2  ;;  %v2854_v51 = vrot.slane %v9237_v60, 2  ;;  %v277_v58 = vld [vmem:[%s9001_s9 + $0xe8] sm:$0xf]  ;;  %v2874_v7 = vrot.slane %v9329_v22, 2 }
  0x30   : > { %v2853_v15 = vsel %vm441_vm1, %v2851_v36, %v2852_v43  ;;  %v2855_v14 = vsel %vm441_vm1, %v2852_v43, %v2854_v51 }
  0x31   : > { %7632 = vmatmul.mubr.msk.bf16.gmra.mrb[8].mxu1 %vm684_vm2, %v655_v11  ;;  %v485_v11 = vrot.slane %v272_v53, 2  ;;  %v3024_v3 = vpack.c.bf16 %v2855_v14, %v2853_v15  ;;  %v282_v15 = vld [vmem:[%s9001_s9 + $0x110] sm:$0xf] }
  0x32   : > { %7635 = vmatprep.mubr.msk.bf16.mxu1 %vm684_vm2, %v3016_v23  ;;  %7896 = vmatmul.mubr.msk.bf16.gmra.mrb[8].mxu0 %vm684_vm2, %v3019_v30  ;;  %v9225_v23 = vld [vmem:[%s9001_s9 + $0x108] sm:$0xff] }
  0x33   : > { %7899 = vmatprep.mubr.msk.bf16.mxu0 %vm684_vm2, %v3020_v31  ;;  %v2847_v30 = vrot.slane %v9225_v23, 2  ;;  %v486_v53 = vsel %vm441_vm1, %v2829_v55, %v485_v11  ;;  %v494_v55 = vrot.slane %v277_v58, 2  ;;  %v9272_v11 = vld [vmem:[%s9001_s9 + $0x140] sm:$0xff] }
  0x34   : > { %v659_v63 = vpack.c.bf16 %v486_v53, %v9183_v0  ;;  %11986 = vst [vmem:[#allocation25_spill] sm:$0xff] %v9272_v11  ;;  %v2856_v0 = vrot.slane %v9266_v16, 2  ;;  %v2860_v43 = vrot.slane %v9272_v11, 2 }
  0x35   : > { %v2850_v61 = vsel %vm441_vm1, %v2847_v30, %v2849_v32  ;;  %v495_v14 = vsel %vm441_vm1, %v2838_v48, %v494_v55  ;;  %v503_v48 = vrot.slane %v282_v15, 2  ;;  %v9304_v55 = vld [vmem:[%s9001_s9 + $0x168] sm:$0xff]  ;;  %v2872_v15 = vrot.slane %v9310_v34, 2 }
  0x36   : > { %v661_v46 = vpack.c.bf16 %v495_v14, %v9218_v56  ;;  %v2865_v56 = vrot.slane %v9298_v27, 2 }
  0x37   : > { %v504_v33 = vsel %vm441_vm1, %v2847_v30, %v503_v48 }
  0x39   : > { %7636 = vmatmul.mubr.msk.bf16.gmra.mrb[12].mxu1 %vm684_vm2, %v657_v59  ;;  %v9259_v59 = vsel %vm441_vm1, %v2845_v50, %v2847_v30  ;;  %v9278_v50 = vld [vmem:[%s9001_s9 + $0x150] sm:$0xff] }
  0x3a   : > { %7639 = vmatprep.mubr.msk.bf16.mxu1 %vm684_vm2, %v3018_v54  ;;  %7900 = vmatmul.mubr.msk.bf16.gmra.mrb[12].mxu0 %vm684_vm2, %v3021_v19  ;;  %v9269_v54 = vld [vmem:[%s9001_s9 + $0x138] sm:$0xf]  ;;  %v9275_v19 = vld [vmem:[%s9001_s9 + $0x148] sm:$0xff]  ;;  %11988 = vst [vmem:[#allocation27_spill] sm:$0xff] %v9278_v50  ;;  %v3023_v32 = vpack.c.bf16 %v2850_v61, %v9259_v59  ;;  %v2863_v58 = vrot.slane %v9278_v50, 2  ;;  %v2857_v61 = vsel %vm441_vm1, %v2854_v51, %v2856_v0 }
  0x3b   : > { %7903 = vmatprep.mubr.msk.bf16.mxu0 %vm684_vm2, %v3022_v37  ;;  %11987 = vst [vmem:[#allocation26_spill] sm:$0xff] %v9275_v19  ;;  %v2858_v36 = vrot.slane %v9269_v54, 2  ;;  %v2861_v53 = vrot.slane %v9275_v19, 2 }
  0x3d   : > { %v2862_v38 = vsel %vm441_vm1, %v2860_v43, %v2861_v53  ;;  %v2864_v8 = vsel %vm441_vm1, %v2861_v53, %v2863_v58  ;;  %v2869_v53 = vrot.slane %v9304_v55, 2 }
  0x41   : > { %7640 = vmatmul.mubr.msk.bf16.gmra.mrb[16].mxu1 %vm684_vm2, %v659_v63  ;;  %v2859_v63 = vsel %vm441_vm1, %v2856_v0, %v2858_v36  ;;  %v3026_v36 = vpack.c.bf16 %v2864_v8, %v2862_v38  ;;  %v287_v8 = vld [vmem:[%s9001_s9 + $0x138] sm:$0xf]  ;;  %v2866_v38 = vsel %vm441_vm1, %v2863_v58, %v2865_v56 }
  0x42   : > { %7643 = vmatprep.mubr.msk.bf16.mxu1 %vm684_vm2, %v3020_v31  ;;  %7904 = vmatmul.mubr.msk.bf16.gmra.mrb[16].mxu0 %vm684_vm2, %v3023_v32  ;;  %v9301_v31 = vld [vmem:[%s9001_s9 + $0x160] sm:$0xf]  ;;  %v9307_v32 = vld [vmem:[%s9001_s9 + $0x170] sm:$0xff]  ;;  %v3025_v51 = vpack.c.bf16 %v2859_v63, %v2857_v61  ;;  %v512_v30 = vrot.slane %v287_v8, 2 }
  0x43   : > { %7907 = vmatprep.mubr.msk.bf16.mxu0 %vm684_vm2, %v3024_v3  ;;  %11989 = vst [vmem:[#allocation28_spill] sm:$0xff] %v9307_v32  ;;  %v2867_v43 = vrot.slane %v9301_v31, 2  ;;  %v2870_v14 = vrot.slane %v9307_v32, 2 }
  0x45   : > { %v2868_v63 = vsel %vm441_vm1, %v2865_v56, %v2867_v43  ;;  %v2871_v24 = vsel %vm441_vm1, %v2869_v53, %v2870_v14  ;;  %v2873_v9 = vsel %vm441_vm1, %v2870_v14, %v2872_v15  ;;  %v3500_v43 = vrot.slane %v9019_v13, 4  ;;  %v292_v14 = vld [vmem:[%s9001_s9 + $0x160] sm:$0xf] }
  0x46   : > { %v3027_v48 = vpack.c.bf16 %v2868_v63, %v2866_v38  ;;  %v513_v53 = vsel %vm441_vm1, %v2856_v0, %v512_v30  ;;  %v3505_v0 = vrot.slane %v9045_v25, 4  ;;  %v3507_v30 = vrot.slane %v9050_v28, 4 }
  0x47   : > { %v665_v8 = vpack.c.bf16 %v513_v53, %v2857_v61  ;;  %v3510_v61 = vrot.slane %v9076_v40, 4 }
  0x48   : > { %v3508_v28 = vsel %vm1462_vm3, %v3505_v0, %v3507_v30 }
  0x49   : > { %7644 = vmatmul.mubr.msk.bf16.gmra.mrb[20].mxu1 %vm684_vm2, %v661_v46  ;;  %v663_v46 = vpack.c.bf16 %v504_v33, %v9259_v59  ;;  %v3501_v33 = vrot.slane %v9026_v17, 4  ;;  %v3503_v59 = vrot.slane %v9029_v18, 4  ;;  %v521_v18 = vrot.slane %v292_v14, 2  ;;  %v9366_v14 = vld [vmem:[%s9001_s9 + $0x190] sm:$0xff] }
  0x4a   : > { %7647 = vmatprep.mubr.msk.bf16.mxu1 %vm684_vm2, %v3022_v37  ;;  %7908 = vmatmul.mubr.msk.bf16.gmra.mrb[20].mxu0 %vm684_vm2, %v3025_v51  ;;  %v9332_v37 = vld [vmem:[%s9001_s9 + $0x188] sm:$0xf]  ;;  %v3028_v51 = vpack.c.bf16 %v2873_v9, %v2871_v24  ;;  %v9346_v9 = vsel %vm441_vm1, %v2872_v15, %v2874_v7 }
  0x4b   : > { %7911 = vmatprep.mubr.msk.bf16.mxu0 %vm684_vm2, %v3026_v36  ;;  %v2876_v58 = vrot.slane %v9332_v37, 2  ;;  %v3502_v63 = vsel %vm1462_vm3, %v3500_v43, %v3501_v33  ;;  %v522_v43 = vsel %vm441_vm1, %v2865_v56, %v521_v18  ;;  %v3506_v53 = vsel %vm1462_vm3, %v3503_v59, %v3505_v0 }
  0x4d   : > { %v2877_v24 = vsel %vm441_vm1, %v2874_v7, %v2876_v58  ;;  %v3512_v58 = vrot.slane %v9083_v45, 4  ;;  %v3516_v45 = vrot.slane %v9106_v57, 4  ;;  %v9392_v57 = vld [vmem:[%s11793_s1 + $0xe] sm:$0x3] }
  0x4e   : > { %11991 = vst [vmem:[#allocation30_spill] sm:$0xff] %v9392_v57 }
  0x4f   : > { %v3513_v18 = vsel %vm1462_vm3, %v3510_v61, %v3512_v58 }
  0x51   : > { %7648 = vmatmul.mubr.msk.bf16.gmra.mrb[24].mxu1 %vm684_vm2, %v663_v46  ;;  %v3504_v46 = vsel %vm1462_vm3, %v3501_v33, %v3503_v59  ;;  %v297_v33 = vld [vmem:[%s9001_s9 + $0x188] sm:$0xf] }
  0x52   : > { %7651 = vmatprep.mubr.msk.bf16.mxu1 %vm684_vm2, %v3024_v3  ;;  %7912 = vmatmul.mubr.msk.bf16.gmra.mrb[24].mxu0 %vm684_vm2, %v3027_v48  ;;  %v3029_v3 = vpack.c.bf16 %v2877_v24, %v9346_v9  ;;  %v3708_v15 = vpack.c.bf16 %v3504_v46, %v3502_v63  ;;  %v3509_v48 = vrot.slane %v9073_v39, 4  ;;  %v9369_v24 = vld [vmem:[%s9001_s9 + $0x198] sm:$0xff]  ;;  %v667_v63 = vpack.c.bf16 %v522_v43, %v2866_v38 }
  0x53   : > { %7915 = vmatprep.mubr.msk.bf16.mxu0 %vm684_vm2, %v3028_v51  ;;  %v530_v56 = vrot.slane %v297_v33, 2  ;;  %v3709_v46 = vpack.c.bf16 %v3508_v28, %v3506_v53  ;;  %v533_v59 = vrot.slane %v9369_v24, 2  ;;  %v4408_v38 = vsel %vm781_vm0, %v9130_v10, 0  ;;  %v9398_v28 = vld [vmem:[%s9001_s9 + $0x1a8] sm:$0xff] }
  0x54   : > { %v3521_v43 = vrot.slane %v9125_v5, 4 }
  0x55   : > { %v531_v33 = vsel %vm441_vm1, %v2874_v7, %v530_v56  ;;  %v9411_v56 = vld [vmem:[%s9001_s9 + $0x1c8] sm:$0xff] }
  0x59   : > { %7652 = vmatmul.mubr.msk.bf16.gmra.mrb[28].mxu1 %vm684_vm2, %v665_v8  ;;  %v9372_v8 = vld [vmem:[%s9001_s9 + $0x1a0] sm:$0xff] }
  0x5a   : > { %7655 = vmatprep.mubr.msk.bf16.mxu1 %vm684_vm2, %v3026_v36  ;;  %7916 = vmatmul.mubr.msk.bf16.gmra.mrb[28].mxu0 %vm684_vm2, %v3029_v3  ;;  %v3511_v36 = vsel %vm1462_vm3, %v3509_v48, %v3510_v61  ;;  %v532_v3 = vrot.slane %v9366_v14, 2  ;;  %v535_v0 = vrot.slane %v9372_v8, 2  ;;  %v3518_v48 = vrot.slane %v9114_v62, 4 }
  0x5b   : > { %7953 = vmatprep.mubr.msk.bf16.mxu0 %vm684_vm2, %v3708_v15  ;;  %v3710_v30 = vpack.c.bf16 %v3513_v18, %v3511_v36  ;;  %v3514_v15 = vrot.slane %v9098_v52, 4  ;;  %v3519_v61 = vrot.slane %v9122_v4, 4  ;;  %v9405_v36 = vld [vmem:[%s9001_s9 + $0x1b8] sm:$0xff]  ;;  %v9408_v18 = vld [vmem:[%s9001_s9 + $0x1c0] sm:$0xff] }
  0x5c   : > { %v534_v10 = vsel %vm441_vm1, %v532_v3, %v533_v59  ;;  %v536_v53 = vsel %vm441_vm1, %v533_v59, %v535_v0  ;;  %v542_v5 = vrot.slane %v9408_v18, 2 }
  0x5d   : > { %v3517_v7 = vsel %vm1462_vm3, %v3514_v15, %v3516_v45  ;;  %v3520_v3 = vsel %vm1462_vm3, %v3518_v48, %v3519_v61  ;;  %v3522_v59 = vsel %vm1462_vm3, %v3519_v61, %v3521_v43  ;;  %v3523_v61 = vrot.slane %v9149_v41, 4 }
  0x5e   : > { %v3712_v48 = vpack.c.bf16 %v3522_v59, %v3520_v3  ;;  %v9444_v3 = vld [vmem:[%s9001_s9 + $0x1d0] sm:$0xff]  ;;  %v307_v59 = vld [vmem:[%s9001_s9 + $0x1d8] sm:$0xf] }
  0x61   : > { %7656 = vmatmul.mubr.msk.bf16.gmra.mrb[32].mxu1 %vm684_vm2, %v667_v63  ;;  %v302_v63 = vld [vmem:[%s9001_s9 + $0x1b0] sm:$0xf] }
  0x62   : > { %7659 = vmatprep.mubr.msk.bf16.mxu1 %vm684_vm2, %v3028_v51  ;;  %7954 = vmatmul.mubr.msk.bf16.vlgmr.msra.gmra.mrb[0].mxu0 %vm684_vm2, %v3709_v46  ;;  %v3515_v51 = vsel %vm1462_vm3, %v3512_v58, %v3514_v15  ;;  %v669_v46 = vpack.c.bf16 %v531_v33, %v9346_v9  ;;  %v9421_v58 = vrot.slane %v9398_v28, 2  ;;  %v539_v45 = vrot.slane %v302_v63, 2 }
  0x63   : > { %8018 = vmatpush3.bf16.msra.mxu0 %v4408_v38  ;;  %7957 = vmatprep.mubr.msk.bf16.mxu0 %vm684_vm2, %v3710_v30  ;;  %v9418_v30 = vpack.c.bf16 %v536_v53, %v534_v10  ;;  %v3711_v15 = vpack.c.bf16 %v3517_v7, %v3515_v51  ;;  %v541_v38 = vrot.slane %v9405_v36, 2  ;;  %v544_v9 = vrot.slane %v9411_v56, 2 }
  0x64   : > { %8737 = vmatprep.subr.msk.bf16.mxu0 %vm781_vm0, %v9392_v57  ;;  %11993 = vst [vmem:[#allocation32_spill] sm:$0xff] %v9421_v58  ;;  %v3525_v33 = vrot.slane %v9152_v42, 4  ;;  %v3527_v10 = vrot.slane %v9158_v44, 4  ;;  %v3528_v53 = vrot.slane %v9161_v47, 4  ;;  %v3530_v63 = vrot.slane %v9164_v49, 4  ;;  %v9454_v49 = vld [vmem:[%s9001_s9 + $0x1e8] sm:$0xff] }
  0x65   : > { %11992 = vst [vmem:[#allocation31_spill] sm:$0xff] %v9418_v30  ;;  %v9436_v51 = vsel %vm441_vm1, %v535_v0, %v9421_v58  ;;  %v540_v42 = vsel %vm441_vm1, %v9421_v58, %v539_v45  ;;  %v543_v7 = vsel %vm441_vm1, %v541_v38, %v542_v5  ;;  %v9451_v0 = vld [vmem:[%s9001_s9 + $0x1e0] sm:$0xff]  ;;  %v9457_v45 = vld [vmem:[%s9001_s9 + $0x1f0] sm:$0xff] }
  0x66   : > { %11994 = vst [vmem:[#allocation33_spill] sm:$0xff] %v9436_v51  ;;  %v3526_v57 = vsel %vm1462_vm3, %v3523_v61, %v3525_v33  ;;  %v3529_v38 = vsel %vm1462_vm3, %v3527_v10, %v3528_v53  ;;  %v551_v33 = vrot.slane %v9454_v49, 2  ;;  %v553_v44 = vrot.slane %v9457_v45, 2 }
  0x67   : > { %v3532_v10 = vrot.slane %v9190_v35, 4 }
  0x69   : > { %7660 = vmatmul.mubr.msk.bf16.gmra.mrb[36].mxu1 %vm684_vm2, %v669_v46  ;;  %v545_v46 = vsel %vm441_vm1, %v542_v5, %v544_v9  ;;  %v3531_v5 = vsel %vm1462_vm3, %v3528_v53, %v3530_v63  ;;  %v3534_v53 = vrot.slane %v9193_v20, 4 }
  0x6a   : > { %7663 = vmatprep.mubr.msk.bf16.mxu1 %vm684_vm2, %v9418_v30  ;;  %7958 = vmatmul.mubr.msk.bf16.gmra.mrb[4].mxu0 %vm684_vm2, %v3711_v15  ;;  %v3524_v30 = vsel %vm1462_vm3, %v3521_v43, %v3523_v61  ;;  %v671_v15 = vpack.c.bf16 %v540_v42, %v9436_v51  ;;  %v9462_v58 = vpack.c.bf16 %v545_v46, %v543_v7  ;;  %v548_v43 = vrot.slane %v307_v59, 2 }
  0x6b   : > { %7961 = vmatprep.mubr.msk.bf16.mxu0 %vm684_vm2, %v3712_v48  ;;  %v9465_v48 = vrot.slane %v9444_v3, 2  ;;  %v3713_v47 = vpack.c.bf16 %v3526_v57, %v3524_v30  ;;  %v550_v61 = vrot.slane %v9451_v0, 2  ;;  %v3714_v42 = vpack.c.bf16 %v3531_v5, %v3529_v38  ;;  %v9488_v38 = vld [vmem:[%s9001_s9 + $0x1f8] sm:$0xff]  ;;  %v312_v5 = vld [vmem:[%s9001_s9 + $0x200] sm:$0xf] }
  0x6c   : > { %11995 = vst [vmem:[#allocation34_spill] sm:$0xff] %v9462_v58  ;;  %v3536_v7 = vrot.slane %v9196_v21, 4  ;;  %v3537_v57 = vrot.slane %v9199_v26, 4  ;;  %v3539_v30 = vrot.slane %v9202_v29, 4  ;;  %v3535_v51 = vsel %vm1462_vm3, %v3532_v10, %v3534_v53  ;;  %v9498_v29 = vld [vmem:[%s9001_s9 + $0x210] sm:$0xff] }
  0x6d   : > { %11996 = vst [vmem:[#allocation35_spill] sm:$0xff] %v9465_v48  ;;  %v9480_v46 = vsel %vm441_vm1, %v544_v9, %v9465_v48  ;;  %v549_v20 = vsel %vm441_vm1, %v9465_v48, %v548_v43  ;;  %v552_v59 = vsel %vm441_vm1, %v550_v61, %v551_v33  ;;  %v9495_v9 = vld [vmem:[%s9001_s9 + $0x208] sm:$0xff]  ;;  %v9501_v43 = vld [vmem:[%s9001_s9 + $0x218] sm:$0xff]  ;;  %v560_v53 = vrot.slane %v9498_v29, 2 }
  0x6e   : > { %11997 = vst [vmem:[#allocation36_spill] sm:$0xff] %v9480_v46  ;;  %v3538_v61 = vsel %vm1462_vm3, %v3536_v7, %v3537_v57  ;;  %v562_v21 = vrot.slane %v9501_v43, 2  ;;  %v3541_v7 = vrot.slane %v9225_v23, 4 }
  0x71   : > { %7664 = vmatmul.mubr.msk.bf16.gmra.mrb[40].mxu1 %vm684_vm2, %v671_v15  ;;  %v554_v15 = vsel %vm441_vm1, %v551_v33, %v553_v44  ;;  %v3540_v33 = vsel %vm1462_vm3, %v3537_v57, %v3539_v30  ;;  %v3543_v57 = vrot.slane %v9228_v1, 4 }
  0x72   : > { %7667 = vmatprep.mubr.msk.bf16.mxu1 %vm684_vm2, %v9462_v58  ;;  %7962 = vmatmul.mubr.msk.bf16.gmra.mrb[8].mxu0 %vm684_vm2, %v3713_v47  ;;  %v3533_v58 = vsel %vm1462_vm3, %v3530_v63, %v3532_v10  ;;  %v673_v47 = vpack.c.bf16 %v549_v20, %v9480_v46  ;;  %v9506_v48 = vpack.c.bf16 %v554_v15, %v552_v59  ;;  %v557_v63 = vrot.slane %v312_v5, 2 }
  0x73   : > { %7965 = vmatprep.mubr.msk.bf16.mxu0 %vm684_vm2, %v3714_v42  ;;  %v9509_v42 = vrot.slane %v9488_v38, 2  ;;  %v3715_v26 = vpack.c.bf16 %v3535_v51, %v3533_v58  ;;  %v559_v10 = vrot.slane %v9495_v9, 2  ;;  %v3716_v20 = vpack.c.bf16 %v3540_v33, %v3538_v61  ;;  %v9532_v61 = vld [vmem:[%s9001_s9 + $0x220] sm:$0xff]  ;;  %v317_v33 = vld [vmem:[%s9001_s9 + $0x228] sm:$0xf] }
  0x74   : > { %11998 = vst [vmem:[#allocation37_spill] sm:$0xff] %v9506_v48  ;;  %v3545_v59 = vrot.slane %v9231_v2, 4  ;;  %v3546_v58 = vrot.slane %v9234_v12, 4  ;;  %v3548_v51 = vrot.slane %v9237_v60, 4  ;;  %v3544_v46 = vsel %vm1462_vm3, %v3541_v7, %v3543_v57  ;;  %v9542_v60 = vld [vmem:[%s9001_s9 + $0x238] sm:$0xff] }
  0x75   : > { %11999 = vst [vmem:[#allocation38_spill] sm:$0xff] %v9509_v42  ;;  %v9524_v15 = vsel %vm441_vm1, %v553_v44, %v9509_v42  ;;  %v558_v1 = vsel %vm441_vm1, %v9509_v42, %v557_v63  ;;  %v561_v5 = vsel %vm441_vm1, %v559_v10, %v560_v53  ;;  %v9539_v44 = vld [vmem:[%s9001_s9 + $0x230] sm:$0xff]  ;;  %v9545_v63 = vld [vmem:[%s9001_s9 + $0x240] sm:$0xff]  ;;  %v569_v57 = vrot.slane %v9542_v60, 2 }
  0x76   : > { %12000 = vst [vmem:[#allocation39_spill] sm:$0xff] %v9524_v15  ;;  %v3547_v10 = vsel %vm1462_vm3, %v3545_v59, %v3546_v58  ;;  %v571_v2 = vrot.slane %v9545_v63, 2  ;;  %v3550_v59 = vrot.slane %v9266_v16, 4 }
  0x79   : > { %7668 = vmatmul.mubr.msk.bf16.gmra.mrb[44].mxu1 %vm684_vm2, %v673_v47  ;;  %v563_v47 = vsel %vm441_vm1, %v560_v53, %v562_v21  ;;  %v3549_v53 = vsel %vm1462_vm3, %v3546_v58, %v3548_v51  ;;  %v3552_v58 = vrot.slane %v9269_v54, 4 }
  0x7a   : > { %7671 = vmatprep.mubr.msk.bf16.mxu1 %vm684_vm2, %v9506_v48  ;;  %7966 = vmatmul.mubr.msk.bf16.gmra.mrb[12].mxu0 %vm684_vm2, %v3715_v26  ;;  %v3542_v48 = vsel %vm1462_vm3, %v3539_v30, %v3541_v7  ;;  %v675_v26 = vpack.c.bf16 %v558_v1, %v9524_v15  ;;  %v9550_v42 = vpack.c.bf16 %v563_v47, %v561_v5  ;;  %v566_v30 = vrot.slane %v317_v33, 2 }
  0x7b   : > { %7969 = vmatprep.mubr.msk.bf16.mxu0 %vm684_vm2, %v3716_v20  ;;  %v9553_v20 = vrot.slane %v9532_v61, 2  ;;  %v3717_v12 = vpack.c.bf16 %v3544_v46, %v3542_v48  ;;  %v568_v7 = vrot.slane %v9539_v44, 2  ;;  %v3718_v1 = vpack.c.bf16 %v3549_v53, %v3547_v10  ;;  %v9576_v10 = vld [vmem:[%s9001_s9 + $0x248] sm:$0xff]  ;;  %v322_v53 = vld [vmem:[%s9001_s9 + $0x250] sm:$0xf] }
  0x7c   : > { %12001 = vst [vmem:[#allocation40_spill] sm:$0xff] %v9550_v42  ;;  %v3554_v5 = vrot.slane %v9272_v11, 4  ;;  %v3555_v48 = vrot.slane %v9275_v19, 4  ;;  %v3557_v46 = vrot.slane %v9278_v50, 4  ;;  %v3553_v15 = vsel %vm1462_vm3, %v3550_v59, %v3552_v58  ;;  %v9586_v50 = vld [vmem:[%s9001_s9 + $0x260] sm:$0xff] }
  0x7d   : > { %12002 = vst [vmem:[#allocation41_spill] sm:$0xff] %v9553_v20  ;;  %v9568_v47 = vsel %vm441_vm1, %v562_v21, %v9553_v20  ;;  %v567_v54 = vsel %vm441_vm1, %v9553_v20, %v566_v30  ;;  %v570_v33 = vsel %vm441_vm1, %v568_v7, %v569_v57  ;;  %v9583_v21 = vld [vmem:[%s9001_s9 + $0x258] sm:$0xff]  ;;  %v9589_v30 = vld [vmem:[%s9001_s9 + $0x268] sm:$0xff]  ;;  %v578_v58 = vrot.slane %v9586_v50, 2 }
  0x7e   : > { %12003 = vst [vmem:[#allocation42_spill] sm:$0xff] %v9568_v47  ;;  %v3556_v7 = vsel %vm1462_vm3, %v3554_v5, %v3555_v48  ;;  %v580_v11 = vrot.slane %v9589_v30, 2  ;;  %v3559_v5 = vrot.slane %v9298_v27, 4 }
  0x81   : > { %7672 = vmatmul.mubr.msk.bf16.gmra.mrb[48].mxu1 %vm684_vm2, %v675_v26  ;;  %v572_v26 = vsel %vm441_vm1, %v569_v57, %v571_v2  ;;  %v3558_v57 = vsel %vm1462_vm3, %v3555_v48, %v3557_v46  ;;  %v3561_v48 = vrot.slane %v9301_v31, 4 }
  0x82   : > { %7675 = vmatprep.mubr.msk.bf16.mxu1 %vm684_vm2, %v9550_v42  ;;  %7970 = vmatmul.mubr.msk.bf16.gmra.mrb[16].mxu0 %vm684_vm2, %v3717_v12  ;;  %v3551_v42 = vsel %vm1462_vm3, %v3548_v51, %v3550_v59  ;;  %v677_v12 = vpack.c.bf16 %v567_v54, %v9568_v47  ;;  %v9594_v20 = vpack.c.bf16 %v572_v26, %v570_v33  ;;  %v575_v51 = vrot.slane %v322_v53, 2 }
  0x83   : > { %7973 = vmatprep.mubr.msk.bf16.mxu0 %vm684_vm2, %v3718_v1  ;;  %v9597_v1 = vrot.slane %v9576_v10, 2  ;;  %v3719_v19 = vpack.c.bf16 %v3553_v15, %v3551_v42  ;;  %v577_v59 = vrot.slane %v9583_v21, 2  ;;  %v3720_v54 = vpack.c.bf16 %v3558_v57, %v3556_v7  ;;  %v9620_v7 = vld [vmem:[%s9001_s9 + $0x270] sm:$0xff]  ;;  %v327_v57 = vld [vmem:[%s9001_s9 + $0x278] sm:$0xf] }
  0x84   : > { %12004 = vst [vmem:[#allocation43_spill] sm:$0xff] %v9594_v20  ;;  %v3563_v33 = vrot.slane %v9304_v55, 4  ;;  %v3564_v26 = vrot.slane %v9307_v32, 4  ;;  %v3566_v42 = vrot.slane %v9310_v34, 4  ;;  %v3562_v47 = vsel %vm1462_vm3, %v3559_v5, %v3561_v48 }
  0x85   : > { %12005 = vst [vmem:[#allocation44_spill] sm:$0xff] %v9597_v1  ;;  %v9612_v15 = vsel %vm441_vm1, %v571_v2, %v9597_v1  ;;  %v576_v53 = vsel %vm441_vm1, %v9597_v1, %v575_v51  ;;  %v579_v31 = vsel %vm441_vm1, %v577_v59, %v578_v58  ;;  %v9632_v59 = vrot.slane %v9620_v7, 2 }
  0x86   : > { %12006 = vst [vmem:[#allocation45_spill] sm:$0xff] %v9612_v15  ;;  %v679_v2 = vpack.c.bf16 %v576_v53, %v9612_v15  ;;  %v3565_v34 = vsel %vm1462_vm3, %v3563_v33, %v3564_v26  ;;  %v3567_v51 = vsel %vm1462_vm3, %v3564_v26, %v3566_v42  ;;  %v3573_v48 = vrot.slane %v9369_v24, 4 }
  0x87   : > { %12008 = vst [vmem:[#allocation47_spill] sm:$0xff] %v9632_v59  ;;  %v3722_v32 = vpack.c.bf16 %v3567_v51, %v3565_v34  ;;  %v3575_v33 = vrot.slane %v9372_v8, 4  ;;  %v12011_v51 = vld [vmem:[#allocation7_spill] sm:$0xff] }
  0x89   : > { %7676 = vmatmul.mubr.msk.bf16.gmra.mrb[52].mxu1 %vm684_vm2, %v677_v12  ;;  %v581_v12 = vsel %vm441_vm1, %v578_v58, %v580_v11  ;;  %v584_v58 = vrot.slane %v327_v57, 2 }
  0x8a   : > { %7679 = vmatprep.mubr.msk.bf16.mxu1 %vm684_vm2, %v9594_v20  ;;  %7974 = vmatmul.mubr.msk.bf16.gmra.mrb[20].mxu0 %vm684_vm2, %v3719_v19  ;;  %v3560_v20 = vsel %vm1462_vm3, %v3557_v46, %v3559_v5  ;;  %v9629_v19 = vpack.c.bf16 %v581_v12, %v579_v31  ;;  %v3570_v46 = vrot.slane %v9332_v37, 4  ;;  %v3572_v5 = vrot.slane %v9366_v14, 4  ;;  %v7005_v12 = vld [vmem:[%s9001_s9 + $0x1b0] sm:$0xf] }
  0x8b   : > { %7977 = vmatprep.mubr.msk.bf16.mxu0 %vm684_vm2, %v3720_v54  ;;  %v3721_v1 = vpack.c.bf16 %v3562_v47, %v3560_v20  ;;  %v3568_v54 = vrot.slane %v9329_v22, 4  ;;  %v9644_v20 = vsel %vm441_vm1, %v580_v11, %v9632_v59  ;;  %v585_v34 = vsel %vm441_vm1, %v9632_v59, %v584_v58  ;;  %v12010_v11 = vld [vmem:[#allocation3_spill] sm:$0xff]  ;;  %v10007_v59 = vld [vmem:[%s9001_s9 + $0x100] sm:$0xff] }
  0x8c   : > { %12007 = vst [vmem:[#allocation46_spill] sm:$0xff] %v9629_v19  ;;  %12009 = vst [vmem:[#allocation48_spill] sm:$0xff] %v9644_v20  ;;  %v681_v26 = vpack.c.bf16 %v585_v34, %v9644_v20  ;;  %v3574_v53 = vsel %vm1462_vm3, %v3572_v5, %v3573_v48  ;;  %v3576_v31 = vsel %vm1462_vm3, %v3573_v48, %v3575_v33  ;;  %v1470_v58 = vrot.slane %v12011_v51, 4  ;;  %v12015_v34 = vld [vmem:[#allocation5_spill] sm:$0xff]  ;;  %v12020_v51 = vld [vmem:[#allocation24_spill] sm:$0xff] }
  0x8d   : > { %v3569_v37 = vsel %vm1462_vm3, %v3566_v42, %v3568_v54  ;;  %v3571_v47 = vsel %vm1462_vm3, %v3568_v54, %v3570_v46  ;;  %v328_v57 = vpack.c.bf16 %v12010_v11, %v9004_v6  ;;  %v3579_v42 = vrot.slane %v7005_v12, 4  ;;  %v12017_v12 = vld [vmem:[#allocation8_spill] sm:$0xff] }
  0x8e   : > { %v3581_v54 = vrot.slane %v9405_v36, 4  ;;  %v3582_v46 = vrot.slane %v9408_v18, 4  ;;  %v3584_v5 = vrot.slane %v9411_v56, 4  ;;  %v332_v11 = vpack.c.bf16 %v9026_v17, %v9019_v13 }
  0x91   : > { %7680 = vmatmul.mubr.msk.bf16.gmra.mrb[56].mxu1 %vm684_vm2, %v679_v2  ;;  %v3723_v2 = vpack.c.bf16 %v3571_v47, %v3569_v37  ;;  %v12016_v37 = vrot.slane %v12015_v34, 4 }
  0x92   : > { %7683 = vmatprep.mubr.msk.bf16.mxu1 %vm684_vm2, %v9629_v19  ;;  %7978 = vmatmul.mubr.msk.bf16.gmra.mrb[24].mxu0 %vm684_vm2, %v3721_v1  ;;  %v9659_v1 = vpack.c.bf16 %v3576_v31, %v3574_v53  ;;  %v3585_v53 = vsel %vm1462_vm3, %v3582_v46, %v3584_v5  ;;  %v7010_v31 = vld [vmem:[%s9001_s9 + $0x1d8] sm:$0xf] }
  0x93   : > { %7981 = vmatprep.mubr.msk.bf16.mxu0 %vm684_vm2, %v3722_v32  ;;  %v9662_v32 = vrot.slane %v9398_v28, 4  ;;  %v9681_v47 = vsel %vm1462_vm3, %v12016_v37, %v1470_v58  ;;  %v9696_v58 = vrot.slane %v9444_v3, 4  ;;  %v12023_v37 = vld [vmem:[#allocation4_spill] sm:$0xff] }
  0x94   : > { %12012 = vst [vmem:[#allocation3_spill] sm:$0xff] %v9659_v1 }
  0x95   : > { %12013 = vst [vmem:[#allocation7_spill] sm:$0xff] %v9662_v32  ;;  %v9674_v6 = vsel %vm1462_vm3, %v3575_v33, %v9662_v32  ;;  %v3580_v48 = vsel %vm1462_vm3, %v9662_v32, %v3579_v42  ;;  %12022 = vst [vmem:[#allocation8_spill] sm:$0xff] %v9696_v58 }
  0x96   : > { %12014 = vst [vmem:[#allocation49_spill] sm:$0xff] %v9674_v6  ;;  %v3725_v42 = vpack.c.bf16 %v3580_v48, %v9674_v6  ;;  %v3591_v48 = vrot.slane %v9454_v49, 4 }
  0x99   : > { %7684 = vmatmul.mubr.msk.bf16.gmra.mrb[60].mxu1 %vm684_vm2, %v681_v26  ;;  %v3583_v26 = vsel %vm1462_vm3, %v3581_v54, %v3582_v46  ;;  %v3588_v54 = vrot.slane %v7010_v31, 4  ;;  %v9701_v46 = vld [vmem:[%s11793_s1 + $0x6] sm:$0x3]  ;;  %v12026_v31 = vld [vmem:[#allocation11_spill] sm:$0xff] }
  0x9a   : > { %7689 = vmatprep.mubr.msk.bf16.mxu1 %vm684_vm2, %v328_v57  ;;  %7982 = vmatmul.mubr.msk.bf16.gmra.mrb[28].mxu0 %vm684_vm2, %v3723_v2  ;;  %v12018_v57 = vld [vmem:[#allocation9_spill] sm:$0xff]  ;;  %v12019_v2 = vld [vmem:[#allocation10_spill] sm:$0xff]  ;;  %v9693_v32 = vpack.c.bf16 %v3585_v53, %v3583_v26  ;;  %v3593_v26 = vrot.slane %v9457_v45, 4 }
  0x9b   : > { %7985 = vmatprep.mubr.msk.bf16.mxu0 %vm684_vm2, %v9659_v1  ;;  %v330_v33 = vpack.c.bf16 %v12019_v2, %v12018_v57  ;;  %v1802_v1 = vsel %vm781_vm0, %v12020_v51, 0  ;;  %v12024_v57 = vpack.c.bf16 %v12015_v34, %v12023_v37  ;;  %v3590_v2 = vrot.slane %v9451_v0, 4  ;;  %v12027_v51 = vld [vmem:[#allocation13_spill] sm:$0xff] }
  0x9c   : > { %12021 = vst [vmem:[#allocation5_spill] sm:$0xff] %v9693_v32  ;;  %v9718_v34 = vsel %vm1462_vm3, %v3584_v5, %v9696_v58  ;;  %v3589_v53 = vsel %vm1462_vm3, %v9696_v58, %v3588_v54  ;;  %v9733_v5 = vrot.slane %v9488_v38, 4  ;;  %v9985_v58 = vld [vmem:[%s9001_s9 + $0xf8] sm:$0xff] }
  0x9d   : > { %12025 = vst [vmem:[#allocation9_spill] sm:$0xff] %v9718_v34 }
  0x9e   : > { %12029 = vst [vmem:[#allocation24_spill] sm:$0xff] %v9733_v5  ;;  %v9745_v13 = vsel %vm1462_vm3, %v3593_v26, %v9733_v5 }
  0x9f   : > { %12030 = vst [vmem:[#allocation4_spill] sm:$0xff] %v9745_v13 }
  0xa1   : > { %7690 = vmatmul.mubr.msk.bf16.vlgmr.msra.gmra.mrb[0].mxu1 %vm684_vm2, %v12024_v57  ;;  %v7015_v57 = vld [vmem:[%s9001_s9 + $0x200] sm:$0xf] }
  0xa2   : > { %7754 = vmatpush3.bf16.msra.mxu1 %v1802_v1  ;;  %7693 = vmatprep.mubr.msk.bf16.mxu1 %vm684_vm2, %v330_v33  ;;  %v331_v1 = vpack.c.bf16 %v12027_v51, %v12026_v31  ;;  %v3592_v33 = vsel %vm1462_vm3, %v3590_v2, %v3591_v48  ;;  %v3597_v54 = vrot.slane %v7015_v57, 4  ;;  %v3599_v31 = vrot.slane %v9495_v9, 4 }
  0xa3   : > { %7986 = vmatmul.mubr.msk.bf16.gmra.mrb[32].mxu0 %vm684_vm2, %v3725_v42  ;;  %8732 = vmatprep.subr.msk.bf16.mxu1 %vm781_vm0, %v9701_v46  ;;  %v3594_v42 = vsel %vm1462_vm3, %v3591_v48, %v3593_v26  ;;  %v3600_v2 = vrot.slane %v9498_v29, 4  ;;  %v3602_v48 = vrot.slane %v9501_v43, 4  ;;  %v9760_v26 = vrot.slane %v9532_v61, 4 }
  0xa4   : > { %7989 = vmatprep.mubr.msk.bf16.mxu0 %vm684_vm2, %v9693_v32  ;;  %v3727_v32 = vpack.c.bf16 %v3589_v53, %v9718_v34  ;;  %v9730_v6 = vpack.c.bf16 %v3594_v42, %v3592_v33  ;;  %v3598_v17 = vsel %vm1462_vm3, %v9733_v5, %v3597_v54  ;;  %v12031_v53 = vld [vmem:[#allocation6_spill] sm:$0xff]  ;;  %v9982_v34 = vld [vmem:[%s9001_s9 + $0xf0] sm:$0xff] }
  0xa5   : > { %v333_v51 = vpack.c.bf16 %v9045_v25, %v12031_v53  ;;  %v3603_v33 = vsel %vm1462_vm3, %v3600_v2, %v3602_v48  ;;  %v3729_v42 = vpack.c.bf16 %v3598_v17, %v9745_v13  ;;  %12033 = vst [vmem:[#allocation13_spill] sm:$0xff] %v9760_v26  ;;  %v3608_v25 = vrot.slane %v9539_v44, 4  ;;  %v12035_v17 = vld [vmem:[#allocation12_spill] sm:$0xff]  ;;  %v9856_v13 = vld [vmem:[%s9001_s9 + $0x2b8] sm:$0xff] }
  0xa6   : > { %12028 = vst [vmem:[#allocation10_spill] sm:$0xff] %v9730_v6  ;;  %v335_v53 = vpack.c.bf16 %v9098_v52, %v12035_v17  ;;  %v3617_v52 = vrot.slane %v9583_v21, 4  ;;  %v4861_v20 = vrot.slane %v9982_v34, 2 }
  0xa9   : > { %7694 = vmatmul.mubr.msk.bf16.gmra.mrb[4].mxu1 %vm684_vm2, %v331_v1  ;;  %v3601_v1 = vsel %vm1462_vm3, %v3599_v31, %v3600_v2  ;;  %v3609_v31 = vrot.slane %v9542_v60, 4  ;;  %v3611_v2 = vrot.slane %v9545_v63, 4 }
  0xaa   : > { %7697 = vmatprep.mubr.msk.bf16.mxu1 %vm684_vm2, %v332_v11  ;;  %v7020_v11 = vld [vmem:[%s9001_s9 + $0x228] sm:$0xf]  ;;  %v9757_v57 = vpack.c.bf16 %v3603_v33, %v3601_v1  ;;  %v7025_v33 = vld [vmem:[%s9001_s9 + $0x250] sm:$0xf] }
  0xab   : > { %7990 = vmatmul.mubr.msk.bf16.gmra.mrb[36].mxu0 %vm684_vm2, %v3727_v32  ;;  %v334_v32 = vpack.c.bf16 %v9076_v40, %v9073_v39  ;;  %v3606_v54 = vrot.slane %v7020_v11, 4  ;;  %v9772_v39 = vsel %vm1462_vm3, %v3602_v48, %v9760_v26  ;;  %v3612_v1 = vsel %vm1462_vm3, %v3609_v31, %v3611_v2 }
  0xac   : > { %7993 = vmatprep.mubr.msk.bf16.mxu0 %vm684_vm2, %v9730_v6  ;;  %12032 = vst [vmem:[#allocation11_spill] sm:$0xff] %v9757_v57  ;;  %12034 = vst [vmem:[#allocation6_spill] sm:$0xff] %v9772_v39  ;;  %v336_v11 = vpack.c.bf16 %v9122_v4, %v9114_v62  ;;  %v9787_v48 = vrot.slane %v9576_v10, 4  ;;  %v3620_v62 = vrot.slane %v9589_v30, 4 }
  0xad   : > { %v3607_v40 = vsel %vm1462_vm3, %v9760_v26, %v3606_v54  ;;  %v3615_v54 = vrot.slane %v7025_v33, 4  ;;  %v12040_v33 = vld [vmem:[#allocation15_spill] sm:$0xff] }
  0xae   : > { %12037 = vst [vmem:[#allocation50_spill] sm:$0xff] %v9787_v48  ;;  %v9799_v4 = vsel %vm1462_vm3, %v3611_v2, %v9787_v48  ;;  %v9817_v2 = vld [vmem:[%s9001_s9 + $0x290] sm:$0xff] }
  0xaf   : > { %12038 = vst [vmem:[#allocation51_spill] sm:$0xff] %v9799_v4 }
  0xb1   : > { %7698 = vmatmul.mubr.msk.bf16.gmra.mrb[8].mxu1 %vm684_vm2, %v333_v51  ;;  %v3610_v51 = vsel %vm1462_vm3, %v3608_v25, %v3609_v31  ;;  %v3618_v25 = vrot.slane %v9586_v50, 4  ;;  %v3616_v31 = vsel %vm1462_vm3, %v9787_v48, %v3615_v54  ;;  %v12047_v48 = vld [vmem:[#allocation19_spill] sm:$0xff] }
  0xb2   : > { %7701 = vmatprep.mubr.msk.bf16.mxu1 %vm684_vm2, %v334_v32  ;;  %v3731_v32 = vpack.c.bf16 %v3607_v40, %v9772_v39  ;;  %v12039_v40 = vld [vmem:[#allocation14_spill] sm:$0xff]  ;;  %v3733_v26 = vpack.c.bf16 %v3616_v31, %v9799_v4 }
  0xb3   : > { %7994 = vmatmul.mubr.msk.bf16.gmra.mrb[40].mxu0 %vm684_vm2, %v3729_v42  ;;  %v9784_v42 = vpack.c.bf16 %v3612_v1, %v3610_v51  ;;  %v337_v17 = vpack.c.bf16 %v9149_v41, %v12039_v40  ;;  %v3621_v51 = vsel %vm1462_vm3, %v3618_v25, %v3620_v62  ;;  %v7030_v1 = vld [vmem:[%s9001_s9 + $0x278] sm:$0xf]  ;;  %v9811_v39 = vld [vmem:[%s9001_s9 + $0x280] sm:$0xff]  ;;  %v9823_v41 = vrot.slane %v9620_v7, 4 }
  0xb4   : > { %7997 = vmatprep.mubr.msk.bf16.mxu0 %vm684_vm2, %v9757_v57  ;;  %v12046_v4 = vld [vmem:[#allocation18_spill] sm:$0xff]  ;;  %v9850_v57 = vld [vmem:[%s9001_s9 + $0x2a8] sm:$0xff] }
  0xb5   : > { %12036 = vst [vmem:[#allocation12_spill] sm:$0xff] %v9784_v42  ;;  %12043 = vst [vmem:[#allocation15_spill] sm:$0xff] %v9823_v41  ;;  %v9835_v31 = vsel %vm1462_vm3, %v3620_v62, %v9823_v41  ;;  %v9853_v62 = vld [vmem:[%s9001_s9 + $0x2b0] sm:$0xff] }
  0xb9   : > { %7702 = vmatmul.mubr.msk.bf16.gmra.mrb[12].mxu1 %vm684_vm2, %v335_v53  ;;  %v3619_v53 = vsel %vm1462_vm3, %v3617_v52, %v3618_v25  ;;  %v3624_v52 = vrot.slane %v7030_v1, 4  ;;  %v3626_v25 = vrot.slane %v9811_v39, 4 }
  0xba   : > { %7705 = vmatprep.mubr.msk.bf16.mxu1 %vm684_vm2, %v336_v11  ;;  %v12041_v11 = vld [vmem:[#allocation16_spill] sm:$0xff]  ;;  %v9820_v54 = vpack.c.bf16 %v3621_v51, %v3619_v53  ;;  %v12045_v53 = vld [vmem:[#allocation17_spill] sm:$0xff] }
  0xbb   : > { %7998 = vmatmul.mubr.msk.bf16.gmra.mrb[44].mxu0 %vm684_vm2, %v3731_v32  ;;  %v338_v32 = vpack.c.bf16 %v12041_v11, %v12040_v33  ;;  %v3629_v33 = vrot.slane %v9817_v2, 4  ;;  %12044 = vst [vmem:[#allocation16_spill] sm:$0xff] %v9835_v31  ;;  %v339_v51 = vpack.c.bf16 %v9190_v35, %v12045_v53  ;;  %v3638_v53 = vrot.slane %v9856_v13, 4 }
  0xbc   : > { %8001 = vmatprep.mubr.msk.bf16.mxu0 %vm684_vm2, %v9784_v42  ;;  %v9814_v42 = vld [vmem:[%s9001_s9 + $0x288] sm:$0xff]  ;;  %12042 = vst [vmem:[#allocation14_spill] sm:$0xff] %v9820_v54 }
  0xbd   : > { %v3627_v40 = vrot.slane %v9814_v42, 4 }
  0xbf   : > { %v3628_v1 = vsel %vm1462_vm3, %v3626_v25, %v3627_v40  ;;  %v3630_v11 = vsel %vm1462_vm3, %v3627_v40, %v3629_v33 }
  0xc0   : > { %v9859_v35 = vpack.c.bf16 %v3630_v11, %v3628_v1  ;;  %v12051_v1 = vld [vmem:[#allocation20_spill] sm:$0xff] }
  0xc1   : > { %7706 = vmatmul.mubr.msk.bf16.gmra.mrb[16].mxu1 %vm684_vm2, %v337_v17  ;;  %v3625_v17 = vsel %vm1462_vm3, %v9823_v41, %v3624_v52  ;;  %v341_v11 = vpack.c.bf16 %v9225_v23, %v12051_v1  ;;  %v12053_v41 = vld [vmem:[#allocation22_spill] sm:$0xff] }
  0xc2   : > { %7709 = vmatprep.mubr.msk.bf16.mxu1 %vm684_vm2, %v338_v32  ;;  %v9844_v32 = vld [vmem:[%s9001_s9 + $0x298] sm:$0xff]  ;;  %v3735_v52 = vpack.c.bf16 %v3625_v17, %v9835_v31  ;;  %12048 = vst [vmem:[#allocation17_spill] sm:$0xff] %v9859_v35  ;;  %v7040_v31 = vld [vmem:[%s9001_s9 + $0x2c8] sm:$0xf]  ;;  %v12059_v1 = vld [vmem:[#allocation26_spill] sm:$0xff] }
  0xc3   : > { %8002 = vmatmul.mubr.msk.bf16.gmra.mrb[48].mxu0 %vm684_vm2, %v3733_v26  ;;  %v7035_v26 = vld [vmem:[%s9001_s9 + $0x2a0] sm:$0xf]  ;;  %v9862_v25 = vrot.slane %v9844_v32, 4  ;;  %v3642_v23 = vrot.slane %v7040_v31, 4 }
  0xc4   : > { %8005 = vmatprep.mubr.msk.bf16.mxu0 %vm684_vm2, %v9820_v54  ;;  %v340_v54 = vpack.c.bf16 %v12047_v48, %v12046_v4  ;;  %v3633_v40 = vrot.slane %v7035_v26, 4  ;;  %v3635_v48 = vrot.slane %v9850_v57, 4  ;;  %v3636_v4 = vrot.slane %v9853_v62, 4 }
  0xc5   : > { %12049 = vst [vmem:[#allocation18_spill] sm:$0xff] %v9862_v25  ;;  %v9874_v17 = vsel %vm1462_vm3, %v3629_v33, %v9862_v25 }
  0xc6   : > { %12050 = vst [vmem:[#allocation19_spill] sm:$0xff] %v9874_v17  ;;  %v3637_v26 = vsel %vm1462_vm3, %v3635_v48, %v3636_v4  ;;  %v12057_v48 = vld [vmem:[#allocation23_spill] sm:$0xff] }
  0xc7   : > { %v343_v31 = vpack.c.bf16 %v9266_v16, %v12057_v48  ;;  %v9925_v16 = vld [vmem:[%s9001_s9 + $0xb0] sm:$0xff]  ;;  %v12060_v48 = vld [vmem:[#allocation27_spill] sm:$0xff]  ;;  %12064 = vst [vmem:[#allocation23_spill] sm:$0xff] %v9985_v58 }
  0xc9   : > { %7710 = vmatmul.mubr.msk.bf16.gmra.mrb[20].mxu1 %vm684_vm2, %v339_v51  ;;  %v3634_v51 = vsel %vm1462_vm3, %v9862_v25, %v3633_v40  ;;  %v9972_v25 = vld [vmem:[%s9001_s9 + $0xe0] sm:$0xff] }
  0xca   : > { %7713 = vmatprep.mubr.msk.bf16.mxu1 %vm684_vm2, %v340_v54  ;;  %v3639_v54 = vsel %vm1462_vm3, %v3636_v4, %v3638_v53  ;;  %v3737_v33 = vpack.c.bf16 %v3634_v51, %v9874_v17  ;;  %v9908_v4 = vld [vmem:[%s9001_s9 + $0xa0] sm:$0xff]  ;;  %v12058_v51 = vld [vmem:[#allocation25_spill] sm:$0xff]  ;;  %v9968_v17 = vld [vmem:[%s11793_s1 + $0x10] sm:$0x3] }
  0xcb   : > { %8006 = vmatmul.mubr.msk.bf16.gmra.mrb[52].mxu0 %vm684_vm2, %v3735_v52  ;;  %v9883_v52 = vld [vmem:[%s9001_s9 + $0x2c0] sm:$0xff]  ;;  %v9889_v6 = vpack.c.bf16 %v3639_v54, %v3637_v26  ;;  %v4843_v54 = vrot.slane %v9908_v4, 2 }
  0xcc   : > { %8009 = vmatprep.mubr.msk.bf16.mxu0 %vm684_vm2, %v9859_v35  ;;  %v12052_v35 = vld [vmem:[#allocation21_spill] sm:$0xff]  ;;  %v9892_v40 = vrot.slane %v9883_v52, 4 }
  0xcd   : > { %v342_v5 = vpack.c.bf16 %v12053_v41, %v12052_v35  ;;  %12054 = vst [vmem:[#allocation20_spill] sm:$0xff] %v9889_v6 }
  0xce   : > { %12055 = vst [vmem:[#allocation21_spill] sm:$0xff] %v9892_v40  ;;  %v9901_v41 = vsel %vm1462_vm3, %v3638_v53, %v9892_v40  ;;  %v3643_v35 = vsel %vm1462_vm3, %v9892_v40, %v3642_v23  ;;  %v9928_v23 = vld [vmem:[%s9001_s9 + $0xb8] sm:$0xff] }
  0xcf   : > { %12056 = vst [vmem:[#allocation22_spill] sm:$0xff] %v9901_v41  ;;  %v3739_v26 = vpack.c.bf16 %v3643_v35, %v9901_v41  ;;  %v4278_v41 = vpack.c.bf16 %v9928_v23, %v9925_v16 }
  0xd1   : > { %7714 = vmatmul.mubr.msk.bf16.gmra.mrb[24].mxu1 %vm684_vm2, %v341_v11  ;;  %v344_v11 = vpack.c.bf16 %v12059_v1, %v12058_v51  ;;  %v345_v51 = vpack.c.bf16 %v9298_v27, %v12060_v48  ;;  %v9936_v1 = vld [vmem:[%s9001_s9 + $0xc8] sm:$0xff] }
  0xd2   : > { %7717 = vmatprep.mubr.msk.bf16.mxu1 %vm684_vm2, %v342_v5  ;;  %v9911_v5 = vld [vmem:[%s9001_s9 + $0xa8] sm:$0xff]  ;;  %v4852_v48 = vrot.slane %v9936_v1, 2 }
  0xd3   : > { %8010 = vmatmul.mubr.msk.bf16.gmra.mrb[56].mxu0 %vm684_vm2, %v3737_v33  ;;  %v4277_v53 = vpack.c.bf16 %v9911_v5, %v9908_v4  ;;  %v4844_v33 = vrot.slane %v9911_v5, 2 }
  0xd4   : > { %8013 = vmatprep.mubr.msk.bf16.mxu0 %vm684_vm2, %v9889_v6  ;;  %v9956_v6 = vld [vmem:[%s9001_s9 + $0xd8] sm:$0xff] }
  0xd5   : > { %v9931_v35 = vsel %vm441_vm1, %v4843_v54, %v4844_v33 }
  0xd9   : > { %7718 = vmatmul.mubr.msk.bf16.gmra.mrb[28].mxu1 %vm684_vm2, %v343_v31  ;;  %v9939_v31 = vld [vmem:[%s9001_s9 + $0xd0] sm:$0xff] }
  0xda   : > { %7721 = vmatprep.mubr.msk.bf16.mxu1 %vm684_vm2, %v344_v11  ;;  %v11865_v11 = vrot.slane %v9925_v16, 2  ;;  %v4279_v27 = vpack.c.bf16 %v9939_v31, %v9936_v1  ;;  %v4853_v40 = vrot.slane %v9939_v31, 2 }
  0xdb   : > { %8014 = vmatmul.mubr.msk.bf16.gmra.mrb[60].mxu0 %vm684_vm2, %v3739_v26  ;;  %v12061_v26 = vld [vmem:[#allocation28_spill] sm:$0xff] }
  0xdc   : > { %8019 = vmatprep.mubr.msk.bf16.mxu0 %vm684_vm2, %v4277_v53  ;;  %v346_v53 = vpack.c.bf16 %v12061_v26, %v9304_v55  ;;  %v9949_v54 = vsel %vm441_vm1, %v4844_v33, %v11865_v11  ;;  %v12062_v26 = vld [vmem:[#allocation30_spill] sm:$0xff]  ;;  %v4855_v11 = vrot.slane %v9956_v6, 2  ;;  %v12063_v55 = vld [vmem:[#allocation29_spill] sm:$0xff] }
  0xdd   : > { %v5182_v33 = vsel %vm781_vm0, %v12062_v26, 0  ;;  %v9977_v26 = vsel %vm441_vm1, %v4852_v48, %v4853_v40 }
  0xe1   : > { %7722 = vmatmul.mubr.msk.bf16.gmra.mrb[32].mxu1 %vm684_vm2, %v345_v51  ;;  %v4857_v51 = vrot.slane %v9972_v25, 2 }
  0xe2   : > { %7725 = vmatprep.mubr.msk.bf16.mxu1 %vm684_vm2, %v346_v53  ;;  %v347_v53 = vpack.c.bf16 %v9329_v22, %v12063_v55  ;;  %v4280_v55 = vpack.c.bf16 %v9972_v25, %v9956_v6 }
  0xe3   : > { %8020 = vmatmul.mubr.msk.bf16.vlgmr.msra.gmra.mrb[0].mxu0 %vm684_vm2, %v4278_v41  ;;  %v9990_v41 = vsel %vm441_vm1, %v4853_v40, %v4855_v11  ;;  %v4862_v40 = vrot.slane %v9985_v58, 2  ;;  %v10013_v22 = vsel %vm441_vm1, %v4855_v11, %v4857_v51 }
  0xe4   : > { %8084 = vmatpush3.bf16.msra.mxu0 %v5182_v33  ;;  %8023 = vmatprep.mubr.msk.bf16.mxu0 %vm684_vm2, %v4279_v27  ;;  %v9993_v33 = vld [vmem:[%s9001_s9 + $0xe8] sm:$0xf]  ;;  %v9997_v27 = vpack.c.bf16 %v9369_v24, %v9366_v14  ;;  %v4281_v14 = vpack.c.bf16 %v9985_v58, %v9982_v34  ;;  %v4864_v24 = vrot.slane %v10007_v59, 2  ;;  %12066 = vst [vmem:[#allocation26_spill] sm:$0xff] %v10013_v22 }
  0xe5   : > { %8738 = vmatprep.subr.msk.bf16.mxu0 %vm781_vm0, %v9968_v17  ;;  %12065 = vst [vmem:[#allocation25_spill] sm:$0xff] %v9993_v33  ;;  %v4859_v48 = vrot.slane %v9993_v33, 2  ;;  %v10025_v33 = vld [vmem:[%s9001_s9 + $0x108] sm:$0xff]  ;;  %v10028_v58 = vsel %vm441_vm1, %v4861_v20, %v4862_v40  ;;  %v10048_v20 = vld [vmem:[%s9001_s9 + $0x110] sm:$0xf] }
  0xe6   : > { %12068 = vst [vmem:[#allocation28_spill] sm:$0xff] %v10028_v58  ;;  %v4866_v11 = vrot.slane %v10025_v33, 2  ;;  %12072 = vst [vmem:[#allocation53_spill] sm:$0xff] %v10048_v20 }
  0xe7   : > { %v10016_v19 = vsel %vm441_vm1, %v4857_v51, %v4859_v48  ;;  %v10033_v51 = vsel %vm441_vm1, %v4862_v40, %v4864_v24  ;;  %v10040_v48 = vld [vmem:[%s9001_s9 + $0x118] sm:$0xff]  ;;  %v4868_v40 = vrot.slane %v10048_v20, 2  ;;  %v10091_v20 = vpack.c.bf16 %v9444_v3, %v9411_v56 }
  0xe8   : > { %12067 = vst [vmem:[#allocation27_spill] sm:$0xff] %v10016_v19  ;;  %12069 = vst [vmem:[#allocation30_spill] sm:$0xff] %v10033_v51  ;;  %v10060_v19 = vld [vmem:[%s9001_s9 + $0x128] sm:$0xff]  ;;  %v10114_v51 = vld [vmem:[%s9001_s9 + $0x150] sm:$0xff] }
  0xe9   : > { %7726 = vmatmul.mubr.msk.bf16.gmra.mrb[36].mxu1 %vm684_vm2, %v347_v53  ;;  %v10037_v53 = vpack.c.bf16 %v9398_v28, %v9372_v8  ;;  %12070 = vst [vmem:[#allocation29_spill] sm:$0xff] %v10040_v48  ;;  %v4282_v8 = vpack.c.bf16 %v10025_v33, %v10007_v59  ;;  %v4870_v28 = vrot.slane %v10040_v48, 2  ;;  %v4873_v58 = vrot.slane %v10060_v19, 2 }
  0xea   : > { %7729 = vmatprep.mubr.msk.bf16.mxu1 %vm684_vm2, %v9997_v27 }
  0xeb   : > { %8024 = vmatmul.mubr.msk.bf16.gmra.mrb[4].mxu0 %vm684_vm2, %v4280_v55  ;;  %v10043_v55 = vld [vmem:[%s9001_s9 + $0x120] sm:$0xff] }
  0xec   : > { %8027 = vmatprep.mubr.msk.bf16.mxu0 %vm684_vm2, %v4281_v14  ;;  %12071 = vst [vmem:[#allocation52_spill] sm:$0xff] %v10043_v55  ;;  %v10052_v14 = vpack.c.bf16 %v9408_v18, %v9405_v36  ;;  %v4871_v22 = vrot.slane %v10043_v55, 2  ;;  %v4283_v15 = vpack.c.bf16 %v10043_v55, %v10040_v48  ;;  %v10066_v36 = vsel %vm441_vm1, %v4864_v24, %v4866_v11  ;;  %v10079_v55 = vld [vmem:[%s9001_s9 + $0x130] sm:$0xff] }
  0xed   : > { %12073 = vst [vmem:[#allocation54_spill] sm:$0xff] %v10066_v36  ;;  %v10069_v18 = vsel %vm441_vm1, %v4866_v11, %v4868_v40  ;;  %v4875_v11 = vrot.slane %v10079_v55, 2  ;;  %v10094_v36 = vld [vmem:[%s9001_s9 + $0x140] sm:$0xff]  ;;  %v4284_v56 = vpack.c.bf16 %v10079_v55, %v10060_v19 }
  0xee   : > { %12074 = vst [vmem:[#allocation55_spill] sm:$0xff] %v10069_v18  ;;  %v10082_v24 = vsel %vm441_vm1, %v4870_v28, %v4871_v22  ;;  %v10087_v40 = vsel %vm441_vm1, %v4871_v22, %v4873_v58  ;;  %12077 = vst [vmem:[#allocation58_spill] sm:$0xff] %v10094_v36  ;;  %v10102_v28 = vld [vmem:[%s9001_s9 + $0x138] sm:$0xf]  ;;  %v4879_v3 = vrot.slane %v10094_v36, 2 }
  0xef   : > { %12075 = vst [vmem:[#allocation56_spill] sm:$0xff] %v10082_v24  ;;  %12076 = vst [vmem:[#allocation57_spill] sm:$0xff] %v10087_v40  ;;  %v4877_v22 = vrot.slane %v10102_v28, 2  ;;  %v4882_v24 = vrot.slane %v10114_v51, 2  ;;  %v10168_v40 = vld [vmem:[%s9001_s9 + $0x178] sm:$0xff] }
  0xf0   : > { %12079 = vst [vmem:[#allocation60_spill] sm:$0xff] %v10102_v28  ;;  %v10145_v28 = vpack.c.bf16 %v9488_v38, %v9457_v45 }
  0xf1   : > { %7730 = vmatmul.mubr.msk.bf16.gmra.mrb[40].mxu1 %vm684_vm2, %v10037_v53 }
  0xf2   : > { %7733 = vmatprep.mubr.msk.bf16.mxu1 %vm684_vm2, %v10052_v14 }
  0xf3   : > { %8028 = vmatmul.mubr.msk.bf16.gmra.mrb[8].mxu0 %vm684_vm2, %v4282_v8  ;;  %v10097_v8 = vld [vmem:[%s9001_s9 + $0x148] sm:$0xff] }
  0xf4   : > { %8031 = vmatprep.mubr.msk.bf16.mxu0 %vm684_vm2, %v4283_v15  ;;  %12078 = vst [vmem:[#allocation59_spill] sm:$0xff] %v10097_v8  ;;  %v10106_v15 = vpack.c.bf16 %v9454_v49, %v9451_v0  ;;  %v4880_v48 = vrot.slane %v10097_v8, 2  ;;  %v4285_v18 = vpack.c.bf16 %v10097_v8, %v10094_v36  ;;  %v10120_v49 = vsel %vm441_vm1, %v4873_v58, %v4875_v11  ;;  %v10133_v8 = vld [vmem:[%s9001_s9 + $0x158] sm:$0xff] }
  0xf5   : > { %12080 = vst [vmem:[#allocation61_spill] sm:$0xff] %v10120_v49  ;;  %v10123_v0 = vsel %vm441_vm1, %v4875_v11, %v4877_v22  ;;  %v4884_v11 = vrot.slane %v10133_v8, 2  ;;  %v10148_v49 = vld [vmem:[%s9001_s9 + $0x168] sm:$0xff]  ;;  %v4286_v45 = vpack.c.bf16 %v10133_v8, %v10114_v51 }
  0xf6   : > { %12081 = vst [vmem:[#allocation62_spill] sm:$0xff] %v10123_v0  ;;  %v10136_v58 = vsel %vm441_vm1, %v4879_v3, %v4880_v48  ;;  %v10141_v22 = vsel %vm441_vm1, %v4880_v48, %v4882_v24  ;;  %12083 = vst [vmem:[#allocation64_spill] sm:$0xff] %v10148_v49  ;;  %v10156_v3 = vld [vmem:[%s9001_s9 + $0x160] sm:$0xf]  ;;  %v4888_v38 = vrot.slane %v10148_v49, 2 }
  0xf7   : > { %12082 = vst [vmem:[#allocation63_spill] sm:$0xff] %v10136_v58  ;;  %12085 = vst [vmem:[#allocation66_spill] sm:$0xff] %v10156_v3  ;;  %v4886_v48 = vrot.slane %v10156_v3, 2  ;;  %v4891_v58 = vrot.slane %v10168_v40, 2  ;;  %v10204_v3 = vld [vmem:[%s9001_s9 + $0x188] sm:$0xf] }
  0xf9   : > { %7734 = vmatmul.mubr.msk.bf16.gmra.mrb[44].mxu1 %vm684_vm2, %v10091_v20 }
  0xfa   : > { %7737 = vmatprep.mubr.msk.bf16.mxu1 %vm684_vm2, %v10106_v15 }
  0xfb   : > { %8032 = vmatmul.mubr.msk.bf16.gmra.mrb[12].mxu0 %vm684_vm2, %v4284_v56  ;;  %v10151_v56 = vld [vmem:[%s9001_s9 + $0x170] sm:$0xff] }
  0xfc   : > { %8035 = vmatprep.mubr.msk.bf16.mxu0 %vm684_vm2, %v4285_v18  ;;  %12084 = vst [vmem:[#allocation65_spill] sm:$0xff] %v10151_v56  ;;  %v10160_v18 = vpack.c.bf16 %v9498_v29, %v9495_v9  ;;  %v4889_v36 = vrot.slane %v10151_v56, 2  ;;  %v4287_v0 = vpack.c.bf16 %v10151_v56, %v10148_v49  ;;  %v10174_v29 = vsel %vm441_vm1, %v4882_v24, %v4884_v11  ;;  %v10187_v56 = vld [vmem:[%s9001_s9 + $0x180] sm:$0xff] }
  0xfd   : > { %12086 = vst [vmem:[#allocation67_spill] sm:$0xff] %v10174_v29  ;;  %v10177_v9 = vsel %vm441_vm1, %v4884_v11, %v4886_v48  ;;  %v4893_v24 = vrot.slane %v10187_v56, 2  ;;  %v10199_v48 = vpack.c.bf16 %v9532_v61, %v9501_v43 }
  0xfe   : > { %v10190_v49 = vsel %vm441_vm1, %v4888_v38, %v4889_v36  ;;  %v10195_v11 = vsel %vm441_vm1, %v4889_v36, %v4891_v58  ;;  %v10208_v38 = vpack.c.bf16 %v9542_v60, %v9539_v44  ;;  %v4288_v36 = vpack.c.bf16 %v10187_v56, %v10168_v40 }
  0xff   : > { %v10214_v29 = vsel %vm441_vm1, %v4891_v58, %v4893_v24  ;;  %v10230_v60 = vpack.c.bf16 %v9576_v10, %v9545_v63  ;;  %v10234_v44 = vpack.c.bf16 %v9586_v50, %v9583_v21  ;;  %v8780_v58 = vld [vmem:[%s9001_s9] sm:$0xff]  ;;  %v12087_v10 = vrot.slane %v12023_v37, 4 }
 0x100   : > { %v10252_v21 = vpack.c.bf16 %v9620_v7, %v9589_v30 }
 0x101   : > { %7738 = vmatmul.mubr.msk.bf16.gmra.mrb[48].mxu1 %vm684_vm2, %v10145_v28 }
 0x102   : > { %7741 = vmatprep.mubr.msk.bf16.mxu1 %vm684_vm2, %v10160_v18 }
 0x103   : > { %8036 = vmatmul.mubr.msk.bf16.gmra.mrb[16].mxu0 %vm684_vm2, %v4286_v45 }
 0x104   : > { %8039 = vmatprep.mubr.msk.bf16.mxu0 %vm684_vm2, %v4287_v0  ;;  %v4895_v0 = vrot.slane %v10204_v3, 2 }
 0x106   : > { %v10217_v43 = vsel %vm441_vm1, %v4893_v24, %v4895_v0  ;;  %v1463_v24 = vrot.slane %v8780_v58, 4  ;;  %v8781_v0 = vld [vmem:[%s9001_s9 + $0x8] sm:$0xff] }
 0x107   : > { %v1464_v61 = vrot.slane %v8781_v0, 4  ;;  %v8783_v0 = vld [vmem:[%s9001_s9 + $0x30] sm:$0xff] }
 0x109   : > { %7742 = vmatmul.mubr.msk.bf16.gmra.mrb[52].mxu1 %vm684_vm2, %v10199_v48  ;;  %v1465_v63 = vsel %vm1462_vm3, %v1463_v24, %v1464_v61  ;;  %v1467_v50 = vsel %vm1462_vm3, %v1464_v61, %v12087_v10  ;;  %v8784_v24 = vld [vmem:[%s9001_s9 + $0x38] sm:$0xff]  ;;  %v8785_v61 = vld [vmem:[%s9001_s9 + $0x40] sm:$0xff]  ;;  %v8786_v10 = vld [vmem:[%s9001_s9 + $0x48] sm:$0xf] }
 0x10a   : > { %7745 = vmatprep.mubr.msk.bf16.mxu1 %vm684_vm2, %v10208_v38  ;;  %v1475_v37 = vrot.slane %v8784_v24, 4  ;;  %v12088_v24 = vpack.c.bf16 %v9681_v47, %v12017_v12  ;;  %v8790_v12 = vld [vmem:[%s11793_s1 + $0x8] sm:$0x3] }
 0x10b   : > { %8040 = vmatmul.mubr.msk.bf16.gmra.mrb[20].mxu0 %vm684_vm2, %v4288_v36  ;;  %v8782_v36 = vld [vmem:[%s9001_s9 + $0x28] sm:$0xff] }
 0x10c   : > { %8043 = vmatprep.mubr.msk.bf16.mxu0 %vm684_vm2, %v9997_v27  ;;  %v1671_v27 = vpack.c.bf16 %v1467_v50, %v1465_v63  ;;  %v1472_v58 = vrot.slane %v8782_v36, 4  ;;  %v1477_v63 = vrot.slane %v8785_v61, 4  ;;  %v1479_v50 = vrot.slane %v8786_v10, 4  ;;  %v10300_v61 = vld [vmem:[%s9001_s9 + $0x68] sm:$0xff] }
 0x10d   : > { %v2371_v36 = vsel %vm781_vm0, %v9701_v46, 0 }
 0x10e   : > { %v1478_v46 = vsel %vm1462_vm3, %v1475_v37, %v1477_v63 }
 0x111   : > { %7746 = vmatmul.mubr.msk.bf16.gmra.mrb[56].mxu1 %vm684_vm2, %v10230_v60 }
 0x112   : > { %7749 = vmatprep.mubr.msk.bf16.mxu1 %vm684_vm2, %v10234_v44 }
 0x113   : > { %8044 = vmatmul.mubr.msk.bf16.gmra.mrb[24].mxu0 %vm684_vm2, %v10037_v53  ;;  %v1473_v53 = vrot.slane %v8783_v0, 4  ;;  %v10271_v0 = vld [vmem:[%s9001_s9 + $0x50] sm:$0xff] }
 0x114   : > { %8047 = vmatprep.mubr.msk.bf16.mxu0 %vm684_vm2, %v10052_v14 }
 0x115   : > { %v1474_v30 = vsel %vm1462_vm3, %v1472_v58, %v1473_v53  ;;  %v1476_v7 = vsel %vm1462_vm3, %v1473_v53, %v1475_v37  ;;  %v10279_v53 = vld [vmem:[%s9001_s9 + $0x60] sm:$0xff] }
 0x116   : > { %v1673_v14 = vpack.c.bf16 %v1476_v7, %v1474_v30  ;;  %v1480_v30 = vsel %vm1462_vm3, %v1477_v63, %v1479_v50  ;;  %v8792_v63 = vld [vmem:[%s9001_s9 + $0x70] sm:$0xf]  ;;  %v10305_v50 = vld [vmem:[%s9001_s9 + $0x78] sm:$0xff] }
 0x117   : > { %v1674_v37 = vpack.c.bf16 %v1480_v30, %v1478_v46  ;;  %v1488_v10 = vrot.slane %v8792_v63, 4  ;;  %v10327_v63 = vld [vmem:[%s9001_s9 + $0x90] sm:$0xff] }
 0x119   : > { %7750 = vmatmul.mubr.msk.bf16.gmra.mrb[60].mxu1 %vm684_vm2, %v10252_v21 }
 0x11a   : > { %7755 = vmatprep.mubr.msk.bf16.mxu1 %vm684_vm2, %v1671_v27  ;;  %v1481_v27 = vrot.slane %v10271_v0, 4 }
 0x11b   : > { %8048 = vmatmul.mubr.msk.bf16.gmra.mrb[28].mxu0 %vm684_vm2, %v10091_v20  ;;  %v10275_v20 = vld [vmem:[%s9001_s9 + $0x58] sm:$0xff] }
 0x11c   : > { %8051 = vmatprep.mubr.msk.bf16.mxu0 %vm684_vm2, %v10106_v15  ;;  %v1482_v58 = vrot.slane %v10275_v20, 4  ;;  %v1484_v15 = vrot.slane %v10279_v53, 4 }
 0x11e   : > { %v1483_v7 = vsel %vm1462_vm3, %v1481_v27, %v1482_v58  ;;  %v1485_v47 = vsel %vm1462_vm3, %v1482_v58, %v1484_v15  ;;  %v10309_v27 = vld [vmem:[%s9001_s9 + $0x80] sm:$0xff] }
 0x11f   : > { %v1491_v58 = vrot.slane %v10309_v27, 4 }
 0x121   : > { %7756 = vmatmul.mubr.msk.bf16.vlgmr.msra.gmra.mrb[0].mxu1 %vm684_vm2, %v12088_v24  ;;  %v10313_v24 = vld [vmem:[%s9001_s9 + $0x88] sm:$0xff] }
 0x122   : > { %7820 = vmatpush3.bf16.msra.mxu1 %v2371_v36  ;;  %7759 = vmatprep.mubr.msk.bf16.mxu1 %vm684_vm2, %v1673_v14  ;;  %v1675_v14 = vpack.c.bf16 %v1485_v47, %v1483_v7  ;;  %v1490_v36 = vrot.slane %v10305_v50, 4  ;;  %12089 = vst [vmem:[#allocation68_spill] sm:$0xff] %v10313_v24 }
 0x123   : > { %8052 = vmatmul.mubr.msk.bf16.gmra.mrb[32].mxu0 %vm684_vm2, %v10145_v28  ;;  %8734 = vmatprep.subr.msk.bf16.mxu1 %vm781_vm0, %v8790_v12  ;;  %v1486_v28 = vrot.slane %v10300_v61, 4 }
 0x124   : > { %8055 = vmatprep.mubr.msk.bf16.mxu0 %vm684_vm2, %v10160_v18  ;;  %v1493_v18 = vrot.slane %v10313_v24, 4  ;;  %v1492_v7 = vsel %vm1462_vm3, %v1490_v36, %v1491_v58  ;;  %v10332_v24 = vld [vmem:[%s9001_s9 + $0xa0] sm:$0xff]  ;;  %v10340_v36 = vld [vmem:[%s9001_s9 + $0xb0] sm:$0xff] }
 0x125   : > { %v1487_v46 = vsel %vm1462_vm3, %v1484_v15, %v1486_v28  ;;  %v1489_v30 = vsel %vm1462_vm3, %v1486_v28, %v1488_v10  ;;  %v8797_v15 = vld [vmem:[%s9001_s9 + $0x98] sm:$0xf]  ;;  %v10336_v28 = vld [vmem:[%s9001_s9 + $0xa8] sm:$0xff]  ;;  %12091 = vst [vmem:[#allocation70_spill] sm:$0xff] %v10340_v36 }
 0x126   : > { %v1494_v47 = vsel %vm1462_vm3, %v1491_v58, %v1493_v18  ;;  %v1676_v12 = vpack.c.bf16 %v1489_v30, %v1487_v46  ;;  %v1497_v45 = vrot.slane %v8797_v15, 4  ;;  %12090 = vst [vmem:[#allocation69_spill] sm:$0xff] %v10336_v28  ;;  %v1500_v10 = vrot.slane %v10336_v28, 4  ;;  %v10354_v15 = vld [vmem:[%s9001_s9 + $0xb8] sm:$0xff]  ;;  %v10359_v28 = vld [vmem:[%s9001_s9 + $0xc8] sm:$0xff] }
 0x129   : > { %7760 = vmatmul.mubr.msk.bf16.gmra.mrb[4].mxu1 %vm684_vm2, %v1674_v37  ;;  %v1677_v37 = vpack.c.bf16 %v1494_v47, %v1492_v7 }
 0x12a   : > { %7763 = vmatprep.mubr.msk.bf16.mxu1 %vm684_vm2, %v1675_v14  ;;  %v1495_v14 = vrot.slane %v10327_v63, 4 }
 0x12b   : > { %8056 = vmatmul.mubr.msk.bf16.gmra.mrb[36].mxu0 %vm684_vm2, %v10199_v48  ;;  %v1499_v48 = vrot.slane %v10332_v24, 4 }
 0x12c   : > { %8059 = vmatprep.mubr.msk.bf16.mxu0 %vm684_vm2, %v10208_v38  ;;  %v1502_v38 = vrot.slane %v10340_v36, 4  ;;  %v1496_v58 = vsel %vm1462_vm3, %v1493_v18, %v1495_v14  ;;  %v1498_v46 = vsel %vm1462_vm3, %v1495_v14, %v1497_v45  ;;  %v8802_v18 = vld [vmem:[%s9001_s9 + $0xc0] sm:$0xf]  ;;  %v1508_v45 = vrot.slane %v10359_v28, 4 }
 0x12d   : > { %v1501_v30 = vsel %vm1462_vm3, %v1499_v48, %v1500_v10  ;;  %v1678_v47 = vpack.c.bf16 %v1498_v46, %v1496_v58  ;;  %v1506_v36 = vrot.slane %v8802_v18, 4  ;;  %v10367_v48 = vld [vmem:[%s9001_s9 + $0xd8] sm:$0xff] }
 0x12e   : > { %v1503_v7 = vsel %vm1462_vm3, %v1500_v10, %v1502_v38  ;;  %12092 = vst [vmem:[#allocation71_spill] sm:$0xff] %v10367_v48  ;;  %v10372_v10 = vpack.c.bf16 %v9814_v42, %v9811_v39 }
 0x130   : > { %12093 = vst [vmem:[#allocation72_spill] sm:$0xff] %v10372_v10 }
 0x131   : > { %7764 = vmatmul.mubr.msk.bf16.gmra.mrb[8].mxu1 %vm684_vm2, %v1676_v12  ;;  %v1679_v12 = vpack.c.bf16 %v1503_v7, %v1501_v30 }
 0x132   : > { %7767 = vmatprep.mubr.msk.bf16.mxu1 %vm684_vm2, %v1677_v37  ;;  %v1504_v37 = vrot.slane %v10354_v15, 4 }
 0x133   : > { %8060 = vmatmul.mubr.msk.bf16.gmra.mrb[40].mxu0 %vm684_vm2, %v10230_v60  ;;  %v10363_v60 = vld [vmem:[%s9001_s9 + $0xd0] sm:$0xff] }
 0x134   : > { %8063 = vmatprep.mubr.msk.bf16.mxu0 %vm684_vm2, %v10234_v44  ;;  %v1509_v14 = vrot.slane %v10363_v60, 4  ;;  %v1511_v44 = vrot.slane %v10367_v48, 4  ;;  %v1505_v58 = vsel %vm1462_vm3, %v1502_v38, %v1504_v37  ;;  %v1507_v46 = vsel %vm1462_vm3, %v1504_v37, %v1506_v36  ;;  %v8807_v38 = vld [vmem:[%s9001_s9 + $0xe8] sm:$0xf] }
 0x135   : > { %v1680_v39 = vpack.c.bf16 %v1507_v46, %v1505_v58  ;;  %v1515_v18 = vrot.slane %v8807_v38, 4  ;;  %v10391_v36 = vpack.c.bf16 %v9844_v32, %v9817_v2  ;;  %v10402_v58 = vld [vmem:[%s9001_s9 + $0x100] sm:$0xff] }
 0x136   : > { %v1510_v30 = vsel %vm1462_vm3, %v1508_v45, %v1509_v14  ;;  %v1512_v7 = vsel %vm1462_vm3, %v1509_v14, %v1511_v44  ;;  %v10398_v45 = vld [vmem:[%s9001_s9 + $0xf8] sm:$0xff]  ;;  %12098 = vst [vmem:[#allocation77_spill] sm:$0xff] %v10402_v58  ;;  %v1520_v46 = vrot.slane %v10402_v58, 4 }
 0x137   : > { %v1681_v42 = vpack.c.bf16 %v1512_v7, %v1510_v30  ;;  %12095 = vst [vmem:[#allocation74_spill] sm:$0xff] %v10391_v36  ;;  %12097 = vst [vmem:[#allocation76_spill] sm:$0xff] %v10398_v45  ;;  %v1518_v14 = vrot.slane %v10398_v45, 4  ;;  %v10407_v30 = vpack.c.bf16 %v9853_v62, %v9850_v57  ;;  %v10420_v62 = vld [vmem:[%s9001_s9 + $0x2d0] sm:$0xff]  ;;  %v10459_v45 = vld [vmem:[%s9001_s9 + $0x2e8] sm:$0xff] }
 0x138   : > { %12100 = vst [vmem:[#allocation79_spill] sm:$0xff] %v10420_v62  ;;  %12108 = vst [vmem:[#allocation87_spill] sm:$0xff] %v10459_v45 }
 0x139   : > { %7768 = vmatmul.mubr.msk.bf16.gmra.mrb[12].mxu1 %vm684_vm2, %v1678_v47  ;;  %v10385_v47 = vld [vmem:[%s9001_s9 + $0xe0] sm:$0xff]  ;;  %12099 = vst [vmem:[#allocation78_spill] sm:$0xff] %v10407_v30  ;;  %v1521_v57 = vsel %vm1462_vm3, %v1518_v14, %v1520_v46 }
 0x13a   : > { %7771 = vmatprep.mubr.msk.bf16.mxu1 %vm684_vm2, %v1679_v12  ;;  %12094 = vst [vmem:[#allocation73_spill] sm:$0xff] %v10385_v47  ;;  %v1513_v12 = vrot.slane %v10385_v47, 4  ;;  %v8817_v47 = vld [vmem:[%s9001_s9 + $0x138] sm:$0xf] }
 0x13b   : > { %8064 = vmatmul.mubr.msk.bf16.gmra.mrb[44].mxu0 %vm684_vm2, %v10252_v21  ;;  %v10394_v21 = vld [vmem:[%s9001_s9 + $0xf0] sm:$0xff]  ;;  %v1533_v48 = vrot.slane %v8817_v47, 4 }
 0x13c   : > { %8067 = vmatprep.mubr.msk.bf16.mxu0 %vm684_vm2, %v10372_v10  ;;  %12096 = vst [vmem:[#allocation75_spill] sm:$0xff] %v10394_v21  ;;  %v1517_v37 = vrot.slane %v10394_v21, 4  ;;  %v1514_v2 = vsel %vm1462_vm3, %v1511_v44, %v1513_v12  ;;  %v1516_v32 = vsel %vm1462_vm3, %v1513_v12, %v1515_v18  ;;  %v10424_v44 = vpack.c.bf16 %v9883_v52, %v9856_v13  ;;  %v10441_v13 = vld [vmem:[%s9001_s9 + $0x118] sm:$0xff]  ;;  %v10445_v10 = vld [vmem:[%s9001_s9 + $0x120] sm:$0xff] }
 0x13d   : > { %v4969_v12 = vrot.slane %v10420_v62, 2  ;;  %12105 = vst [vmem:[#allocation84_spill] sm:$0xff] %v10441_v13  ;;  %v1526_v52 = vrot.slane %v10441_v13, 4  ;;  %12106 = vst [vmem:[#allocation85_spill] sm:$0xff] %v10445_v10 }
 0x13e   : > { %v1519_v7 = vsel %vm1462_vm3, %v1517_v37, %v1518_v14  ;;  %12101 = vst [vmem:[#allocation80_spill] sm:$0xff] %v10424_v44  ;;  %v10432_v37 = vld [vmem:[%s9001_s9 + $0x108] sm:$0xff] }
 0x13f   : > { %v1683_v38 = vpack.c.bf16 %v1521_v57, %v1519_v7  ;;  %12103 = vst [vmem:[#allocation82_spill] sm:$0xff] %v10432_v37  ;;  %v1522_v14 = vrot.slane %v10432_v37, 4  ;;  %v1527_v7 = vrot.slane %v10445_v10, 4  ;;  %v10449_v57 = vld [vmem:[%s9001_s9 + $0x128] sm:$0xff] }
 0x140   : > { %12107 = vst [vmem:[#allocation86_spill] sm:$0xff] %v10449_v57  ;;  %v1529_v37 = vrot.slane %v10449_v57, 4 }
 0x141   : > { %7772 = vmatmul.mubr.msk.bf16.gmra.mrb[16].mxu1 %vm684_vm2, %v1680_v39  ;;  %v1682_v39 = vpack.c.bf16 %v1516_v32, %v1514_v2  ;;  %v10437_v2 = vld [vmem:[%s9001_s9 + $0x2e0] sm:$0xff]  ;;  %v1523_v58 = vsel %vm1462_vm3, %v1520_v46, %v1522_v14  ;;  %v1528_v57 = vsel %vm1462_vm3, %v1526_v52, %v1527_v7  ;;  %v10474_v46 = vld [vmem:[%s9001_s9 + $0x2f8] sm:$0xff]  ;;  %v10494_v52 = vld [vmem:[%s9001_s9 + $0x308] sm:$0xff] }
 0x142   : > { %7775 = vmatprep.mubr.msk.bf16.mxu1 %vm684_vm2, %v1681_v42  ;;  %v10427_v42 = vld [vmem:[%s9001_s9 + $0x2d8] sm:$0xff]  ;;  %12104 = vst [vmem:[#allocation83_spill] sm:$0xff] %v10437_v2  ;;  %v4972_v32 = vrot.slane %v10437_v2, 2  ;;  %v1530_v10 = vsel %vm1462_vm3, %v1527_v7, %v1529_v37  ;;  %12114 = vst [vmem:[#allocation93_spill] sm:$0xff] %v10494_v52 }
 0x143   : > { %8068 = vmatmul.mubr.msk.bf16.gmra.mrb[48].mxu0 %vm684_vm2, %v10391_v36  ;;  %12102 = vst [vmem:[#allocation81_spill] sm:$0xff] %v10427_v42  ;;  %v4970_v18 = vrot.slane %v10427_v42, 2 }
 0x144   : > { %8071 = vmatprep.mubr.msk.bf16.mxu0 %vm684_vm2, %v10407_v30  ;;  %v8812_v30 = vld [vmem:[%s9001_s9 + $0x110] sm:$0xf] }
 0x145   : > { %v1524_v36 = vrot.slane %v8812_v30, 4  ;;  %v4305_v30 = vpack.c.bf16 %v10427_v42, %v10420_v62  ;;  %v1685_v42 = vpack.c.bf16 %v1530_v10, %v1528_v57  ;;  %v10489_v62 = vld [vmem:[%s9001_s9 + $0x130] sm:$0xff] }
 0x146   : > { %12113 = vst [vmem:[#allocation92_spill] sm:$0xff] %v10489_v62  ;;  %v1531_v21 = vrot.slane %v10489_v62, 4  ;;  %v10507_v57 = vld [vmem:[%s9001_s9 + $0x150] sm:$0xff] }
 0x147   : > { %v1525_v13 = vsel %vm1462_vm3, %v1522_v14, %v1524_v36  ;;  %v4974_v36 = vrot.slane %v10459_v45, 2  ;;  %v10477_v14 = vld [vmem:[%s9001_s9 + $0x300] sm:$0xff]  ;;  %12117 = vst [vmem:[#allocation96_spill] sm:$0xff] %v10507_v57 }
 0x148   : > { %12111 = vst [vmem:[#allocation90_spill] sm:$0xff] %v10477_v14  ;;  %v1684_v7 = vpack.c.bf16 %v1525_v13, %v1523_v58  ;;  %v4981_v13 = vrot.slane %v10494_v52, 2  ;;  %v4307_v47 = vpack.c.bf16 %v10477_v14, %v10474_v46 }
 0x149   : > { %7776 = vmatmul.mubr.msk.bf16.gmra.mrb[20].mxu1 %vm684_vm2, %v1682_v39  ;;  %v10466_v39 = vsel %vm441_vm1, %v4969_v12, %v4970_v18  ;;  %v4306_v12 = vpack.c.bf16 %v10459_v45, %v10437_v2  ;;  %v10503_v45 = vld [vmem:[%s9001_s9 + $0x148] sm:$0xff]  ;;  %v1538_v2 = vrot.slane %v10507_v57, 4  ;;  %v1532_v57 = vsel %vm1462_vm3, %v1529_v37, %v1531_v21 }
 0x14a   : > { %7779 = vmatprep.mubr.msk.bf16.mxu1 %vm684_vm2, %v1683_v38  ;;  %12109 = vst [vmem:[#allocation88_spill] sm:$0xff] %v10466_v39  ;;  %v10469_v38 = vsel %vm441_vm1, %v4970_v18, %v4972_v32  ;;  %v4978_v18 = vrot.slane %v10474_v46, 2  ;;  %v10499_v39 = vld [vmem:[%s9001_s9 + $0x140] sm:$0xff]  ;;  %12116 = vst [vmem:[#allocation95_spill] sm:$0xff] %v10503_v45  ;;  %v1536_v10 = vrot.slane %v10503_v45, 4  ;;  %v1534_v45 = vsel %vm1462_vm3, %v1531_v21, %v1533_v48  ;;  %v10557_v21 = vld [vmem:[%s9001_s9 + $0x168] sm:$0xff] }
 0x14b   : > { %8072 = vmatmul.mubr.msk.bf16.gmra.mrb[52].mxu0 %vm684_vm2, %v10424_v44  ;;  %12110 = vst [vmem:[#allocation89_spill] sm:$0xff] %v10469_v38  ;;  %v10486_v44 = vld [vmem:[%s9001_s9 + $0x2f0] sm:$0xf]  ;;  %12115 = vst [vmem:[#allocation94_spill] sm:$0xff] %v10499_v39  ;;  %v1535_v38 = vrot.slane %v10499_v39, 4  ;;  %v5537_v37 = vrot.slane %v9908_v4, 4 }
 0x14c   : > { %8075 = vmatprep.mubr.msk.bf16.mxu0 %vm684_vm2, %v4305_v30  ;;  %v4979_v30 = vrot.slane %v10477_v14, 2  ;;  %12112 = vst [vmem:[#allocation91_spill] sm:$0xff] %v10486_v44  ;;  %v4976_v58 = vrot.slane %v10486_v44, 2  ;;  %v10513_v44 = vsel %vm441_vm1, %v4972_v32, %v4974_v36  ;;  %v10526_v32 = vld [vmem:[%s9001_s9 + $0x310] sm:$0xff]  ;;  %v10549_v39 = vld [vmem:[%s9001_s9 + $0x158] sm:$0xff] }
 0x14d   : > { %12118 = vst [vmem:[#allocation97_spill] sm:$0xff] %v10513_v44  ;;  %12120 = vst [vmem:[#allocation99_spill] sm:$0xff] %v10526_v32  ;;  %v4983_v48 = vrot.slane %v10526_v32, 2  ;;  %v8822_v44 = vld [vmem:[%s9001_s9 + $0x160] sm:$0xf]  ;;  %v4308_v4 = vpack.c.bf16 %v10526_v32, %v10494_v52 }
 0x14e   : > { %v10516_v62 = vsel %vm441_vm1, %v4974_v36, %v4976_v58  ;;  %v1537_v36 = vsel %vm1462_vm3, %v1535_v38, %v1536_v10  ;;  %v10531_v58 = vsel %vm441_vm1, %v4978_v18, %v4979_v30  ;;  %v5538_v38 = vrot.slane %v9911_v5, 4  ;;  %v10543_v18 = vld [vmem:[%s9001_s9 + $0xc0] sm:$0xf] }
 0x14f   : > { %12119 = vst [vmem:[#allocation98_spill] sm:$0xff] %v10516_v62  ;;  %12121 = vst [vmem:[#allocation100_spill] sm:$0xff] %v10531_v58  ;;  %v1542_v62 = vrot.slane %v8822_v44, 4  ;;  %v1544_v5 = vrot.slane %v10557_v21, 4  ;;  %v4848_v58 = vrot.slane %v9928_v23, 2  ;;  %v4850_v44 = vrot.slane %v10543_v18, 2 }
 0x151   : > { %7780 = vmatmul.mubr.msk.bf16.gmra.mrb[24].mxu1 %vm684_vm2, %v1684_v7  ;;  %v1539_v7 = vsel %vm1462_vm3, %v1536_v10, %v1538_v2  ;;  %v10546_v10 = vld [vmem:[%s9001_s9 + $0x318] sm:$0xf] }
 0x152   : > { %7783 = vmatprep.mubr.msk.bf16.mxu1 %vm684_vm2, %v1685_v42  ;;  %v10534_v42 = vsel %vm441_vm1, %v4979_v30, %v4981_v13  ;;  %12123 = vst [vmem:[#allocation102_spill] sm:$0xff] %v10546_v10  ;;  %v1687_v30 = vpack.c.bf16 %v1539_v7, %v1537_v36  ;;  %v4985_v14 = vrot.slane %v10546_v10, 2  ;;  %v10565_v36 = vld [vmem:[%s9001_s9 + $0x178] sm:$0xff]  ;;  %v10571_v10 = vsel %vm441_vm1, %v4981_v13, %v4983_v48 }
 0x153   : > { %8076 = vmatmul.mubr.msk.bf16.gmra.mrb[56].mxu0 %vm684_vm2, %v4306_v12  ;;  %12122 = vst [vmem:[#allocation101_spill] sm:$0xff] %v10534_v42  ;;  %v1686_v12 = vpack.c.bf16 %v1534_v45, %v1532_v57  ;;  %v10561_v45 = vld [vmem:[%s9001_s9 + $0x170] sm:$0xff]  ;;  %v1547_v7 = vrot.slane %v10565_v36, 4 }
 0x154   : > { %8079 = vmatprep.mubr.msk.bf16.mxu0 %vm684_vm2, %v4307_v47  ;;  %v1540_v47 = vrot.slane %v10549_v39, 4  ;;  %v1545_v57 = vrot.slane %v10561_v45, 4  ;;  %v10574_v42 = vsel %vm441_vm1, %v4983_v48, %v4985_v14  ;;  %v10586_v48 = vsel %vm1462_vm3, %v5537_v37, %v5538_v38 }
 0x155   : > { %v5547_v37 = vrot.slane %v9939_v31, 4  ;;  %v10613_v31 = vld [vmem:[%s9001_s9 + $0x190] sm:$0xff] }
 0x156   : > { %v1541_v52 = vsel %vm1462_vm3, %v1538_v2, %v1540_v47  ;;  %v1543_v23 = vsel %vm1462_vm3, %v1540_v47, %v1542_v62  ;;  %v1546_v13 = vsel %vm1462_vm3, %v1544_v5, %v1545_v57  ;;  %v1548_v14 = vsel %vm1462_vm3, %v1545_v57, %v1547_v7 }
 0x157   : > { %v12124_v2 = vrot.slane %v9925_v16, 2  ;;  %v12125_v62 = vpack.c.bf16 %v9949_v54, %v9931_v35  ;;  %v4851_v47 = vsel %vm441_vm1, %v4848_v58, %v4850_v44  ;;  %v1688_v5 = vpack.c.bf16 %v1543_v23, %v1541_v52  ;;  %v8827_v54 = vld [vmem:[%s9001_s9 + $0x188] sm:$0xf]  ;;  %v10617_v52 = vld [vmem:[%s9001_s9 + $0x198] sm:$0xff]  ;;  %v10621_v23 = vld [vmem:[%s9001_s9 + $0x1a0] sm:$0xff] }
 0x158   : > { %v1689_v57 = vpack.c.bf16 %v1548_v14, %v1546_v13  ;;  %12126 = vst [vmem:[#allocation103_spill] sm:$0xff] %v10621_v23  ;;  %v1556_v13 = vrot.slane %v10621_v23, 4  ;;  %v5876_v14 = vsel %vm781_vm0, %v9968_v17, 0  ;;  %v12131_v23 = vld [vmem:[#allocation25_spill] sm:$0xff] }
 0x159   : > { %7784 = vmatmul.mubr.msk.bf16.gmra.mrb[28].mxu1 %vm684_vm2, %v1686_v12  ;;  %v11932_v12 = vrot.slane %v9925_v16, 4  ;;  %v4849_v32 = vsel %vm441_vm1, %v12124_v2, %v4848_v58  ;;  %v10606_v2 = vld [vmem:[%s9001_s9 + $0x180] sm:$0xff] }
 0x15a   : > { %7787 = vmatprep.mubr.msk.bf16.mxu1 %vm684_vm2, %v1687_v30  ;;  %v5546_v30 = vrot.slane %v9936_v1, 4  ;;  %v1549_v35 = vrot.slane %v10606_v2, 4  ;;  %v5052_v44 = vpack.c.bf16 %v4851_v47, %v4849_v32 }
 0x15b   : > { %8080 = vmatmul.mubr.msk.bf16.gmra.mrb[60].mxu0 %vm684_vm2, %v4308_v4  ;;  %v5549_v4 = vrot.slane %v9956_v6, 4  ;;  %v10603_v1 = vsel %vm1462_vm3, %v5538_v38, %v11932_v12  ;;  %v1553_v6 = vrot.slane %v10613_v31, 4  ;;  %v1554_v38 = vrot.slane %v10617_v52, 4 }
 0x15c   : > { %8085 = vmatprep.mubr.msk.bf16.mxu0 %vm684_vm2, %v12125_v62  ;;  %v1551_v62 = vrot.slane %v8827_v54, 4  ;;  %v1550_v32 = vsel %vm1462_vm3, %v1547_v7, %v1549_v35  ;;  %v10634_v12 = vsel %vm1462_vm3, %v5546_v30, %v5547_v37  ;;  %v12129_v7 = vpack.c.bf16 %v9990_v41, %v9977_v26 }
 0x15d   : > { %v1555_v54 = vsel %vm1462_vm3, %v1553_v6, %v1554_v38  ;;  %v1557_v58 = vsel %vm1462_vm3, %v1554_v38, %v1556_v13  ;;  %12127 = vst [vmem:[#allocation104_spill] sm:$0xff] %v10634_v12  ;;  %v10637_v17 = vsel %vm1462_vm3, %v5547_v37, %v5549_v4  ;;  %v5555_v30 = vrot.slane %v9982_v34, 4  ;;  %v10649_v6 = vld [vmem:[%s9001_s9 + $0x1a8] sm:$0xff]  ;;  %v8832_v38 = vld [vmem:[%s9001_s9 + $0x1b0] sm:$0xf]  ;;  %v10660_v12 = vld [vmem:[%s9001_s9 + $0x1c0] sm:$0xff] }
 0x15e   : > { %v1552_v47 = vsel %vm1462_vm3, %v1549_v35, %v1551_v62  ;;  %12128 = vst [vmem:[#allocation105_spill] sm:$0xff] %v10637_v17  ;;  %v12130_v35 = vld [vmem:[#allocation23_spill] sm:$0xff]  ;;  %v1691_v37 = vpack.c.bf16 %v1557_v58, %v1555_v54  ;;  %v5553_v26 = vrot.slane %v12131_v23, 4  ;;  %v5558_v41 = vrot.slane %v10007_v59, 4 }
 0x15f   : > { %v5556_v62 = vrot.slane %v12130_v35, 4  ;;  %12132 = vst [vmem:[#allocation23_spill] sm:$0xff] %v10660_v12  ;;  %v1563_v34 = vrot.slane %v10660_v12, 4  ;;  %v12146_v12 = vld [vmem:[#allocation53_spill] sm:$0xff] }
 0x161   : > { %7788 = vmatmul.mubr.msk.bf16.gmra.mrb[32].mxu1 %vm684_vm2, %v1688_v5  ;;  %v5551_v5 = vrot.slane %v9972_v25, 4  ;;  %v1558_v25 = vrot.slane %v10649_v6, 4 }
 0x162   : > { %7791 = vmatprep.mubr.msk.bf16.mxu1 %vm684_vm2, %v1689_v57 }
 0x163   : > { %8086 = vmatmul.mubr.msk.bf16.vlgmr.msra.gmra.mrb[0].mxu0 %vm684_vm2, %v5052_v44  ;;  %v1690_v44 = vpack.c.bf16 %v1552_v47, %v1550_v32  ;;  %v10664_v32 = vld [vmem:[%s9001_s9 + $0x1c8] sm:$0xff]  ;;  %v10668_v47 = vsel %vm1462_vm3, %v5549_v4, %v5551_v5  ;;  %v10671_v54 = vsel %vm1462_vm3, %v5551_v5, %v5553_v26  ;;  %v1559_v23 = vsel %vm1462_vm3, %v1556_v13, %v1558_v25 }
 0x164   : > { %8150 = vmatpush3.bf16.msra.mxu0 %v5876_v14  ;;  %8089 = vmatprep.mubr.msk.bf16.mxu0 %vm684_vm2, %v12129_v7  ;;  %v1560_v14 = vrot.slane %v8832_v38, 4  ;;  %v10656_v7 = vld [vmem:[%s9001_s9 + $0x1b8] sm:$0xff]  ;;  %12133 = vst [vmem:[#allocation25_spill] sm:$0xff] %v10664_v32  ;;  %v1565_v58 = vrot.slane %v10664_v32, 4  ;;  %12134 = vst [vmem:[#allocation106_spill] sm:$0xff] %v10668_v47  ;;  %v12136_v38 = vld [vmem:[#allocation27_spill] sm:$0xff]  ;;  %v10686_v26 = vsel %vm1462_vm3, %v5555_v30, %v5556_v62 }
 0x165   : > { %v1562_v57 = vrot.slane %v10656_v7, 4  ;;  %12135 = vst [vmem:[#allocation107_spill] sm:$0xff] %v10671_v54  ;;  %v12137_v32 = vld [vmem:[#allocation26_spill] sm:$0xff]  ;;  %12139 = vst [vmem:[#allocation27_spill] sm:$0xff] %v10686_v26  ;;  %v5560_v13 = vrot.slane %v10025_v33, 4  ;;  %v10712_v26 = vld [vmem:[%s9001_s9 + $0x1e8] sm:$0xff] }
 0x166   : > { %v1561_v35 = vsel %vm1462_vm3, %v1558_v25, %v1560_v14  ;;  %v12138_v4 = vpack.c.bf16 %v12136_v38, %v12137_v32  ;;  %v12141_v25 = vld [vmem:[#allocation30_spill] sm:$0xff]  ;;  %v12142_v14 = vld [vmem:[#allocation28_spill] sm:$0xff]  ;;  %v8837_v33 = vld [vmem:[%s9001_s9 + $0x1d8] sm:$0xf] }
 0x167   : > { %v1564_v5 = vsel %vm1462_vm3, %v1562_v57, %v1563_v34  ;;  %v12143_v59 = vpack.c.bf16 %v12141_v25, %v12142_v14  ;;  %v12145_v38 = vld [vmem:[#allocation52_spill] sm:$0xff]  ;;  %v1569_v17 = vrot.slane %v8837_v33, 4  ;;  %v5562_v25 = vrot.slane %v12146_v12, 4  ;;  %v10708_v14 = vld [vmem:[%s9001_s9 + $0x1e0] sm:$0xff]  ;;  %12147 = vst [vmem:[#allocation30_spill] sm:$0xff] %v10712_v26  ;;  %v12151_v33 = vld [vmem:[#allocation55_spill] sm:$0xff] }
 0x168   : > { %v5565_v30 = vrot.slane %v12145_v38, 4  ;;  %v1571_v57 = vrot.slane %v10708_v14, 4 }
 0x169   : > { %7792 = vmatmul.mubr.msk.bf16.gmra.mrb[36].mxu1 %vm684_vm2, %v1690_v44  ;;  %v1566_v44 = vsel %vm1462_vm3, %v1563_v34, %v1565_v58  ;;  %v12144_v34 = vld [vmem:[#allocation29_spill] sm:$0xff] }
 0x16a   : > { %7795 = vmatprep.mubr.msk.bf16.mxu1 %vm684_vm2, %v1691_v37  ;;  %v10689_v37 = vsel %vm1462_vm3, %v5556_v62, %v5558_v41  ;;  %v5564_v32 = vrot.slane %v12144_v34, 4  ;;  %v1693_v47 = vpack.c.bf16 %v1566_v44, %v1564_v5  ;;  %v10701_v62 = vld [vmem:[%s9001_s9 + $0x1d0] sm:$0xff]  ;;  %v1572_v34 = vrot.slane %v10712_v26, 4 }
 0x16b   : > { %8090 = vmatmul.mubr.msk.bf16.gmra.mrb[4].mxu0 %vm684_vm2, %v12138_v4  ;;  %12140 = vst [vmem:[#allocation26_spill] sm:$0xff] %v10689_v37  ;;  %v1692_v4 = vpack.c.bf16 %v1561_v35, %v1559_v23  ;;  %v1567_v54 = vrot.slane %v10701_v62, 4  ;;  %v10716_v23 = vld [vmem:[%s9001_s9 + $0x1f0] sm:$0xff]  ;;  %v10720_v5 = vsel %vm1462_vm3, %v5558_v41, %v5560_v13  ;;  %v10723_v44 = vsel %vm1462_vm3, %v5560_v13, %v5562_v25 }
 0x16c   : > { %8093 = vmatprep.mubr.msk.bf16.mxu0 %vm684_vm2, %v12143_v59  ;;  %v5567_v59 = vrot.slane %v10060_v19, 4  ;;  %12148 = vst [vmem:[#allocation28_spill] sm:$0xff] %v10716_v23  ;;  %v1574_v35 = vrot.slane %v10716_v23, 4  ;;  %12149 = vst [vmem:[#allocation29_spill] sm:$0xff] %v10720_v5  ;;  %v12152_v23 = vld [vmem:[#allocation54_spill] sm:$0xff]  ;;  %v1573_v13 = vsel %vm1462_vm3, %v1571_v57, %v1572_v34  ;;  %v10738_v25 = vsel %vm1462_vm3, %v5564_v32, %v5565_v30  ;;  %v12161_v26 = vld [vmem:[#allocation60_spill] sm:$0xff] }
 0x16d   : > { %12150 = vst [vmem:[#allocation52_spill] sm:$0xff] %v10723_v44  ;;  %v1568_v12 = vsel %vm1462_vm3, %v1565_v58, %v1567_v54  ;;  %v1570_v38 = vsel %vm1462_vm3, %v1567_v54, %v1569_v17  ;;  %v12153_v41 = vpack.c.bf16 %v12151_v33, %v12152_v23  ;;  %12154 = vst [vmem:[#allocation53_spill] sm:$0xff] %v10738_v25  ;;  %v5569_v58 = vrot.slane %v10079_v55, 4  ;;  %v12156_v17 = vld [vmem:[#allocation57_spill] sm:$0xff]  ;;  %v12157_v54 = vld [vmem:[#allocation56_spill] sm:$0xff] }
 0x16e   : > { %v12158_v19 = vpack.c.bf16 %v12156_v17, %v12157_v54  ;;  %v12160_v33 = vld [vmem:[#allocation59_spill] sm:$0xff]  ;;  %v8842_v55 = vld [vmem:[%s9001_s9 + $0x200] sm:$0xf]  ;;  %v5571_v17 = vrot.slane %v12161_v26, 4  ;;  %v10764_v25 = vld [vmem:[%s9001_s9 + $0x210] sm:$0xff] }
 0x16f   : > { %v5574_v32 = vrot.slane %v12160_v33, 4  ;;  %v1578_v37 = vrot.slane %v8842_v55, 4  ;;  %v10760_v54 = vld [vmem:[%s9001_s9 + $0x208] sm:$0xff]  ;;  %v12165_v55 = vld [vmem:[#allocation62_spill] sm:$0xff] }
 0x170   : > { %v1580_v57 = vrot.slane %v10760_v54, 4 }
 0x171   : > { %7796 = vmatmul.mubr.msk.bf16.gmra.mrb[40].mxu1 %vm684_vm2, %v1692_v4  ;;  %v1575_v4 = vsel %vm1462_vm3, %v1572_v34, %v1574_v35  ;;  %v12159_v34 = vld [vmem:[#allocation58_spill] sm:$0xff] }
 0x172   : > { %7799 = vmatprep.mubr.msk.bf16.mxu1 %vm684_vm2, %v1693_v47  ;;  %v10741_v47 = vsel %vm1462_vm3, %v5565_v30, %v5567_v59  ;;  %v5573_v23 = vrot.slane %v12159_v34, 4  ;;  %v1695_v5 = vpack.c.bf16 %v1575_v4, %v1573_v13  ;;  %v10753_v30 = vld [vmem:[%s9001_s9 + $0x1f8] sm:$0xff]  ;;  %v1581_v34 = vrot.slane %v10764_v25, 4 }
 0x173   : > { %8094 = vmatmul.mubr.msk.bf16.gmra.mrb[8].mxu0 %vm684_vm2, %v12153_v41  ;;  %12155 = vst [vmem:[#allocation55_spill] sm:$0xff] %v10741_v47  ;;  %v1694_v41 = vpack.c.bf16 %v1570_v38, %v1568_v12  ;;  %v1576_v44 = vrot.slane %v10753_v30, 4  ;;  %v10768_v12 = vld [vmem:[%s9001_s9 + $0x218] sm:$0xff]  ;;  %v10772_v13 = vsel %vm1462_vm3, %v5567_v59, %v5569_v58  ;;  %v10775_v4 = vsel %vm1462_vm3, %v5569_v58, %v5571_v17  ;;  %v12173_v47 = vld [vmem:[#allocation66_spill] sm:$0xff] }
 0x174   : > { %8097 = vmatprep.mubr.msk.bf16.mxu0 %vm684_vm2, %v12158_v19  ;;  %v5576_v19 = vrot.slane %v10114_v51, 4  ;;  %12162 = vst [vmem:[#allocation54_spill] sm:$0xff] %v10768_v12  ;;  %v1583_v38 = vrot.slane %v10768_v12, 4  ;;  %12163 = vst [vmem:[#allocation57_spill] sm:$0xff] %v10772_v13  ;;  %v12166_v12 = vld [vmem:[#allocation61_spill] sm:$0xff]  ;;  %v1582_v58 = vsel %vm1462_vm3, %v1580_v57, %v1581_v34  ;;  %v10790_v17 = vsel %vm1462_vm3, %v5573_v23, %v5574_v32 }
 0x175   : > { %12164 = vst [vmem:[#allocation56_spill] sm:$0xff] %v10775_v4  ;;  %v1577_v26 = vsel %vm1462_vm3, %v1574_v35, %v1576_v44  ;;  %v1579_v33 = vsel %vm1462_vm3, %v1576_v44, %v1578_v37  ;;  %v12167_v59 = vpack.c.bf16 %v12165_v55, %v12166_v12  ;;  %12168 = vst [vmem:[#allocation58_spill] sm:$0xff] %v10790_v17  ;;  %v5578_v35 = vrot.slane %v10133_v8, 4  ;;  %v12169_v37 = vld [vmem:[#allocation63_spill] sm:$0xff]  ;;  %v12172_v55 = vld [vmem:[#allocation65_spill] sm:$0xff] }
 0x176   : > { %v12170_v44 = vpack.c.bf16 %v10141_v22, %v12169_v37  ;;  %v5583_v23 = vrot.slane %v12172_v55, 4  ;;  %v8847_v8 = vld [vmem:[%s9001_s9 + $0x228] sm:$0xf]  ;;  %v5580_v22 = vrot.slane %v12173_v47, 4  ;;  %v5585_v37 = vrot.slane %v10168_v40, 4  ;;  %v10816_v17 = vld [vmem:[%s9001_s9 + $0x238] sm:$0xff] }
 0x177   : > { %v1587_v4 = vrot.slane %v8847_v8, 4  ;;  %v10864_v40 = vld [vmem:[%s9001_s9 + $0x258] sm:$0xff] }
 0x178   : > { %v10827_v47 = vsel %vm1462_vm3, %v5578_v35, %v5580_v22 }
 0x179   : > { %7800 = vmatmul.mubr.msk.bf16.gmra.mrb[44].mxu1 %vm684_vm2, %v1694_v41  ;;  %v1584_v41 = vsel %vm1462_vm3, %v1581_v34, %v1583_v38  ;;  %v12171_v34 = vld [vmem:[#allocation64_spill] sm:$0xff] }
 0x17a   : > { %7803 = vmatprep.mubr.msk.bf16.mxu1 %vm684_vm2, %v1695_v5  ;;  %v10793_v5 = vsel %vm1462_vm3, %v5574_v32, %v5576_v19  ;;  %v5582_v12 = vrot.slane %v12171_v34, 4  ;;  %v1697_v51 = vpack.c.bf16 %v1584_v41, %v1582_v58  ;;  %v10805_v32 = vld [vmem:[%s9001_s9 + $0x220] sm:$0xff]  ;;  %v1590_v34 = vrot.slane %v10816_v17, 4 }
 0x17b   : > { %8098 = vmatmul.mubr.msk.bf16.gmra.mrb[12].mxu0 %vm684_vm2, %v12167_v59  ;;  %v1696_v59 = vpack.c.bf16 %v1579_v33, %v1577_v26  ;;  %v1585_v13 = vrot.slane %v10805_v32, 4  ;;  %v10820_v26 = vld [vmem:[%s9001_s9 + $0x240] sm:$0xff]  ;;  %v10824_v58 = vsel %vm1462_vm3, %v5576_v19, %v5578_v35  ;;  %v12174_v19 = vld [vmem:[#allocation67_spill] sm:$0xff] }
 0x17c   : > { %8101 = vmatprep.mubr.msk.bf16.mxu0 %vm684_vm2, %v12170_v44  ;;  %v10812_v44 = vld [vmem:[%s9001_s9 + $0x230] sm:$0xff]  ;;  %v1592_v33 = vrot.slane %v10820_v26, 4  ;;  %v12175_v8 = vpack.c.bf16 %v10177_v9, %v12174_v19  ;;  %v10842_v22 = vsel %vm1462_vm3, %v5582_v12, %v5583_v23  ;;  %v12176_v9 = vpack.c.bf16 %v10195_v11, %v10190_v49  ;;  %v10858_v12 = vld [vmem:[%s9001_s9 + $0x248] sm:$0xff]  ;;  %v10868_v11 = vld [vmem:[%s9001_s9 + $0x260] sm:$0xff] }
 0x17d   : > { %v1589_v57 = vrot.slane %v10812_v44, 4  ;;  %v1586_v41 = vsel %vm1462_vm3, %v1583_v38, %v1585_v13  ;;  %v1588_v55 = vsel %vm1462_vm3, %v1585_v13, %v1587_v4  ;;  %v5587_v38 = vrot.slane %v10187_v56, 4  ;;  %v8852_v19 = vld [vmem:[%s9001_s9 + $0x250] sm:$0xf] }
 0x17e   : > { %v1698_v4 = vpack.c.bf16 %v1588_v55, %v1586_v41  ;;  %v5589_v56 = vrot.slane %v10204_v3, 4  ;;  %v1598_v49 = vrot.slane %v10864_v40, 4  ;;  %v10872_v41 = vld [vmem:[%s9001_s9 + $0x268] sm:$0xff] }
 0x17f   : > { %v1591_v35 = vsel %vm1462_vm3, %v1589_v57, %v1590_v34  ;;  %v10855_v57 = vld [vmem:[%s9001_s9 + $0x1b0] sm:$0xf]  ;;  %12178 = vst [vmem:[#allocation60_spill] sm:$0xff] %v10872_v41  ;;  %v1601_v55 = vrot.slane %v10872_v41, 4 }
 0x180   : > { %12177 = vst [vmem:[#allocation59_spill] sm:$0xff] %v10855_v57  ;;  %v10880_v3 = vsel %vm1462_vm3, %v5587_v38, %v5589_v56  ;;  %v12181_v56 = vld [vmem:[#allocation31_spill] sm:$0xff] }
 0x181   : > { %7804 = vmatmul.mubr.msk.bf16.gmra.mrb[48].mxu1 %vm684_vm2, %v1696_v59  ;;  %v1593_v59 = vsel %vm1462_vm3, %v1590_v34, %v1592_v33 }
 0x182   : > { %7807 = vmatprep.mubr.msk.bf16.mxu1 %vm684_vm2, %v1697_v51  ;;  %v10845_v51 = vsel %vm1462_vm3, %v5583_v23, %v5585_v37  ;;  %v1699_v34 = vpack.c.bf16 %v1593_v59, %v1591_v35  ;;  %v1594_v23 = vrot.slane %v10858_v12, 4  ;;  %v4904_v35 = vrot.slane %v10855_v57, 2 }
 0x183   : > { %8102 = vmatmul.mubr.msk.bf16.gmra.mrb[16].mxu0 %vm684_vm2, %v12175_v8  ;;  %v1596_v8 = vrot.slane %v8852_v19, 4  ;;  %v10877_v59 = vsel %vm1462_vm3, %v5585_v37, %v5587_v38  ;;  %v12180_v57 = vpack.c.bf16 %v10217_v43, %v10214_v29  ;;  %v8857_v43 = vld [vmem:[%s9001_s9 + $0x278] sm:$0xf] }
 0x184   : > { %8105 = vmatprep.mubr.msk.bf16.mxu0 %vm684_vm2, %v12176_v9  ;;  %v1599_v9 = vrot.slane %v10868_v11, 4  ;;  %12179 = vst [vmem:[#allocation62_spill] sm:$0xff] %v10877_v59  ;;  %v1595_v13 = vsel %vm1462_vm3, %v1592_v33, %v1594_v23  ;;  %v10899_v59 = vld [vmem:[%s9001_s9 + $0x1d8] sm:$0xf] }
 0x185   : > { %v1597_v41 = vsel %vm1462_vm3, %v1594_v23, %v1596_v8  ;;  %v10902_v23 = vld [vmem:[%s9001_s9 + $0x270] sm:$0xff]  ;;  %v12183_v8 = vld [vmem:[#allocation33_spill] sm:$0xff] }
 0x186   : > { %v1600_v37 = vsel %vm1462_vm3, %v1598_v49, %v1599_v9  ;;  %v1602_v38 = vsel %vm1462_vm3, %v1599_v9, %v1601_v55  ;;  %v1603_v29 = vrot.slane %v10902_v23, 4  ;;  %v4913_v9 = vrot.slane %v10899_v59, 2 }
 0x187   : > { %v1701_v33 = vpack.c.bf16 %v1602_v38, %v1600_v37  ;;  %v12185_v37 = vld [vmem:[#allocation35_spill] sm:$0xff] }
 0x188   : > { %v4914_v38 = vsel %vm441_vm1, %v12185_v37, %v4913_v9  ;;  %v12189_v9 = vld [vmem:[#allocation39_spill] sm:$0xff]  ;;  %v12191_v37 = vld [vmem:[#allocation40_spill] sm:$0xff] }
 0x189   : > { %7808 = vmatmul.mubr.msk.bf16.gmra.mrb[52].mxu1 %vm684_vm2, %v1698_v4  ;;  %v12182_v4 = vld [vmem:[#allocation32_spill] sm:$0xff] }
 0x18a   : > { %7811 = vmatprep.mubr.msk.bf16.mxu1 %vm684_vm2, %v1699_v34  ;;  %v4905_v19 = vsel %vm441_vm1, %v12182_v4, %v4904_v35  ;;  %v1700_v34 = vpack.c.bf16 %v1597_v41, %v1595_v13  ;;  %v1604_v13 = vsel %vm1462_vm3, %v1601_v55, %v1603_v29  ;;  %v12184_v35 = vld [vmem:[#allocation34_spill] sm:$0xff] }
 0x18b   : > { %8106 = vmatmul.mubr.msk.bf16.gmra.mrb[20].mxu0 %vm684_vm2, %v12180_v57  ;;  %v1605_v57 = vrot.slane %v8857_v43, 4  ;;  %v5064_v49 = vpack.c.bf16 %v4905_v19, %v12183_v8 }
 0x18c   : > { %8109 = vmatprep.mubr.msk.bf16.mxu0 %vm684_vm2, %v12181_v56  ;;  %v10918_v56 = vld [vmem:[%s9001_s9 + $0x200] sm:$0xf] }
 0x18d   : > { %v1606_v41 = vsel %vm1462_vm3, %v1603_v29, %v1605_v57  ;;  %v4922_v55 = vrot.slane %v10918_v56, 2  ;;  %v12187_v29 = vld [vmem:[#allocation37_spill] sm:$0xff]  ;;  %v12188_v57 = vld [vmem:[#allocation38_spill] sm:$0xff] }
 0x18e   : > { %v1702_v19 = vpack.c.bf16 %v1606_v41, %v1604_v13 }
 0x18f   : > { %v4923_v8 = vsel %vm441_vm1, %v12188_v57, %v4922_v55 }
 0x190   : > { %v5068_v13 = vpack.c.bf16 %v4923_v8, %v12189_v9  ;;  %v12198_v8 = vld [vmem:[#allocation70_spill] sm:$0xff]  ;;  %v12199_v9 = vld [vmem:[#allocation45_spill] sm:$0xff] }
 0x191   : > { %7812 = vmatmul.mubr.msk.bf16.gmra.mrb[56].mxu1 %vm684_vm2, %v1700_v34  ;;  %v2240_v34 = vpack.c.bf16 %v10275_v20, %v10271_v0  ;;  %v2241_v0 = vpack.c.bf16 %v10300_v61, %v10279_v53  ;;  %v10934_v20 = vld [vmem:[%s9001_s9 + $0x228] sm:$0xf]  ;;  %v12192_v53 = vld [vmem:[#allocation41_spill] sm:$0xff] }
 0x192   : > { %7815 = vmatprep.mubr.msk.bf16.mxu1 %vm684_vm2, %v1701_v33  ;;  %v12186_v33 = vld [vmem:[#allocation36_spill] sm:$0xff]  ;;  %v4931_v41 = vrot.slane %v10934_v20, 2 }
 0x193   : > { %8110 = vmatmul.mubr.msk.bf16.gmra.mrb[24].mxu0 %vm684_vm2, %v5064_v49  ;;  %v5066_v43 = vpack.c.bf16 %v4914_v38, %v12186_v33  ;;  %v2242_v49 = vpack.c.bf16 %v10309_v27, %v10305_v50  ;;  %v12193_v50 = vld [vmem:[#allocation68_spill] sm:$0xff]  ;;  %v12195_v33 = vld [vmem:[#allocation42_spill] sm:$0xff] }
 0x194   : > { %8113 = vmatprep.mubr.msk.bf16.mxu0 %vm684_vm2, %v12184_v35  ;;  %v12190_v35 = vld [vmem:[#allocation2_spill] sm:$0xff]  ;;  %v4932_v61 = vsel %vm441_vm1, %v12192_v53, %v4931_v41  ;;  %v2243_v27 = vpack.c.bf16 %v10327_v63, %v12193_v50  ;;  %v10951_v38 = vld [vmem:[%s9001_s9 + $0x250] sm:$0xf]  ;;  %v8859_v53 = vld [vmem:[%s9001_s9 + $0x288] sm:$0xff] }
 0x195   : > { %v4940_v55 = vrot.slane %v10951_v38, 2  ;;  %v12197_v63 = vld [vmem:[#allocation44_spill] sm:$0xff] }
 0x196   : > { %v8860_v50 = vld [vmem:[%s9001_s9 + $0x290] sm:$0xff] }
 0x197   : > { %v4941_v57 = vsel %vm441_vm1, %v12197_v63, %v4940_v55  ;;  %v12204_v63 = vld [vmem:[#allocation75_spill] sm:$0xff] }
 0x199   : > { %7816 = vmatmul.mubr.msk.bf16.gmra.mrb[60].mxu1 %vm684_vm2, %v1702_v19  ;;  %v12194_v19 = vld [vmem:[#allocation69_spill] sm:$0xff] }
 0x19a   : > { %7821 = vmatprep.mubr.msk.bf16.mxu1 %vm684_vm2, %v2240_v34  ;;  %v2244_v34 = vpack.c.bf16 %v12194_v19, %v10332_v24  ;;  %v2245_v24 = vpack.c.bf16 %v10354_v15, %v12198_v8  ;;  %v12201_v15 = vld [vmem:[#allocation47_spill] sm:$0xff] }
 0x19b   : > { %8114 = vmatmul.mubr.msk.bf16.gmra.mrb[28].mxu0 %vm684_vm2, %v5066_v43  ;;  %v5070_v43 = vpack.c.bf16 %v4932_v61, %v12195_v33  ;;  %v4952_v61 = vrot.slane %v8859_v53, 2  ;;  %v12202_v19 = vld [vmem:[#allocation71_spill] sm:$0xff] }
 0x19c   : > { %8117 = vmatprep.mubr.msk.bf16.mxu0 %vm684_vm2, %v12187_v29  ;;  %v12196_v29 = vld [vmem:[#allocation43_spill] sm:$0xff] }
 0x19d   : > { %v8862_v53 = vld [vmem:[%s9001_s9 + $0x2a8] sm:$0xff] }
 0x1a1   : > { %7822 = vmatmul.mubr.msk.bf16.vlgmr.msra.gmra.mrb[0].mxu1 %vm684_vm2, %v2241_v0  ;;  %v10967_v0 = vld [vmem:[%s9001_s9 + $0x278] sm:$0xf] }
 0x1a2   : > { %8216 = vmatpush3.bf16.msra.mxu1 %v12190_v35  ;;  %7825 = vmatprep.mubr.msk.bf16.mxu1 %vm684_vm2, %v2242_v49  ;;  %v2246_v49 = vpack.c.bf16 %v10363_v60, %v10359_v28  ;;  %v4949_v41 = vrot.slane %v10967_v0, 2  ;;  %v8858_v35 = vld [vmem:[%s9001_s9 + $0x280] sm:$0xff] }
 0x1a3   : > { %8118 = vmatmul.mubr.msk.bf16.gmra.mrb[32].mxu0 %vm684_vm2, %v5068_v13  ;;  %v5072_v13 = vpack.c.bf16 %v4941_v57, %v12199_v9  ;;  %v12200_v28 = vld [vmem:[#allocation46_spill] sm:$0xff]  ;;  %v12205_v57 = vld [vmem:[#allocation76_spill] sm:$0xff]  ;;  %v8861_v9 = vld [vmem:[%s9001_s9 + $0x298] sm:$0xff] }
 0x1a4   : > { %8121 = vmatprep.mubr.msk.bf16.mxu0 %vm684_vm2, %v12191_v37  ;;  %v4951_v37 = vrot.slane %v8858_v35, 2  ;;  %v4950_v60 = vsel %vm441_vm1, %v12201_v15, %v4949_v41  ;;  %v2248_v8 = vpack.c.bf16 %v12205_v57, %v12204_v63  ;;  %v11018_v57 = vld [vmem:[%s9001_s9 + $0x2c8] sm:$0xf] }
 0x1a9   : > { %7826 = vmatmul.mubr.msk.bf16.gmra.mrb[4].mxu1 %vm684_vm2, %v2243_v27  ;;  %v4954_v27 = vrot.slane %v8860_v50, 2  ;;  %v4960_v50 = vrot.slane %v8862_v53, 2  ;;  %v8865_v53 = vld [vmem:[%s9001_s9 + $0x2c0] sm:$0xff] }
 0x1aa   : > { %7829 = vmatprep.mubr.msk.bf16.mxu1 %vm684_vm2, %v2244_v34  ;;  %v12203_v34 = vld [vmem:[#allocation73_spill] sm:$0xff] }
 0x1ab   : > { %8122 = vmatmul.mubr.msk.bf16.gmra.mrb[36].mxu0 %vm684_vm2, %v5070_v43  ;;  %v2247_v33 = vpack.c.bf16 %v12203_v34, %v12202_v19  ;;  %v4953_v43 = vsel %vm441_vm1, %v4951_v37, %v4952_v61  ;;  %v4955_v55 = vsel %vm441_vm1, %v4952_v61, %v4954_v27  ;;  %v8863_v37 = vld [vmem:[%s9001_s9 + $0x2b0] sm:$0xff]  ;;  %v12207_v34 = vld [vmem:[#allocation77_spill] sm:$0xff] }
 0x1ac   : > { %8125 = vmatprep.mubr.msk.bf16.mxu0 %vm684_vm2, %v12196_v29  ;;  %v10988_v29 = vld [vmem:[%s9001_s9 + $0x2a0] sm:$0xf]  ;;  %v10996_v35 = vpack.c.bf16 %v4955_v55, %v4953_v43  ;;  %v4961_v61 = vrot.slane %v8863_v37, 2 }
 0x1ad   : > { %v4958_v41 = vrot.slane %v10988_v29, 2  ;;  %v12208_v43 = vld [vmem:[#allocation82_spill] sm:$0xff] }
 0x1ae   : > { %v2249_v55 = vpack.c.bf16 %v12208_v43, %v12207_v34  ;;  %v4962_v63 = vsel %vm441_vm1, %v4960_v50, %v4961_v61  ;;  %v12214_v43 = vld [vmem:[#allocation94_spill] sm:$0xff] }
 0x1b1   : > { %7830 = vmatmul.mubr.msk.bf16.gmra.mrb[8].mxu1 %vm684_vm2, %v2245_v24  ;;  %v12206_v24 = vld [vmem:[#allocation48_spill] sm:$0xff] }
 0x1b2   : > { %7833 = vmatprep.mubr.msk.bf16.mxu1 %vm684_vm2, %v2246_v49  ;;  %v5074_v49 = vpack.c.bf16 %v4950_v60, %v12206_v24  ;;  %v12210_v24 = vld [vmem:[#allocation85_spill] sm:$0xff] }
 0x1b3   : > { %8126 = vmatmul.mubr.msk.bf16.gmra.mrb[40].mxu0 %vm684_vm2, %v5072_v13  ;;  %v10994_v13 = vrot.slane %v8861_v9, 2 }
 0x1b4   : > { %8129 = vmatprep.mubr.msk.bf16.mxu0 %vm684_vm2, %v12200_v28  ;;  %v8864_v28 = vld [vmem:[%s9001_s9 + $0x2b8] sm:$0xff] }
 0x1b5   : > { %v4963_v15 = vrot.slane %v8864_v28, 2  ;;  %v11009_v60 = vsel %vm441_vm1, %v4954_v27, %v10994_v13  ;;  %v4959_v19 = vsel %vm441_vm1, %v10994_v13, %v4958_v41  ;;  %v11024_v27 = vrot.slane %v8865_v53, 2  ;;  %v12212_v28 = vld [vmem:[#allocation86_spill] sm:$0xff]  ;;  %v12218_v53 = vld [vmem:[#allocation83_spill] sm:$0xff] }
 0x1b6   : > { %v5076_v9 = vpack.c.bf16 %v4959_v19, %v11009_v60  ;;  %v4967_v41 = vrot.slane %v11018_v57, 2  ;;  %v12213_v19 = vld [vmem:[#allocation92_spill] sm:$0xff] }
 0x1b7   : > { %v11036_v50 = vsel %vm441_vm1, %v4963_v15, %v11024_v27  ;;  %v2251_v34 = vpack.c.bf16 %v12213_v19, %v12212_v28  ;;  %v12220_v19 = vld [vmem:[#allocation89_spill] sm:$0xff] }
 0x1b9   : > { %7834 = vmatmul.mubr.msk.bf16.gmra.mrb[12].mxu1 %vm684_vm2, %v2247_v33  ;;  %v4964_v33 = vsel %vm441_vm1, %v4961_v61, %v4963_v15  ;;  %v4968_v61 = vsel %vm441_vm1, %v11024_v27, %v4967_v41  ;;  %v12219_v41 = vld [vmem:[#allocation87_spill] sm:$0xff] }
 0x1ba   : > { %7837 = vmatprep.mubr.msk.bf16.mxu1 %vm684_vm2, %v2248_v8  ;;  %v12209_v8 = vld [vmem:[#allocation84_spill] sm:$0xff]  ;;  %v11026_v37 = vpack.c.bf16 %v4964_v33, %v4962_v63  ;;  %v12215_v63 = vld [vmem:[#allocation95_spill] sm:$0xff]  ;;  %v5668_v28 = vrot.slane %v12219_v41, 4  ;;  %v12225_v41 = vld [vmem:[#allocation90_spill] sm:$0xff] }
 0x1bb   : > { %8130 = vmatmul.mubr.msk.bf16.gmra.mrb[44].mxu0 %vm684_vm2, %v5074_v49  ;;  %v2250_v49 = vpack.c.bf16 %v12210_v24, %v12209_v8  ;;  %v12216_v33 = vld [vmem:[#allocation79_spill] sm:$0xff]  ;;  %v12217_v24 = vld [vmem:[#allocation81_spill] sm:$0xff] }
 0x1bc   : > { %8133 = vmatprep.mubr.msk.bf16.mxu0 %vm684_vm2, %v10996_v35  ;;  %12211 = vst [vmem:[#allocation61_spill] sm:$0xff] %v11026_v37  ;;  %v5663_v8 = vrot.slane %v12216_v33, 4  ;;  %v12223_v33 = vld [vmem:[#allocation96_spill] sm:$0xff] }
 0x1c1   : > { %7838 = vmatmul.mubr.msk.bf16.gmra.mrb[16].mxu1 %vm684_vm2, %v2249_v55  ;;  %v2252_v55 = vpack.c.bf16 %v12215_v63, %v12214_v43  ;;  %v12221_v43 = vld [vmem:[#allocation88_spill] sm:$0xff] }
 0x1c2   : > { %7841 = vmatprep.mubr.msk.bf16.mxu1 %vm684_vm2, %v2250_v49  ;;  %v5664_v49 = vrot.slane %v12217_v24, 4  ;;  %v12222_v63 = vpack.c.bf16 %v12220_v19, %v12221_v43  ;;  %v12224_v24 = vld [vmem:[#allocation91_spill] sm:$0xff]  ;;  %v5673_v19 = vrot.slane %v12225_v41, 4  ;;  %v12226_v43 = vld [vmem:[#allocation93_spill] sm:$0xff] }
 0x1c3   : > { %8134 = vmatmul.mubr.msk.bf16.gmra.mrb[48].mxu0 %vm684_vm2, %v5076_v9  ;;  %v5078_v9 = vpack.c.bf16 %v4968_v61, %v11036_v50 }
 0x1c4   : > { %8137 = vmatprep.mubr.msk.bf16.mxu0 %vm684_vm2, %v11026_v37  ;;  %v5666_v37 = vrot.slane %v12218_v53, 4  ;;  %v11052_v15 = vsel %vm1462_vm3, %v5663_v8, %v5664_v49  ;;  %v2254_v8 = vpack.c.bf16 %v10561_v45, %v10557_v21  ;;  %v5672_v53 = vrot.slane %v10474_v46, 4  ;;  %v12227_v45 = vld [vmem:[#allocation98_spill] sm:$0xff]  ;;  %v12228_v46 = vld [vmem:[#allocation97_spill] sm:$0xff] }
 0x1c6   : > { %v11060_v61 = vsel %vm1462_vm3, %v5664_v49, %v5666_v37  ;;  %v11073_v49 = vsel %vm1462_vm3, %v5666_v37, %v5668_v28  ;;  %v12230_v37 = vld [vmem:[#allocation99_spill] sm:$0xff] }
 0x1c7   : > { %v5677_v41 = vrot.slane %v12230_v37, 4  ;;  %v8866_v37 = vld [vmem:[%s9001_s9 + $0xb8] sm:$0xff] }
 0x1c8   : > { %v5542_v21 = vrot.slane %v8866_v37, 4 }
 0x1c9   : > { %7842 = vmatmul.mubr.msk.bf16.gmra.mrb[20].mxu1 %vm684_vm2, %v2251_v34  ;;  %v2253_v34 = vpack.c.bf16 %v10549_v39, %v12223_v33  ;;  %v12229_v33 = vpack.c.bf16 %v12227_v45, %v12228_v46  ;;  %v12234_v46 = vld [vmem:[#allocation102_spill] sm:$0xff] }
 0x1ca   : > { %7845 = vmatprep.mubr.msk.bf16.mxu1 %vm684_vm2, %v2252_v55  ;;  %v5773_v55 = vpack.c.bf16 %v11060_v61, %v11052_v15 }
 0x1cb   : > { %8138 = vmatmul.mubr.msk.bf16.gmra.mrb[52].mxu0 %vm684_vm2, %v5078_v9  ;;  %v5670_v9 = vrot.slane %v12224_v24, 4  ;;  %v11087_v24 = vsel %vm1462_vm3, %v5672_v53, %v5673_v19  ;;  %v2256_v53 = vpack.c.bf16 %v10617_v52, %v10613_v31 }
 0x1cc   : > { %8141 = vmatprep.mubr.msk.bf16.mxu0 %vm684_vm2, %v12222_v63  ;;  %v5675_v63 = vrot.slane %v12226_v43, 4  ;;  %v12231_v43 = vld [vmem:[#allocation101_spill] sm:$0xff] }
 0x1cd   : > { %v11076_v39 = vsel %vm1462_vm3, %v5668_v28, %v5670_v9  ;;  %v12232_v28 = vld [vmem:[#allocation100_spill] sm:$0xff] }
 0x1ce   : > { %v12233_v9 = vpack.c.bf16 %v12231_v43, %v12232_v28  ;;  %v5544_v43 = vrot.slane %v10543_v18, 4  ;;  %v11107_v28 = vsel %vm1462_vm3, %v5675_v63, %v5677_v41  ;;  %v12236_v18 = vrot.slane %v9925_v16, 4  ;;  %v12240_v16 = vld [vmem:[#allocation105_spill] sm:$0xff] }
 0x1d1   : > { %7846 = vmatmul.mubr.msk.bf16.gmra.mrb[24].mxu1 %vm684_vm2, %v2253_v34  ;;  %v11095_v34 = vsel %vm1462_vm3, %v5673_v19, %v5675_v63  ;;  %v5543_v63 = vsel %vm1462_vm3, %v12236_v18, %v5542_v21 }
 0x1d2   : > { %7849 = vmatprep.mubr.msk.bf16.mxu1 %vm684_vm2, %v2254_v8  ;;  %v2255_v8 = vpack.c.bf16 %v10606_v2, %v10565_v36  ;;  %v5775_v45 = vpack.c.bf16 %v11095_v34, %v11087_v24  ;;  %v12235_v2 = vpack.c.bf16 %v10574_v42, %v10571_v10  ;;  %v12241_v10 = vld [vmem:[#allocation104_spill] sm:$0xff] }
 0x1d3   : > { %8142 = vmatmul.mubr.msk.bf16.gmra.mrb[56].mxu0 %vm684_vm2, %v12229_v33  ;;  %v5679_v33 = vrot.slane %v12234_v46, 4 }
 0x1d4   : > { %8145 = vmatprep.mubr.msk.bf16.mxu0 %vm684_vm2, %v12233_v9  ;;  %v5545_v9 = vsel %vm1462_vm3, %v5542_v21, %v5544_v43  ;;  %v12245_v43 = vld [vmem:[#allocation107_spill] sm:$0xff] }
 0x1d5   : > { %v11110_v19 = vsel %vm1462_vm3, %v5677_v41, %v5679_v33  ;;  %v12237_v41 = vpack.c.bf16 %v10603_v1, %v10586_v48  ;;  %v5746_v42 = vpack.c.bf16 %v5545_v9, %v5543_v63  ;;  %v12242_v48 = vpack.c.bf16 %v12240_v16, %v12241_v10  ;;  %v12243_v1 = vld [vmem:[#allocation25_spill] sm:$0xff]  ;;  %v12248_v63 = vld [vmem:[#allocation26_spill] sm:$0xff]  ;;  %v12252_v16 = vld [vmem:[#allocation52_spill] sm:$0xff] }
 0x1d6   : > { %v5776_v36 = vpack.c.bf16 %v11110_v19, %v11107_v28  ;;  %v2259_v21 = vpack.c.bf16 %v10701_v62, %v12243_v1  ;;  %v12253_v10 = vld [vmem:[#allocation29_spill] sm:$0xff] }
 0x1d9   : > { %7850 = vmatmul.mubr.msk.bf16.gmra.mrb[28].mxu1 %vm684_vm2, %v2255_v8  ;;  %v12238_v8 = vld [vmem:[#allocation103_spill] sm:$0xff] }
 0x1da   : > { %7853 = vmatprep.mubr.msk.bf16.mxu1 %vm684_vm2, %v2256_v53  ;;  %v2257_v46 = vpack.c.bf16 %v10649_v6, %v12238_v8  ;;  %v12239_v53 = vld [vmem:[#allocation23_spill] sm:$0xff]  ;;  %v12244_v6 = vld [vmem:[#allocation30_spill] sm:$0xff] }
 0x1db   : > { %8146 = vmatmul.mubr.msk.bf16.gmra.mrb[60].mxu0 %vm684_vm2, %v12235_v2  ;;  %v2258_v33 = vpack.c.bf16 %v12239_v53, %v10656_v7  ;;  %v2260_v37 = vpack.c.bf16 %v12244_v6, %v10708_v14  ;;  %v12246_v2 = vld [vmem:[#allocation106_spill] sm:$0xff] }
 0x1dc   : > { %8151 = vmatprep.mubr.msk.bf16.mxu0 %vm684_vm2, %v12237_v41  ;;  %v12247_v18 = vpack.c.bf16 %v12245_v43, %v12246_v2  ;;  %v12249_v41 = vld [vmem:[#allocation27_spill] sm:$0xff]  ;;  %v12258_v2 = vld [vmem:[#allocation54_spill] sm:$0xff] }
 0x1dd   : > { %v12250_v9 = vpack.c.bf16 %v12248_v63, %v12249_v41  ;;  %v2264_v63 = vpack.c.bf16 %v10816_v17, %v10812_v44  ;;  %v12259_v41 = vld [vmem:[#allocation56_spill] sm:$0xff] }
 0x1e1   : > { %7854 = vmatmul.mubr.msk.bf16.gmra.mrb[32].mxu1 %vm684_vm2, %v2257_v46  ;;  %v12251_v46 = vld [vmem:[#allocation28_spill] sm:$0xff] }
 0x1e2   : > { %7857 = vmatprep.mubr.msk.bf16.mxu1 %vm684_vm2, %v2258_v33  ;;  %v2261_v33 = vpack.c.bf16 %v10753_v30, %v12251_v46 }
 0x1e3   : > { %8152 = vmatmul.mubr.msk.bf16.vlgmr.msra.gmra.mrb[0].mxu0 %vm684_vm2, %v5746_v42  ;;  %v2262_v42 = vpack.c.bf16 %v10764_v25, %v10760_v54 }
 0x1e4   : > { %8155 = vmatprep.mubr.msk.bf16.mxu0 %vm684_vm2, %v12242_v48  ;;  %v12254_v48 = vpack.c.bf16 %v12252_v16, %v12253_v10  ;;  %v2265_v10 = vpack.c.bf16 %v10858_v12, %v10820_v26 }
 0x1e9   : > { %7858 = vmatmul.mubr.msk.bf16.gmra.mrb[36].mxu1 %vm684_vm2, %v2259_v21  ;;  %v12255_v21 = vld [vmem:[#allocation55_spill] sm:$0xff] }
 0x1ea   : > { %7861 = vmatprep.mubr.msk.bf16.mxu1 %vm684_vm2, %v2260_v37  ;;  %v12256_v37 = vld [vmem:[#allocation53_spill] sm:$0xff] }
 0x1eb   : > { %8156 = vmatmul.mubr.msk.bf16.gmra.mrb[4].mxu0 %vm684_vm2, %v12247_v18  ;;  %v12257_v43 = vpack.c.bf16 %v12255_v21, %v12256_v37  ;;  %v2263_v18 = vpack.c.bf16 %v10805_v32, %v12258_v2  ;;  %v12264_v21 = vpack.c.bf16 %v10827_v47, %v10824_v58  ;;  %v12266_v37 = vld [vmem:[#allocation60_spill] sm:$0xff]  ;;  %v12271_v47 = vld [vmem:[#allocation3_spill] sm:$0xff] }
 0x1ec   : > { %8159 = vmatprep.mubr.msk.bf16.mxu0 %vm684_vm2, %v12250_v9  ;;  %v12260_v9 = vld [vmem:[#allocation57_spill] sm:$0xff] }
 0x1f1   : > { %7862 = vmatmul.mubr.msk.bf16.gmra.mrb[40].mxu1 %vm684_vm2, %v2261_v33  ;;  %v12261_v33 = vpack.c.bf16 %v12259_v41, %v12260_v9  ;;  %v12268_v41 = vld [vmem:[#allocation72_spill] sm:$0xff]  ;;  %v12269_v9 = vld [vmem:[#allocation62_spill] sm:$0xff] }
 0x1f2   : > { %7865 = vmatprep.mubr.msk.bf16.mxu1 %vm684_vm2, %v2262_v42  ;;  %v12262_v42 = vld [vmem:[#allocation58_spill] sm:$0xff]  ;;  %v12270_v58 = vpack.c.bf16 %v10880_v3, %v12269_v9  ;;  %v12278_v9 = vld [vmem:[#allocation9_spill] sm:$0xff] }
 0x1f3   : > { %8160 = vmatmul.mubr.msk.bf16.gmra.mrb[8].mxu0 %vm684_vm2, %v12254_v48  ;;  %v12263_v16 = vpack.c.bf16 %v10793_v5, %v12262_v42  ;;  %v2266_v48 = vpack.c.bf16 %v10868_v11, %v10864_v40  ;;  %v12265_v5 = vpack.c.bf16 %v10845_v51, %v10842_v22  ;;  %v12272_v22 = vld [vmem:[#allocation7_spill] sm:$0xff]  ;;  %v12274_v3 = vld [vmem:[#allocation74_spill] sm:$0xff] }
 0x1f4   : > { %8163 = vmatprep.mubr.msk.bf16.mxu0 %vm684_vm2, %v12257_v43  ;;  %v2267_v43 = vpack.c.bf16 %v10902_v23, %v12266_v37 }
 0x1f9   : > { %7866 = vmatmul.mubr.msk.bf16.gmra.mrb[44].mxu1 %vm684_vm2, %v2263_v18  ;;  %v12267_v18 = vld [vmem:[#allocation59_spill] sm:$0xff] }
 0x1fa   : > { %7869 = vmatprep.mubr.msk.bf16.mxu1 %vm684_vm2, %v2264_v63  ;;  %v5598_v63 = vrot.slane %v12267_v18, 4 }
 0x1fb   : > { %8164 = vmatmul.mubr.msk.bf16.gmra.mrb[12].mxu0 %vm684_vm2, %v12261_v33  ;;  %v12273_v33 = vld [vmem:[#allocation49_spill] sm:$0xff] }
 0x1fc   : > { %8167 = vmatprep.mubr.msk.bf16.mxu0 %vm684_vm2, %v12263_v16  ;;  %v5599_v51 = vsel %vm1462_vm3, %v12272_v22, %v5598_v63  ;;  %v2878_v16 = vrot.slane %v10613_v31, 2  ;;  %v12276_v63 = vld [vmem:[#allocation5_spill] sm:$0xff]  ;;  %v12277_v31 = vld [vmem:[#allocation8_spill] sm:$0xff]  ;;  %v2888_v22 = vrot.slane %v12239_v53, 2 }
 0x1fd   : > { %v5758_v42 = vpack.c.bf16 %v5599_v51, %v12273_v33  ;;  %v2890_v51 = vrot.slane %v12243_v1, 2  ;;  %v5616_v33 = vrot.slane %v10918_v56, 4  ;;  %v12280_v1 = vld [vmem:[#allocation10_spill] sm:$0xff]  ;;  %v12281_v56 = vld [vmem:[#allocation24_spill] sm:$0xff] }
 0x1ff   : > { %v2891_v53 = vsel %vm441_vm1, %v2888_v22, %v2890_v51 }
 0x201   : > { %7870 = vmatmul.mubr.msk.bf16.gmra.mrb[48].mxu1 %vm684_vm2, %v2265_v10  ;;  %v2879_v10 = vrot.slane %v10617_v52, 2 }
 0x202   : > { %7873 = vmatprep.mubr.msk.bf16.mxu1 %vm684_vm2, %v2266_v48  ;;  %v2881_v48 = vrot.slane %v12238_v8, 2  ;;  %v8867_v8 = vld [vmem:[%s9001_s9 + $0x1b0] sm:$0xf] }
 0x203   : > { %8168 = vmatmul.mubr.msk.bf16.gmra.mrb[16].mxu0 %vm684_vm2, %v12264_v21  ;;  %v5607_v21 = vrot.slane %v10899_v59, 4  ;;  %v2885_v59 = vrot.slane %v8867_v8, 2  ;;  %v2899_v8 = vrot.slane %v12251_v46, 2 }
 0x204   : > { %8171 = vmatprep.mubr.msk.bf16.mxu0 %vm684_vm2, %v12265_v5  ;;  %v12275_v5 = vld [vmem:[#allocation78_spill] sm:$0xff]  ;;  %v2882_v18 = vsel %vm441_vm1, %v2879_v10, %v2881_v48 }
 0x205   : > { %v5608_v52 = vsel %vm1462_vm3, %v12277_v31, %v5607_v21  ;;  %v5617_v21 = vsel %vm1462_vm3, %v12281_v56, %v5616_v33  ;;  %v2896_v31 = vrot.slane %v10708_v14, 2  ;;  %v8869_v33 = vld [vmem:[%s9001_s9 + $0x200] sm:$0xf] }
 0x209   : > { %7874 = vmatmul.mubr.msk.bf16.gmra.mrb[52].mxu1 %vm684_vm2, %v2267_v43  ;;  %v2880_v43 = vsel %vm441_vm1, %v2878_v16, %v2879_v10  ;;  %v2884_v16 = vsel %vm441_vm1, %v2881_v48, %v12182_v4  ;;  %v2886_v10 = vsel %vm441_vm1, %v12182_v4, %v2885_v59  ;;  %v2892_v48 = vrot.slane %v10701_v62, 2 }
 0x20a   : > { %7877 = vmatprep.mubr.msk.bf16.mxu1 %vm684_vm2, %v12268_v41  ;;  %v3030_v41 = vpack.c.bf16 %v2882_v18, %v2880_v43  ;;  %v8868_v43 = vld [vmem:[%s9001_s9 + $0x1d8] sm:$0xf]  ;;  %v5625_v59 = vrot.slane %v10934_v20, 4 }
 0x20b   : > { %8172 = vmatmul.mubr.msk.bf16.gmra.mrb[20].mxu0 %vm684_vm2, %v12270_v58  ;;  %v5760_v58 = vpack.c.bf16 %v5608_v52, %v12278_v9  ;;  %v2894_v18 = vrot.slane %v8868_v43, 2  ;;  %v2897_v52 = vrot.slane %v12244_v6, 2  ;;  %v12284_v6 = vld [vmem:[#allocation13_spill] sm:$0xff]  ;;  %v8870_v43 = vld [vmem:[%s9001_s9 + $0x228] sm:$0xf] }
 0x20c   : > { %8175 = vmatprep.mubr.msk.bf16.mxu0 %vm684_vm2, %v12271_v47  ;;  %v2887_v47 = vrot.slane %v10656_v7, 2  ;;  %v5626_v20 = vsel %vm1462_vm3, %v12284_v6, %v5625_v59  ;;  %v5643_v59 = vrot.slane %v10967_v0, 4  ;;  %v8871_v6 = vld [vmem:[%s9001_s9 + $0x250] sm:$0xf] }
 0x20d   : > { %v2895_v62 = vsel %vm441_vm1, %v2892_v48, %v2894_v18  ;;  %v2898_v9 = vsel %vm441_vm1, %v2896_v31, %v2897_v52  ;;  %v2900_v14 = vsel %vm441_vm1, %v2897_v52, %v2899_v8  ;;  %v2912_v18 = vrot.slane %v8870_v43, 2  ;;  %v8873_v43 = vld [vmem:[%s9001_s9 + $0x2a0] sm:$0xf] }
 0x20e   : > { %v2889_v7 = vsel %vm441_vm1, %v2887_v47, %v2888_v22  ;;  %v3034_v47 = vpack.c.bf16 %v2900_v14, %v2898_v9  ;;  %v2901_v22 = vrot.slane %v10753_v30, 2  ;;  %v2914_v31 = vrot.slane %v10812_v44, 2  ;;  %v12289_v9 = vld [vmem:[#allocation14_spill] sm:$0xff] }
 0x20f   : > { %v2915_v52 = vrot.slane %v10816_v17, 2  ;;  %v12290_v17 = vld [vmem:[#allocation15_spill] sm:$0xff] }
 0x210   : > { %v2902_v56 = vsel %vm441_vm1, %v2899_v8, %v2901_v22  ;;  %v2917_v8 = vrot.slane %v10820_v26, 2  ;;  %v5644_v26 = vsel %vm1462_vm3, %v12290_v17, %v5643_v59  ;;  %v12298_v59 = vld [vmem:[#allocation61_spill] sm:$0xff] }
 0x211   : > { %7878 = vmatmul.mubr.msk.bf16.gmra.mrb[56].mxu1 %vm684_vm2, %v12274_v3  ;;  %v3031_v3 = vpack.c.bf16 %v2886_v10, %v2884_v16  ;;  %v2905_v10 = vrot.slane %v10760_v54, 2 }
 0x212   : > { %7881 = vmatprep.mubr.msk.bf16.mxu1 %vm684_vm2, %v12275_v5  ;;  %v3032_v5 = vpack.c.bf16 %v2891_v53, %v2889_v7  ;;  %v2906_v7 = vrot.slane %v10764_v25, 2  ;;  %v2908_v53 = vrot.slane %v12258_v2, 2  ;;  %v12287_v25 = vld [vmem:[#allocation50_spill] sm:$0xff]  ;;  %v2918_v44 = vsel %vm441_vm1, %v2915_v52, %v2917_v8 }
 0x213   : > { %8176 = vmatmul.mubr.msk.bf16.gmra.mrb[24].mxu0 %vm684_vm2, %v5758_v42  ;;  %v12279_v42 = vld [vmem:[#allocation80_spill] sm:$0xff] }
 0x214   : > { %8179 = vmatprep.mubr.msk.bf16.mxu0 %vm684_vm2, %v12276_v63  ;;  %v12282_v63 = vld [vmem:[#allocation4_spill] sm:$0xff]  ;;  %v2909_v54 = vsel %vm441_vm1, %v2906_v7, %v2908_v53 }
 0x215   : > { %v5762_v4 = vpack.c.bf16 %v5617_v21, %v12282_v63  ;;  %v2907_v21 = vsel %vm441_vm1, %v2905_v10, %v2906_v7  ;;  %v12288_v63 = vld [vmem:[#allocation51_spill] sm:$0xff]  ;;  %v12292_v7 = vld [vmem:[#allocation17_spill] sm:$0xff] }
 0x219   : > { %7882 = vmatmul.mubr.msk.bf16.gmra.mrb[60].mxu1 %vm684_vm2, %v12279_v42  ;;  %v12285_v42 = vld [vmem:[#allocation6_spill] sm:$0xff] }
 0x21a   : > { %7919 = vmatprep.mubr.msk.bf16.mxu1 %vm684_vm2, %v3030_v41  ;;  %v2893_v41 = vsel %vm441_vm1, %v2890_v51, %v2892_v48  ;;  %v2903_v51 = vrot.slane %v8869_v33, 2  ;;  %v5764_v16 = vpack.c.bf16 %v5626_v20, %v12285_v42  ;;  %v2910_v48 = vrot.slane %v10805_v32, 2 }
 0x21b   : > { %8180 = vmatmul.mubr.msk.bf16.gmra.mrb[28].mxu0 %vm684_vm2, %v5760_v58  ;;  %v12283_v58 = vld [vmem:[#allocation11_spill] sm:$0xff]  ;;  %v3033_v46 = vpack.c.bf16 %v2895_v62, %v2893_v41  ;;  %v2916_v62 = vsel %vm441_vm1, %v2914_v31, %v2915_v52  ;;  %v2921_v20 = vrot.slane %v8871_v6, 2  ;;  %v2924_v33 = vrot.slane %v10868_v11, 2  ;;  %v12293_v11 = vld [vmem:[#allocation18_spill] sm:$0xff] }
 0x21c   : > { %8183 = vmatprep.mubr.msk.bf16.mxu0 %vm684_vm2, %v12280_v1  ;;  %v5634_v1 = vrot.slane %v10951_v38, 4  ;;  %v2904_v30 = vsel %vm441_vm1, %v2901_v22, %v2903_v51  ;;  %v2911_v41 = vsel %vm441_vm1, %v2908_v53, %v2910_v48  ;;  %v2913_v32 = vsel %vm441_vm1, %v2910_v48, %v2912_v18  ;;  %v12297_v18 = vld [vmem:[#allocation22_spill] sm:$0xff]  ;;  %v8874_v52 = vld [vmem:[%s9001_s9 + $0x2c8] sm:$0xf] }
 0x21d   : > { %v3035_v2 = vpack.c.bf16 %v2904_v30, %v2902_v56  ;;  %v3037_v0 = vpack.c.bf16 %v2913_v32, %v2911_v41  ;;  %v3038_v14 = vpack.c.bf16 %v2918_v44, %v2916_v62  ;;  %v2923_v22 = vrot.slane %v10864_v40, 2  ;;  %v8872_v56 = vld [vmem:[%s9001_s9 + $0x278] sm:$0xf] }
 0x21e   : > { %v5635_v38 = vsel %vm1462_vm3, %v12287_v25, %v5634_v1  ;;  %v2926_v51 = vrot.slane %v12266_v37, 2  ;;  %v5652_v42 = vrot.slane %v10988_v29, 4  ;;  %v2928_v1 = vrot.slane %v10902_v23, 2  ;;  %v12296_v23 = vld [vmem:[#allocation21_spill] sm:$0xff] }
 0x21f   : > { %v2925_v10 = vsel %vm441_vm1, %v2923_v22, %v2924_v33  ;;  %v2930_v30 = vrot.slane %v8872_v56, 2 }
 0x220   : > { %v2927_v40 = vsel %vm441_vm1, %v2924_v33, %v2926_v51  ;;  %v5653_v29 = vsel %vm1462_vm3, %v12293_v11, %v5652_v42  ;;  %v2929_v25 = vsel %vm441_vm1, %v2926_v51, %v2928_v1 }
 0x221   : > { %7920 = vmatmul.mubr.msk.bf16.vlgmr.msra.gmra.mrb[32].mxu1 %vm684_vm2, %v3031_v3  ;;  %v12286_v3 = vld [vmem:[#allocation12_spill] sm:$0xff]  ;;  %v3040_v53 = vpack.c.bf16 %v2927_v40, %v2925_v10  ;;  %v11422_v10 = vld [vmem:[%s11794_s2] ss:$0 sm:$0xff] }
 0x222   : > { %7923 = vmatprep.mubr.msk.bf16.mxu1 %vm684_vm2, %v3032_v5  ;;  %v3036_v5 = vpack.c.bf16 %v2909_v54, %v2907_v21  ;;  %v12294_v21 = vld [vmem:[#allocation19_spill] sm:$0xff] }
 0x223   : > { %8184 = vmatmul.mubr.msk.bf16.gmra.mrb[32].mxu0 %vm684_vm2, %v5762_v4  ;;  %v5766_v4 = vpack.c.bf16 %v5635_v38, %v12288_v63  ;;  %v5770_v54 = vpack.c.bf16 %v5653_v29, %v12294_v21  ;;  %v2931_v38 = vsel %vm441_vm1, %v2928_v1, %v2930_v30 }
 0x224   : > { %8187 = vmatprep.mubr.msk.bf16.mxu0 %vm684_vm2, %v12283_v58  ;;  %v2919_v58 = vrot.slane %v10858_v12, 2  ;;  %v3041_v48 = vpack.c.bf16 %v2931_v38, %v2929_v25 }
 0x226   : > { %v2922_v12 = vsel %vm441_vm1, %v2919_v58, %v2921_v20 }
 0x229   : > { %7924 = vmatmul.mubr.msk.bf16.gmra.mrb[36].mxu1 %vm684_vm2, %v3033_v46  ;;  %v12291_v46 = vld [vmem:[#allocation16_spill] sm:$0xff] }
 0x22a   : > { %7927 = vmatprep.mubr.msk.bf16.mxu1 %vm684_vm2, %v3034_v47  ;;  %v5768_v47 = vpack.c.bf16 %v5644_v26, %v12291_v46 }
 0x22b   : > { %8188 = vmatmul.mubr.msk.bf16.gmra.mrb[36].mxu0 %vm684_vm2, %v5764_v16  ;;  %v2920_v16 = vsel %vm441_vm1, %v2917_v8, %v2919_v58  ;;  %v2948_v8 = vrot.slane %v8874_v52, 2 }
 0x22c   : > { %8191 = vmatprep.mubr.msk.bf16.mxu0 %vm684_vm2, %v12286_v3  ;;  %v3039_v37 = vpack.c.bf16 %v2922_v12, %v2920_v16  ;;  %v5661_v3 = vrot.slane %v11018_v57, 4  ;;  %v2939_v57 = vrot.slane %v8873_v43, 2 }
 0x231   : > { %7928 = vmatmul.mubr.msk.bf16.gmra.mrb[40].mxu1 %vm684_vm2, %v3035_v2  ;;  %v12295_v2 = vld [vmem:[#allocation20_spill] sm:$0xff] }
 0x232   : > { %7931 = vmatprep.mubr.msk.bf16.mxu1 %vm684_vm2, %v3036_v5  ;;  %v5662_v5 = vsel %vm1462_vm3, %v12296_v23, %v5661_v3 }
 0x233   : > { %8192 = vmatmul.mubr.msk.bf16.gmra.mrb[40].mxu0 %vm684_vm2, %v5766_v4  ;;  %v5772_v63 = vpack.c.bf16 %v5662_v5, %v12297_v18  ;;  %v2940_v4 = vsel %vm441_vm1, %v10994_v13, %v2939_v57  ;;  %v12299_v13 = vpack.c.bf16 %v11076_v39, %v11073_v49 }
 0x234   : > { %8195 = vmatprep.mubr.msk.bf16.mxu0 %vm684_vm2, %v12289_v9  ;;  %v3043_v31 = vpack.c.bf16 %v2940_v4, %v11009_v60 }
 0x239   : > { %7932 = vmatmul.mubr.msk.bf16.gmra.mrb[44].mxu1 %vm684_vm2, %v3037_v0 }
 0x23a   : > { %7935 = vmatprep.mubr.msk.bf16.mxu1 %vm684_vm2, %v3038_v14 }
 0x23b   : > { %8196 = vmatmul.mubr.msk.bf16.gmra.mrb[44].mxu0 %vm684_vm2, %v5768_v47 }
 0x23c   : > { %8199 = vmatprep.mubr.msk.bf16.mxu0 %vm684_vm2, %v12292_v7 }
 0x241   : > { %7936 = vmatmul.mubr.msk.bf16.gmra.mrb[48].mxu1 %vm684_vm2, %v3039_v37 }
 0x242   : > { %7939 = vmatprep.mubr.msk.bf16.mxu1 %vm684_vm2, %v3040_v53 }
 0x243   : > { %8200 = vmatmul.mubr.msk.bf16.gmra.mrb[48].mxu0 %vm684_vm2, %v5770_v54 }
 0x244   : > { %8203 = vmatprep.mubr.msk.bf16.mxu0 %vm684_vm2, %v12295_v2 }
 0x249   : > { %7940 = vmatmul.mubr.msk.bf16.gmra.mrb[52].mxu1 %vm684_vm2, %v3041_v48 }
 0x24a   : > { %7943 = vmatprep.mubr.msk.bf16.mxu1 %vm684_vm2, %v10996_v35  ;;  %v2949_v35 = vsel %vm441_vm1, %v11024_v27, %v2948_v8 }
 0x24b   : > { %8204 = vmatmul.mubr.msk.bf16.gmra.mrb[52].mxu0 %vm684_vm2, %v5772_v63  ;;  %v3045_v60 = vpack.c.bf16 %v2949_v35, %v11036_v50 }
 0x24c   : > { %8207 = vmatprep.mubr.msk.bf16.mxu0 %vm684_vm2, %v5773_v55 }
 0x251   : > { %7944 = vmatmul.mubr.msk.bf16.gmra.mrb[56].mxu1 %vm684_vm2, %v3043_v31 }
 0x252   : > { %7947 = vmatprep.mubr.msk.bf16.mxu1 %vm684_vm2, %v12298_v59 }
 0x253   : > { %8208 = vmatmul.mubr.msk.bf16.gmra.mrb[56].mxu0 %vm684_vm2, %v12299_v13 }
 0x254   : > { %8211 = vmatprep.mubr.msk.bf16.mxu0 %vm684_vm2, %v5775_v45 }
 0x259   : > { %7948 = vmatmul.mubr.msk.bf16.gmra.mrb[60].mxu1 %vm684_vm2, %v3045_v60 }
 0x25b   : > { %8212 = vmatmul.mubr.msk.bf16.gmra.mrb[60].mxu0 %vm684_vm2, %v5776_v36 }
 0x274   : > { %v7823_v27 = vpop.f32.mrb[0].mxu1 }
 0x275   : > { %v2407_v15 = vpop.f32.mrb[1].mxu1 }
 0x276   : > { %v7824_v61 = vpop.f32.mrb[2].mxu1 }
 0x277   : > { %v2410_v55 = vpop.f32.mrb[3].mxu1 }
 0x27c   : > { %v7827_v49 = vpop.f32.mrb[4].mxu1 }
 0x27d   : > { %v11363_v39 = vpop.f32.mrb[5].mxu1 }
 0x27e   : > { %v11365_v41 = vpop.f32.mrb[6].mxu1 }
 0x27f   : > { %v11367_v24 = vpop.f32.mrb[7].mxu1 }
 0x284   : > { %v11369_v34 = vpop.f32.mrb[8].mxu1 }
 0x285   : > { %v11371_v50 = vpop.f32.mrb[9].mxu1 }
 0x286   : > { %v11373_v45 = vpop.f32.mrb[10].mxu1 }
 0x287   : > { %v11375_v28 = vpop.f32.mrb[11].mxu1 }
 0x28c   : > { %v11377_v19 = vpop.f32.mrb[12].mxu1 }
 0x28d   : > { %v11379_v36 = vpop.f32.mrb[13].mxu1 }
 0x28e   : > { %v11381_v32 = vpop.f32.mrb[14].mxu1 }
 0x28f   : > { %v11383_v62 = vpop.f32.mrb[15].mxu1 }
 0x294   : > { %v11385_v44 = vpop.f32.mrb[16].mxu1 }
 0x295   : > { %v11387_v9 = vpop.f32.mrb[17].mxu1 }
 0x296   : > { %v11389_v17 = vpop.f32.mrb[18].mxu1 }
 0x297   : > { %v11391_v26 = vpop.f32.mrb[19].mxu1 }
 0x29c   : > { %v11393_v0 = vpop.f32.mrb[20].mxu1 }
 0x29d   : > { %v11395_v14 = vpop.f32.mrb[21].mxu1 }
 0x29e   : > { %v11397_v58 = vpop.f32.mrb[22].mxu1 }
 0x29f   : > { %v11399_v6 = vpop.f32.mrb[23].mxu1 }
 0x2a4   : > { %v11401_v20 = vpop.f32.mrb[24].mxu1 }
 0x2a5   : > { %v11404_v46 = vpop.f32.mrb[25].mxu1 }
 0x2a6   : > { %v11406_v47 = vpop.f32.mrb[26].mxu1 }
 0x2a7   : > { %v11408_v22 = vpop.f32.mrb[27].mxu1 }
 0x2ac   : > { %v11410_v33 = vpop.f32.mrb[28].mxu1 }
 0x2ad   : > { %v11412_v51 = vpop.f32.mrb[29].mxu1 }
 0x2ae   : > { %v11414_v42 = vpop.f32.mrb[30].mxu1 }
 0x2af   : > { %v11416_v16 = vpop.f32.mrb[31].mxu1 }
 0x2b6   : > { %v8153_v12 = vpop.f32.mrb[0].mxu0 }
 0x2b7   : > { %v8217_v40 = vadd.f32 %v8153_v12, %v7823_v27  ;;  %v5912_v7 = vpop.f32.mrb[1].mxu0 }
 0x2b8   : > { %v8218_v11 = vadd.f32 %v5912_v7, %v2407_v15  ;;  %v8154_v29 = vpop.f32.mrb[2].mxu0 }
 0x2b9   : > { %v6240_v37 = vadd.f32 %v8217_v40, %v11422_v10  ;;  %v8219_v53 = vadd.f32 %v8154_v29, %v7824_v61  ;;  %v5915_v1 = vpop.f32.mrb[3].mxu0 }
 0x2ba   : > { %v6238_v56 = vadd.f32 %v8218_v11, %v11422_v10  ;;  %v8220_v30 = vadd.f32 %v5915_v1, %v2410_v55 }
 0x2bb   : > { %6304 = vst.msk [vmem:[%s11427_s12 + $0x10] sm:$0xff] %vm684_vm2, %v6240_v37  ;;  %v6241_v21 = vadd.f32 %v8219_v53, %v11422_v10  ;;  %v6501_v25 = vmul.f32 %v6240_v37, %v6240_v37  ;;  %v6369_v63 = vsel %vm684_vm2, %v6240_v37, 0.0 }
 0x2bc   : > { %6302 = vst.msk [vmem:[%s11427_s12] sm:$0xff] %vm684_vm2, %v6238_v56  ;;  %v6499_v54 = vmul.f32 %v6238_v56, %v6238_v56  ;;  %v6239_v3 = vadd.f32 %v8220_v30, %v11422_v10  ;;  %v6366_v38 = vsel %vm684_vm2, %v6238_v56, 0.0 }
 0x2bd   : > { %6305 = vst.msk [vmem:[%s11427_s12 + $0x18] sm:$0xff] %vm684_vm2, %v6241_v21  ;;  %v6502_v48 = vmul.f32 %v6241_v21, %v6241_v21  ;;  %v6566_v15 = vsel %vm684_vm2, %v6501_v25, 0.0  ;;  %v6371_v61 = vsel %vm684_vm2, %v6241_v21, 0.0 }
 0x2be   : > { %6303 = vst.msk [vmem:[%s11427_s12 + $0x8] sm:$0xff] %vm684_vm2, %v6239_v3  ;;  %v6367_v2 = vsel %vm684_vm2, %v6239_v3, 0.0  ;;  %v6500_v23 = vmul.f32 %v6239_v3, %v6239_v3  ;;  %v8157_v5 = vpop.f32.mrb[4].mxu0  ;;  %v6563_v4 = vsel %vm684_vm2, %v6499_v54, 0.0 }
 0x2bf   : > { %v6368_v43 = vadd.f32 %v6367_v2, %v6366_v38  ;;  %v8221_v57 = vadd.f32 %v8157_v5, %v7827_v49  ;;  %v5928_v18 = vpop.f32.mrb[5].mxu0 }
 0x2c0   : > { %v6564_v31 = vsel %vm684_vm2, %v6500_v23, 0.0  ;;  %v8222_v52 = vadd.f32 %v5928_v18, %v11363_v39  ;;  %v8158_v8 = vpop.f32.mrb[6].mxu0  ;;  %v6568_v39 = vsel %vm684_vm2, %v6502_v48, 0.0 }
 0x2c1   : > { %v6370_v59 = vadd.f32 %v6369_v63, %v6368_v43  ;;  %v6565_v35 = vadd.f32 %v6564_v31, %v6563_v4  ;;  %v6244_v13 = vadd.f32 %v8221_v57, %v11422_v10  ;;  %v8223_v60 = vadd.f32 %v8158_v8, %v11365_v41  ;;  %v5931_v27 = vpop.f32.mrb[7].mxu0 }
 0x2c2   : > { %v6242_v55 = vadd.f32 %v8222_v52, %v11422_v10  ;;  %v8224_v49 = vadd.f32 %v5931_v27, %v11367_v24 }
 0x2c3   : > { %v6567_v12 = vadd.f32 %v6566_v15, %v6565_v35  ;;  %6308 = vst.msk [vmem:[%s11427_s12 + $0x30] sm:$0xff] %vm684_vm2, %v6244_v13  ;;  %v6372_v40 = vadd.f32 %v6371_v61, %v6370_v59  ;;  %v6245_v11 = vadd.f32 %v8223_v60, %v11422_v10  ;;  %v6505_v1 = vmul.f32 %v6244_v13, %v6244_v13 }
 0x2c4   : > { %6306 = vst.msk [vmem:[%s11427_s12 + $0x20] sm:$0xff] %vm684_vm2, %v6242_v55  ;;  %v6373_v41 = vsel %vm684_vm2, %v6242_v55, 0.0  ;;  %v6503_v7 = vmul.f32 %v6242_v55, %v6242_v55  ;;  %v6243_v29 = vadd.f32 %v8224_v49, %v11422_v10  ;;  %v6377_v2 = vsel %vm684_vm2, %v6244_v13, 0.0 }
 0x2c5   : > { %v6374_v37 = vadd.f32 %v6373_v41, %v6372_v40  ;;  %v6569_v53 = vadd.f32 %v6568_v39, %v6567_v12  ;;  %6309 = vst.msk [vmem:[%s11427_s12 + $0x38] sm:$0xff] %vm684_vm2, %v6245_v11  ;;  %v6506_v23 = vmul.f32 %v6245_v11, %v6245_v11 }
 0x2c6   : > { %v6570_v24 = vsel %vm684_vm2, %v6503_v7, 0.0  ;;  %6307 = vst.msk [vmem:[%s11427_s12 + $0x28] sm:$0xff] %vm684_vm2, %v6243_v29  ;;  %v6375_v56 = vsel %vm684_vm2, %v6243_v29, 0.0  ;;  %v8161_v30 = vpop.f32.mrb[8].mxu0  ;;  %v6504_v3 = vmul.f32 %v6243_v29, %v6243_v29 }
 0x2c7   : > { %v6571_v21 = vadd.f32 %v6570_v24, %v6569_v53  ;;  %v6376_v54 = vadd.f32 %v6375_v56, %v6374_v37  ;;  %v8225_v25 = vadd.f32 %v8161_v30, %v11369_v34  ;;  %v5944_v38 = vpop.f32.mrb[9].mxu0  ;;  %v6379_v34 = vsel %vm684_vm2, %v6245_v11, 0.0 }
 0x2c8   : > { %v8226_v5 = vadd.f32 %v5944_v38, %v11371_v50  ;;  %v8162_v48 = vpop.f32.mrb[10].mxu0  ;;  %v6572_v57 = vsel %vm684_vm2, %v6504_v3, 0.0  ;;  %v6574_v50 = vsel %vm684_vm2, %v6505_v1, 0.0  ;;  %v6576_v15 = vsel %vm684_vm2, %v6506_v23, 0.0 }
 0x2c9   : > { %v6378_v43 = vadd.f32 %v6377_v2, %v6376_v54  ;;  %v6248_v18 = vadd.f32 %v8225_v25, %v11422_v10  ;;  %v8227_v63 = vadd.f32 %v8162_v48, %v11373_v45  ;;  %v5947_v4 = vpop.f32.mrb[11].mxu0  ;;  %v6573_v31 = vadd.f32 %v6572_v57, %v6571_v21 }
 0x2ca   : > { %v6246_v52 = vadd.f32 %v8226_v5, %v11422_v10  ;;  %v8228_v8 = vadd.f32 %v5947_v4, %v11375_v28 }
 0x2cb   : > { %6312 = vst.msk [vmem:[%s11427_s12 + $0x50] sm:$0xff] %vm684_vm2, %v6248_v18  ;;  %v6380_v59 = vadd.f32 %v6379_v34, %v6378_v43  ;;  %v6249_v35 = vadd.f32 %v8227_v63, %v11422_v10  ;;  %v6575_v13 = vadd.f32 %v6574_v50, %v6573_v31  ;;  %v6509_v40 = vmul.f32 %v6248_v18, %v6248_v18 }
 0x2cc   : > { %6310 = vst.msk [vmem:[%s11427_s12 + $0x40] sm:$0xff] %vm684_vm2, %v6246_v52  ;;  %v6381_v45 = vsel %vm684_vm2, %v6246_v52, 0.0  ;;  %v6507_v60 = vmul.f32 %v6246_v52, %v6246_v52  ;;  %v6247_v27 = vadd.f32 %v8228_v8, %v11422_v10  ;;  %v6385_v29 = vsel %vm684_vm2, %v6248_v18, 0.0 }
 0x2cd   : > { %v6382_v61 = vadd.f32 %v6381_v45, %v6380_v59  ;;  %6313 = vst.msk [vmem:[%s11427_s12 + $0x58] sm:$0xff] %vm684_vm2, %v6249_v35  ;;  %v6577_v28 = vadd.f32 %v6576_v15, %v6575_v13  ;;  %v6510_v56 = vmul.f32 %v6249_v35, %v6249_v35 }
 0x2ce   : > { %v6578_v55 = vsel %vm684_vm2, %v6507_v60, 0.0  ;;  %6311 = vst.msk [vmem:[%s11427_s12 + $0x48] sm:$0xff] %vm684_vm2, %v6247_v27  ;;  %v6383_v49 = vsel %vm684_vm2, %v6247_v27, 0.0  ;;  %v6508_v39 = vmul.f32 %v6247_v27, %v6247_v27  ;;  %v8165_v12 = vpop.f32.mrb[12].mxu0 }
 0x2cf   : > { %v6384_v41 = vadd.f32 %v6383_v49, %v6382_v61  ;;  %v8229_v7 = vadd.f32 %v8165_v12, %v11377_v19  ;;  %v5960_v11 = vpop.f32.mrb[13].mxu0  ;;  %v6579_v37 = vadd.f32 %v6578_v55, %v6577_v28  ;;  %v6387_v19 = vsel %vm684_vm2, %v6249_v35, 0.0 }
 0x2d0   : > { %v6580_v53 = vsel %vm684_vm2, %v6508_v39, 0.0  ;;  %v8230_v1 = vadd.f32 %v5960_v11, %v11379_v36  ;;  %v8166_v24 = vpop.f32.mrb[14].mxu0  ;;  %v6582_v36 = vsel %vm684_vm2, %v6509_v40, 0.0  ;;  %v6584_v18 = vsel %vm684_vm2, %v6510_v56, 0.0 }
 0x2d1   : > { %v6386_v30 = vadd.f32 %v6385_v29, %v6384_v41  ;;  %v6252_v21 = vadd.f32 %v8229_v7, %v11422_v10  ;;  %v8231_v54 = vadd.f32 %v8166_v24, %v11381_v32  ;;  %v5963_v3 = vpop.f32.mrb[15].mxu0  ;;  %v6581_v25 = vadd.f32 %v6580_v53, %v6579_v37 }
 0x2d2   : > { %v6250_v38 = vadd.f32 %v8230_v1, %v11422_v10  ;;  %v8232_v2 = vadd.f32 %v5963_v3, %v11383_v62 }
 0x2d3   : > { %6316 = vst.msk [vmem:[%s11427_s12 + $0x70] sm:$0xff] %vm684_vm2, %v6252_v21  ;;  %v6388_v23 = vadd.f32 %v6387_v19, %v6386_v30  ;;  %v6253_v5 = vadd.f32 %v8231_v54, %v11422_v10  ;;  %v6583_v48 = vadd.f32 %v6582_v36, %v6581_v25  ;;  %v6513_v8 = vmul.f32 %v6252_v21, %v6252_v21 }
 0x2d4   : > { %6314 = vst.msk [vmem:[%s11427_s12 + $0x60] sm:$0xff] %vm684_vm2, %v6250_v38  ;;  %v6389_v32 = vsel %vm684_vm2, %v6250_v38, 0.0  ;;  %v6511_v43 = vmul.f32 %v6250_v38, %v6250_v38  ;;  %v6251_v57 = vadd.f32 %v8232_v2, %v11422_v10  ;;  %v6393_v13 = vsel %vm684_vm2, %v6252_v21, 0.0 }
 0x2d5   : > { %v6390_v63 = vadd.f32 %v6389_v32, %v6388_v23  ;;  %6317 = vst.msk [vmem:[%s11427_s12 + $0x78] sm:$0xff] %vm684_vm2, %v6253_v5  ;;  %v6585_v62 = vadd.f32 %v6584_v18, %v6583_v48  ;;  %v6514_v61 = vmul.f32 %v6253_v5, %v6253_v5 }
 0x2d6   : > { %v6586_v4 = vsel %vm684_vm2, %v6511_v43, 0.0  ;;  %6315 = vst.msk [vmem:[%s11427_s12 + $0x68] sm:$0xff] %vm684_vm2, %v6251_v57  ;;  %v6391_v34 = vsel %vm684_vm2, %v6251_v57, 0.0  ;;  %v6512_v31 = vmul.f32 %v6251_v57, %v6251_v57  ;;  %v8169_v52 = vpop.f32.mrb[16].mxu0 }
 0x2d7   : > { %v6392_v50 = vadd.f32 %v6391_v34, %v6390_v63  ;;  %v8233_v59 = vadd.f32 %v8169_v52, %v11385_v44  ;;  %v5976_v35 = vpop.f32.mrb[17].mxu0  ;;  %v6587_v45 = vadd.f32 %v6586_v4, %v6585_v62  ;;  %v6395_v44 = vsel %vm684_vm2, %v6253_v5, 0.0 }
 0x2d8   : > { %v6588_v60 = vsel %vm684_vm2, %v6512_v31, 0.0  ;;  %v8234_v27 = vadd.f32 %v5976_v35, %v11387_v9  ;;  %v8170_v15 = vpop.f32.mrb[18].mxu0  ;;  %v6590_v9 = vsel %vm684_vm2, %v6513_v8, 0.0  ;;  %v6592_v1 = vsel %vm684_vm2, %v6514_v61, 0.0 }
 0x2d9   : > { %v6394_v28 = vadd.f32 %v6393_v13, %v6392_v50  ;;  %v6256_v55 = vadd.f32 %v8233_v59, %v11422_v10  ;;  %v8235_v49 = vadd.f32 %v8170_v15, %v11389_v17  ;;  %v5979_v39 = vpop.f32.mrb[19].mxu0  ;;  %v6589_v12 = vadd.f32 %v6588_v60, %v6587_v45 }
 0x2da   : > { %v6254_v40 = vadd.f32 %v8234_v27, %v11422_v10  ;;  %v8236_v41 = vadd.f32 %v5979_v39, %v11391_v26 }
 0x2db   : > { %6320 = vst.msk [vmem:[%s11427_s12 + $0x90] sm:$0xff] %vm684_vm2, %v6256_v55  ;;  %v6396_v7 = vadd.f32 %v6395_v44, %v6394_v28  ;;  %v6257_v11 = vadd.f32 %v8235_v49, %v11422_v10  ;;  %v6591_v29 = vadd.f32 %v6590_v9, %v6589_v12  ;;  %v6517_v3 = vmul.f32 %v6256_v55, %v6256_v55 }
 0x2dc   : > { %6318 = vst.msk [vmem:[%s11427_s12 + $0x80] sm:$0xff] %vm684_vm2, %v6254_v40  ;;  %v6397_v17 = vsel %vm684_vm2, %v6254_v40, 0.0  ;;  %v6515_v37 = vmul.f32 %v6254_v40, %v6254_v40  ;;  %v6255_v53 = vadd.f32 %v8236_v41, %v11422_v10  ;;  %v6401_v2 = vsel %vm684_vm2, %v6256_v55, 0.0 }
 0x2dd   : > { %v6398_v24 = vadd.f32 %v6397_v17, %v6396_v7  ;;  %6321 = vst.msk [vmem:[%s11427_s12 + $0x98] sm:$0xff] %vm684_vm2, %v6257_v11  ;;  %v6593_v26 = vadd.f32 %v6592_v1, %v6591_v29  ;;  %v6518_v32 = vmul.f32 %v6257_v11, %v6257_v11 }
 0x2de   : > { %v6594_v56 = vsel %vm684_vm2, %v6515_v37, 0.0  ;;  %6319 = vst.msk [vmem:[%s11427_s12 + $0x88] sm:$0xff] %vm684_vm2, %v6255_v53  ;;  %v6399_v30 = vsel %vm684_vm2, %v6255_v53, 0.0  ;;  %v6516_v21 = vmul.f32 %v6255_v53, %v6255_v53  ;;  %v8173_v54 = vpop.f32.mrb[20].mxu0 }
 0x2df   : > { %v6400_v19 = vadd.f32 %v6399_v30, %v6398_v24  ;;  %v8237_v25 = vadd.f32 %v8173_v54, %v11393_v0  ;;  %v5992_v38 = vpop.f32.mrb[21].mxu0  ;;  %v6595_v36 = vadd.f32 %v6594_v56, %v6593_v26  ;;  %v6403_v0 = vsel %vm684_vm2, %v6257_v11, 0.0 }
 0x2e0   : > { %v6596_v23 = vsel %vm684_vm2, %v6516_v21, 0.0  ;;  %v8238_v5 = vadd.f32 %v5992_v38, %v11395_v14  ;;  %v8174_v48 = vpop.f32.mrb[22].mxu0  ;;  %v6598_v14 = vsel %vm684_vm2, %v6517_v3, 0.0  ;;  %v6600_v35 = vsel %vm684_vm2, %v6518_v32, 0.0 }
 0x2e1   : > { %v6402_v43 = vadd.f32 %v6401_v2, %v6400_v19  ;;  %v6260_v57 = vadd.f32 %v8237_v25, %v11422_v10  ;;  %v8239_v18 = vadd.f32 %v8174_v48, %v11397_v58  ;;  %v5995_v63 = vpop.f32.mrb[23].mxu0  ;;  %v6597_v62 = vadd.f32 %v6596_v23, %v6595_v36 }
 0x2e2   : > { %v6258_v4 = vadd.f32 %v8238_v5, %v11422_v10  ;;  %v8240_v34 = vadd.f32 %v5995_v63, %v11399_v6 }
 0x2e3   : > { %6324 = vst.msk [vmem:[%s11427_s12 + $0xb0] sm:$0xff] %vm684_vm2, %v6260_v57  ;;  %v6404_v31 = vadd.f32 %v6403_v0, %v6402_v43  ;;  %v6261_v52 = vadd.f32 %v8239_v18, %v11422_v10  ;;  %v6599_v8 = vadd.f32 %v6598_v14, %v6597_v62  ;;  %v6521_v61 = vmul.f32 %v6260_v57, %v6260_v57 }
 0x2e4   : > { %6322 = vst.msk [vmem:[%s11427_s12 + $0xa0] sm:$0xff] %vm684_vm2, %v6258_v4  ;;  %v6405_v58 = vsel %vm684_vm2, %v6258_v4, 0.0  ;;  %v6519_v50 = vmul.f32 %v6258_v4, %v6258_v4  ;;  %v6259_v59 = vadd.f32 %v8240_v34, %v11422_v10  ;;  %v6409_v39 = vsel %vm684_vm2, %v6260_v57, 0.0 }
 0x2e5   : > { %v6406_v13 = vadd.f32 %v6405_v58, %v6404_v31  ;;  %6325 = vst.msk [vmem:[%s11427_s12 + $0xb8] sm:$0xff] %vm684_vm2, %v6261_v52  ;;  %v6601_v6 = vadd.f32 %v6600_v35, %v6599_v8  ;;  %v6522_v9 = vmul.f32 %v6261_v52, %v6261_v52 }
 0x2e6   : > { %v6602_v45 = vsel %vm684_vm2, %v6519_v50, 0.0  ;;  %6323 = vst.msk [vmem:[%s11427_s12 + $0xa8] sm:$0xff] %vm684_vm2, %v6259_v59  ;;  %v6407_v60 = vsel %vm684_vm2, %v6259_v59, 0.0  ;;  %v6520_v27 = vmul.f32 %v6259_v59, %v6259_v59  ;;  %v8177_v15 = vpop.f32.mrb[24].mxu0 }
 0x2e7   : > { %v6408_v28 = vadd.f32 %v6407_v60, %v6406_v13  ;;  %v8241_v55 = vadd.f32 %v8177_v15, %v11401_v20  ;;  %v6008_v49 = vpop.f32.mrb[25].mxu0  ;;  %v6603_v44 = vadd.f32 %v6602_v45, %v6601_v6  ;;  %v6411_v20 = vsel %vm684_vm2, %v6261_v52, 0.0 }
 0x2e8   : > { %v6604_v12 = vsel %vm684_vm2, %v6520_v27, 0.0  ;;  %v8242_v40 = vadd.f32 %v6008_v49, %v11404_v46  ;;  %v8178_v41 = vpop.f32.mrb[26].mxu0  ;;  %v6606_v46 = vsel %vm684_vm2, %v6521_v61, 0.0  ;;  %v6608_v54 = vsel %vm684_vm2, %v6522_v9, 0.0 }
 0x2e9   : > { %v6410_v7 = vadd.f32 %v6409_v39, %v6408_v28  ;;  %v6264_v11 = vadd.f32 %v8241_v55, %v11422_v10  ;;  %v8243_v29 = vadd.f32 %v8178_v41, %v11406_v47  ;;  %v6011_v17 = vpop.f32.mrb[27].mxu0  ;;  %v6605_v37 = vadd.f32 %v6604_v12, %v6603_v44 }
 0x2ea   : > { %v6262_v53 = vadd.f32 %v8242_v40, %v11422_v10  ;;  %v8244_v1 = vadd.f32 %v6011_v17, %v11408_v22 }
 0x2eb   : > { %6328 = vst.msk [vmem:[%s11427_s12 + $0xd0] sm:$0xff] %vm684_vm2, %v6264_v11  ;;  %v6412_v24 = vadd.f32 %v6411_v20, %v6410_v7  ;;  %v6265_v26 = vadd.f32 %v8243_v29, %v11422_v10  ;;  %v6607_v56 = vadd.f32 %v6606_v46, %v6605_v37  ;;  %v6525_v36 = vmul.f32 %v6264_v11, %v6264_v11 }
 0x2ec   : > { %6326 = vst.msk [vmem:[%s11427_s12 + $0xc0] sm:$0xff] %vm684_vm2, %v6262_v53  ;;  %v6413_v47 = vsel %vm684_vm2, %v6262_v53, 0.0  ;;  %v6523_v30 = vmul.f32 %v6262_v53, %v6262_v53  ;;  %v6263_v21 = vadd.f32 %v8244_v1, %v11422_v10  ;;  %v6417_v32 = vsel %vm684_vm2, %v6264_v11, 0.0 }
 0x2ed   : > { %v6414_v3 = vadd.f32 %v6413_v47, %v6412_v24  ;;  %6329 = vst.msk [vmem:[%s11427_s12 + $0xd8] sm:$0xff] %vm684_vm2, %v6265_v26  ;;  %v6609_v22 = vadd.f32 %v6608_v54, %v6607_v56  ;;  %v6526_v0 = vmul.f32 %v6265_v26, %v6265_v26  ;;  %v6614_v58 = vsel %vm684_vm2, %v6525_v36, 0.0 }
 0x2ee   : > { %v6610_v19 = vsel %vm684_vm2, %v6523_v30, 0.0  ;;  %6327 = vst.msk [vmem:[%s11427_s12 + $0xc8] sm:$0xff] %vm684_vm2, %v6263_v21  ;;  %v6415_v25 = vsel %vm684_vm2, %v6263_v21, 0.0  ;;  %v6524_v38 = vmul.f32 %v6263_v21, %v6263_v21  ;;  %v8181_v2 = vpop.f32.mrb[28].mxu0 }
 0x2ef   : > { %v6416_v23 = vadd.f32 %v6415_v25, %v6414_v3  ;;  %v8245_v5 = vadd.f32 %v8181_v2, %v11410_v33  ;;  %v6024_v48 = vpop.f32.mrb[29].mxu0  ;;  %v6611_v43 = vadd.f32 %v6610_v19, %v6609_v22  ;;  %v6419_v33 = vsel %vm684_vm2, %v6265_v26, 0.0 }
 0x2f0   : > { %v6612_v57 = vsel %vm684_vm2, %v6524_v38, 0.0  ;;  %v8246_v18 = vadd.f32 %v6024_v48, %v11412_v51  ;;  %v8182_v63 = vpop.f32.mrb[30].mxu0  ;;  %v6616_v45 = vsel %vm684_vm2, %v6526_v0, 0.0 }
 0x2f1   : > { %v6418_v62 = vadd.f32 %v6417_v32, %v6416_v23  ;;  %v6268_v4 = vadd.f32 %v8245_v5, %v11422_v10  ;;  %v8247_v34 = vadd.f32 %v8182_v63, %v11414_v42  ;;  %v6027_v14 = vpop.f32.mrb[31].mxu0  ;;  %v6613_v31 = vadd.f32 %v6612_v57, %v6611_v43 }
 0x2f2   : > { %v6266_v52 = vadd.f32 %v8246_v18, %v11422_v10  ;;  %v8248_v8 = vadd.f32 %v6027_v14, %v11416_v16 }
 0x2f3   : > { %6332 = vst.msk [vmem:[%s11427_s12 + $0xf0] sm:$0xff] %vm684_vm2, %v6268_v4  ;;  %v6420_v51 = vadd.f32 %v6419_v33, %v6418_v62  ;;  %v6269_v50 = vadd.f32 %v8247_v34, %v11422_v10  ;;  %v6615_v59 = vadd.f32 %v6614_v58, %v6613_v31  ;;  %v6529_v39 = vmul.f32 %v6268_v4, %v6268_v4 }
 0x2f4   : > { %6330 = vst.msk [vmem:[%s11427_s12 + $0xe0] sm:$0xff] %vm684_vm2, %v6266_v52  ;;  %v6421_v42 = vsel %vm684_vm2, %v6266_v52, 0.0  ;;  %v6527_v35 = vmul.f32 %v6266_v52, %v6266_v52  ;;  %v6267_v13 = vadd.f32 %v8248_v8, %v11422_v10  ;;  %v7921_v6 = vpop.f32.mrb[32].mxu1  ;;  %v6425_v9 = vsel %vm684_vm2, %v6268_v4, 0.0 }
 0x2f5   : > { %v6422_v16 = vadd.f32 %v6421_v42, %v6420_v51  ;;  %6333 = vst.msk [vmem:[%s11427_s12 + $0xf8] sm:$0xff] %vm684_vm2, %v6269_v50  ;;  %v3309_v60 = vpop.f32.mrb[33].mxu1  ;;  %v6617_v27 = vadd.f32 %v6616_v45, %v6615_v59  ;;  %v6530_v20 = vmul.f32 %v6269_v50, %v6269_v50  ;;  %v6427_v24 = vsel %vm684_vm2, %v6269_v50, 0.0 }
 0x2f6   : > { %v6618_v15 = vsel %vm684_vm2, %v6527_v35, 0.0  ;;  %6331 = vst.msk [vmem:[%s11427_s12 + $0xe8] sm:$0xff] %vm684_vm2, %v6267_v13  ;;  %v6423_v61 = vsel %vm684_vm2, %v6267_v13, 0.0  ;;  %v6528_v28 = vmul.f32 %v6267_v13, %v6267_v13  ;;  %v8185_v55 = vpop.f32.mrb[32].mxu0  ;;  %v7922_v49 = vpop.f32.mrb[34].mxu1  ;;  %v6622_v30 = vsel %vm684_vm2, %v6529_v39, 0.0 }
 0x2f7   : > { %v6424_v44 = vadd.f32 %v6423_v61, %v6422_v16  ;;  %v8249_v12 = vadd.f32 %v8185_v55, %v7921_v6  ;;  %v6040_v40 = vpop.f32.mrb[33].mxu0  ;;  %v3312_v41 = vpop.f32.mrb[35].mxu1  ;;  %v6619_v7 = vadd.f32 %v6618_v15, %v6617_v27  ;;  %v6624_v2 = vsel %vm684_vm2, %v6530_v20, 0.0 }
 0x2f8   : > { %v6620_v11 = vsel %vm684_vm2, %v6528_v28, 0.0  ;;  %v8250_v29 = vadd.f32 %v6040_v40, %v3309_v60  ;;  %v8186_v17 = vpop.f32.mrb[34].mxu0 }
 0x2f9   : > { %v6426_v37 = vadd.f32 %v6425_v9, %v6424_v44  ;;  %v6272_v53 = vadd.f32 %v8249_v12, %v11422_v10  ;;  %v8251_v1 = vadd.f32 %v8186_v17, %v7922_v49  ;;  %v6043_v46 = vpop.f32.mrb[35].mxu0  ;;  %v6621_v26 = vadd.f32 %v6620_v11, %v6619_v7 }
 0x2fa   : > { %v6270_v56 = vadd.f32 %v8250_v29, %v11422_v10  ;;  %v8252_v47 = vadd.f32 %v6043_v46, %v3312_v41 }
 0x2fb   : > { %6336 = vst.msk [vmem:[%s11427_s12 + $0x110] sm:$0xff] %vm684_vm2, %v6272_v53  ;;  %v6428_v21 = vadd.f32 %v6427_v24, %v6426_v37  ;;  %v6273_v54 = vadd.f32 %v8251_v1, %v11422_v10  ;;  %v6623_v3 = vadd.f32 %v6622_v30, %v6621_v26  ;;  %v6533_v63 = vmul.f32 %v6272_v53, %v6272_v53 }
 0x2fc   : > { %6334 = vst.msk [vmem:[%s11427_s12 + $0x100] sm:$0xff] %vm684_vm2, %v6270_v56  ;;  %v6429_v22 = vsel %vm684_vm2, %v6270_v56, 0.0  ;;  %v6531_v19 = vmul.f32 %v6270_v56, %v6270_v56  ;;  %v6271_v25 = vadd.f32 %v8252_v47, %v11422_v10  ;;  %v7925_v38 = vpop.f32.mrb[36].mxu1  ;;  %v6433_v14 = vsel %vm684_vm2, %v6272_v53, 0.0 }
 0x2fd   : > { %v6430_v36 = vadd.f32 %v6429_v22, %v6428_v21  ;;  %6337 = vst.msk [vmem:[%s11427_s12 + $0x118] sm:$0xff] %vm684_vm2, %v6273_v54  ;;  %v3325_v23 = vpop.f32.mrb[37].mxu1  ;;  %v6625_v5 = vadd.f32 %v6624_v2, %v6623_v3  ;;  %v6534_v58 = vmul.f32 %v6273_v54, %v6273_v54  ;;  %v6435_v35 = vsel %vm684_vm2, %v6273_v54, 0.0 }
 0x2fe   : > { %v6626_v48 = vsel %vm684_vm2, %v6531_v19, 0.0  ;;  %6335 = vst.msk [vmem:[%s11427_s12 + $0x108] sm:$0xff] %vm684_vm2, %v6271_v25  ;;  %v6431_v32 = vsel %vm684_vm2, %v6271_v25, 0.0  ;;  %v6532_v43 = vmul.f32 %v6271_v25, %v6271_v25  ;;  %v8189_v57 = vpop.f32.mrb[36].mxu0  ;;  %v7926_v18 = vpop.f32.mrb[38].mxu1  ;;  %v6630_v16 = vsel %vm684_vm2, %v6533_v63, 0.0 }
 0x2ff   : > { %v6432_v0 = vadd.f32 %v6431_v32, %v6430_v36  ;;  %v8253_v62 = vadd.f32 %v8189_v57, %v7925_v38  ;;  %v6056_v4 = vpop.f32.mrb[37].mxu0  ;;  %v3328_v34 = vpop.f32.mrb[39].mxu1  ;;  %v6627_v33 = vadd.f32 %v6626_v48, %v6625_v5  ;;  %v6632_v39 = vsel %vm684_vm2, %v6534_v58, 0.0 }
 0x300   : > { %v6628_v31 = vsel %vm684_vm2, %v6532_v43, 0.0  ;;  %v8254_v52 = vadd.f32 %v6056_v4, %v3325_v23  ;;  %v8190_v8 = vpop.f32.mrb[38].mxu0 }
 0x301   : > { %v6434_v51 = vadd.f32 %v6433_v14, %v6432_v0  ;;  %v6276_v50 = vadd.f32 %v8253_v62, %v11422_v10  ;;  %v8255_v59 = vadd.f32 %v8190_v8, %v7926_v18  ;;  %v6059_v42 = vpop.f32.mrb[39].mxu0  ;;  %v6629_v13 = vadd.f32 %v6628_v31, %v6627_v33 }
 0x302   : > { %v6274_v6 = vadd.f32 %v8254_v52, %v11422_v10  ;;  %v8256_v45 = vadd.f32 %v6059_v42, %v3328_v34 }
 0x303   : > { %6340 = vst.msk [vmem:[%s11427_s12 + $0x130] sm:$0xff] %vm684_vm2, %v6276_v50  ;;  %v6436_v60 = vadd.f32 %v6435_v35, %v6434_v51  ;;  %v6277_v27 = vadd.f32 %v8255_v59, %v11422_v10  ;;  %v6631_v15 = vadd.f32 %v6630_v16, %v6629_v13  ;;  %v6537_v17 = vmul.f32 %v6276_v50, %v6276_v50 }
 0x304   : > { %6338 = vst.msk [vmem:[%s11427_s12 + $0x120] sm:$0xff] %vm684_vm2, %v6274_v6  ;;  %v6437_v61 = vsel %vm684_vm2, %v6274_v6, 0.0  ;;  %v6535_v28 = vmul.f32 %v6274_v6, %v6274_v6  ;;  %v6275_v55 = vadd.f32 %v8256_v45, %v11422_v10  ;;  %v7929_v49 = vpop.f32.mrb[40].mxu1  ;;  %v6441_v46 = vsel %vm684_vm2, %v6276_v50, 0.0 }
 0x305   : > { %v6438_v44 = vadd.f32 %v6437_v61, %v6436_v60  ;;  %6341 = vst.msk [vmem:[%s11427_s12 + $0x138] sm:$0xff] %vm684_vm2, %v6277_v27  ;;  %v3341_v12 = vpop.f32.mrb[41].mxu1  ;;  %v6633_v40 = vadd.f32 %v6632_v39, %v6631_v15  ;;  %v6538_v30 = vmul.f32 %v6277_v27, %v6277_v27  ;;  %v6443_v19 = vsel %vm684_vm2, %v6277_v27, 0.0 }
 0x306   : > { %v6634_v41 = vsel %vm684_vm2, %v6535_v28, 0.0  ;;  %6339 = vst.msk [vmem:[%s11427_s12 + $0x128] sm:$0xff] %vm684_vm2, %v6275_v55  ;;  %v6439_v9 = vsel %vm684_vm2, %v6275_v55, 0.0  ;;  %v6536_v7 = vmul.f32 %v6275_v55, %v6275_v55  ;;  %v8193_v11 = vpop.f32.mrb[40].mxu0  ;;  %v7930_v29 = vpop.f32.mrb[42].mxu1  ;;  %v6638_v36 = vsel %vm684_vm2, %v6537_v17, 0.0 }
 0x307   : > { %v6440_v20 = vadd.f32 %v6439_v9, %v6438_v44  ;;  %v8257_v37 = vadd.f32 %v8193_v11, %v7929_v49  ;;  %v6072_v53 = vpop.f32.mrb[41].mxu0  ;;  %v3344_v1 = vpop.f32.mrb[43].mxu1  ;;  %v6635_v24 = vadd.f32 %v6634_v41, %v6633_v40  ;;  %v6640_v63 = vsel %vm684_vm2, %v6538_v30, 0.0 }
 0x308   : > { %v6636_v26 = vsel %vm684_vm2, %v6536_v7, 0.0  ;;  %v8258_v56 = vadd.f32 %v6072_v53, %v3341_v12  ;;  %v8194_v47 = vpop.f32.mrb[42].mxu0 }
 0x309   : > { %v6442_v21 = vadd.f32 %v6441_v46, %v6440_v20  ;;  %v6280_v54 = vadd.f32 %v8257_v37, %v11422_v10  ;;  %v8259_v3 = vadd.f32 %v8194_v47, %v7930_v29  ;;  %v6075_v22 = vpop.f32.mrb[43].mxu0  ;;  %v6637_v25 = vadd.f32 %v6636_v26, %v6635_v24 }
 0x30a   : > { %v6278_v38 = vadd.f32 %v8258_v56, %v11422_v10  ;;  %v8260_v2 = vadd.f32 %v6075_v22, %v3344_v1 }
 0x30b   : > { %6344 = vst.msk [vmem:[%s11427_s12 + $0x150] sm:$0xff] %vm684_vm2, %v6280_v54  ;;  %v6444_v23 = vadd.f32 %v6443_v19, %v6442_v21  ;;  %v6281_v5 = vadd.f32 %v8259_v3, %v11422_v10  ;;  %v6639_v48 = vadd.f32 %v6638_v36, %v6637_v25  ;;  %v6541_v8 = vmul.f32 %v6280_v54, %v6280_v54 }
 0x30c   : > { %6342 = vst.msk [vmem:[%s11427_s12 + $0x140] sm:$0xff] %vm684_vm2, %v6278_v38  ;;  %v6445_v32 = vsel %vm684_vm2, %v6278_v38, 0.0  ;;  %v6539_v43 = vmul.f32 %v6278_v38, %v6278_v38  ;;  %v6279_v57 = vadd.f32 %v8260_v2, %v11422_v10  ;;  %v7933_v18 = vpop.f32.mrb[44].mxu1  ;;  %v6449_v42 = vsel %vm684_vm2, %v6280_v54, 0.0 }
 0x30d   : > { %v6446_v0 = vadd.f32 %v6445_v32, %v6444_v23  ;;  %6345 = vst.msk [vmem:[%s11427_s12 + $0x158] sm:$0xff] %vm684_vm2, %v6281_v5  ;;  %v3357_v62 = vpop.f32.mrb[45].mxu1  ;;  %v6641_v4 = vadd.f32 %v6640_v63, %v6639_v48  ;;  %v6542_v16 = vmul.f32 %v6281_v5, %v6281_v5  ;;  %v6451_v28 = vsel %vm684_vm2, %v6281_v5, 0.0 }
 0x30e   : > { %v6642_v34 = vsel %vm684_vm2, %v6539_v43, 0.0  ;;  %6343 = vst.msk [vmem:[%s11427_s12 + $0x148] sm:$0xff] %vm684_vm2, %v6279_v57  ;;  %v6447_v14 = vsel %vm684_vm2, %v6279_v57, 0.0  ;;  %v6540_v33 = vmul.f32 %v6279_v57, %v6279_v57  ;;  %v8197_v31 = vpop.f32.mrb[44].mxu0  ;;  %v7934_v52 = vpop.f32.mrb[46].mxu1  ;;  %v6646_v44 = vsel %vm684_vm2, %v6541_v8, 0.0 }
 0x30f   : > { %v6448_v58 = vadd.f32 %v6447_v14, %v6446_v0  ;;  %v8261_v51 = vadd.f32 %v8197_v31, %v7933_v18  ;;  %v6088_v50 = vpop.f32.mrb[45].mxu0  ;;  %v3360_v59 = vpop.f32.mrb[47].mxu1  ;;  %v6643_v35 = vadd.f32 %v6642_v34, %v6641_v4  ;;  %v6648_v17 = vsel %vm684_vm2, %v6542_v16, 0.0 }
 0x310   : > { %v6644_v13 = vsel %vm684_vm2, %v6540_v33, 0.0  ;;  %v8262_v6 = vadd.f32 %v6088_v50, %v3357_v62  ;;  %v8198_v45 = vpop.f32.mrb[46].mxu0 }
 0x311   : > { %v6450_v60 = vadd.f32 %v6449_v42, %v6448_v58  ;;  %v6284_v27 = vadd.f32 %v8261_v51, %v11422_v10  ;;  %v8263_v15 = vadd.f32 %v8198_v45, %v7934_v52  ;;  %v6091_v61 = vpop.f32.mrb[47].mxu0  ;;  %v6645_v55 = vadd.f32 %v6644_v13, %v6643_v35 }
 0x312   : > { %v6282_v49 = vadd.f32 %v8262_v6, %v11422_v10  ;;  %v8264_v39 = vadd.f32 %v6091_v61, %v3360_v59 }
 0x313   : > { %6348 = vst.msk [vmem:[%s11427_s12 + $0x170] sm:$0xff] %vm684_vm2, %v6284_v27  ;;  %v6452_v12 = vadd.f32 %v6451_v28, %v6450_v60  ;;  %v6285_v40 = vadd.f32 %v8263_v15, %v11422_v10  ;;  %v6647_v41 = vadd.f32 %v6646_v44, %v6645_v55  ;;  %v6545_v47 = vmul.f32 %v6284_v27, %v6284_v27 }
 0x314   : > { %6346 = vst.msk [vmem:[%s11427_s12 + $0x160] sm:$0xff] %vm684_vm2, %v6282_v49  ;;  %v6453_v9 = vsel %vm684_vm2, %v6282_v49, 0.0  ;;  %v6543_v7 = vmul.f32 %v6282_v49, %v6282_v49  ;;  %v6283_v11 = vadd.f32 %v8264_v39, %v11422_v10  ;;  %v7937_v29 = vpop.f32.mrb[48].mxu1  ;;  %v6457_v22 = vsel %vm684_vm2, %v6284_v27, 0.0 }
 0x315   : > { %v6454_v20 = vadd.f32 %v6453_v9, %v6452_v12  ;;  %6349 = vst.msk [vmem:[%s11427_s12 + $0x178] sm:$0xff] %vm684_vm2, %v6285_v40  ;;  %v3373_v37 = vpop.f32.mrb[49].mxu1  ;;  %v6649_v53 = vadd.f32 %v6648_v17, %v6647_v41  ;;  %v6546_v36 = vmul.f32 %v6285_v40, %v6285_v40  ;;  %v6459_v43 = vsel %vm684_vm2, %v6285_v40, 0.0 }
 0x316   : > { %v6650_v1 = vsel %vm684_vm2, %v6543_v7, 0.0  ;;  %6347 = vst.msk [vmem:[%s11427_s12 + $0x168] sm:$0xff] %vm684_vm2, %v6283_v11  ;;  %v6455_v46 = vsel %vm684_vm2, %v6283_v11, 0.0  ;;  %v6544_v24 = vmul.f32 %v6283_v11, %v6283_v11  ;;  %v8201_v26 = vpop.f32.mrb[48].mxu0  ;;  %v7938_v56 = vpop.f32.mrb[50].mxu1  ;;  %v6654_v0 = vsel %vm684_vm2, %v6545_v47, 0.0 }
 0x317   : > { %v6456_v30 = vadd.f32 %v6455_v46, %v6454_v20  ;;  %v8265_v21 = vadd.f32 %v8201_v26, %v7937_v29  ;;  %v6104_v54 = vpop.f32.mrb[49].mxu0  ;;  %v3376_v3 = vpop.f32.mrb[51].mxu1  ;;  %v6651_v19 = vadd.f32 %v6650_v1, %v6649_v53  ;;  %v6656_v8 = vsel %vm684_vm2, %v6546_v36, 0.0 }
 0x318   : > { %v6652_v25 = vsel %vm684_vm2, %v6544_v24, 0.0  ;;  %v8266_v38 = vadd.f32 %v6104_v54, %v3373_v37  ;;  %v8202_v2 = vpop.f32.mrb[50].mxu0 }
 0x319   : > { %v6458_v23 = vadd.f32 %v6457_v22, %v6456_v30  ;;  %v6288_v5 = vadd.f32 %v8265_v21, %v11422_v10  ;;  %v8267_v48 = vadd.f32 %v8202_v2, %v7938_v56  ;;  %v6107_v32 = vpop.f32.mrb[51].mxu0  ;;  %v6653_v57 = vadd.f32 %v6652_v25, %v6651_v19 }
 0x31a   : > { %v6286_v18 = vadd.f32 %v8266_v38, %v11422_v10  ;;  %v8268_v63 = vadd.f32 %v6107_v32, %v3376_v3 }
 0x31b   : > { %6352 = vst.msk [vmem:[%s11427_s12 + $0x190] sm:$0xff] %vm684_vm2, %v6288_v5  ;;  %v6460_v62 = vadd.f32 %v6459_v43, %v6458_v23  ;;  %v6289_v4 = vadd.f32 %v8267_v48, %v11422_v10  ;;  %v6655_v34 = vadd.f32 %v6654_v0, %v6653_v57  ;;  %v6549_v45 = vmul.f32 %v6288_v5, %v6288_v5 }
 0x31c   : > { %6350 = vst.msk [vmem:[%s11427_s12 + $0x180] sm:$0xff] %vm684_vm2, %v6286_v18  ;;  %v6461_v14 = vsel %vm684_vm2, %v6286_v18, 0.0  ;;  %v6547_v33 = vmul.f32 %v6286_v18, %v6286_v18  ;;  %v6287_v31 = vadd.f32 %v8268_v63, %v11422_v10  ;;  %v7941_v52 = vpop.f32.mrb[52].mxu1  ;;  %v6465_v61 = vsel %vm684_vm2, %v6288_v5, 0.0 }
 0x31d   : > { %v6462_v58 = vadd.f32 %v6461_v14, %v6460_v62  ;;  %6353 = vst.msk [vmem:[%s11427_s12 + $0x198] sm:$0xff] %vm684_vm2, %v6289_v4  ;;  %v3389_v51 = vpop.f32.mrb[53].mxu1  ;;  %v6657_v50 = vadd.f32 %v6656_v8, %v6655_v34  ;;  %v6550_v44 = vmul.f32 %v6289_v4, %v6289_v4  ;;  %v6467_v7 = vsel %vm684_vm2, %v6289_v4, 0.0  ;;  %v8875_v62 = vld [vmem:[%s11794_s2] ss:$0 sm:$0xff] }
 0x31e   : > { %v6658_v59 = vsel %vm684_vm2, %v6547_v33, 0.0  ;;  %6351 = vst.msk [vmem:[%s11427_s12 + $0x188] sm:$0xff] %vm684_vm2, %v6287_v31  ;;  %v6463_v42 = vsel %vm684_vm2, %v6287_v31, 0.0  ;;  %v6548_v35 = vmul.f32 %v6287_v31, %v6287_v31  ;;  %v8205_v13 = vpop.f32.mrb[52].mxu0  ;;  %v7942_v6 = vpop.f32.mrb[54].mxu1  ;;  %v6662_v20 = vsel %vm684_vm2, %v6549_v45, 0.0 }
 0x31f   : > { %v6464_v16 = vadd.f32 %v6463_v42, %v6462_v58  ;;  %v8269_v60 = vadd.f32 %v8205_v13, %v7941_v52  ;;  %v6120_v27 = vpop.f32.mrb[53].mxu0  ;;  %v3392_v15 = vpop.f32.mrb[55].mxu1  ;;  %v6659_v28 = vadd.f32 %v6658_v59, %v6657_v50  ;;  %v6664_v47 = vsel %vm684_vm2, %v6550_v44, 0.0 }
 0x320   : > { %v6660_v55 = vsel %vm684_vm2, %v6548_v35, 0.0  ;;  %v8270_v49 = vadd.f32 %v6120_v27, %v3389_v51  ;;  %v8206_v39 = vpop.f32.mrb[54].mxu0 }
 0x321   : > { %v6466_v12 = vadd.f32 %v6465_v61, %v6464_v16  ;;  %v6292_v40 = vadd.f32 %v8269_v60, %v11422_v10  ;;  %v8271_v41 = vadd.f32 %v8206_v39, %v7942_v6  ;;  %v6123_v9 = vpop.f32.mrb[55].mxu0  ;;  %v6661_v11 = vadd.f32 %v6660_v55, %v6659_v28 }
 0x322   : > { %v6290_v29 = vadd.f32 %v8270_v49, %v11422_v10  ;;  %v8272_v17 = vadd.f32 %v6123_v9, %v3392_v15 }
 0x323   : > { %6356 = vst.msk [vmem:[%s11427_s12 + $0x1b0] sm:$0xff] %vm684_vm2, %v6292_v40  ;;  %v6468_v37 = vadd.f32 %v6467_v7, %v6466_v12  ;;  %v6293_v53 = vadd.f32 %v8271_v41, %v11422_v10  ;;  %v6663_v1 = vadd.f32 %v6662_v20, %v6661_v11  ;;  %v6553_v2 = vmul.f32 %v6292_v40, %v6292_v40 }
 0x324   : > { %6354 = vst.msk [vmem:[%s11427_s12 + $0x1a0] sm:$0xff] %vm684_vm2, %v6290_v29  ;;  %v6469_v46 = vsel %vm684_vm2, %v6290_v29, 0.0  ;;  %v6551_v24 = vmul.f32 %v6290_v29, %v6290_v29  ;;  %v6291_v26 = vadd.f32 %v8272_v17, %v11422_v10  ;;  %v7945_v56 = vpop.f32.mrb[56].mxu1  ;;  %v6473_v48 = vsel %vm684_vm2, %v6292_v40, 0.0 }
 0x325   : > { %v6470_v30 = vadd.f32 %v6469_v46, %v6468_v37  ;;  %6357 = vst.msk [vmem:[%s11427_s12 + $0x1b8] sm:$0xff] %vm684_vm2, %v6293_v53  ;;  %v3405_v21 = vpop.f32.mrb[57].mxu1  ;;  %v6665_v54 = vadd.f32 %v6664_v47, %v6663_v1  ;;  %v6554_v63 = vmul.f32 %v6293_v53, %v6293_v53  ;;  %v6475_v33 = vsel %vm684_vm2, %v6293_v53, 0.0 }
 0x326   : > { %v6666_v3 = vsel %vm684_vm2, %v6551_v24, 0.0  ;;  %6355 = vst.msk [vmem:[%s11427_s12 + $0x1a8] sm:$0xff] %vm684_vm2, %v6291_v26  ;;  %v6471_v22 = vsel %vm684_vm2, %v6291_v26, 0.0  ;;  %v6552_v19 = vmul.f32 %v6291_v26, %v6291_v26  ;;  %v8209_v25 = vpop.f32.mrb[56].mxu0  ;;  %v7946_v38 = vpop.f32.mrb[58].mxu1  ;;  %v6670_v58 = vsel %vm684_vm2, %v6553_v2, 0.0 }
 0x327   : > { %v6472_v36 = vadd.f32 %v6471_v22, %v6470_v30  ;;  %v8273_v10 = vadd.f32 %v8209_v25, %v7945_v56  ;;  %v6136_v23 = vpop.f32.mrb[57].mxu0  ;;  %v3408_v5 = vpop.f32.mrb[59].mxu1  ;;  %v6667_v32 = vadd.f32 %v6666_v3, %v6665_v54  ;;  %v6672_v45 = vsel %vm684_vm2, %v6554_v63, 0.0 }
 0x328   : > { %v6668_v43 = vsel %vm684_vm2, %v6552_v19, 0.0  ;;  %v8274_v57 = vadd.f32 %v6136_v23, %v3405_v21  ;;  %v8210_v18 = vpop.f32.mrb[58].mxu0 }
 0x329   : > { %v6474_v0 = vadd.f32 %v6473_v48, %v6472_v36  ;;  %v6296_v4 = vadd.f32 %v8875_v62, %v8273_v10  ;;  %v8275_v34 = vadd.f32 %v8210_v18, %v7946_v38  ;;  %v6139_v14 = vpop.f32.mrb[59].mxu0  ;;  %v6669_v31 = vadd.f32 %v6668_v43, %v6667_v32 }
 0x32a   : > { %v6294_v52 = vadd.f32 %v8875_v62, %v8274_v57  ;;  %v8276_v8 = vadd.f32 %v6139_v14, %v3408_v5 }
 0x32b   : > { %6360 = vst.msk [vmem:[%s11427_s12 + $0x1d0] sm:$0xff] %vm684_vm2, %v6296_v4  ;;  %v6476_v51 = vadd.f32 %v6475_v33, %v6474_v0  ;;  %v6297_v50 = vadd.f32 %v8875_v62, %v8275_v34  ;;  %v6671_v59 = vadd.f32 %v6670_v58, %v6669_v31  ;;  %v6557_v39 = vmul.f32 %v6296_v4, %v6296_v4 }
 0x32c   : > { %6358 = vst.msk [vmem:[%s11427_s12 + $0x1c0] sm:$0xff] %vm684_vm2, %v6294_v52  ;;  %v6477_v42 = vsel %vm684_vm2, %v6294_v52, 0.0  ;;  %v6555_v35 = vmul.f32 %v6294_v52, %v6294_v52  ;;  %v6295_v13 = vadd.f32 %v8875_v62, %v8276_v8  ;;  %v7949_v6 = vpop.f32.mrb[60].mxu1  ;;  %v6481_v9 = vsel %vm684_vm2, %v6296_v4, 0.0 }
 0x32d   : > { %v6478_v16 = vadd.f32 %v6477_v42, %v6476_v51  ;;  %6361 = vst.msk [vmem:[%s11427_s12 + $0x1d8] sm:$0xff] %vm684_vm2, %v6297_v50  ;;  %v3421_v60 = vpop.f32.mrb[61].mxu1  ;;  %v6673_v27 = vadd.f32 %v6672_v45, %v6671_v59  ;;  %v6558_v20 = vmul.f32 %v6297_v50, %v6297_v50  ;;  %v6483_v24 = vsel %vm684_vm2, %v6297_v50, 0.0 }
 0x32e   : > { %v6674_v15 = vsel %vm684_vm2, %v6555_v35, 0.0  ;;  %6359 = vst.msk [vmem:[%s11427_s12 + $0x1c8] sm:$0xff] %vm684_vm2, %v6295_v13  ;;  %v6479_v61 = vsel %vm684_vm2, %v6295_v13, 0.0  ;;  %v6556_v28 = vmul.f32 %v6295_v13, %v6295_v13  ;;  %v8213_v55 = vpop.f32.mrb[60].mxu0  ;;  %v7950_v49 = vpop.f32.mrb[62].mxu1  ;;  %v6678_v30 = vsel %vm684_vm2, %v6557_v39, 0.0 }
 0x32f   : > { %v6480_v44 = vadd.f32 %v6479_v61, %v6478_v16  ;;  %v8277_v12 = vadd.f32 %v8213_v55, %v7949_v6  ;;  %v6152_v40 = vpop.f32.mrb[61].mxu0  ;;  %v3424_v41 = vpop.f32.mrb[63].mxu1  ;;  %v6675_v7 = vadd.f32 %v6674_v15, %v6673_v27  ;;  %v6680_v38 = vsel %vm684_vm2, %v6558_v20, 0.0 }
 0x330   : > { %v6676_v11 = vsel %vm684_vm2, %v6556_v28, 0.0  ;;  %v8278_v29 = vadd.f32 %v6152_v40, %v3421_v60  ;;  %v8214_v17 = vpop.f32.mrb[62].mxu0 }
 0x331   : > { %v6482_v37 = vadd.f32 %v6481_v9, %v6480_v44  ;;  %v6300_v53 = vadd.f32 %v8875_v62, %v8277_v12  ;;  %v8279_v1 = vadd.f32 %v8214_v17, %v7950_v49  ;;  %v6155_v46 = vpop.f32.mrb[63].mxu0  ;;  %v6677_v26 = vadd.f32 %v6676_v11, %v6675_v7 }
 0x332   : > { %v6298_v56 = vadd.f32 %v8875_v62, %v8278_v29  ;;  %v8280_v47 = vadd.f32 %v6155_v46, %v3424_v41 }
 0x333   : > { %6364 = vst.msk [vmem:[%s11427_s12 + $0x1f0] sm:$0xff] %vm684_vm2, %v6300_v53  ;;  %v6484_v21 = vadd.f32 %v6483_v24, %v6482_v37  ;;  %v6301_v54 = vadd.f32 %v8875_v62, %v8279_v1  ;;  %v6679_v3 = vadd.f32 %v6678_v30, %v6677_v26  ;;  %v6561_v48 = vmul.f32 %v6300_v53, %v6300_v53 }
 0x334   : > { %6362 = vst.msk [vmem:[%s11427_s12 + $0x1e0] sm:$0xff] %vm684_vm2, %v6298_v56  ;;  %v6485_v22 = vsel %vm684_vm2, %v6298_v56, 0.0  ;;  %v6559_v19 = vmul.f32 %v6298_v56, %v6298_v56  ;;  %v6299_v25 = vadd.f32 %v8875_v62, %v8280_v47  ;;  %v6489_v43 = vsel %vm684_vm2, %v6300_v53, 0.0 }
 0x335   : > { %v6486_v2 = vadd.f32 %v6485_v22, %v6484_v21  ;;  %6365 = vst.msk [vmem:[%s11427_s12 + $0x1f8] sm:$0xff] %vm684_vm2, %v6301_v54  ;;  %v6681_v36 = vadd.f32 %v6680_v38, %v6679_v3  ;;  %v6562_v63 = vmul.f32 %v6301_v54, %v6301_v54  ;;  %v6491_v62 = vsel %vm684_vm2, %v6301_v54, 0.0 }
 0x336   : > { %v6682_v10 = vsel %vm684_vm2, %v6559_v19, 0.0  ;;  %6363 = vst.msk [vmem:[%s11427_s12 + $0x1e8] sm:$0xff] %vm684_vm2, %v6299_v25  ;;  %v6487_v23 = vsel %vm684_vm2, %v6299_v25, 0.0  ;;  %v6560_v5 = vmul.f32 %v6299_v25, %v6299_v25  ;;  %v6686_v34 = vsel %vm684_vm2, %v6561_v48, 0.0 }
 0x337   : > { %v6488_v32 = vadd.f32 %v6487_v23, %v6486_v2  ;;  %v6683_v57 = vadd.f32 %v6682_v10, %v6681_v36  ;;  %v6688_v31 = vsel %vm684_vm2, %v6562_v63, 0.0 }
 0x338   : > { %v6684_v18 = vsel %vm684_vm2, %v6560_v5, 0.0 }
 0x339   : > { %v6490_v0 = vadd.f32 %v6489_v43, %v6488_v32  ;;  %v6685_v4 = vadd.f32 %v6684_v18, %v6683_v57 }
 0x33b   : > { %v6492_v14 = vadd.f32 %v6491_v62, %v6490_v0  ;;  %v6687_v33 = vadd.f32 %v6686_v34, %v6685_v4 }
 0x33d   : > { %v6493_v52 = vrot.slane %v6492_v14, 4  ;;  %v6689_v8 = vadd.f32 %v6688_v31, %v6687_v33 }
 0x33f   : > { %v6494_v58 = vadd.f32 %v6493_v52, %v6492_v14  ;;  %v6690_v51 = vrot.slane %v6689_v8, 4 }
 0x341   : > { %v6495_v50 = vrot.slane %v6494_v58, 2  ;;  %v6691_v59 = vadd.f32 %v6690_v51, %v6689_v8 }
 0x343   : > { %v6496_v42 = vadd.f32 %v6495_v50, %v6494_v58  ;;  %v6692_v35 = vrot.slane %v6691_v59, 2 }
 0x345   : > { %v6497_v13 = vrot.slane %v6496_v42, 1  ;;  %v6693_v6 = vadd.f32 %v6692_v35, %v6691_v59 }
 0x347   : > { %v6694_v45 = vrot.slane %v6693_v6, 1  ;;  %v6498_v16 = vadd.f32 %v6497_v13, %v6496_v42 }
 0x349   : > { %v6695_v60 = vadd.f32 %v6694_v45, %v6693_v6 }
 0x34b   : > { %v6697_v27 = vsel %vm6696_vm4, %v6498_v16, %v6695_v60 }
 0x34c   : > { %6699 = vst.msk [vmem:[%s243_s27] sm:$0x3] %vm6698_vm5, %v6697_v27 }
 0x34d PF: > { %s15_s19 = sadd.s32 1, %s8914_s19   ;;  %s12300_s15 = smov %s8906_s17 }
 0x34e   : > { %p12_p8 = scmp.ge.s32.totalorder %s15_s19, 6   ;;  %s12301_s16 = smov %s8910_s18 }
 0x34f   : > { %s12302_s17 = smov %s12305_s20  ;;  %s12303_s18 = smov %s12309_s21 }
 0x350   :  { %14 = sbr.rel (!%p12_p8) target bundleno = 3 (0x3), region = 85 }

</bundles_post_ra>
